<compile_context>
chip_gen: v6e
topology: v6e:2x2x1
jax: 0.10.0
libtpu: 0.0.40
codegen_flags: <defaults>
</compile_context>

<pallas_src>
import functools

import numpy as np

import jax
import jax.numpy as jnp
from jax.experimental import pallas as pl
from jax.experimental.pallas import tpu as pltpu


# ----------------------------- Pallas kernels -------------------------------

def _conv3x3_relu_kernel(x_ref, w_ref, b_ref, m_ref, o_ref, *, H, W):
    """3x3 'same' conv + bias + ReLU for one image, channel-major layout.

    x_ref: (1, Cin, Lext) bf16 -- zero-padded (H+2)x(W+2) image flattened to
           P=(H+2)*(W+2) lanes, extended by padl=(W+3) zero lanes on each side
           so every conv tap is a static in-VMEM lane slice (no HBM im2col).
    w_ref: (9, Cout, Cin) bf16 -- per-tap transposed weights.
    b_ref: (Cout, 1) f32
    m_ref: (1, P) f32 -- interior mask (1 inside the HxW image, 0 on pad ring).
    o_ref: (1, Cout, Lext) bf16 -- written in the SAME extended-padded layout,
           so the next conv layer consumes it without any XLA pad/crop.
    """
    Hp, Wp = H + 2, W + 2
    P = Hp * Wp
    padl = Wp + 1
    cout = w_ref.shape[1]
    x = x_ref[0]                                               # (Cin, Lext) bf16
    acc = jnp.zeros((cout, P), jnp.float32)
    for t in range(9):                                         # unrolled taps
        ky, kx = t // 3, t % 3
        s = ky * Wp + kx                                       # static lane offset
        acc = acc + jnp.dot(w_ref[t], x[:, s:s + P],
                            preferred_element_type=jnp.float32)
    act = jnp.maximum(acc + b_ref[...], 0.0) * m_ref[...]      # f32 bias+ReLU+mask
    edge = jnp.zeros((cout, padl), o_ref.dtype)
    o_ref[0, :, :padl] = edge                                  # zero ext strips
    o_ref[0, :, padl + P:] = edge
    o_ref[0, :, padl:padl + P] = act.astype(o_ref.dtype)


def _head_loss_kernel(fx_ref, fy_ref, w1_ref, b1_ref, w2_ref, b2_ref,
                      w3_ref, b3_ref, o_ref, *, tau, eps):
    """Fused VGG classifier (3 FC layers, x and y branches) + ContrastiveLoss."""

    def mlp(f_bf16):
        h = jnp.dot(f_bf16, w1_ref[...], preferred_element_type=jnp.float32)
        h = jnp.maximum(h + b1_ref[...], 0.0)
        # TODO(synk): Dropout treated as identity (eval semantics; no RNG state).
        h = jnp.dot(h.astype(jnp.bfloat16), w2_ref[...],
                    preferred_element_type=jnp.float32)
        h = jnp.maximum(h + b2_ref[...], 0.0)
        h = jnp.dot(h.astype(jnp.bfloat16), w3_ref[...],
                    preferred_element_type=jnp.float32)
        return h + b3_ref[...]                                 # (B, FC_OUT) f32

    x = mlp(fx_ref[...])
    y = mlp(fy_ref[...])
    B = x.shape[0]

    # cos(x_i, y_j) = (x_i/max(||x_i||,eps)) . (y_j/max(||y_j||,eps))
    # (per-vector eps clamp, matching torch.nn.CosineSimilarity in practice).
    xn = jnp.sqrt(jnp.sum(x * x, axis=-1, keepdims=True))      # (B, 1)
    yn = jnp.sqrt(jnp.sum(y * y, axis=-1, keepdims=True))      # (B, 1)
    xh = x * pl.reciprocal(jnp.maximum(xn, eps), approx=True)
    yh = y * pl.reciprocal(jnp.maximum(yn, eps), approx=True)
    cos = jax.lax.dot_general(xh, yh, (((1,), (1,)), ((), ())),
                              preferred_element_type=jnp.float32)   # (B, B)
    cos_diag = jnp.sum(xh * yh, axis=-1, keepdims=True)             # (B, 1)

    inv_tau = 1.0 / tau
    E = jnp.exp(cos * inv_tau)
    E_diag = jnp.exp(cos_diag * inv_tau)

    # Reference denominator: sum_j(E_ij + eps) + eps == sum_j E_ij + (B + 1)*eps
    extra = (B + 1.0) * eps
    denom_row = jnp.sum(E, axis=1, keepdims=True) + extra           # (B, 1)
    denom_col = jnp.sum(E, axis=0, keepdims=True) + extra           # (1, B)

    sum_log_diag = jnp.sum(jnp.log(E_diag), keepdims=True)          # (1, 1)
    sum_log_row = jnp.sum(jnp.log(denom_row), keepdims=True)        # (1, 1)
    sum_log_col = jnp.sum(jnp.log(denom_col), keepdims=True)        # (1, 1)

    scale = -1.0 / (2.0 * B)
    o_ref[...] = scale * (2.0 * sum_log_diag - sum_log_row - sum_log_col)


# ------------------------------ Pallas wrappers ------------------------------

def conv3x3_relu_ext(x_ext, w9, b, mask, *, H, W):
    """(N2, Cin, Lext) bf16 -> (N2, Cout, Lext) bf16, same extended-padded layout."""
    N2, Cin, Lext = x_ext.shape
    Cout = w9.shape[1]
    P = (H + 2) * (W + 2)
    return pl.pallas_call(
        functools.partial(_conv3x3_relu_kernel, H=H, W=W),
        out_shape=jax.ShapeDtypeStruct((N2, Cout, Lext), jnp.bfloat16),
        grid=(N2,),
        in_specs=[
            pl.BlockSpec((1, Cin, Lext), lambda n: (n, 0, 0)),
            # Constant index_map: weight/bias/mask tiles are tiny, so any
            # per-step re-DMA from double-buffering is negligible at grid<=4.
            pl.BlockSpec((9, Cout, Cin), lambda n: (0, 0, 0)),
            pl.BlockSpec((Cout, 1), lambda n: (0, 0)),
            pl.BlockSpec((1, P), lambda n: (0, 0)),
        ],
        out_specs=pl.BlockSpec((1, Cout, Lext), lambda n: (n, 0, 0)),
        compiler_params=pltpu.CompilerParams(
            dimension_semantics=("parallel",)),   # v7x: images split across TCs
    )(x_ext, w9, b.reshape(Cout, 1), mask)


def classifier_contrastive_loss(fx, fy, fcs, *, tau=0.07, eps=1e-6):
    """Fused 3-layer classifier (both branches) + ContrastiveLoss -> scalar."""
    (w1, b1), (w2, b2), (w3, b3) = fcs
    out = pl.pallas_call(
        functools.partial(_head_loss_kernel, tau=tau, eps=eps),
        out_shape=jax.ShapeDtypeStruct((1, 1), jnp.float32),
    )(fx, fy, w1, b1.reshape(1, -1), w2, b2.reshape(1, -1), w3, b3.reshape(1, -1))
    return out[0, 0]


# ------------------------- layout helpers (XLA glue) --------------------------

def to_ext(x):
    """(N2, C, H, W) -> (N2, C, Lext) extended-padded channel-major layout."""
    N2, C, H, W = x.shape
    Wp = W + 2
    padl = Wp + 1
    xp = jnp.pad(x, ((0, 0), (0, 0), (1, 1), (1, 1))).reshape(N2, C, (H + 2) * Wp)
    return jnp.pad(xp, ((0, 0), (0, 0), (padl, padl)))


def from_ext(x_ext, H, W):
    """(N2, C, Lext) -> (N2, C, H, W) interior crop."""
    N2, C, _ = x_ext.shape
    Hp, Wp = H + 2, W + 2
    P = Hp * Wp
    padl = Wp + 1
    grid = x_ext[:, :, padl:padl + P].reshape(N2, C, Hp, Wp)
    return grid[:, :, 1:1 + H, 1:1 + W]


def interior_mask(H, W):
    """(1, (H+2)*(W+2)) f32 mask: 1 inside the HxW image, 0 on the pad ring."""
    Hp, Wp = H + 2, W + 2
    m = np.zeros((Hp, Wp), np.float32)
    m[1:1 + H, 1:1 + W] = 1.0
    return jnp.asarray(m.reshape(1, Hp * Wp))


def max_pool_2x2(x):
    # glue: cheap 2x2 windowed max on (N, C, H, W); the GEMMs run in Pallas.
    N, C, H, W = x.shape
    return jnp.max(x.reshape(N, C, H // 2, 2, W // 2, 2), axis=(3, 5))


# ------------------------------- VGG19 (scaled) ------------------------------

VGG19_CFG = (4, 4, "M", 8, 8, "M", 16, 16, 16, 16, "M",
             32, 32, 32, 32, "M", 32, 32, 32, 32, "M")   # torchvision cfg "E" / 16
FC_HIDDEN = 128   # stands in for 4096
FC_OUT = 64       # stands in for 1000 logits
POOL_OUT = 7      # torchvision AdaptiveAvgPool2d((7, 7))


def init_vgg_params(key, in_ch=3):
    # Deterministic synthetic He-normal weights; pretrained VGG19 is NOT loaded.
    params = {"convs": [], "fcs": []}
    c = in_ch
    for v in VGG19_CFG:
        if v == "M":
            continue
        key, kw = jax.random.split(key)
        w = (jax.random.normal(kw, (9, v, c), jnp.float32)          # (tap, Cout, Cin)
             * jnp.sqrt(2.0 / (9 * c))).astype(jnp.bfloat16)
        params["convs"].append((w, jnp.zeros((v,), jnp.float32)))
        c = v
    dims = [c * POOL_OUT * POOL_OUT, FC_HIDDEN, FC_HIDDEN, FC_OUT]
    for i in range(3):
        key, kw = jax.random.split(key)
        w = (jax.random.normal(kw, (dims[i], dims[i + 1]), jnp.float32)
             * jnp.sqrt(2.0 / dims[i])).astype(jnp.bfloat16)
        params["fcs"].append((w, jnp.zeros((dims[i + 1],), jnp.float32)))
    return params


def vgg_features(params, x_nchw):
    """(N2, 3, H, W) -> (N2, C_last) bf16 features (after the 1x1 deep map)."""
    x = x_nchw.astype(jnp.bfloat16)
    ci = 0
    i = 0
    cfg = VGG19_CFG
    while i < len(cfg):
        if cfg[i] == "M":
            x = max_pool_2x2(x)
            i += 1
            continue
        # A run of consecutive convs at a fixed spatial size: chain them in the
        # extended-padded layout (one XLA pad in, one XLA crop out per run).
        _, _, H, W = x.shape
        mask = interior_mask(H, W)
        ext = to_ext(x)
        while i < len(cfg) and cfg[i] != "M":
            w, b = params["convs"][ci]
            ext = conv3x3_relu_ext(ext, w, b, mask, H=H, W=W)
            ci += 1
            i += 1
        x = from_ext(ext, H, W)
    N2, C, H, W = x.shape
    assert H == 1 and W == 1, "adaptive-pool shortcut assumes a 1x1 feature map"
    # AdaptiveAvgPool2d((7,7)) on a 1x1 map is pure replication; its 49x fan-out
    # is folded into FC1 (see vgg_contrastive_loss), so just return (N2, C).
    return x.reshape(N2, C)


def vgg_contrastive_loss(params, x, y):
    N = x.shape[0]
    # Both branches share the VGG weights -> run them as one batch (halves the
    # number of Pallas launches and the XLA glue ops).
    feats = vgg_features(params, jnp.concatenate([x, y], axis=0))
    (w1, b1), (w2, b2), (w3, b3) = params["fcs"]
    C = feats.shape[1]
    # Fold the 49x replication of the 1x1 feature map (avgpool + flatten) into
    # FC1 by summing its 49-row groups: mathematically identical, and the
    # reduction constant-folds at compile time (params are closure constants).
    w1r = (w1.astype(jnp.float32)
             .reshape(C, POOL_OUT * POOL_OUT, w1.shape[1])
             .sum(axis=1).astype(jnp.bfloat16))
    return classifier_contrastive_loss(feats[:N], feats[N:],
                                       ((w1r, b1), (w2, b2), (w3, b3)))


# ----------------------------------- main ------------------------------------

if __name__ == "__main__":
    key = jax.random.PRNGKey(0)
    kp, kx, ky = jax.random.split(key, 3)
    params = init_vgg_params(kp)

    # Small NCHW inputs (PyTorch convention): batch=2, channels=3, spatial=32.
    x = jax.random.normal(kx, (2, 3, 32, 32), jnp.float32)
    y = jax.random.normal(ky, (2, 3, 32, 32), jnp.float32)

    loss_fn = jax.jit(functools.partial(vgg_contrastive_loss, params))
    loss = loss_fn(x, y)
    jax.block_until_ready(loss)
    assert bool(jnp.isfinite(loss)), "loss is not finite"
    print("KERNEL_OK")
</pallas_src>

<mosaic_0001>
module attributes {stable_mosaic.version = 11 : i64} {
  func.func @_conv3x3_relu_kernel(%arg0: i32, %arg1: memref<1x3x1226xbf16, #tpu.memory_space<vmem>>, %arg2: memref<9x4x3xbf16, #tpu.memory_space<vmem>>, %arg3: memref<4x1xf32, #tpu.memory_space<vmem>>, %arg4: memref<1x1156xf32, #tpu.memory_space<vmem>>, %arg5: memref<1x4x1226xbf16, #tpu.memory_space<vmem>>) attributes {dimension_semantics = [#tpu.dimension_semantics<parallel>], iteration_bounds = array<i64: 4>, scalar_prefetch = 0 : i64, scratch_operands = 0 : i64, tpu.core_type = #tpu.core_type<tc>, window_params = [{transform_indices = @transform_0, window_bounds = array<i64: 1, 3, 1226>}, {pipeline_mode = #tpu.pipeline_mode<synchronous>, transform_indices = @transform_1, window_bounds = array<i64: 9, 4, 3>}, {pipeline_mode = #tpu.pipeline_mode<synchronous>, transform_indices = @transform_2, window_bounds = array<i64: 4, 1>}, {pipeline_mode = #tpu.pipeline_mode<synchronous>, transform_indices = @transform_3, window_bounds = array<i64: 1, 1156>}, {transform_indices = @transform_4, window_bounds = array<i64: 1, 4, 1226>}]} {
    %c0 = arith.constant 0 : index
    %c0_0 = arith.constant 0 : index
    %c0_1 = arith.constant 0 : index
    %0 = vector.load %arg1[%c0, %c0_0, %c0_1] : memref<1x3x1226xbf16, #tpu.memory_space<vmem>>, vector<1x3x1226xbf16>
    %1 = vector.shape_cast %0 : vector<1x3x1226xbf16> to vector<3x1226xbf16>
    %cst = arith.constant 0.000000e+00 : f32
    %2 = vector.broadcast %cst : f32 to vector<4x1156xf32>
    %c0_2 = arith.constant 0 : index
    %c0_3 = arith.constant 0 : index
    %c0_4 = arith.constant 0 : index
    %3 = vector.load %arg2[%c0_2, %c0_3, %c0_4] : memref<9x4x3xbf16, #tpu.memory_space<vmem>>, vector<1x4x3xbf16>
    %4 = vector.shape_cast %3 : vector<1x4x3xbf16> to vector<4x3xbf16>
    %5 = vector.extract_strided_slice %1 {offsets = [0, 0], sizes = [3, 1156], strides = [1, 1]} : vector<3x1226xbf16> to vector<3x1156xbf16>
    %cst_5 = arith.constant dense<0.000000e+00> : vector<4x1156xf32>
    %6 = tpu.matmul %4, %5, %cst_5 {dimension_numbers = #tpu.dot_dimension_numbers<[1], [0], [0], [1], [0, 0, 1, 1], [], []>} : vector<4x3xbf16>, vector<3x1156xbf16>, vector<4x1156xf32> -> vector<4x1156xf32>
    %7 = arith.addf %2, %6 : vector<4x1156xf32>
    %c1 = arith.constant 1 : index
    %c0_6 = arith.constant 0 : index
    %c0_7 = arith.constant 0 : index
    %8 = vector.load %arg2[%c1, %c0_6, %c0_7] : memref<9x4x3xbf16, #tpu.memory_space<vmem>>, vector<1x4x3xbf16>
    %9 = vector.shape_cast %8 : vector<1x4x3xbf16> to vector<4x3xbf16>
    %10 = vector.extract_strided_slice %1 {offsets = [0, 1], sizes = [3, 1156], strides = [1, 1]} : vector<3x1226xbf16> to vector<3x1156xbf16>
    %cst_8 = arith.constant dense<0.000000e+00> : vector<4x1156xf32>
    %11 = tpu.matmul %9, %10, %cst_8 {dimension_numbers = #tpu.dot_dimension_numbers<[1], [0], [0], [1], [0, 0, 1, 1], [], []>} : vector<4x3xbf16>, vector<3x1156xbf16>, vector<4x1156xf32> -> vector<4x1156xf32>
    %12 = arith.addf %7, %11 : vector<4x1156xf32>
    %c2 = arith.constant 2 : index
    %c0_9 = arith.constant 0 : index
    %c0_10 = arith.constant 0 : index
    %13 = vector.load %arg2[%c2, %c0_9, %c0_10] : memref<9x4x3xbf16, #tpu.memory_space<vmem>>, vector<1x4x3xbf16>
    %14 = vector.shape_cast %13 : vector<1x4x3xbf16> to vector<4x3xbf16>
    %15 = vector.extract_strided_slice %1 {offsets = [0, 2], sizes = [3, 1156], strides = [1, 1]} : vector<3x1226xbf16> to vector<3x1156xbf16>
    %cst_11 = arith.constant dense<0.000000e+00> : vector<4x1156xf32>
    %16 = tpu.matmul %14, %15, %cst_11 {dimension_numbers = #tpu.dot_dimension_numbers<[1], [0], [0], [1], [0, 0, 1, 1], [], []>} : vector<4x3xbf16>, vector<3x1156xbf16>, vector<4x1156xf32> -> vector<4x1156xf32>
    %17 = arith.addf %12, %16 : vector<4x1156xf32>
    %c3 = arith.constant 3 : index
    %c0_12 = arith.constant 0 : index
    %c0_13 = arith.constant 0 : index
    %18 = vector.load %arg2[%c3, %c0_12, %c0_13] : memref<9x4x3xbf16, #tpu.memory_space<vmem>>, vector<1x4x3xbf16>
    %19 = vector.shape_cast %18 : vector<1x4x3xbf16> to vector<4x3xbf16>
    %20 = vector.extract_strided_slice %1 {offsets = [0, 34], sizes = [3, 1156], strides = [1, 1]} : vector<3x1226xbf16> to vector<3x1156xbf16>
    %cst_14 = arith.constant dense<0.000000e+00> : vector<4x1156xf32>
    %21 = tpu.matmul %19, %20, %cst_14 {dimension_numbers = #tpu.dot_dimension_numbers<[1], [0], [0], [1], [0, 0, 1, 1], [], []>} : vector<4x3xbf16>, vector<3x1156xbf16>, vector<4x1156xf32> -> vector<4x1156xf32>
    %22 = arith.addf %17, %21 : vector<4x1156xf32>
    %c4 = arith.constant 4 : index
    %c0_15 = arith.constant 0 : index
    %c0_16 = arith.constant 0 : index
    %23 = vector.load %arg2[%c4, %c0_15, %c0_16] : memref<9x4x3xbf16, #tpu.memory_space<vmem>>, vector<1x4x3xbf16>
    %24 = vector.shape_cast %23 : vector<1x4x3xbf16> to vector<4x3xbf16>
    %25 = vector.extract_strided_slice %1 {offsets = [0, 35], sizes = [3, 1156], strides = [1, 1]} : vector<3x1226xbf16> to vector<3x1156xbf16>
    %cst_17 = arith.constant dense<0.000000e+00> : vector<4x1156xf32>
    %26 = tpu.matmul %24, %25, %cst_17 {dimension_numbers = #tpu.dot_dimension_numbers<[1], [0], [0], [1], [0, 0, 1, 1], [], []>} : vector<4x3xbf16>, vector<3x1156xbf16>, vector<4x1156xf32> -> vector<4x1156xf32>
    %27 = arith.addf %22, %26 : vector<4x1156xf32>
    %c5 = arith.constant 5 : index
    %c0_18 = arith.constant 0 : index
    %c0_19 = arith.constant 0 : index
    %28 = vector.load %arg2[%c5, %c0_18, %c0_19] : memref<9x4x3xbf16, #tpu.memory_space<vmem>>, vector<1x4x3xbf16>
    %29 = vector.shape_cast %28 : vector<1x4x3xbf16> to vector<4x3xbf16>
    %30 = vector.extract_strided_slice %1 {offsets = [0, 36], sizes = [3, 1156], strides = [1, 1]} : vector<3x1226xbf16> to vector<3x1156xbf16>
    %cst_20 = arith.constant dense<0.000000e+00> : vector<4x1156xf32>
    %31 = tpu.matmul %29, %30, %cst_20 {dimension_numbers = #tpu.dot_dimension_numbers<[1], [0], [0], [1], [0, 0, 1, 1], [], []>} : vector<4x3xbf16>, vector<3x1156xbf16>, vector<4x1156xf32> -> vector<4x1156xf32>
    %32 = arith.addf %27, %31 : vector<4x1156xf32>
    %c6 = arith.constant 6 : index
    %c0_21 = arith.constant 0 : index
    %c0_22 = arith.constant 0 : index
    %33 = vector.load %arg2[%c6, %c0_21, %c0_22] : memref<9x4x3xbf16, #tpu.memory_space<vmem>>, vector<1x4x3xbf16>
    %34 = vector.shape_cast %33 : vector<1x4x3xbf16> to vector<4x3xbf16>
    %35 = vector.extract_strided_slice %1 {offsets = [0, 68], sizes = [3, 1156], strides = [1, 1]} : vector<3x1226xbf16> to vector<3x1156xbf16>
    %cst_23 = arith.constant dense<0.000000e+00> : vector<4x1156xf32>
    %36 = tpu.matmul %34, %35, %cst_23 {dimension_numbers = #tpu.dot_dimension_numbers<[1], [0], [0], [1], [0, 0, 1, 1], [], []>} : vector<4x3xbf16>, vector<3x1156xbf16>, vector<4x1156xf32> -> vector<4x1156xf32>
    %37 = arith.addf %32, %36 : vector<4x1156xf32>
    %c7 = arith.constant 7 : index
    %c0_24 = arith.constant 0 : index
    %c0_25 = arith.constant 0 : index
    %38 = vector.load %arg2[%c7, %c0_24, %c0_25] : memref<9x4x3xbf16, #tpu.memory_space<vmem>>, vector<1x4x3xbf16>
    %39 = vector.shape_cast %38 : vector<1x4x3xbf16> to vector<4x3xbf16>
    %40 = vector.extract_strided_slice %1 {offsets = [0, 69], sizes = [3, 1156], strides = [1, 1]} : vector<3x1226xbf16> to vector<3x1156xbf16>
    %cst_26 = arith.constant dense<0.000000e+00> : vector<4x1156xf32>
    %41 = tpu.matmul %39, %40, %cst_26 {dimension_numbers = #tpu.dot_dimension_numbers<[1], [0], [0], [1], [0, 0, 1, 1], [], []>} : vector<4x3xbf16>, vector<3x1156xbf16>, vector<4x1156xf32> -> vector<4x1156xf32>
    %42 = arith.addf %37, %41 : vector<4x1156xf32>
    %c8 = arith.constant 8 : index
    %c0_27 = arith.constant 0 : index
    %c0_28 = arith.constant 0 : index
    %43 = vector.load %arg2[%c8, %c0_27, %c0_28] : memref<9x4x3xbf16, #tpu.memory_space<vmem>>, vector<1x4x3xbf16>
    %44 = vector.shape_cast %43 : vector<1x4x3xbf16> to vector<4x3xbf16>
    %45 = vector.extract_strided_slice %1 {offsets = [0, 70], sizes = [3, 1156], strides = [1, 1]} : vector<3x1226xbf16> to vector<3x1156xbf16>
    %cst_29 = arith.constant dense<0.000000e+00> : vector<4x1156xf32>
    %46 = tpu.matmul %44, %45, %cst_29 {dimension_numbers = #tpu.dot_dimension_numbers<[1], [0], [0], [1], [0, 0, 1, 1], [], []>} : vector<4x3xbf16>, vector<3x1156xbf16>, vector<4x1156xf32> -> vector<4x1156xf32>
    %47 = arith.addf %42, %46 : vector<4x1156xf32>
    %c0_30 = arith.constant 0 : index
    %c0_31 = arith.constant 0 : index
    %48 = vector.load %arg3[%c0_30, %c0_31] : memref<4x1xf32, #tpu.memory_space<vmem>>, vector<4x1xf32>
    %49 = vector.broadcast %48 : vector<4x1xf32> to vector<4x1156xf32>
    %50 = arith.addf %47, %49 : vector<4x1156xf32>
    %cst_32 = arith.constant 0.000000e+00 : f32
    %51 = vector.broadcast %cst_32 : f32 to vector<4x1156xf32>
    %52 = arith.maximumf %50, %51 : vector<4x1156xf32>
    %c0_33 = arith.constant 0 : index
    %c0_34 = arith.constant 0 : index
    %53 = vector.load %arg4[%c0_33, %c0_34] : memref<1x1156xf32, #tpu.memory_space<vmem>>, vector<1x1156xf32>
    %54 = vector.broadcast %53 : vector<1x1156xf32> to vector<4x1156xf32>
    %55 = arith.mulf %52, %54 : vector<4x1156xf32>
    %cst_35 = arith.constant 0.000000e+00 : bf16
    %56 = vector.broadcast %cst_35 : bf16 to vector<4x35xbf16>
    %c0_36 = arith.constant 0 : index
    %c0_37 = arith.constant 0 : index
    %c0_38 = arith.constant 0 : index
    %57 = vector.load %arg5[%c0_36, %c0_37, %c0_38] : memref<1x4x1226xbf16, #tpu.memory_space<vmem>>, vector<1x4x35xbf16>
    %58 = vector.shape_cast %57 : vector<1x4x35xbf16> to vector<4x35xbf16>
    %59 = vector.shape_cast %56 : vector<4x35xbf16> to vector<1x4x35xbf16>
    tpu.vector_store %arg5[%c0_36, %c0_37, %c0_38], %59 {strides = array<i32>} : memref<1x4x1226xbf16, #tpu.memory_space<vmem>>, vector<1x4x35xbf16>,
    %c0_39 = arith.constant 0 : index
    %c0_40 = arith.constant 0 : index
    %c1191 = arith.constant 1191 : index
    %60 = vector.load %arg5[%c0_39, %c0_40, %c1191] : memref<1x4x1226xbf16, #tpu.memory_space<vmem>>, vector<1x4x35xbf16>
    %61 = vector.shape_cast %60 : vector<1x4x35xbf16> to vector<4x35xbf16>
    %62 = vector.shape_cast %56 : vector<4x35xbf16> to vector<1x4x35xbf16>
    tpu.vector_store %arg5[%c0_39, %c0_40, %c1191], %62 {strides = array<i32>} : memref<1x4x1226xbf16, #tpu.memory_space<vmem>>, vector<1x4x35xbf16>,
    %63 = arith.truncf %55 : vector<4x1156xf32> to vector<4x1156xbf16>
    %c0_41 = arith.constant 0 : index
    %c0_42 = arith.constant 0 : index
    %c35 = arith.constant 35 : index
    %64 = vector.load %arg5[%c0_41, %c0_42, %c35] : memref<1x4x1226xbf16, #tpu.memory_space<vmem>>, vector<1x4x1156xbf16>
    %65 = vector.shape_cast %64 : vector<1x4x1156xbf16> to vector<4x1156xbf16>
    %66 = vector.shape_cast %63 : vector<4x1156xbf16> to vector<1x4x1156xbf16>
    tpu.vector_store %arg5[%c0_41, %c0_42, %c35], %66 {strides = array<i32>} : memref<1x4x1226xbf16, #tpu.memory_space<vmem>>, vector<1x4x1156xbf16>,
    return
  }
  func.func @transform_0(%arg0: i32) -> (i32, i32, i32) {
    %c0_i32 = arith.constant 0 : i32
    %c0_i32_0 = arith.constant 0 : i32
    %c0_i32_1 = arith.constant 0 : i32
    return %arg0, %c0_i32, %c0_i32_0 : i32, i32, i32
  }
  func.func @transform_1(%arg0: i32) -> (i32, i32, i32) {
    %c0_i32 = arith.constant 0 : i32
    %c0_i32_0 = arith.constant 0 : i32
    %c0_i32_1 = arith.constant 0 : i32
    %c0_i32_2 = arith.constant 0 : i32
    return %c0_i32, %c0_i32_0, %c0_i32_1 : i32, i32, i32
  }
  func.func @transform_2(%arg0: i32) -> (i32, i32) {
    %c0_i32 = arith.constant 0 : i32
    %c0_i32_0 = arith.constant 0 : i32
    %c0_i32_1 = arith.constant 0 : i32
    return %c0_i32, %c0_i32_0 : i32, i32
  }
  func.func @transform_3(%arg0: i32) -> (i32, i32) {
    %c0_i32 = arith.constant 0 : i32
    %c0_i32_0 = arith.constant 0 : i32
    %c0_i32_1 = arith.constant 0 : i32
    return %c0_i32, %c0_i32_0 : i32, i32
  }
  func.func @transform_4(%arg0: i32) -> (i32, i32, i32) {
    %c0_i32 = arith.constant 0 : i32
    %c0_i32_0 = arith.constant 0 : i32
    %c0_i32_1 = arith.constant 0 : i32
    return %arg0, %c0_i32, %c0_i32_0 : i32, i32, i32
  }
}

module attributes {stable_mosaic.version = 11 : i64} {
  func.func @_conv3x3_relu_kernel(%arg0: i32, %arg1: memref<1x4x1226xbf16, #tpu.memory_space<vmem>>, %arg2: memref<9x4x4xbf16, #tpu.memory_space<vmem>>, %arg3: memref<4x1xf32, #tpu.memory_space<vmem>>, %arg4: memref<1x1156xf32, #tpu.memory_space<vmem>>, %arg5: memref<1x4x1226xbf16, #tpu.memory_space<vmem>>) attributes {dimension_semantics = [#tpu.dimension_semantics<parallel>], iteration_bounds = array<i64: 4>, scalar_prefetch = 0 : i64, scratch_operands = 0 : i64, tpu.core_type = #tpu.core_type<tc>, window_params = [{transform_indices = @transform_0, window_bounds = array<i64: 1, 4, 1226>}, {pipeline_mode = #tpu.pipeline_mode<synchronous>, transform_indices = @transform_1, window_bounds = array<i64: 9, 4, 4>}, {pipeline_mode = #tpu.pipeline_mode<synchronous>, transform_indices = @transform_2, window_bounds = array<i64: 4, 1>}, {pipeline_mode = #tpu.pipeline_mode<synchronous>, transform_indices = @transform_3, window_bounds = array<i64: 1, 1156>}, {transform_indices = @transform_4, window_bounds = array<i64: 1, 4, 1226>}]} {
    %c0 = arith.constant 0 : index
    %c0_0 = arith.constant 0 : index
    %c0_1 = arith.constant 0 : index
    %0 = vector.load %arg1[%c0, %c0_0, %c0_1] : memref<1x4x1226xbf16, #tpu.memory_space<vmem>>, vector<1x4x1226xbf16>
    %1 = vector.shape_cast %0 : vector<1x4x1226xbf16> to vector<4x1226xbf16>
    %cst = arith.constant 0.000000e+00 : f32
    %2 = vector.broadcast %cst : f32 to vector<4x1156xf32>
    %c0_2 = arith.constant 0 : index
    %c0_3 = arith.constant 0 : index
    %c0_4 = arith.constant 0 : index
    %3 = vector.load %arg2[%c0_2, %c0_3, %c0_4] : memref<9x4x4xbf16, #tpu.memory_space<vmem>>, vector<1x4x4xbf16>
    %4 = vector.shape_cast %3 : vector<1x4x4xbf16> to vector<4x4xbf16>
    %5 = vector.extract_strided_slice %1 {offsets = [0, 0], sizes = [4, 1156], strides = [1, 1]} : vector<4x1226xbf16> to vector<4x1156xbf16>
    %cst_5 = arith.constant dense<0.000000e+00> : vector<4x1156xf32>
    %6 = tpu.matmul %4, %5, %cst_5 {dimension_numbers = #tpu.dot_dimension_numbers<[1], [0], [0], [1], [0, 0, 1, 1], [], []>} : vector<4x4xbf16>, vector<4x1156xbf16>, vector<4x1156xf32> -> vector<4x1156xf32>
    %7 = arith.addf %2, %6 : vector<4x1156xf32>
    %c1 = arith.constant 1 : index
    %c0_6 = arith.constant 0 : index
    %c0_7 = arith.constant 0 : index
    %8 = vector.load %arg2[%c1, %c0_6, %c0_7] : memref<9x4x4xbf16, #tpu.memory_space<vmem>>, vector<1x4x4xbf16>
    %9 = vector.shape_cast %8 : vector<1x4x4xbf16> to vector<4x4xbf16>
    %10 = vector.extract_strided_slice %1 {offsets = [0, 1], sizes = [4, 1156], strides = [1, 1]} : vector<4x1226xbf16> to vector<4x1156xbf16>
    %cst_8 = arith.constant dense<0.000000e+00> : vector<4x1156xf32>
    %11 = tpu.matmul %9, %10, %cst_8 {dimension_numbers = #tpu.dot_dimension_numbers<[1], [0], [0], [1], [0, 0, 1, 1], [], []>} : vector<4x4xbf16>, vector<4x1156xbf16>, vector<4x1156xf32> -> vector<4x1156xf32>
    %12 = arith.addf %7, %11 : vector<4x1156xf32>
    %c2 = arith.constant 2 : index
    %c0_9 = arith.constant 0 : index
    %c0_10 = arith.constant 0 : index
    %13 = vector.load %arg2[%c2, %c0_9, %c0_10] : memref<9x4x4xbf16, #tpu.memory_space<vmem>>, vector<1x4x4xbf16>
    %14 = vector.shape_cast %13 : vector<1x4x4xbf16> to vector<4x4xbf16>
    %15 = vector.extract_strided_slice %1 {offsets = [0, 2], sizes = [4, 1156], strides = [1, 1]} : vector<4x1226xbf16> to vector<4x1156xbf16>
    %cst_11 = arith.constant dense<0.000000e+00> : vector<4x1156xf32>
    %16 = tpu.matmul %14, %15, %cst_11 {dimension_numbers = #tpu.dot_dimension_numbers<[1], [0], [0], [1], [0, 0, 1, 1], [], []>} : vector<4x4xbf16>, vector<4x1156xbf16>, vector<4x1156xf32> -> vector<4x1156xf32>
    %17 = arith.addf %12, %16 : vector<4x1156xf32>
    %c3 = arith.constant 3 : index
    %c0_12 = arith.constant 0 : index
    %c0_13 = arith.constant 0 : index
    %18 = vector.load %arg2[%c3, %c0_12, %c0_13] : memref<9x4x4xbf16, #tpu.memory_space<vmem>>, vector<1x4x4xbf16>
    %19 = vector.shape_cast %18 : vector<1x4x4xbf16> to vector<4x4xbf16>
    %20 = vector.extract_strided_slice %1 {offsets = [0, 34], sizes = [4, 1156], strides = [1, 1]} : vector<4x1226xbf16> to vector<4x1156xbf16>
    %cst_14 = arith.constant dense<0.000000e+00> : vector<4x1156xf32>
    %21 = tpu.matmul %19, %20, %cst_14 {dimension_numbers = #tpu.dot_dimension_numbers<[1], [0], [0], [1], [0, 0, 1, 1], [], []>} : vector<4x4xbf16>, vector<4x1156xbf16>, vector<4x1156xf32> -> vector<4x1156xf32>
    %22 = arith.addf %17, %21 : vector<4x1156xf32>
    %c4 = arith.constant 4 : index
    %c0_15 = arith.constant 0 : index
    %c0_16 = arith.constant 0 : index
    %23 = vector.load %arg2[%c4, %c0_15, %c0_16] : memref<9x4x4xbf16, #tpu.memory_space<vmem>>, vector<1x4x4xbf16>
    %24 = vector.shape_cast %23 : vector<1x4x4xbf16> to vector<4x4xbf16>
    %25 = vector.extract_strided_slice %1 {offsets = [0, 35], sizes = [4, 1156], strides = [1, 1]} : vector<4x1226xbf16> to vector<4x1156xbf16>
    %cst_17 = arith.constant dense<0.000000e+00> : vector<4x1156xf32>
    %26 = tpu.matmul %24, %25, %cst_17 {dimension_numbers = #tpu.dot_dimension_numbers<[1], [0], [0], [1], [0, 0, 1, 1], [], []>} : vector<4x4xbf16>, vector<4x1156xbf16>, vector<4x1156xf32> -> vector<4x1156xf32>
    %27 = arith.addf %22, %26 : vector<4x1156xf32>
    %c5 = arith.constant 5 : index
    %c0_18 = arith.constant 0 : index
    %c0_19 = arith.constant 0 : index
    %28 = vector.load %arg2[%c5, %c0_18, %c0_19] : memref<9x4x4xbf16, #tpu.memory_space<vmem>>, vector<1x4x4xbf16>
    %29 = vector.shape_cast %28 : vector<1x4x4xbf16> to vector<4x4xbf16>
    %30 = vector.extract_strided_slice %1 {offsets = [0, 36], sizes = [4, 1156], strides = [1, 1]} : vector<4x1226xbf16> to vector<4x1156xbf16>
    %cst_20 = arith.constant dense<0.000000e+00> : vector<4x1156xf32>
    %31 = tpu.matmul %29, %30, %cst_20 {dimension_numbers = #tpu.dot_dimension_numbers<[1], [0], [0], [1], [0, 0, 1, 1], [], []>} : vector<4x4xbf16>, vector<4x1156xbf16>, vector<4x1156xf32> -> vector<4x1156xf32>
    %32 = arith.addf %27, %31 : vector<4x1156xf32>
    %c6 = arith.constant 6 : index
    %c0_21 = arith.constant 0 : index
    %c0_22 = arith.constant 0 : index
    %33 = vector.load %arg2[%c6, %c0_21, %c0_22] : memref<9x4x4xbf16, #tpu.memory_space<vmem>>, vector<1x4x4xbf16>
    %34 = vector.shape_cast %33 : vector<1x4x4xbf16> to vector<4x4xbf16>
    %35 = vector.extract_strided_slice %1 {offsets = [0, 68], sizes = [4, 1156], strides = [1, 1]} : vector<4x1226xbf16> to vector<4x1156xbf16>
    %cst_23 = arith.constant dense<0.000000e+00> : vector<4x1156xf32>
    %36 = tpu.matmul %34, %35, %cst_23 {dimension_numbers = #tpu.dot_dimension_numbers<[1], [0], [0], [1], [0, 0, 1, 1], [], []>} : vector<4x4xbf16>, vector<4x1156xbf16>, vector<4x1156xf32> -> vector<4x1156xf32>
    %37 = arith.addf %32, %36 : vector<4x1156xf32>
    %c7 = arith.constant 7 : index
    %c0_24 = arith.constant 0 : index
    %c0_25 = arith.constant 0 : index
    %38 = vector.load %arg2[%c7, %c0_24, %c0_25] : memref<9x4x4xbf16, #tpu.memory_space<vmem>>, vector<1x4x4xbf16>
    %39 = vector.shape_cast %38 : vector<1x4x4xbf16> to vector<4x4xbf16>
    %40 = vector.extract_strided_slice %1 {offsets = [0, 69], sizes = [4, 1156], strides = [1, 1]} : vector<4x1226xbf16> to vector<4x1156xbf16>
    %cst_26 = arith.constant dense<0.000000e+00> : vector<4x1156xf32>
    %41 = tpu.matmul %39, %40, %cst_26 {dimension_numbers = #tpu.dot_dimension_numbers<[1], [0], [0], [1], [0, 0, 1, 1], [], []>} : vector<4x4xbf16>, vector<4x1156xbf16>, vector<4x1156xf32> -> vector<4x1156xf32>
    %42 = arith.addf %37, %41 : vector<4x1156xf32>
    %c8 = arith.constant 8 : index
    %c0_27 = arith.constant 0 : index
    %c0_28 = arith.constant 0 : index
    %43 = vector.load %arg2[%c8, %c0_27, %c0_28] : memref<9x4x4xbf16, #tpu.memory_space<vmem>>, vector<1x4x4xbf16>
    %44 = vector.shape_cast %43 : vector<1x4x4xbf16> to vector<4x4xbf16>
    %45 = vector.extract_strided_slice %1 {offsets = [0, 70], sizes = [4, 1156], strides = [1, 1]} : vector<4x1226xbf16> to vector<4x1156xbf16>
    %cst_29 = arith.constant dense<0.000000e+00> : vector<4x1156xf32>
    %46 = tpu.matmul %44, %45, %cst_29 {dimension_numbers = #tpu.dot_dimension_numbers<[1], [0], [0], [1], [0, 0, 1, 1], [], []>} : vector<4x4xbf16>, vector<4x1156xbf16>, vector<4x1156xf32> -> vector<4x1156xf32>
    %47 = arith.addf %42, %46 : vector<4x1156xf32>
    %c0_30 = arith.constant 0 : index
    %c0_31 = arith.constant 0 : index
    %48 = vector.load %arg3[%c0_30, %c0_31] : memref<4x1xf32, #tpu.memory_space<vmem>>, vector<4x1xf32>
    %49 = vector.broadcast %48 : vector<4x1xf32> to vector<4x1156xf32>
    %50 = arith.addf %47, %49 : vector<4x1156xf32>
    %cst_32 = arith.constant 0.000000e+00 : f32
    %51 = vector.broadcast %cst_32 : f32 to vector<4x1156xf32>
    %52 = arith.maximumf %50, %51 : vector<4x1156xf32>
    %c0_33 = arith.constant 0 : index
    %c0_34 = arith.constant 0 : index
    %53 = vector.load %arg4[%c0_33, %c0_34] : memref<1x1156xf32, #tpu.memory_space<vmem>>, vector<1x1156xf32>
    %54 = vector.broadcast %53 : vector<1x1156xf32> to vector<4x1156xf32>
    %55 = arith.mulf %52, %54 : vector<4x1156xf32>
    %cst_35 = arith.constant 0.000000e+00 : bf16
    %56 = vector.broadcast %cst_35 : bf16 to vector<4x35xbf16>
    %c0_36 = arith.constant 0 : index
    %c0_37 = arith.constant 0 : index
    %c0_38 = arith.constant 0 : index
    %57 = vector.load %arg5[%c0_36, %c0_37, %c0_38] : memref<1x4x1226xbf16, #tpu.memory_space<vmem>>, vector<1x4x35xbf16>
    %58 = vector.shape_cast %57 : vector<1x4x35xbf16> to vector<4x35xbf16>
    %59 = vector.shape_cast %56 : vector<4x35xbf16> to vector<1x4x35xbf16>
    tpu.vector_store %arg5[%c0_36, %c0_37, %c0_38], %59 {strides = array<i32>} : memref<1x4x1226xbf16, #tpu.memory_space<vmem>>, vector<1x4x35xbf16>,
    %c0_39 = arith.constant 0 : index
    %c0_40 = arith.constant 0 : index
    %c1191 = arith.constant 1191 : index
    %60 = vector.load %arg5[%c0_39, %c0_40, %c1191] : memref<1x4x1226xbf16, #tpu.memory_space<vmem>>, vector<1x4x35xbf16>
    %61 = vector.shape_cast %60 : vector<1x4x35xbf16> to vector<4x35xbf16>
    %62 = vector.shape_cast %56 : vector<4x35xbf16> to vector<1x4x35xbf16>
    tpu.vector_store %arg5[%c0_39, %c0_40, %c1191], %62 {strides = array<i32>} : memref<1x4x1226xbf16, #tpu.memory_space<vmem>>, vector<1x4x35xbf16>,
    %63 = arith.truncf %55 : vector<4x1156xf32> to vector<4x1156xbf16>
    %c0_41 = arith.constant 0 : index
    %c0_42 = arith.constant 0 : index
    %c35 = arith.constant 35 : index
    %64 = vector.load %arg5[%c0_41, %c0_42, %c35] : memref<1x4x1226xbf16, #tpu.memory_space<vmem>>, vector<1x4x1156xbf16>
    %65 = vector.shape_cast %64 : vector<1x4x1156xbf16> to vector<4x1156xbf16>
    %66 = vector.shape_cast %63 : vector<4x1156xbf16> to vector<1x4x1156xbf16>
    tpu.vector_store %arg5[%c0_41, %c0_42, %c35], %66 {strides = array<i32>} : memref<1x4x1226xbf16, #tpu.memory_space<vmem>>, vector<1x4x1156xbf16>,
    return
  }
  func.func @transform_0(%arg0: i32) -> (i32, i32, i32) {
    %c0_i32 = arith.constant 0 : i32
    %c0_i32_0 = arith.constant 0 : i32
    %c0_i32_1 = arith.constant 0 : i32
    return %arg0, %c0_i32, %c0_i32_0 : i32, i32, i32
  }
  func.func @transform_1(%arg0: i32) -> (i32, i32, i32) {
    %c0_i32 = arith.constant 0 : i32
    %c0_i32_0 = arith.constant 0 : i32
    %c0_i32_1 = arith.constant 0 : i32
    %c0_i32_2 = arith.constant 0 : i32
    return %c0_i32, %c0_i32_0, %c0_i32_1 : i32, i32, i32
  }
  func.func @transform_2(%arg0: i32) -> (i32, i32) {
    %c0_i32 = arith.constant 0 : i32
    %c0_i32_0 = arith.constant 0 : i32
    %c0_i32_1 = arith.constant 0 : i32
    return %c0_i32, %c0_i32_0 : i32, i32
  }
  func.func @transform_3(%arg0: i32) -> (i32, i32) {
    %c0_i32 = arith.constant 0 : i32
    %c0_i32_0 = arith.constant 0 : i32
    %c0_i32_1 = arith.constant 0 : i32
    return %c0_i32, %c0_i32_0 : i32, i32
  }
  func.func @transform_4(%arg0: i32) -> (i32, i32, i32) {
    %c0_i32 = arith.constant 0 : i32
    %c0_i32_0 = arith.constant 0 : i32
    %c0_i32_1 = arith.constant 0 : i32
    return %arg0, %c0_i32, %c0_i32_0 : i32, i32, i32
  }
}

module attributes {stable_mosaic.version = 11 : i64} {
  func.func @_conv3x3_relu_kernel(%arg0: i32, %arg1: memref<1x8x362xbf16, #tpu.memory_space<vmem>>, %arg2: memref<9x8x8xbf16, #tpu.memory_space<vmem>>, %arg3: memref<8x1xf32, #tpu.memory_space<vmem>>, %arg4: memref<1x324xf32, #tpu.memory_space<vmem>>, %arg5: memref<1x8x362xbf16, #tpu.memory_space<vmem>>) attributes {dimension_semantics = [#tpu.dimension_semantics<parallel>], iteration_bounds = array<i64: 4>, scalar_prefetch = 0 : i64, scratch_operands = 0 : i64, tpu.core_type = #tpu.core_type<tc>, window_params = [{transform_indices = @transform_0, window_bounds = array<i64: 1, 8, 362>}, {pipeline_mode = #tpu.pipeline_mode<synchronous>, transform_indices = @transform_1, window_bounds = array<i64: 9, 8, 8>}, {pipeline_mode = #tpu.pipeline_mode<synchronous>, transform_indices = @transform_2, window_bounds = array<i64: 8, 1>}, {pipeline_mode = #tpu.pipeline_mode<synchronous>, transform_indices = @transform_3, window_bounds = array<i64: 1, 324>}, {transform_indices = @transform_4, window_bounds = array<i64: 1, 8, 362>}]} {
    %c0 = arith.constant 0 : index
    %c0_0 = arith.constant 0 : index
    %c0_1 = arith.constant 0 : index
    %0 = vector.load %arg1[%c0, %c0_0, %c0_1] : memref<1x8x362xbf16, #tpu.memory_space<vmem>>, vector<1x8x362xbf16>
    %1 = vector.shape_cast %0 : vector<1x8x362xbf16> to vector<8x362xbf16>
    %cst = arith.constant 0.000000e+00 : f32
    %2 = vector.broadcast %cst : f32 to vector<8x324xf32>
    %c0_2 = arith.constant 0 : index
    %c0_3 = arith.constant 0 : index
    %c0_4 = arith.constant 0 : index
    %3 = vector.load %arg2[%c0_2, %c0_3, %c0_4] : memref<9x8x8xbf16, #tpu.memory_space<vmem>>, vector<1x8x8xbf16>
    %4 = vector.shape_cast %3 : vector<1x8x8xbf16> to vector<8x8xbf16>
    %5 = vector.extract_strided_slice %1 {offsets = [0, 0], sizes = [8, 324], strides = [1, 1]} : vector<8x362xbf16> to vector<8x324xbf16>
    %cst_5 = arith.constant dense<0.000000e+00> : vector<8x324xf32>
    %6 = tpu.matmul %4, %5, %cst_5 {dimension_numbers = #tpu.dot_dimension_numbers<[1], [0], [0], [1], [0, 0, 1, 1], [], []>} : vector<8x8xbf16>, vector<8x324xbf16>, vector<8x324xf32> -> vector<8x324xf32>
    %7 = arith.addf %2, %6 : vector<8x324xf32>
    %c1 = arith.constant 1 : index
    %c0_6 = arith.constant 0 : index
    %c0_7 = arith.constant 0 : index
    %8 = vector.load %arg2[%c1, %c0_6, %c0_7] : memref<9x8x8xbf16, #tpu.memory_space<vmem>>, vector<1x8x8xbf16>
    %9 = vector.shape_cast %8 : vector<1x8x8xbf16> to vector<8x8xbf16>
    %10 = vector.extract_strided_slice %1 {offsets = [0, 1], sizes = [8, 324], strides = [1, 1]} : vector<8x362xbf16> to vector<8x324xbf16>
    %cst_8 = arith.constant dense<0.000000e+00> : vector<8x324xf32>
    %11 = tpu.matmul %9, %10, %cst_8 {dimension_numbers = #tpu.dot_dimension_numbers<[1], [0], [0], [1], [0, 0, 1, 1], [], []>} : vector<8x8xbf16>, vector<8x324xbf16>, vector<8x324xf32> -> vector<8x324xf32>
    %12 = arith.addf %7, %11 : vector<8x324xf32>
    %c2 = arith.constant 2 : index
    %c0_9 = arith.constant 0 : index
    %c0_10 = arith.constant 0 : index
    %13 = vector.load %arg2[%c2, %c0_9, %c0_10] : memref<9x8x8xbf16, #tpu.memory_space<vmem>>, vector<1x8x8xbf16>
    %14 = vector.shape_cast %13 : vector<1x8x8xbf16> to vector<8x8xbf16>
    %15 = vector.extract_strided_slice %1 {offsets = [0, 2], sizes = [8, 324], strides = [1, 1]} : vector<8x362xbf16> to vector<8x324xbf16>
    %cst_11 = arith.constant dense<0.000000e+00> : vector<8x324xf32>
    %16 = tpu.matmul %14, %15, %cst_11 {dimension_numbers = #tpu.dot_dimension_numbers<[1], [0], [0], [1], [0, 0, 1, 1], [], []>} : vector<8x8xbf16>, vector<8x324xbf16>, vector<8x324xf32> -> vector<8x324xf32>
    %17 = arith.addf %12, %16 : vector<8x324xf32>
    %c3 = arith.constant 3 : index
    %c0_12 = arith.constant 0 : index
    %c0_13 = arith.constant 0 : index
    %18 = vector.load %arg2[%c3, %c0_12, %c0_13] : memref<9x8x8xbf16, #tpu.memory_space<vmem>>, vector<1x8x8xbf16>
    %19 = vector.shape_cast %18 : vector<1x8x8xbf16> to vector<8x8xbf16>
    %20 = vector.extract_strided_slice %1 {offsets = [0, 18], sizes = [8, 324], strides = [1, 1]} : vector<8x362xbf16> to vector<8x324xbf16>
    %cst_14 = arith.constant dense<0.000000e+00> : vector<8x324xf32>
    %21 = tpu.matmul %19, %20, %cst_14 {dimension_numbers = #tpu.dot_dimension_numbers<[1], [0], [0], [1], [0, 0, 1, 1], [], []>} : vector<8x8xbf16>, vector<8x324xbf16>, vector<8x324xf32> -> vector<8x324xf32>
    %22 = arith.addf %17, %21 : vector<8x324xf32>
    %c4 = arith.constant 4 : index
    %c0_15 = arith.constant 0 : index
    %c0_16 = arith.constant 0 : index
    %23 = vector.load %arg2[%c4, %c0_15, %c0_16] : memref<9x8x8xbf16, #tpu.memory_space<vmem>>, vector<1x8x8xbf16>
    %24 = vector.shape_cast %23 : vector<1x8x8xbf16> to vector<8x8xbf16>
    %25 = vector.extract_strided_slice %1 {offsets = [0, 19], sizes = [8, 324], strides = [1, 1]} : vector<8x362xbf16> to vector<8x324xbf16>
    %cst_17 = arith.constant dense<0.000000e+00> : vector<8x324xf32>
    %26 = tpu.matmul %24, %25, %cst_17 {dimension_numbers = #tpu.dot_dimension_numbers<[1], [0], [0], [1], [0, 0, 1, 1], [], []>} : vector<8x8xbf16>, vector<8x324xbf16>, vector<8x324xf32> -> vector<8x324xf32>
    %27 = arith.addf %22, %26 : vector<8x324xf32>
    %c5 = arith.constant 5 : index
    %c0_18 = arith.constant 0 : index
    %c0_19 = arith.constant 0 : index
    %28 = vector.load %arg2[%c5, %c0_18, %c0_19] : memref<9x8x8xbf16, #tpu.memory_space<vmem>>, vector<1x8x8xbf16>
    %29 = vector.shape_cast %28 : vector<1x8x8xbf16> to vector<8x8xbf16>
    %30 = vector.extract_strided_slice %1 {offsets = [0, 20], sizes = [8, 324], strides = [1, 1]} : vector<8x362xbf16> to vector<8x324xbf16>
    %cst_20 = arith.constant dense<0.000000e+00> : vector<8x324xf32>
    %31 = tpu.matmul %29, %30, %cst_20 {dimension_numbers = #tpu.dot_dimension_numbers<[1], [0], [0], [1], [0, 0, 1, 1], [], []>} : vector<8x8xbf16>, vector<8x324xbf16>, vector<8x324xf32> -> vector<8x324xf32>
    %32 = arith.addf %27, %31 : vector<8x324xf32>
    %c6 = arith.constant 6 : index
    %c0_21 = arith.constant 0 : index
    %c0_22 = arith.constant 0 : index
    %33 = vector.load %arg2[%c6, %c0_21, %c0_22] : memref<9x8x8xbf16, #tpu.memory_space<vmem>>, vector<1x8x8xbf16>
    %34 = vector.shape_cast %33 : vector<1x8x8xbf16> to vector<8x8xbf16>
    %35 = vector.extract_strided_slice %1 {offsets = [0, 36], sizes = [8, 324], strides = [1, 1]} : vector<8x362xbf16> to vector<8x324xbf16>
    %cst_23 = arith.constant dense<0.000000e+00> : vector<8x324xf32>
    %36 = tpu.matmul %34, %35, %cst_23 {dimension_numbers = #tpu.dot_dimension_numbers<[1], [0], [0], [1], [0, 0, 1, 1], [], []>} : vector<8x8xbf16>, vector<8x324xbf16>, vector<8x324xf32> -> vector<8x324xf32>
    %37 = arith.addf %32, %36 : vector<8x324xf32>
    %c7 = arith.constant 7 : index
    %c0_24 = arith.constant 0 : index
    %c0_25 = arith.constant 0 : index
    %38 = vector.load %arg2[%c7, %c0_24, %c0_25] : memref<9x8x8xbf16, #tpu.memory_space<vmem>>, vector<1x8x8xbf16>
    %39 = vector.shape_cast %38 : vector<1x8x8xbf16> to vector<8x8xbf16>
    %40 = vector.extract_strided_slice %1 {offsets = [0, 37], sizes = [8, 324], strides = [1, 1]} : vector<8x362xbf16> to vector<8x324xbf16>
    %cst_26 = arith.constant dense<0.000000e+00> : vector<8x324xf32>
    %41 = tpu.matmul %39, %40, %cst_26 {dimension_numbers = #tpu.dot_dimension_numbers<[1], [0], [0], [1], [0, 0, 1, 1], [], []>} : vector<8x8xbf16>, vector<8x324xbf16>, vector<8x324xf32> -> vector<8x324xf32>
    %42 = arith.addf %37, %41 : vector<8x324xf32>
    %c8 = arith.constant 8 : index
    %c0_27 = arith.constant 0 : index
    %c0_28 = arith.constant 0 : index
    %43 = vector.load %arg2[%c8, %c0_27, %c0_28] : memref<9x8x8xbf16, #tpu.memory_space<vmem>>, vector<1x8x8xbf16>
    %44 = vector.shape_cast %43 : vector<1x8x8xbf16> to vector<8x8xbf16>
    %45 = vector.extract_strided_slice %1 {offsets = [0, 38], sizes = [8, 324], strides = [1, 1]} : vector<8x362xbf16> to vector<8x324xbf16>
    %cst_29 = arith.constant dense<0.000000e+00> : vector<8x324xf32>
    %46 = tpu.matmul %44, %45, %cst_29 {dimension_numbers = #tpu.dot_dimension_numbers<[1], [0], [0], [1], [0, 0, 1, 1], [], []>} : vector<8x8xbf16>, vector<8x324xbf16>, vector<8x324xf32> -> vector<8x324xf32>
    %47 = arith.addf %42, %46 : vector<8x324xf32>
    %c0_30 = arith.constant 0 : index
    %c0_31 = arith.constant 0 : index
    %48 = vector.load %arg3[%c0_30, %c0_31] : memref<8x1xf32, #tpu.memory_space<vmem>>, vector<8x1xf32>
    %49 = vector.broadcast %48 : vector<8x1xf32> to vector<8x324xf32>
    %50 = arith.addf %47, %49 : vector<8x324xf32>
    %cst_32 = arith.constant 0.000000e+00 : f32
    %51 = vector.broadcast %cst_32 : f32 to vector<8x324xf32>
    %52 = arith.maximumf %50, %51 : vector<8x324xf32>
    %c0_33 = arith.constant 0 : index
    %c0_34 = arith.constant 0 : index
    %53 = vector.load %arg4[%c0_33, %c0_34] : memref<1x324xf32, #tpu.memory_space<vmem>>, vector<1x324xf32>
    %54 = vector.broadcast %53 : vector<1x324xf32> to vector<8x324xf32>
    %55 = arith.mulf %52, %54 : vector<8x324xf32>
    %cst_35 = arith.constant 0.000000e+00 : bf16
    %56 = vector.broadcast %cst_35 : bf16 to vector<8x19xbf16>
    %c0_36 = arith.constant 0 : index
    %c0_37 = arith.constant 0 : index
    %c0_38 = arith.constant 0 : index
    %57 = vector.load %arg5[%c0_36, %c0_37, %c0_38] : memref<1x8x362xbf16, #tpu.memory_space<vmem>>, vector<1x8x19xbf16>
    %58 = vector.shape_cast %57 : vector<1x8x19xbf16> to vector<8x19xbf16>
    %59 = vector.shape_cast %56 : vector<8x19xbf16> to vector<1x8x19xbf16>
    tpu.vector_store %arg5[%c0_36, %c0_37, %c0_38], %59 {strides = array<i32>} : memref<1x8x362xbf16, #tpu.memory_space<vmem>>, vector<1x8x19xbf16>,
    %c0_39 = arith.constant 0 : index
    %c0_40 = arith.constant 0 : index
    %c343 = arith.constant 343 : index
    %60 = vector.load %arg5[%c0_39, %c0_40, %c343] : memref<1x8x362xbf16, #tpu.memory_space<vmem>>, vector<1x8x19xbf16>
    %61 = vector.shape_cast %60 : vector<1x8x19xbf16> to vector<8x19xbf16>
    %62 = vector.shape_cast %56 : vector<8x19xbf16> to vector<1x8x19xbf16>
    tpu.vector_store %arg5[%c0_39, %c0_40, %c343], %62 {strides = array<i32>} : memref<1x8x362xbf16, #tpu.memory_space<vmem>>, vector<1x8x19xbf16>,
    %63 = arith.truncf %55 : vector<8x324xf32> to vector<8x324xbf16>
    %c0_41 = arith.constant 0 : index
    %c0_42 = arith.constant 0 : index
    %c19 = arith.constant 19 : index
    %64 = vector.load %arg5[%c0_41, %c0_42, %c19] : memref<1x8x362xbf16, #tpu.memory_space<vmem>>, vector<1x8x324xbf16>
    %65 = vector.shape_cast %64 : vector<1x8x324xbf16> to vector<8x324xbf16>
    %66 = vector.shape_cast %63 : vector<8x324xbf16> to vector<1x8x324xbf16>
    tpu.vector_store %arg5[%c0_41, %c0_42, %c19], %66 {strides = array<i32>} : memref<1x8x362xbf16, #tpu.memory_space<vmem>>, vector<1x8x324xbf16>,
    return
  }
  func.func @transform_0(%arg0: i32) -> (i32, i32, i32) {
    %c0_i32 = arith.constant 0 : i32
    %c0_i32_0 = arith.constant 0 : i32
    %c0_i32_1 = arith.constant 0 : i32
    return %arg0, %c0_i32, %c0_i32_0 : i32, i32, i32
  }
  func.func @transform_1(%arg0: i32) -> (i32, i32, i32) {
    %c0_i32 = arith.constant 0 : i32
    %c0_i32_0 = arith.constant 0 : i32
    %c0_i32_1 = arith.constant 0 : i32
    %c0_i32_2 = arith.constant 0 : i32
    return %c0_i32, %c0_i32_0, %c0_i32_1 : i32, i32, i32
  }
  func.func @transform_2(%arg0: i32) -> (i32, i32) {
    %c0_i32 = arith.constant 0 : i32
    %c0_i32_0 = arith.constant 0 : i32
    %c0_i32_1 = arith.constant 0 : i32
    return %c0_i32, %c0_i32_0 : i32, i32
  }
  func.func @transform_3(%arg0: i32) -> (i32, i32) {
    %c0_i32 = arith.constant 0 : i32
    %c0_i32_0 = arith.constant 0 : i32
    %c0_i32_1 = arith.constant 0 : i32
    return %c0_i32, %c0_i32_0 : i32, i32
  }
  func.func @transform_4(%arg0: i32) -> (i32, i32, i32) {
    %c0_i32 = arith.constant 0 : i32
    %c0_i32_0 = arith.constant 0 : i32
    %c0_i32_1 = arith.constant 0 : i32
    return %arg0, %c0_i32, %c0_i32_0 : i32, i32, i32
  }
}

module attributes {stable_mosaic.version = 11 : i64} {
  func.func @_conv3x3_relu_kernel(%arg0: i32, %arg1: memref<1x4x362xbf16, #tpu.memory_space<vmem>>, %arg2: memref<9x8x4xbf16, #tpu.memory_space<vmem>>, %arg3: memref<8x1xf32, #tpu.memory_space<vmem>>, %arg4: memref<1x324xf32, #tpu.memory_space<vmem>>, %arg5: memref<1x8x362xbf16, #tpu.memory_space<vmem>>) attributes {dimension_semantics = [#tpu.dimension_semantics<parallel>], iteration_bounds = array<i64: 4>, scalar_prefetch = 0 : i64, scratch_operands = 0 : i64, tpu.core_type = #tpu.core_type<tc>, window_params = [{transform_indices = @transform_0, window_bounds = array<i64: 1, 4, 362>}, {pipeline_mode = #tpu.pipeline_mode<synchronous>, transform_indices = @transform_1, window_bounds = array<i64: 9, 8, 4>}, {pipeline_mode = #tpu.pipeline_mode<synchronous>, transform_indices = @transform_2, window_bounds = array<i64: 8, 1>}, {pipeline_mode = #tpu.pipeline_mode<synchronous>, transform_indices = @transform_3, window_bounds = array<i64: 1, 324>}, {transform_indices = @transform_4, window_bounds = array<i64: 1, 8, 362>}]} {
    %c0 = arith.constant 0 : index
    %c0_0 = arith.constant 0 : index
    %c0_1 = arith.constant 0 : index
    %0 = vector.load %arg1[%c0, %c0_0, %c0_1] : memref<1x4x362xbf16, #tpu.memory_space<vmem>>, vector<1x4x362xbf16>
    %1 = vector.shape_cast %0 : vector<1x4x362xbf16> to vector<4x362xbf16>
    %cst = arith.constant 0.000000e+00 : f32
    %2 = vector.broadcast %cst : f32 to vector<8x324xf32>
    %c0_2 = arith.constant 0 : index
    %c0_3 = arith.constant 0 : index
    %c0_4 = arith.constant 0 : index
    %3 = vector.load %arg2[%c0_2, %c0_3, %c0_4] : memref<9x8x4xbf16, #tpu.memory_space<vmem>>, vector<1x8x4xbf16>
    %4 = vector.shape_cast %3 : vector<1x8x4xbf16> to vector<8x4xbf16>
    %5 = vector.extract_strided_slice %1 {offsets = [0, 0], sizes = [4, 324], strides = [1, 1]} : vector<4x362xbf16> to vector<4x324xbf16>
    %cst_5 = arith.constant dense<0.000000e+00> : vector<8x324xf32>
    %6 = tpu.matmul %4, %5, %cst_5 {dimension_numbers = #tpu.dot_dimension_numbers<[1], [0], [0], [1], [0, 0, 1, 1], [], []>} : vector<8x4xbf16>, vector<4x324xbf16>, vector<8x324xf32> -> vector<8x324xf32>
    %7 = arith.addf %2, %6 : vector<8x324xf32>
    %c1 = arith.constant 1 : index
    %c0_6 = arith.constant 0 : index
    %c0_7 = arith.constant 0 : index
    %8 = vector.load %arg2[%c1, %c0_6, %c0_7] : memref<9x8x4xbf16, #tpu.memory_space<vmem>>, vector<1x8x4xbf16>
    %9 = vector.shape_cast %8 : vector<1x8x4xbf16> to vector<8x4xbf16>
    %10 = vector.extract_strided_slice %1 {offsets = [0, 1], sizes = [4, 324], strides = [1, 1]} : vector<4x362xbf16> to vector<4x324xbf16>
    %cst_8 = arith.constant dense<0.000000e+00> : vector<8x324xf32>
    %11 = tpu.matmul %9, %10, %cst_8 {dimension_numbers = #tpu.dot_dimension_numbers<[1], [0], [0], [1], [0, 0, 1, 1], [], []>} : vector<8x4xbf16>, vector<4x324xbf16>, vector<8x324xf32> -> vector<8x324xf32>
    %12 = arith.addf %7, %11 : vector<8x324xf32>
    %c2 = arith.constant 2 : index
    %c0_9 = arith.constant 0 : index
    %c0_10 = arith.constant 0 : index
    %13 = vector.load %arg2[%c2, %c0_9, %c0_10] : memref<9x8x4xbf16, #tpu.memory_space<vmem>>, vector<1x8x4xbf16>
    %14 = vector.shape_cast %13 : vector<1x8x4xbf16> to vector<8x4xbf16>
    %15 = vector.extract_strided_slice %1 {offsets = [0, 2], sizes = [4, 324], strides = [1, 1]} : vector<4x362xbf16> to vector<4x324xbf16>
    %cst_11 = arith.constant dense<0.000000e+00> : vector<8x324xf32>
    %16 = tpu.matmul %14, %15, %cst_11 {dimension_numbers = #tpu.dot_dimension_numbers<[1], [0], [0], [1], [0, 0, 1, 1], [], []>} : vector<8x4xbf16>, vector<4x324xbf16>, vector<8x324xf32> -> vector<8x324xf32>
    %17 = arith.addf %12, %16 : vector<8x324xf32>
    %c3 = arith.constant 3 : index
    %c0_12 = arith.constant 0 : index
    %c0_13 = arith.constant 0 : index
    %18 = vector.load %arg2[%c3, %c0_12, %c0_13] : memref<9x8x4xbf16, #tpu.memory_space<vmem>>, vector<1x8x4xbf16>
    %19 = vector.shape_cast %18 : vector<1x8x4xbf16> to vector<8x4xbf16>
    %20 = vector.extract_strided_slice %1 {offsets = [0, 18], sizes = [4, 324], strides = [1, 1]} : vector<4x362xbf16> to vector<4x324xbf16>
    %cst_14 = arith.constant dense<0.000000e+00> : vector<8x324xf32>
    %21 = tpu.matmul %19, %20, %cst_14 {dimension_numbers = #tpu.dot_dimension_numbers<[1], [0], [0], [1], [0, 0, 1, 1], [], []>} : vector<8x4xbf16>, vector<4x324xbf16>, vector<8x324xf32> -> vector<8x324xf32>
    %22 = arith.addf %17, %21 : vector<8x324xf32>
    %c4 = arith.constant 4 : index
    %c0_15 = arith.constant 0 : index
    %c0_16 = arith.constant 0 : index
    %23 = vector.load %arg2[%c4, %c0_15, %c0_16] : memref<9x8x4xbf16, #tpu.memory_space<vmem>>, vector<1x8x4xbf16>
    %24 = vector.shape_cast %23 : vector<1x8x4xbf16> to vector<8x4xbf16>
    %25 = vector.extract_strided_slice %1 {offsets = [0, 19], sizes = [4, 324], strides = [1, 1]} : vector<4x362xbf16> to vector<4x324xbf16>
    %cst_17 = arith.constant dense<0.000000e+00> : vector<8x324xf32>
    %26 = tpu.matmul %24, %25, %cst_17 {dimension_numbers = #tpu.dot_dimension_numbers<[1], [0], [0], [1], [0, 0, 1, 1], [], []>} : vector<8x4xbf16>, vector<4x324xbf16>, vector<8x324xf32> -> vector<8x324xf32>
    %27 = arith.addf %22, %26 : vector<8x324xf32>
    %c5 = arith.constant 5 : index
    %c0_18 = arith.constant 0 : index
    %c0_19 = arith.constant 0 : index
    %28 = vector.load %arg2[%c5, %c0_18, %c0_19] : memref<9x8x4xbf16, #tpu.memory_space<vmem>>, vector<1x8x4xbf16>
    %29 = vector.shape_cast %28 : vector<1x8x4xbf16> to vector<8x4xbf16>
    %30 = vector.extract_strided_slice %1 {offsets = [0, 20], sizes = [4, 324], strides = [1, 1]} : vector<4x362xbf16> to vector<4x324xbf16>
    %cst_20 = arith.constant dense<0.000000e+00> : vector<8x324xf32>
    %31 = tpu.matmul %29, %30, %cst_20 {dimension_numbers = #tpu.dot_dimension_numbers<[1], [0], [0], [1], [0, 0, 1, 1], [], []>} : vector<8x4xbf16>, vector<4x324xbf16>, vector<8x324xf32> -> vector<8x324xf32>
    %32 = arith.addf %27, %31 : vector<8x324xf32>
    %c6 = arith.constant 6 : index
    %c0_21 = arith.constant 0 : index
    %c0_22 = arith.constant 0 : index
    %33 = vector.load %arg2[%c6, %c0_21, %c0_22] : memref<9x8x4xbf16, #tpu.memory_space<vmem>>, vector<1x8x4xbf16>
    %34 = vector.shape_cast %33 : vector<1x8x4xbf16> to vector<8x4xbf16>
    %35 = vector.extract_strided_slice %1 {offsets = [0, 36], sizes = [4, 324], strides = [1, 1]} : vector<4x362xbf16> to vector<4x324xbf16>
    %cst_23 = arith.constant dense<0.000000e+00> : vector<8x324xf32>
    %36 = tpu.matmul %34, %35, %cst_23 {dimension_numbers = #tpu.dot_dimension_numbers<[1], [0], [0], [1], [0, 0, 1, 1], [], []>} : vector<8x4xbf16>, vector<4x324xbf16>, vector<8x324xf32> -> vector<8x324xf32>
    %37 = arith.addf %32, %36 : vector<8x324xf32>
    %c7 = arith.constant 7 : index
    %c0_24 = arith.constant 0 : index
    %c0_25 = arith.constant 0 : index
    %38 = vector.load %arg2[%c7, %c0_24, %c0_25] : memref<9x8x4xbf16, #tpu.memory_space<vmem>>, vector<1x8x4xbf16>
    %39 = vector.shape_cast %38 : vector<1x8x4xbf16> to vector<8x4xbf16>
    %40 = vector.extract_strided_slice %1 {offsets = [0, 37], sizes = [4, 324], strides = [1, 1]} : vector<4x362xbf16> to vector<4x324xbf16>
    %cst_26 = arith.constant dense<0.000000e+00> : vector<8x324xf32>
    %41 = tpu.matmul %39, %40, %cst_26 {dimension_numbers = #tpu.dot_dimension_numbers<[1], [0], [0], [1], [0, 0, 1, 1], [], []>} : vector<8x4xbf16>, vector<4x324xbf16>, vector<8x324xf32> -> vector<8x324xf32>
    %42 = arith.addf %37, %41 : vector<8x324xf32>
    %c8 = arith.constant 8 : index
    %c0_27 = arith.constant 0 : index
    %c0_28 = arith.constant 0 : index
    %43 = vector.load %arg2[%c8, %c0_27, %c0_28] : memref<9x8x4xbf16, #tpu.memory_space<vmem>>, vector<1x8x4xbf16>
    %44 = vector.shape_cast %43 : vector<1x8x4xbf16> to vector<8x4xbf16>
    %45 = vector.extract_strided_slice %1 {offsets = [0, 38], sizes = [4, 324], strides = [1, 1]} : vector<4x362xbf16> to vector<4x324xbf16>
    %cst_29 = arith.constant dense<0.000000e+00> : vector<8x324xf32>
    %46 = tpu.matmul %44, %45, %cst_29 {dimension_numbers = #tpu.dot_dimension_numbers<[1], [0], [0], [1], [0, 0, 1, 1], [], []>} : vector<8x4xbf16>, vector<4x324xbf16>, vector<8x324xf32> -> vector<8x324xf32>
    %47 = arith.addf %42, %46 : vector<8x324xf32>
    %c0_30 = arith.constant 0 : index
    %c0_31 = arith.constant 0 : index
    %48 = vector.load %arg3[%c0_30, %c0_31] : memref<8x1xf32, #tpu.memory_space<vmem>>, vector<8x1xf32>
    %49 = vector.broadcast %48 : vector<8x1xf32> to vector<8x324xf32>
    %50 = arith.addf %47, %49 : vector<8x324xf32>
    %cst_32 = arith.constant 0.000000e+00 : f32
    %51 = vector.broadcast %cst_32 : f32 to vector<8x324xf32>
    %52 = arith.maximumf %50, %51 : vector<8x324xf32>
    %c0_33 = arith.constant 0 : index
    %c0_34 = arith.constant 0 : index
    %53 = vector.load %arg4[%c0_33, %c0_34] : memref<1x324xf32, #tpu.memory_space<vmem>>, vector<1x324xf32>
    %54 = vector.broadcast %53 : vector<1x324xf32> to vector<8x324xf32>
    %55 = arith.mulf %52, %54 : vector<8x324xf32>
    %cst_35 = arith.constant 0.000000e+00 : bf16
    %56 = vector.broadcast %cst_35 : bf16 to vector<8x19xbf16>
    %c0_36 = arith.constant 0 : index
    %c0_37 = arith.constant 0 : index
    %c0_38 = arith.constant 0 : index
    %57 = vector.load %arg5[%c0_36, %c0_37, %c0_38] : memref<1x8x362xbf16, #tpu.memory_space<vmem>>, vector<1x8x19xbf16>
    %58 = vector.shape_cast %57 : vector<1x8x19xbf16> to vector<8x19xbf16>
    %59 = vector.shape_cast %56 : vector<8x19xbf16> to vector<1x8x19xbf16>
    tpu.vector_store %arg5[%c0_36, %c0_37, %c0_38], %59 {strides = array<i32>} : memref<1x8x362xbf16, #tpu.memory_space<vmem>>, vector<1x8x19xbf16>,
    %c0_39 = arith.constant 0 : index
    %c0_40 = arith.constant 0 : index
    %c343 = arith.constant 343 : index
    %60 = vector.load %arg5[%c0_39, %c0_40, %c343] : memref<1x8x362xbf16, #tpu.memory_space<vmem>>, vector<1x8x19xbf16>
    %61 = vector.shape_cast %60 : vector<1x8x19xbf16> to vector<8x19xbf16>
    %62 = vector.shape_cast %56 : vector<8x19xbf16> to vector<1x8x19xbf16>
    tpu.vector_store %arg5[%c0_39, %c0_40, %c343], %62 {strides = array<i32>} : memref<1x8x362xbf16, #tpu.memory_space<vmem>>, vector<1x8x19xbf16>,
    %63 = arith.truncf %55 : vector<8x324xf32> to vector<8x324xbf16>
    %c0_41 = arith.constant 0 : index
    %c0_42 = arith.constant 0 : index
    %c19 = arith.constant 19 : index
    %64 = vector.load %arg5[%c0_41, %c0_42, %c19] : memref<1x8x362xbf16, #tpu.memory_space<vmem>>, vector<1x8x324xbf16>
    %65 = vector.shape_cast %64 : vector<1x8x324xbf16> to vector<8x324xbf16>
    %66 = vector.shape_cast %63 : vector<8x324xbf16> to vector<1x8x324xbf16>
    tpu.vector_store %arg5[%c0_41, %c0_42, %c19], %66 {strides = array<i32>} : memref<1x8x362xbf16, #tpu.memory_space<vmem>>, vector<1x8x324xbf16>,
    return
  }
  func.func @transform_0(%arg0: i32) -> (i32, i32, i32) {
    %c0_i32 = arith.constant 0 : i32
    %c0_i32_0 = arith.constant 0 : i32
    %c0_i32_1 = arith.constant 0 : i32
    return %arg0, %c0_i32, %c0_i32_0 : i32, i32, i32
  }
  func.func @transform_1(%arg0: i32) -> (i32, i32, i32) {
    %c0_i32 = arith.constant 0 : i32
    %c0_i32_0 = arith.constant 0 : i32
    %c0_i32_1 = arith.constant 0 : i32
    %c0_i32_2 = arith.constant 0 : i32
    return %c0_i32, %c0_i32_0, %c0_i32_1 : i32, i32, i32
  }
  func.func @transform_2(%arg0: i32) -> (i32, i32) {
    %c0_i32 = arith.constant 0 : i32
    %c0_i32_0 = arith.constant 0 : i32
    %c0_i32_1 = arith.constant 0 : i32
    return %c0_i32, %c0_i32_0 : i32, i32
  }
  func.func @transform_3(%arg0: i32) -> (i32, i32) {
    %c0_i32 = arith.constant 0 : i32
    %c0_i32_0 = arith.constant 0 : i32
    %c0_i32_1 = arith.constant 0 : i32
    return %c0_i32, %c0_i32_0 : i32, i32
  }
  func.func @transform_4(%arg0: i32) -> (i32, i32, i32) {
    %c0_i32 = arith.constant 0 : i32
    %c0_i32_0 = arith.constant 0 : i32
    %c0_i32_1 = arith.constant 0 : i32
    return %arg0, %c0_i32, %c0_i32_0 : i32, i32, i32
  }
}

module attributes {stable_mosaic.version = 11 : i64} {
  func.func @_conv3x3_relu_kernel(%arg0: i32, %arg1: memref<1x16x122xbf16, #tpu.memory_space<vmem>>, %arg2: memref<9x16x16xbf16, #tpu.memory_space<vmem>>, %arg3: memref<16x1xf32, #tpu.memory_space<vmem>>, %arg4: memref<1x100xf32, #tpu.memory_space<vmem>>, %arg5: memref<1x16x122xbf16, #tpu.memory_space<vmem>>) attributes {dimension_semantics = [#tpu.dimension_semantics<parallel>], iteration_bounds = array<i64: 4>, scalar_prefetch = 0 : i64, scratch_operands = 0 : i64, tpu.core_type = #tpu.core_type<tc>, window_params = [{transform_indices = @transform_0, window_bounds = array<i64: 1, 16, 122>}, {pipeline_mode = #tpu.pipeline_mode<synchronous>, transform_indices = @transform_1, window_bounds = array<i64: 9, 16, 16>}, {pipeline_mode = #tpu.pipeline_mode<synchronous>, transform_indices = @transform_2, window_bounds = array<i64: 16, 1>}, {pipeline_mode = #tpu.pipeline_mode<synchronous>, transform_indices = @transform_3, window_bounds = array<i64: 1, 100>}, {transform_indices = @transform_4, window_bounds = array<i64: 1, 16, 122>}]} {
    %c0 = arith.constant 0 : index
    %c0_0 = arith.constant 0 : index
    %c0_1 = arith.constant 0 : index
    %0 = vector.load %arg1[%c0, %c0_0, %c0_1] : memref<1x16x122xbf16, #tpu.memory_space<vmem>>, vector<1x16x122xbf16>
    %1 = vector.shape_cast %0 : vector<1x16x122xbf16> to vector<16x122xbf16>
    %cst = arith.constant 0.000000e+00 : f32
    %2 = vector.broadcast %cst : f32 to vector<16x100xf32>
    %c0_2 = arith.constant 0 : index
    %c0_3 = arith.constant 0 : index
    %c0_4 = arith.constant 0 : index
    %3 = vector.load %arg2[%c0_2, %c0_3, %c0_4] : memref<9x16x16xbf16, #tpu.memory_space<vmem>>, vector<1x16x16xbf16>
    %4 = vector.shape_cast %3 : vector<1x16x16xbf16> to vector<16x16xbf16>
    %5 = vector.extract_strided_slice %1 {offsets = [0, 0], sizes = [16, 100], strides = [1, 1]} : vector<16x122xbf16> to vector<16x100xbf16>
    %cst_5 = arith.constant dense<0.000000e+00> : vector<16x100xf32>
    %6 = tpu.matmul %4, %5, %cst_5 {dimension_numbers = #tpu.dot_dimension_numbers<[1], [0], [0], [1], [0, 0, 1, 1], [], []>} : vector<16x16xbf16>, vector<16x100xbf16>, vector<16x100xf32> -> vector<16x100xf32>
    %7 = arith.addf %2, %6 : vector<16x100xf32>
    %c1 = arith.constant 1 : index
    %c0_6 = arith.constant 0 : index
    %c0_7 = arith.constant 0 : index
    %8 = vector.load %arg2[%c1, %c0_6, %c0_7] : memref<9x16x16xbf16, #tpu.memory_space<vmem>>, vector<1x16x16xbf16>
    %9 = vector.shape_cast %8 : vector<1x16x16xbf16> to vector<16x16xbf16>
    %10 = vector.extract_strided_slice %1 {offsets = [0, 1], sizes = [16, 100], strides = [1, 1]} : vector<16x122xbf16> to vector<16x100xbf16>
    %cst_8 = arith.constant dense<0.000000e+00> : vector<16x100xf32>
    %11 = tpu.matmul %9, %10, %cst_8 {dimension_numbers = #tpu.dot_dimension_numbers<[1], [0], [0], [1], [0, 0, 1, 1], [], []>} : vector<16x16xbf16>, vector<16x100xbf16>, vector<16x100xf32> -> vector<16x100xf32>
    %12 = arith.addf %7, %11 : vector<16x100xf32>
    %c2 = arith.constant 2 : index
    %c0_9 = arith.constant 0 : index
    %c0_10 = arith.constant 0 : index
    %13 = vector.load %arg2[%c2, %c0_9, %c0_10] : memref<9x16x16xbf16, #tpu.memory_space<vmem>>, vector<1x16x16xbf16>
    %14 = vector.shape_cast %13 : vector<1x16x16xbf16> to vector<16x16xbf16>
    %15 = vector.extract_strided_slice %1 {offsets = [0, 2], sizes = [16, 100], strides = [1, 1]} : vector<16x122xbf16> to vector<16x100xbf16>
    %cst_11 = arith.constant dense<0.000000e+00> : vector<16x100xf32>
    %16 = tpu.matmul %14, %15, %cst_11 {dimension_numbers = #tpu.dot_dimension_numbers<[1], [0], [0], [1], [0, 0, 1, 1], [], []>} : vector<16x16xbf16>, vector<16x100xbf16>, vector<16x100xf32> -> vector<16x100xf32>
    %17 = arith.addf %12, %16 : vector<16x100xf32>
    %c3 = arith.constant 3 : index
    %c0_12 = arith.constant 0 : index
    %c0_13 = arith.constant 0 : index
    %18 = vector.load %arg2[%c3, %c0_12, %c0_13] : memref<9x16x16xbf16, #tpu.memory_space<vmem>>, vector<1x16x16xbf16>
    %19 = vector.shape_cast %18 : vector<1x16x16xbf16> to vector<16x16xbf16>
    %20 = vector.extract_strided_slice %1 {offsets = [0, 10], sizes = [16, 100], strides = [1, 1]} : vector<16x122xbf16> to vector<16x100xbf16>
    %cst_14 = arith.constant dense<0.000000e+00> : vector<16x100xf32>
    %21 = tpu.matmul %19, %20, %cst_14 {dimension_numbers = #tpu.dot_dimension_numbers<[1], [0], [0], [1], [0, 0, 1, 1], [], []>} : vector<16x16xbf16>, vector<16x100xbf16>, vector<16x100xf32> -> vector<16x100xf32>
    %22 = arith.addf %17, %21 : vector<16x100xf32>
    %c4 = arith.constant 4 : index
    %c0_15 = arith.constant 0 : index
    %c0_16 = arith.constant 0 : index
    %23 = vector.load %arg2[%c4, %c0_15, %c0_16] : memref<9x16x16xbf16, #tpu.memory_space<vmem>>, vector<1x16x16xbf16>
    %24 = vector.shape_cast %23 : vector<1x16x16xbf16> to vector<16x16xbf16>
    %25 = vector.extract_strided_slice %1 {offsets = [0, 11], sizes = [16, 100], strides = [1, 1]} : vector<16x122xbf16> to vector<16x100xbf16>
    %cst_17 = arith.constant dense<0.000000e+00> : vector<16x100xf32>
    %26 = tpu.matmul %24, %25, %cst_17 {dimension_numbers = #tpu.dot_dimension_numbers<[1], [0], [0], [1], [0, 0, 1, 1], [], []>} : vector<16x16xbf16>, vector<16x100xbf16>, vector<16x100xf32> -> vector<16x100xf32>
    %27 = arith.addf %22, %26 : vector<16x100xf32>
    %c5 = arith.constant 5 : index
    %c0_18 = arith.constant 0 : index
    %c0_19 = arith.constant 0 : index
    %28 = vector.load %arg2[%c5, %c0_18, %c0_19] : memref<9x16x16xbf16, #tpu.memory_space<vmem>>, vector<1x16x16xbf16>
    %29 = vector.shape_cast %28 : vector<1x16x16xbf16> to vector<16x16xbf16>
    %30 = vector.extract_strided_slice %1 {offsets = [0, 12], sizes = [16, 100], strides = [1, 1]} : vector<16x122xbf16> to vector<16x100xbf16>
    %cst_20 = arith.constant dense<0.000000e+00> : vector<16x100xf32>
    %31 = tpu.matmul %29, %30, %cst_20 {dimension_numbers = #tpu.dot_dimension_numbers<[1], [0], [0], [1], [0, 0, 1, 1], [], []>} : vector<16x16xbf16>, vector<16x100xbf16>, vector<16x100xf32> -> vector<16x100xf32>
    %32 = arith.addf %27, %31 : vector<16x100xf32>
    %c6 = arith.constant 6 : index
    %c0_21 = arith.constant 0 : index
    %c0_22 = arith.constant 0 : index
    %33 = vector.load %arg2[%c6, %c0_21, %c0_22] : memref<9x16x16xbf16, #tpu.memory_space<vmem>>, vector<1x16x16xbf16>
    %34 = vector.shape_cast %33 : vector<1x16x16xbf16> to vector<16x16xbf16>
    %35 = vector.extract_strided_slice %1 {offsets = [0, 20], sizes = [16, 100], strides = [1, 1]} : vector<16x122xbf16> to vector<16x100xbf16>
    %cst_23 = arith.constant dense<0.000000e+00> : vector<16x100xf32>
    %36 = tpu.matmul %34, %35, %cst_23 {dimension_numbers = #tpu.dot_dimension_numbers<[1], [0], [0], [1], [0, 0, 1, 1], [], []>} : vector<16x16xbf16>, vector<16x100xbf16>, vector<16x100xf32> -> vector<16x100xf32>
    %37 = arith.addf %32, %36 : vector<16x100xf32>
    %c7 = arith.constant 7 : index
    %c0_24 = arith.constant 0 : index
    %c0_25 = arith.constant 0 : index
    %38 = vector.load %arg2[%c7, %c0_24, %c0_25] : memref<9x16x16xbf16, #tpu.memory_space<vmem>>, vector<1x16x16xbf16>
    %39 = vector.shape_cast %38 : vector<1x16x16xbf16> to vector<16x16xbf16>
    %40 = vector.extract_strided_slice %1 {offsets = [0, 21], sizes = [16, 100], strides = [1, 1]} : vector<16x122xbf16> to vector<16x100xbf16>
    %cst_26 = arith.constant dense<0.000000e+00> : vector<16x100xf32>
    %41 = tpu.matmul %39, %40, %cst_26 {dimension_numbers = #tpu.dot_dimension_numbers<[1], [0], [0], [1], [0, 0, 1, 1], [], []>} : vector<16x16xbf16>, vector<16x100xbf16>, vector<16x100xf32> -> vector<16x100xf32>
    %42 = arith.addf %37, %41 : vector<16x100xf32>
    %c8 = arith.constant 8 : index
    %c0_27 = arith.constant 0 : index
    %c0_28 = arith.constant 0 : index
    %43 = vector.load %arg2[%c8, %c0_27, %c0_28] : memref<9x16x16xbf16, #tpu.memory_space<vmem>>, vector<1x16x16xbf16>
    %44 = vector.shape_cast %43 : vector<1x16x16xbf16> to vector<16x16xbf16>
    %45 = vector.extract_strided_slice %1 {offsets = [0, 22], sizes = [16, 100], strides = [1, 1]} : vector<16x122xbf16> to vector<16x100xbf16>
    %cst_29 = arith.constant dense<0.000000e+00> : vector<16x100xf32>
    %46 = tpu.matmul %44, %45, %cst_29 {dimension_numbers = #tpu.dot_dimension_numbers<[1], [0], [0], [1], [0, 0, 1, 1], [], []>} : vector<16x16xbf16>, vector<16x100xbf16>, vector<16x100xf32> -> vector<16x100xf32>
    %47 = arith.addf %42, %46 : vector<16x100xf32>
    %c0_30 = arith.constant 0 : index
    %c0_31 = arith.constant 0 : index
    %48 = vector.load %arg3[%c0_30, %c0_31] : memref<16x1xf32, #tpu.memory_space<vmem>>, vector<16x1xf32>
    %49 = vector.broadcast %48 : vector<16x1xf32> to vector<16x100xf32>
    %50 = arith.addf %47, %49 : vector<16x100xf32>
    %cst_32 = arith.constant 0.000000e+00 : f32
    %51 = vector.broadcast %cst_32 : f32 to vector<16x100xf32>
    %52 = arith.maximumf %50, %51 : vector<16x100xf32>
    %c0_33 = arith.constant 0 : index
    %c0_34 = arith.constant 0 : index
    %53 = vector.load %arg4[%c0_33, %c0_34] : memref<1x100xf32, #tpu.memory_space<vmem>>, vector<1x100xf32>
    %54 = vector.broadcast %53 : vector<1x100xf32> to vector<16x100xf32>
    %55 = arith.mulf %52, %54 : vector<16x100xf32>
    %cst_35 = arith.constant 0.000000e+00 : bf16
    %56 = vector.broadcast %cst_35 : bf16 to vector<16x11xbf16>
    %c0_36 = arith.constant 0 : index
    %c0_37 = arith.constant 0 : index
    %c0_38 = arith.constant 0 : index
    %57 = vector.load %arg5[%c0_36, %c0_37, %c0_38] : memref<1x16x122xbf16, #tpu.memory_space<vmem>>, vector<1x16x11xbf16>
    %58 = vector.shape_cast %57 : vector<1x16x11xbf16> to vector<16x11xbf16>
    %59 = vector.shape_cast %56 : vector<16x11xbf16> to vector<1x16x11xbf16>
    tpu.vector_store %arg5[%c0_36, %c0_37, %c0_38], %59 {strides = array<i32>} : memref<1x16x122xbf16, #tpu.memory_space<vmem>>, vector<1x16x11xbf16>,
    %c0_39 = arith.constant 0 : index
    %c0_40 = arith.constant 0 : index
    %c111 = arith.constant 111 : index
    %60 = vector.load %arg5[%c0_39, %c0_40, %c111] : memref<1x16x122xbf16, #tpu.memory_space<vmem>>, vector<1x16x11xbf16>
    %61 = vector.shape_cast %60 : vector<1x16x11xbf16> to vector<16x11xbf16>
    %62 = vector.shape_cast %56 : vector<16x11xbf16> to vector<1x16x11xbf16>
    tpu.vector_store %arg5[%c0_39, %c0_40, %c111], %62 {strides = array<i32>} : memref<1x16x122xbf16, #tpu.memory_space<vmem>>, vector<1x16x11xbf16>,
    %63 = arith.truncf %55 : vector<16x100xf32> to vector<16x100xbf16>
    %c0_41 = arith.constant 0 : index
    %c0_42 = arith.constant 0 : index
    %c11 = arith.constant 11 : index
    %64 = vector.load %arg5[%c0_41, %c0_42, %c11] : memref<1x16x122xbf16, #tpu.memory_space<vmem>>, vector<1x16x100xbf16>
    %65 = vector.shape_cast %64 : vector<1x16x100xbf16> to vector<16x100xbf16>
    %66 = vector.shape_cast %63 : vector<16x100xbf16> to vector<1x16x100xbf16>
    tpu.vector_store %arg5[%c0_41, %c0_42, %c11], %66 {strides = array<i32>} : memref<1x16x122xbf16, #tpu.memory_space<vmem>>, vector<1x16x100xbf16>,
    return
  }
  func.func @transform_0(%arg0: i32) -> (i32, i32, i32) {
    %c0_i32 = arith.constant 0 : i32
    %c0_i32_0 = arith.constant 0 : i32
    %c0_i32_1 = arith.constant 0 : i32
    return %arg0, %c0_i32, %c0_i32_0 : i32, i32, i32
  }
  func.func @transform_1(%arg0: i32) -> (i32, i32, i32) {
    %c0_i32 = arith.constant 0 : i32
    %c0_i32_0 = arith.constant 0 : i32
    %c0_i32_1 = arith.constant 0 : i32
    %c0_i32_2 = arith.constant 0 : i32
    return %c0_i32, %c0_i32_0, %c0_i32_1 : i32, i32, i32
  }
  func.func @transform_2(%arg0: i32) -> (i32, i32) {
    %c0_i32 = arith.constant 0 : i32
    %c0_i32_0 = arith.constant 0 : i32
    %c0_i32_1 = arith.constant 0 : i32
    return %c0_i32, %c0_i32_0 : i32, i32
  }
  func.func @transform_3(%arg0: i32) -> (i32, i32) {
    %c0_i32 = arith.constant 0 : i32
    %c0_i32_0 = arith.constant 0 : i32
    %c0_i32_1 = arith.constant 0 : i32
    return %c0_i32, %c0_i32_0 : i32, i32
  }
  func.func @transform_4(%arg0: i32) -> (i32, i32, i32) {
    %c0_i32 = arith.constant 0 : i32
    %c0_i32_0 = arith.constant 0 : i32
    %c0_i32_1 = arith.constant 0 : i32
    return %arg0, %c0_i32, %c0_i32_0 : i32, i32, i32
  }
}

module attributes {stable_mosaic.version = 11 : i64} {
  func.func @_conv3x3_relu_kernel(%arg0: i32, %arg1: memref<1x8x122xbf16, #tpu.memory_space<vmem>>, %arg2: memref<9x16x8xbf16, #tpu.memory_space<vmem>>, %arg3: memref<16x1xf32, #tpu.memory_space<vmem>>, %arg4: memref<1x100xf32, #tpu.memory_space<vmem>>, %arg5: memref<1x16x122xbf16, #tpu.memory_space<vmem>>) attributes {dimension_semantics = [#tpu.dimension_semantics<parallel>], iteration_bounds = array<i64: 4>, scalar_prefetch = 0 : i64, scratch_operands = 0 : i64, tpu.core_type = #tpu.core_type<tc>, window_params = [{transform_indices = @transform_0, window_bounds = array<i64: 1, 8, 122>}, {pipeline_mode = #tpu.pipeline_mode<synchronous>, transform_indices = @transform_1, window_bounds = array<i64: 9, 16, 8>}, {pipeline_mode = #tpu.pipeline_mode<synchronous>, transform_indices = @transform_2, window_bounds = array<i64: 16, 1>}, {pipeline_mode = #tpu.pipeline_mode<synchronous>, transform_indices = @transform_3, window_bounds = array<i64: 1, 100>}, {transform_indices = @transform_4, window_bounds = array<i64: 1, 16, 122>}]} {
    %c0 = arith.constant 0 : index
    %c0_0 = arith.constant 0 : index
    %c0_1 = arith.constant 0 : index
    %0 = vector.load %arg1[%c0, %c0_0, %c0_1] : memref<1x8x122xbf16, #tpu.memory_space<vmem>>, vector<1x8x122xbf16>
    %1 = vector.shape_cast %0 : vector<1x8x122xbf16> to vector<8x122xbf16>
    %cst = arith.constant 0.000000e+00 : f32
    %2 = vector.broadcast %cst : f32 to vector<16x100xf32>
    %c0_2 = arith.constant 0 : index
    %c0_3 = arith.constant 0 : index
    %c0_4 = arith.constant 0 : index
    %3 = vector.load %arg2[%c0_2, %c0_3, %c0_4] : memref<9x16x8xbf16, #tpu.memory_space<vmem>>, vector<1x16x8xbf16>
    %4 = vector.shape_cast %3 : vector<1x16x8xbf16> to vector<16x8xbf16>
    %5 = vector.extract_strided_slice %1 {offsets = [0, 0], sizes = [8, 100], strides = [1, 1]} : vector<8x122xbf16> to vector<8x100xbf16>
    %cst_5 = arith.constant dense<0.000000e+00> : vector<16x100xf32>
    %6 = tpu.matmul %4, %5, %cst_5 {dimension_numbers = #tpu.dot_dimension_numbers<[1], [0], [0], [1], [0, 0, 1, 1], [], []>} : vector<16x8xbf16>, vector<8x100xbf16>, vector<16x100xf32> -> vector<16x100xf32>
    %7 = arith.addf %2, %6 : vector<16x100xf32>
    %c1 = arith.constant 1 : index
    %c0_6 = arith.constant 0 : index
    %c0_7 = arith.constant 0 : index
    %8 = vector.load %arg2[%c1, %c0_6, %c0_7] : memref<9x16x8xbf16, #tpu.memory_space<vmem>>, vector<1x16x8xbf16>
    %9 = vector.shape_cast %8 : vector<1x16x8xbf16> to vector<16x8xbf16>
    %10 = vector.extract_strided_slice %1 {offsets = [0, 1], sizes = [8, 100], strides = [1, 1]} : vector<8x122xbf16> to vector<8x100xbf16>
    %cst_8 = arith.constant dense<0.000000e+00> : vector<16x100xf32>
    %11 = tpu.matmul %9, %10, %cst_8 {dimension_numbers = #tpu.dot_dimension_numbers<[1], [0], [0], [1], [0, 0, 1, 1], [], []>} : vector<16x8xbf16>, vector<8x100xbf16>, vector<16x100xf32> -> vector<16x100xf32>
    %12 = arith.addf %7, %11 : vector<16x100xf32>
    %c2 = arith.constant 2 : index
    %c0_9 = arith.constant 0 : index
    %c0_10 = arith.constant 0 : index
    %13 = vector.load %arg2[%c2, %c0_9, %c0_10] : memref<9x16x8xbf16, #tpu.memory_space<vmem>>, vector<1x16x8xbf16>
    %14 = vector.shape_cast %13 : vector<1x16x8xbf16> to vector<16x8xbf16>
    %15 = vector.extract_strided_slice %1 {offsets = [0, 2], sizes = [8, 100], strides = [1, 1]} : vector<8x122xbf16> to vector<8x100xbf16>
    %cst_11 = arith.constant dense<0.000000e+00> : vector<16x100xf32>
    %16 = tpu.matmul %14, %15, %cst_11 {dimension_numbers = #tpu.dot_dimension_numbers<[1], [0], [0], [1], [0, 0, 1, 1], [], []>} : vector<16x8xbf16>, vector<8x100xbf16>, vector<16x100xf32> -> vector<16x100xf32>
    %17 = arith.addf %12, %16 : vector<16x100xf32>
    %c3 = arith.constant 3 : index
    %c0_12 = arith.constant 0 : index
    %c0_13 = arith.constant 0 : index
    %18 = vector.load %arg2[%c3, %c0_12, %c0_13] : memref<9x16x8xbf16, #tpu.memory_space<vmem>>, vector<1x16x8xbf16>
    %19 = vector.shape_cast %18 : vector<1x16x8xbf16> to vector<16x8xbf16>
    %20 = vector.extract_strided_slice %1 {offsets = [0, 10], sizes = [8, 100], strides = [1, 1]} : vector<8x122xbf16> to vector<8x100xbf16>
    %cst_14 = arith.constant dense<0.000000e+00> : vector<16x100xf32>
    %21 = tpu.matmul %19, %20, %cst_14 {dimension_numbers = #tpu.dot_dimension_numbers<[1], [0], [0], [1], [0, 0, 1, 1], [], []>} : vector<16x8xbf16>, vector<8x100xbf16>, vector<16x100xf32> -> vector<16x100xf32>
    %22 = arith.addf %17, %21 : vector<16x100xf32>
    %c4 = arith.constant 4 : index
    %c0_15 = arith.constant 0 : index
    %c0_16 = arith.constant 0 : index
    %23 = vector.load %arg2[%c4, %c0_15, %c0_16] : memref<9x16x8xbf16, #tpu.memory_space<vmem>>, vector<1x16x8xbf16>
    %24 = vector.shape_cast %23 : vector<1x16x8xbf16> to vector<16x8xbf16>
    %25 = vector.extract_strided_slice %1 {offsets = [0, 11], sizes = [8, 100], strides = [1, 1]} : vector<8x122xbf16> to vector<8x100xbf16>
    %cst_17 = arith.constant dense<0.000000e+00> : vector<16x100xf32>
    %26 = tpu.matmul %24, %25, %cst_17 {dimension_numbers = #tpu.dot_dimension_numbers<[1], [0], [0], [1], [0, 0, 1, 1], [], []>} : vector<16x8xbf16>, vector<8x100xbf16>, vector<16x100xf32> -> vector<16x100xf32>
    %27 = arith.addf %22, %26 : vector<16x100xf32>
    %c5 = arith.constant 5 : index
    %c0_18 = arith.constant 0 : index
    %c0_19 = arith.constant 0 : index
    %28 = vector.load %arg2[%c5, %c0_18, %c0_19] : memref<9x16x8xbf16, #tpu.memory_space<vmem>>, vector<1x16x8xbf16>
    %29 = vector.shape_cast %28 : vector<1x16x8xbf16> to vector<16x8xbf16>
    %30 = vector.extract_strided_slice %1 {offsets = [0, 12], sizes = [8, 100], strides = [1, 1]} : vector<8x122xbf16> to vector<8x100xbf16>
    %cst_20 = arith.constant dense<0.000000e+00> : vector<16x100xf32>
    %31 = tpu.matmul %29, %30, %cst_20 {dimension_numbers = #tpu.dot_dimension_numbers<[1], [0], [0], [1], [0, 0, 1, 1], [], []>} : vector<16x8xbf16>, vector<8x100xbf16>, vector<16x100xf32> -> vector<16x100xf32>
    %32 = arith.addf %27, %31 : vector<16x100xf32>
    %c6 = arith.constant 6 : index
    %c0_21 = arith.constant 0 : index
    %c0_22 = arith.constant 0 : index
    %33 = vector.load %arg2[%c6, %c0_21, %c0_22] : memref<9x16x8xbf16, #tpu.memory_space<vmem>>, vector<1x16x8xbf16>
    %34 = vector.shape_cast %33 : vector<1x16x8xbf16> to vector<16x8xbf16>
    %35 = vector.extract_strided_slice %1 {offsets = [0, 20], sizes = [8, 100], strides = [1, 1]} : vector<8x122xbf16> to vector<8x100xbf16>
    %cst_23 = arith.constant dense<0.000000e+00> : vector<16x100xf32>
    %36 = tpu.matmul %34, %35, %cst_23 {dimension_numbers = #tpu.dot_dimension_numbers<[1], [0], [0], [1], [0, 0, 1, 1], [], []>} : vector<16x8xbf16>, vector<8x100xbf16>, vector<16x100xf32> -> vector<16x100xf32>
    %37 = arith.addf %32, %36 : vector<16x100xf32>
    %c7 = arith.constant 7 : index
    %c0_24 = arith.constant 0 : index
    %c0_25 = arith.constant 0 : index
    %38 = vector.load %arg2[%c7, %c0_24, %c0_25] : memref<9x16x8xbf16, #tpu.memory_space<vmem>>, vector<1x16x8xbf16>
    %39 = vector.shape_cast %38 : vector<1x16x8xbf16> to vector<16x8xbf16>
    %40 = vector.extract_strided_slice %1 {offsets = [0, 21], sizes = [8, 100], strides = [1, 1]} : vector<8x122xbf16> to vector<8x100xbf16>
    %cst_26 = arith.constant dense<0.000000e+00> : vector<16x100xf32>
    %41 = tpu.matmul %39, %40, %cst_26 {dimension_numbers = #tpu.dot_dimension_numbers<[1], [0], [0], [1], [0, 0, 1, 1], [], []>} : vector<16x8xbf16>, vector<8x100xbf16>, vector<16x100xf32> -> vector<16x100xf32>
    %42 = arith.addf %37, %41 : vector<16x100xf32>
    %c8 = arith.constant 8 : index
    %c0_27 = arith.constant 0 : index
    %c0_28 = arith.constant 0 : index
    %43 = vector.load %arg2[%c8, %c0_27, %c0_28] : memref<9x16x8xbf16, #tpu.memory_space<vmem>>, vector<1x16x8xbf16>
    %44 = vector.shape_cast %43 : vector<1x16x8xbf16> to vector<16x8xbf16>
    %45 = vector.extract_strided_slice %1 {offsets = [0, 22], sizes = [8, 100], strides = [1, 1]} : vector<8x122xbf16> to vector<8x100xbf16>
    %cst_29 = arith.constant dense<0.000000e+00> : vector<16x100xf32>
    %46 = tpu.matmul %44, %45, %cst_29 {dimension_numbers = #tpu.dot_dimension_numbers<[1], [0], [0], [1], [0, 0, 1, 1], [], []>} : vector<16x8xbf16>, vector<8x100xbf16>, vector<16x100xf32> -> vector<16x100xf32>
    %47 = arith.addf %42, %46 : vector<16x100xf32>
    %c0_30 = arith.constant 0 : index
    %c0_31 = arith.constant 0 : index
    %48 = vector.load %arg3[%c0_30, %c0_31] : memref<16x1xf32, #tpu.memory_space<vmem>>, vector<16x1xf32>
    %49 = vector.broadcast %48 : vector<16x1xf32> to vector<16x100xf32>
    %50 = arith.addf %47, %49 : vector<16x100xf32>
    %cst_32 = arith.constant 0.000000e+00 : f32
    %51 = vector.broadcast %cst_32 : f32 to vector<16x100xf32>
    %52 = arith.maximumf %50, %51 : vector<16x100xf32>
    %c0_33 = arith.constant 0 : index
    %c0_34 = arith.constant 0 : index
    %53 = vector.load %arg4[%c0_33, %c0_34] : memref<1x100xf32, #tpu.memory_space<vmem>>, vector<1x100xf32>
    %54 = vector.broadcast %53 : vector<1x100xf32> to vector<16x100xf32>
    %55 = arith.mulf %52, %54 : vector<16x100xf32>
    %cst_35 = arith.constant 0.000000e+00 : bf16
    %56 = vector.broadcast %cst_35 : bf16 to vector<16x11xbf16>
    %c0_36 = arith.constant 0 : index
    %c0_37 = arith.constant 0 : index
    %c0_38 = arith.constant 0 : index
    %57 = vector.load %arg5[%c0_36, %c0_37, %c0_38] : memref<1x16x122xbf16, #tpu.memory_space<vmem>>, vector<1x16x11xbf16>
    %58 = vector.shape_cast %57 : vector<1x16x11xbf16> to vector<16x11xbf16>
    %59 = vector.shape_cast %56 : vector<16x11xbf16> to vector<1x16x11xbf16>
    tpu.vector_store %arg5[%c0_36, %c0_37, %c0_38], %59 {strides = array<i32>} : memref<1x16x122xbf16, #tpu.memory_space<vmem>>, vector<1x16x11xbf16>,
    %c0_39 = arith.constant 0 : index
    %c0_40 = arith.constant 0 : index
    %c111 = arith.constant 111 : index
    %60 = vector.load %arg5[%c0_39, %c0_40, %c111] : memref<1x16x122xbf16, #tpu.memory_space<vmem>>, vector<1x16x11xbf16>
    %61 = vector.shape_cast %60 : vector<1x16x11xbf16> to vector<16x11xbf16>
    %62 = vector.shape_cast %56 : vector<16x11xbf16> to vector<1x16x11xbf16>
    tpu.vector_store %arg5[%c0_39, %c0_40, %c111], %62 {strides = array<i32>} : memref<1x16x122xbf16, #tpu.memory_space<vmem>>, vector<1x16x11xbf16>,
    %63 = arith.truncf %55 : vector<16x100xf32> to vector<16x100xbf16>
    %c0_41 = arith.constant 0 : index
    %c0_42 = arith.constant 0 : index
    %c11 = arith.constant 11 : index
    %64 = vector.load %arg5[%c0_41, %c0_42, %c11] : memref<1x16x122xbf16, #tpu.memory_space<vmem>>, vector<1x16x100xbf16>
    %65 = vector.shape_cast %64 : vector<1x16x100xbf16> to vector<16x100xbf16>
    %66 = vector.shape_cast %63 : vector<16x100xbf16> to vector<1x16x100xbf16>
    tpu.vector_store %arg5[%c0_41, %c0_42, %c11], %66 {strides = array<i32>} : memref<1x16x122xbf16, #tpu.memory_space<vmem>>, vector<1x16x100xbf16>,
    return
  }
  func.func @transform_0(%arg0: i32) -> (i32, i32, i32) {
    %c0_i32 = arith.constant 0 : i32
    %c0_i32_0 = arith.constant 0 : i32
    %c0_i32_1 = arith.constant 0 : i32
    return %arg0, %c0_i32, %c0_i32_0 : i32, i32, i32
  }
  func.func @transform_1(%arg0: i32) -> (i32, i32, i32) {
    %c0_i32 = arith.constant 0 : i32
    %c0_i32_0 = arith.constant 0 : i32
    %c0_i32_1 = arith.constant 0 : i32
    %c0_i32_2 = arith.constant 0 : i32
    return %c0_i32, %c0_i32_0, %c0_i32_1 : i32, i32, i32
  }
  func.func @transform_2(%arg0: i32) -> (i32, i32) {
    %c0_i32 = arith.constant 0 : i32
    %c0_i32_0 = arith.constant 0 : i32
    %c0_i32_1 = arith.constant 0 : i32
    return %c0_i32, %c0_i32_0 : i32, i32
  }
  func.func @transform_3(%arg0: i32) -> (i32, i32) {
    %c0_i32 = arith.constant 0 : i32
    %c0_i32_0 = arith.constant 0 : i32
    %c0_i32_1 = arith.constant 0 : i32
    return %c0_i32, %c0_i32_0 : i32, i32
  }
  func.func @transform_4(%arg0: i32) -> (i32, i32, i32) {
    %c0_i32 = arith.constant 0 : i32
    %c0_i32_0 = arith.constant 0 : i32
    %c0_i32_1 = arith.constant 0 : i32
    return %arg0, %c0_i32, %c0_i32_0 : i32, i32, i32
  }
}

module attributes {stable_mosaic.version = 11 : i64} {
  func.func @_conv3x3_relu_kernel(%arg0: i32, %arg1: memref<1x16x50xbf16, #tpu.memory_space<vmem>>, %arg2: memref<9x32x16xbf16, #tpu.memory_space<vmem>>, %arg3: memref<32x1xf32, #tpu.memory_space<vmem>>, %arg4: memref<1x36xf32, #tpu.memory_space<vmem>>, %arg5: memref<1x32x50xbf16, #tpu.memory_space<vmem>>) attributes {dimension_semantics = [#tpu.dimension_semantics<parallel>], iteration_bounds = array<i64: 4>, scalar_prefetch = 0 : i64, scratch_operands = 0 : i64, tpu.core_type = #tpu.core_type<tc>, window_params = [{transform_indices = @transform_0, window_bounds = array<i64: 1, 16, 50>}, {pipeline_mode = #tpu.pipeline_mode<synchronous>, transform_indices = @transform_1, window_bounds = array<i64: 9, 32, 16>}, {pipeline_mode = #tpu.pipeline_mode<synchronous>, transform_indices = @transform_2, window_bounds = array<i64: 32, 1>}, {pipeline_mode = #tpu.pipeline_mode<synchronous>, transform_indices = @transform_3, window_bounds = array<i64: 1, 36>}, {transform_indices = @transform_4, window_bounds = array<i64: 1, 32, 50>}]} {
    %c0 = arith.constant 0 : index
    %c0_0 = arith.constant 0 : index
    %c0_1 = arith.constant 0 : index
    %0 = vector.load %arg1[%c0, %c0_0, %c0_1] : memref<1x16x50xbf16, #tpu.memory_space<vmem>>, vector<1x16x50xbf16>
    %1 = vector.shape_cast %0 : vector<1x16x50xbf16> to vector<16x50xbf16>
    %cst = arith.constant 0.000000e+00 : f32
    %2 = vector.broadcast %cst : f32 to vector<32x36xf32>
    %c0_2 = arith.constant 0 : index
    %c0_3 = arith.constant 0 : index
    %c0_4 = arith.constant 0 : index
    %3 = vector.load %arg2[%c0_2, %c0_3, %c0_4] : memref<9x32x16xbf16, #tpu.memory_space<vmem>>, vector<1x32x16xbf16>
    %4 = vector.shape_cast %3 : vector<1x32x16xbf16> to vector<32x16xbf16>
    %5 = vector.extract_strided_slice %1 {offsets = [0, 0], sizes = [16, 36], strides = [1, 1]} : vector<16x50xbf16> to vector<16x36xbf16>
    %cst_5 = arith.constant dense<0.000000e+00> : vector<32x36xf32>
    %6 = tpu.matmul %4, %5, %cst_5 {dimension_numbers = #tpu.dot_dimension_numbers<[1], [0], [0], [1], [0, 0, 1, 1], [], []>} : vector<32x16xbf16>, vector<16x36xbf16>, vector<32x36xf32> -> vector<32x36xf32>
    %7 = arith.addf %2, %6 : vector<32x36xf32>
    %c1 = arith.constant 1 : index
    %c0_6 = arith.constant 0 : index
    %c0_7 = arith.constant 0 : index
    %8 = vector.load %arg2[%c1, %c0_6, %c0_7] : memref<9x32x16xbf16, #tpu.memory_space<vmem>>, vector<1x32x16xbf16>
    %9 = vector.shape_cast %8 : vector<1x32x16xbf16> to vector<32x16xbf16>
    %10 = vector.extract_strided_slice %1 {offsets = [0, 1], sizes = [16, 36], strides = [1, 1]} : vector<16x50xbf16> to vector<16x36xbf16>
    %cst_8 = arith.constant dense<0.000000e+00> : vector<32x36xf32>
    %11 = tpu.matmul %9, %10, %cst_8 {dimension_numbers = #tpu.dot_dimension_numbers<[1], [0], [0], [1], [0, 0, 1, 1], [], []>} : vector<32x16xbf16>, vector<16x36xbf16>, vector<32x36xf32> -> vector<32x36xf32>
    %12 = arith.addf %7, %11 : vector<32x36xf32>
    %c2 = arith.constant 2 : index
    %c0_9 = arith.constant 0 : index
    %c0_10 = arith.constant 0 : index
    %13 = vector.load %arg2[%c2, %c0_9, %c0_10] : memref<9x32x16xbf16, #tpu.memory_space<vmem>>, vector<1x32x16xbf16>
    %14 = vector.shape_cast %13 : vector<1x32x16xbf16> to vector<32x16xbf16>
    %15 = vector.extract_strided_slice %1 {offsets = [0, 2], sizes = [16, 36], strides = [1, 1]} : vector<16x50xbf16> to vector<16x36xbf16>
    %cst_11 = arith.constant dense<0.000000e+00> : vector<32x36xf32>
    %16 = tpu.matmul %14, %15, %cst_11 {dimension_numbers = #tpu.dot_dimension_numbers<[1], [0], [0], [1], [0, 0, 1, 1], [], []>} : vector<32x16xbf16>, vector<16x36xbf16>, vector<32x36xf32> -> vector<32x36xf32>
    %17 = arith.addf %12, %16 : vector<32x36xf32>
    %c3 = arith.constant 3 : index
    %c0_12 = arith.constant 0 : index
    %c0_13 = arith.constant 0 : index
    %18 = vector.load %arg2[%c3, %c0_12, %c0_13] : memref<9x32x16xbf16, #tpu.memory_space<vmem>>, vector<1x32x16xbf16>
    %19 = vector.shape_cast %18 : vector<1x32x16xbf16> to vector<32x16xbf16>
    %20 = vector.extract_strided_slice %1 {offsets = [0, 6], sizes = [16, 36], strides = [1, 1]} : vector<16x50xbf16> to vector<16x36xbf16>
    %cst_14 = arith.constant dense<0.000000e+00> : vector<32x36xf32>
    %21 = tpu.matmul %19, %20, %cst_14 {dimension_numbers = #tpu.dot_dimension_numbers<[1], [0], [0], [1], [0, 0, 1, 1], [], []>} : vector<32x16xbf16>, vector<16x36xbf16>, vector<32x36xf32> -> vector<32x36xf32>
    %22 = arith.addf %17, %21 : vector<32x36xf32>
    %c4 = arith.constant 4 : index
    %c0_15 = arith.constant 0 : index
    %c0_16 = arith.constant 0 : index
    %23 = vector.load %arg2[%c4, %c0_15, %c0_16] : memref<9x32x16xbf16, #tpu.memory_space<vmem>>, vector<1x32x16xbf16>
    %24 = vector.shape_cast %23 : vector<1x32x16xbf16> to vector<32x16xbf16>
    %25 = vector.extract_strided_slice %1 {offsets = [0, 7], sizes = [16, 36], strides = [1, 1]} : vector<16x50xbf16> to vector<16x36xbf16>
    %cst_17 = arith.constant dense<0.000000e+00> : vector<32x36xf32>
    %26 = tpu.matmul %24, %25, %cst_17 {dimension_numbers = #tpu.dot_dimension_numbers<[1], [0], [0], [1], [0, 0, 1, 1], [], []>} : vector<32x16xbf16>, vector<16x36xbf16>, vector<32x36xf32> -> vector<32x36xf32>
    %27 = arith.addf %22, %26 : vector<32x36xf32>
    %c5 = arith.constant 5 : index
    %c0_18 = arith.constant 0 : index
    %c0_19 = arith.constant 0 : index
    %28 = vector.load %arg2[%c5, %c0_18, %c0_19] : memref<9x32x16xbf16, #tpu.memory_space<vmem>>, vector<1x32x16xbf16>
    %29 = vector.shape_cast %28 : vector<1x32x16xbf16> to vector<32x16xbf16>
    %30 = vector.extract_strided_slice %1 {offsets = [0, 8], sizes = [16, 36], strides = [1, 1]} : vector<16x50xbf16> to vector<16x36xbf16>
    %cst_20 = arith.constant dense<0.000000e+00> : vector<32x36xf32>
    %31 = tpu.matmul %29, %30, %cst_20 {dimension_numbers = #tpu.dot_dimension_numbers<[1], [0], [0], [1], [0, 0, 1, 1], [], []>} : vector<32x16xbf16>, vector<16x36xbf16>, vector<32x36xf32> -> vector<32x36xf32>
    %32 = arith.addf %27, %31 : vector<32x36xf32>
    %c6 = arith.constant 6 : index
    %c0_21 = arith.constant 0 : index
    %c0_22 = arith.constant 0 : index
    %33 = vector.load %arg2[%c6, %c0_21, %c0_22] : memref<9x32x16xbf16, #tpu.memory_space<vmem>>, vector<1x32x16xbf16>
    %34 = vector.shape_cast %33 : vector<1x32x16xbf16> to vector<32x16xbf16>
    %35 = vector.extract_strided_slice %1 {offsets = [0, 12], sizes = [16, 36], strides = [1, 1]} : vector<16x50xbf16> to vector<16x36xbf16>
    %cst_23 = arith.constant dense<0.000000e+00> : vector<32x36xf32>
    %36 = tpu.matmul %34, %35, %cst_23 {dimension_numbers = #tpu.dot_dimension_numbers<[1], [0], [0], [1], [0, 0, 1, 1], [], []>} : vector<32x16xbf16>, vector<16x36xbf16>, vector<32x36xf32> -> vector<32x36xf32>
    %37 = arith.addf %32, %36 : vector<32x36xf32>
    %c7 = arith.constant 7 : index
    %c0_24 = arith.constant 0 : index
    %c0_25 = arith.constant 0 : index
    %38 = vector.load %arg2[%c7, %c0_24, %c0_25] : memref<9x32x16xbf16, #tpu.memory_space<vmem>>, vector<1x32x16xbf16>
    %39 = vector.shape_cast %38 : vector<1x32x16xbf16> to vector<32x16xbf16>
    %40 = vector.extract_strided_slice %1 {offsets = [0, 13], sizes = [16, 36], strides = [1, 1]} : vector<16x50xbf16> to vector<16x36xbf16>
    %cst_26 = arith.constant dense<0.000000e+00> : vector<32x36xf32>
    %41 = tpu.matmul %39, %40, %cst_26 {dimension_numbers = #tpu.dot_dimension_numbers<[1], [0], [0], [1], [0, 0, 1, 1], [], []>} : vector<32x16xbf16>, vector<16x36xbf16>, vector<32x36xf32> -> vector<32x36xf32>
    %42 = arith.addf %37, %41 : vector<32x36xf32>
    %c8 = arith.constant 8 : index
    %c0_27 = arith.constant 0 : index
    %c0_28 = arith.constant 0 : index
    %43 = vector.load %arg2[%c8, %c0_27, %c0_28] : memref<9x32x16xbf16, #tpu.memory_space<vmem>>, vector<1x32x16xbf16>
    %44 = vector.shape_cast %43 : vector<1x32x16xbf16> to vector<32x16xbf16>
    %45 = vector.extract_strided_slice %1 {offsets = [0, 14], sizes = [16, 36], strides = [1, 1]} : vector<16x50xbf16> to vector<16x36xbf16>
    %cst_29 = arith.constant dense<0.000000e+00> : vector<32x36xf32>
    %46 = tpu.matmul %44, %45, %cst_29 {dimension_numbers = #tpu.dot_dimension_numbers<[1], [0], [0], [1], [0, 0, 1, 1], [], []>} : vector<32x16xbf16>, vector<16x36xbf16>, vector<32x36xf32> -> vector<32x36xf32>
    %47 = arith.addf %42, %46 : vector<32x36xf32>
    %c0_30 = arith.constant 0 : index
    %c0_31 = arith.constant 0 : index
    %48 = vector.load %arg3[%c0_30, %c0_31] : memref<32x1xf32, #tpu.memory_space<vmem>>, vector<32x1xf32>
    %49 = vector.broadcast %48 : vector<32x1xf32> to vector<32x36xf32>
    %50 = arith.addf %47, %49 : vector<32x36xf32>
    %cst_32 = arith.constant 0.000000e+00 : f32
    %51 = vector.broadcast %cst_32 : f32 to vector<32x36xf32>
    %52 = arith.maximumf %50, %51 : vector<32x36xf32>
    %c0_33 = arith.constant 0 : index
    %c0_34 = arith.constant 0 : index
    %53 = vector.load %arg4[%c0_33, %c0_34] : memref<1x36xf32, #tpu.memory_space<vmem>>, vector<1x36xf32>
    %54 = vector.broadcast %53 : vector<1x36xf32> to vector<32x36xf32>
    %55 = arith.mulf %52, %54 : vector<32x36xf32>
    %cst_35 = arith.constant 0.000000e+00 : bf16
    %56 = vector.broadcast %cst_35 : bf16 to vector<32x7xbf16>
    %c0_36 = arith.constant 0 : index
    %c0_37 = arith.constant 0 : index
    %c0_38 = arith.constant 0 : index
    %57 = vector.load %arg5[%c0_36, %c0_37, %c0_38] : memref<1x32x50xbf16, #tpu.memory_space<vmem>>, vector<1x32x7xbf16>
    %58 = vector.shape_cast %57 : vector<1x32x7xbf16> to vector<32x7xbf16>
    %59 = vector.shape_cast %56 : vector<32x7xbf16> to vector<1x32x7xbf16>
    tpu.vector_store %arg5[%c0_36, %c0_37, %c0_38], %59 {strides = array<i32>} : memref<1x32x50xbf16, #tpu.memory_space<vmem>>, vector<1x32x7xbf16>,
    %c0_39 = arith.constant 0 : index
    %c0_40 = arith.constant 0 : index
    %c43 = arith.constant 43 : index
    %60 = vector.load %arg5[%c0_39, %c0_40, %c43] : memref<1x32x50xbf16, #tpu.memory_space<vmem>>, vector<1x32x7xbf16>
    %61 = vector.shape_cast %60 : vector<1x32x7xbf16> to vector<32x7xbf16>
    %62 = vector.shape_cast %56 : vector<32x7xbf16> to vector<1x32x7xbf16>
    tpu.vector_store %arg5[%c0_39, %c0_40, %c43], %62 {strides = array<i32>} : memref<1x32x50xbf16, #tpu.memory_space<vmem>>, vector<1x32x7xbf16>,
    %63 = arith.truncf %55 : vector<32x36xf32> to vector<32x36xbf16>
    %c0_41 = arith.constant 0 : index
    %c0_42 = arith.constant 0 : index
    %c7_43 = arith.constant 7 : index
    %64 = vector.load %arg5[%c0_41, %c0_42, %c7_43] : memref<1x32x50xbf16, #tpu.memory_space<vmem>>, vector<1x32x36xbf16>
    %65 = vector.shape_cast %64 : vector<1x32x36xbf16> to vector<32x36xbf16>
    %66 = vector.shape_cast %63 : vector<32x36xbf16> to vector<1x32x36xbf16>
    tpu.vector_store %arg5[%c0_41, %c0_42, %c7_43], %66 {strides = array<i32>} : memref<1x32x50xbf16, #tpu.memory_space<vmem>>, vector<1x32x36xbf16>,
    return
  }
  func.func @transform_0(%arg0: i32) -> (i32, i32, i32) {
    %c0_i32 = arith.constant 0 : i32
    %c0_i32_0 = arith.constant 0 : i32
    %c0_i32_1 = arith.constant 0 : i32
    return %arg0, %c0_i32, %c0_i32_0 : i32, i32, i32
  }
  func.func @transform_1(%arg0: i32) -> (i32, i32, i32) {
    %c0_i32 = arith.constant 0 : i32
    %c0_i32_0 = arith.constant 0 : i32
    %c0_i32_1 = arith.constant 0 : i32
    %c0_i32_2 = arith.constant 0 : i32
    return %c0_i32, %c0_i32_0, %c0_i32_1 : i32, i32, i32
  }
  func.func @transform_2(%arg0: i32) -> (i32, i32) {
    %c0_i32 = arith.constant 0 : i32
    %c0_i32_0 = arith.constant 0 : i32
    %c0_i32_1 = arith.constant 0 : i32
    return %c0_i32, %c0_i32_0 : i32, i32
  }
  func.func @transform_3(%arg0: i32) -> (i32, i32) {
    %c0_i32 = arith.constant 0 : i32
    %c0_i32_0 = arith.constant 0 : i32
    %c0_i32_1 = arith.constant 0 : i32
    return %c0_i32, %c0_i32_0 : i32, i32
  }
  func.func @transform_4(%arg0: i32) -> (i32, i32, i32) {
    %c0_i32 = arith.constant 0 : i32
    %c0_i32_0 = arith.constant 0 : i32
    %c0_i32_1 = arith.constant 0 : i32
    return %arg0, %c0_i32, %c0_i32_0 : i32, i32, i32
  }
}

module attributes {stable_mosaic.version = 11 : i64} {
  func.func @_conv3x3_relu_kernel(%arg0: i32, %arg1: memref<1x32x50xbf16, #tpu.memory_space<vmem>>, %arg2: memref<9x32x32xbf16, #tpu.memory_space<vmem>>, %arg3: memref<32x1xf32, #tpu.memory_space<vmem>>, %arg4: memref<1x36xf32, #tpu.memory_space<vmem>>, %arg5: memref<1x32x50xbf16, #tpu.memory_space<vmem>>) attributes {dimension_semantics = [#tpu.dimension_semantics<parallel>], iteration_bounds = array<i64: 4>, scalar_prefetch = 0 : i64, scratch_operands = 0 : i64, tpu.core_type = #tpu.core_type<tc>, window_params = [{transform_indices = @transform_0, window_bounds = array<i64: 1, 32, 50>}, {pipeline_mode = #tpu.pipeline_mode<synchronous>, transform_indices = @transform_1, window_bounds = array<i64: 9, 32, 32>}, {pipeline_mode = #tpu.pipeline_mode<synchronous>, transform_indices = @transform_2, window_bounds = array<i64: 32, 1>}, {pipeline_mode = #tpu.pipeline_mode<synchronous>, transform_indices = @transform_3, window_bounds = array<i64: 1, 36>}, {transform_indices = @transform_4, window_bounds = array<i64: 1, 32, 50>}]} {
    %c0 = arith.constant 0 : index
    %c0_0 = arith.constant 0 : index
    %c0_1 = arith.constant 0 : index
    %0 = vector.load %arg1[%c0, %c0_0, %c0_1] : memref<1x32x50xbf16, #tpu.memory_space<vmem>>, vector<1x32x50xbf16>
    %1 = vector.shape_cast %0 : vector<1x32x50xbf16> to vector<32x50xbf16>
    %cst = arith.constant 0.000000e+00 : f32
    %2 = vector.broadcast %cst : f32 to vector<32x36xf32>
    %c0_2 = arith.constant 0 : index
    %c0_3 = arith.constant 0 : index
    %c0_4 = arith.constant 0 : index
    %3 = vector.load %arg2[%c0_2, %c0_3, %c0_4] : memref<9x32x32xbf16, #tpu.memory_space<vmem>>, vector<1x32x32xbf16>
    %4 = vector.shape_cast %3 : vector<1x32x32xbf16> to vector<32x32xbf16>
    %5 = vector.extract_strided_slice %1 {offsets = [0, 0], sizes = [32, 36], strides = [1, 1]} : vector<32x50xbf16> to vector<32x36xbf16>
    %cst_5 = arith.constant dense<0.000000e+00> : vector<32x36xf32>
    %6 = tpu.matmul %4, %5, %cst_5 {dimension_numbers = #tpu.dot_dimension_numbers<[1], [0], [0], [1], [0, 0, 1, 1], [], []>} : vector<32x32xbf16>, vector<32x36xbf16>, vector<32x36xf32> -> vector<32x36xf32>
    %7 = arith.addf %2, %6 : vector<32x36xf32>
    %c1 = arith.constant 1 : index
    %c0_6 = arith.constant 0 : index
    %c0_7 = arith.constant 0 : index
    %8 = vector.load %arg2[%c1, %c0_6, %c0_7] : memref<9x32x32xbf16, #tpu.memory_space<vmem>>, vector<1x32x32xbf16>
    %9 = vector.shape_cast %8 : vector<1x32x32xbf16> to vector<32x32xbf16>
    %10 = vector.extract_strided_slice %1 {offsets = [0, 1], sizes = [32, 36], strides = [1, 1]} : vector<32x50xbf16> to vector<32x36xbf16>
    %cst_8 = arith.constant dense<0.000000e+00> : vector<32x36xf32>
    %11 = tpu.matmul %9, %10, %cst_8 {dimension_numbers = #tpu.dot_dimension_numbers<[1], [0], [0], [1], [0, 0, 1, 1], [], []>} : vector<32x32xbf16>, vector<32x36xbf16>, vector<32x36xf32> -> vector<32x36xf32>
    %12 = arith.addf %7, %11 : vector<32x36xf32>
    %c2 = arith.constant 2 : index
    %c0_9 = arith.constant 0 : index
    %c0_10 = arith.constant 0 : index
    %13 = vector.load %arg2[%c2, %c0_9, %c0_10] : memref<9x32x32xbf16, #tpu.memory_space<vmem>>, vector<1x32x32xbf16>
    %14 = vector.shape_cast %13 : vector<1x32x32xbf16> to vector<32x32xbf16>
    %15 = vector.extract_strided_slice %1 {offsets = [0, 2], sizes = [32, 36], strides = [1, 1]} : vector<32x50xbf16> to vector<32x36xbf16>
    %cst_11 = arith.constant dense<0.000000e+00> : vector<32x36xf32>
    %16 = tpu.matmul %14, %15, %cst_11 {dimension_numbers = #tpu.dot_dimension_numbers<[1], [0], [0], [1], [0, 0, 1, 1], [], []>} : vector<32x32xbf16>, vector<32x36xbf16>, vector<32x36xf32> -> vector<32x36xf32>
    %17 = arith.addf %12, %16 : vector<32x36xf32>
    %c3 = arith.constant 3 : index
    %c0_12 = arith.constant 0 : index
    %c0_13 = arith.constant 0 : index
    %18 = vector.load %arg2[%c3, %c0_12, %c0_13] : memref<9x32x32xbf16, #tpu.memory_space<vmem>>, vector<1x32x32xbf16>
    %19 = vector.shape_cast %18 : vector<1x32x32xbf16> to vector<32x32xbf16>
    %20 = vector.extract_strided_slice %1 {offsets = [0, 6], sizes = [32, 36], strides = [1, 1]} : vector<32x50xbf16> to vector<32x36xbf16>
    %cst_14 = arith.constant dense<0.000000e+00> : vector<32x36xf32>
    %21 = tpu.matmul %19, %20, %cst_14 {dimension_numbers = #tpu.dot_dimension_numbers<[1], [0], [0], [1], [0, 0, 1, 1], [], []>} : vector<32x32xbf16>, vector<32x36xbf16>, vector<32x36xf32> -> vector<32x36xf32>
    %22 = arith.addf %17, %21 : vector<32x36xf32>
    %c4 = arith.constant 4 : index
    %c0_15 = arith.constant 0 : index
    %c0_16 = arith.constant 0 : index
    %23 = vector.load %arg2[%c4, %c0_15, %c0_16] : memref<9x32x32xbf16, #tpu.memory_space<vmem>>, vector<1x32x32xbf16>
    %24 = vector.shape_cast %23 : vector<1x32x32xbf16> to vector<32x32xbf16>
    %25 = vector.extract_strided_slice %1 {offsets = [0, 7], sizes = [32, 36], strides = [1, 1]} : vector<32x50xbf16> to vector<32x36xbf16>
    %cst_17 = arith.constant dense<0.000000e+00> : vector<32x36xf32>
    %26 = tpu.matmul %24, %25, %cst_17 {dimension_numbers = #tpu.dot_dimension_numbers<[1], [0], [0], [1], [0, 0, 1, 1], [], []>} : vector<32x32xbf16>, vector<32x36xbf16>, vector<32x36xf32> -> vector<32x36xf32>
    %27 = arith.addf %22, %26 : vector<32x36xf32>
    %c5 = arith.constant 5 : index
    %c0_18 = arith.constant 0 : index
    %c0_19 = arith.constant 0 : index
    %28 = vector.load %arg2[%c5, %c0_18, %c0_19] : memref<9x32x32xbf16, #tpu.memory_space<vmem>>, vector<1x32x32xbf16>
    %29 = vector.shape_cast %28 : vector<1x32x32xbf16> to vector<32x32xbf16>
    %30 = vector.extract_strided_slice %1 {offsets = [0, 8], sizes = [32, 36], strides = [1, 1]} : vector<32x50xbf16> to vector<32x36xbf16>
    %cst_20 = arith.constant dense<0.000000e+00> : vector<32x36xf32>
    %31 = tpu.matmul %29, %30, %cst_20 {dimension_numbers = #tpu.dot_dimension_numbers<[1], [0], [0], [1], [0, 0, 1, 1], [], []>} : vector<32x32xbf16>, vector<32x36xbf16>, vector<32x36xf32> -> vector<32x36xf32>
    %32 = arith.addf %27, %31 : vector<32x36xf32>
    %c6 = arith.constant 6 : index
    %c0_21 = arith.constant 0 : index
    %c0_22 = arith.constant 0 : index
    %33 = vector.load %arg2[%c6, %c0_21, %c0_22] : memref<9x32x32xbf16, #tpu.memory_space<vmem>>, vector<1x32x32xbf16>
    %34 = vector.shape_cast %33 : vector<1x32x32xbf16> to vector<32x32xbf16>
    %35 = vector.extract_strided_slice %1 {offsets = [0, 12], sizes = [32, 36], strides = [1, 1]} : vector<32x50xbf16> to vector<32x36xbf16>
    %cst_23 = arith.constant dense<0.000000e+00> : vector<32x36xf32>
    %36 = tpu.matmul %34, %35, %cst_23 {dimension_numbers = #tpu.dot_dimension_numbers<[1], [0], [0], [1], [0, 0, 1, 1], [], []>} : vector<32x32xbf16>, vector<32x36xbf16>, vector<32x36xf32> -> vector<32x36xf32>
    %37 = arith.addf %32, %36 : vector<32x36xf32>
    %c7 = arith.constant 7 : index
    %c0_24 = arith.constant 0 : index
    %c0_25 = arith.constant 0 : index
    %38 = vector.load %arg2[%c7, %c0_24, %c0_25] : memref<9x32x32xbf16, #tpu.memory_space<vmem>>, vector<1x32x32xbf16>
    %39 = vector.shape_cast %38 : vector<1x32x32xbf16> to vector<32x32xbf16>
    %40 = vector.extract_strided_slice %1 {offsets = [0, 13], sizes = [32, 36], strides = [1, 1]} : vector<32x50xbf16> to vector<32x36xbf16>
    %cst_26 = arith.constant dense<0.000000e+00> : vector<32x36xf32>
    %41 = tpu.matmul %39, %40, %cst_26 {dimension_numbers = #tpu.dot_dimension_numbers<[1], [0], [0], [1], [0, 0, 1, 1], [], []>} : vector<32x32xbf16>, vector<32x36xbf16>, vector<32x36xf32> -> vector<32x36xf32>
    %42 = arith.addf %37, %41 : vector<32x36xf32>
    %c8 = arith.constant 8 : index
    %c0_27 = arith.constant 0 : index
    %c0_28 = arith.constant 0 : index
    %43 = vector.load %arg2[%c8, %c0_27, %c0_28] : memref<9x32x32xbf16, #tpu.memory_space<vmem>>, vector<1x32x32xbf16>
    %44 = vector.shape_cast %43 : vector<1x32x32xbf16> to vector<32x32xbf16>
    %45 = vector.extract_strided_slice %1 {offsets = [0, 14], sizes = [32, 36], strides = [1, 1]} : vector<32x50xbf16> to vector<32x36xbf16>
    %cst_29 = arith.constant dense<0.000000e+00> : vector<32x36xf32>
    %46 = tpu.matmul %44, %45, %cst_29 {dimension_numbers = #tpu.dot_dimension_numbers<[1], [0], [0], [1], [0, 0, 1, 1], [], []>} : vector<32x32xbf16>, vector<32x36xbf16>, vector<32x36xf32> -> vector<32x36xf32>
    %47 = arith.addf %42, %46 : vector<32x36xf32>
    %c0_30 = arith.constant 0 : index
    %c0_31 = arith.constant 0 : index
    %48 = vector.load %arg3[%c0_30, %c0_31] : memref<32x1xf32, #tpu.memory_space<vmem>>, vector<32x1xf32>
    %49 = vector.broadcast %48 : vector<32x1xf32> to vector<32x36xf32>
    %50 = arith.addf %47, %49 : vector<32x36xf32>
    %cst_32 = arith.constant 0.000000e+00 : f32
    %51 = vector.broadcast %cst_32 : f32 to vector<32x36xf32>
    %52 = arith.maximumf %50, %51 : vector<32x36xf32>
    %c0_33 = arith.constant 0 : index
    %c0_34 = arith.constant 0 : index
    %53 = vector.load %arg4[%c0_33, %c0_34] : memref<1x36xf32, #tpu.memory_space<vmem>>, vector<1x36xf32>
    %54 = vector.broadcast %53 : vector<1x36xf32> to vector<32x36xf32>
    %55 = arith.mulf %52, %54 : vector<32x36xf32>
    %cst_35 = arith.constant 0.000000e+00 : bf16
    %56 = vector.broadcast %cst_35 : bf16 to vector<32x7xbf16>
    %c0_36 = arith.constant 0 : index
    %c0_37 = arith.constant 0 : index
    %c0_38 = arith.constant 0 : index
    %57 = vector.load %arg5[%c0_36, %c0_37, %c0_38] : memref<1x32x50xbf16, #tpu.memory_space<vmem>>, vector<1x32x7xbf16>
    %58 = vector.shape_cast %57 : vector<1x32x7xbf16> to vector<32x7xbf16>
    %59 = vector.shape_cast %56 : vector<32x7xbf16> to vector<1x32x7xbf16>
    tpu.vector_store %arg5[%c0_36, %c0_37, %c0_38], %59 {strides = array<i32>} : memref<1x32x50xbf16, #tpu.memory_space<vmem>>, vector<1x32x7xbf16>,
    %c0_39 = arith.constant 0 : index
    %c0_40 = arith.constant 0 : index
    %c43 = arith.constant 43 : index
    %60 = vector.load %arg5[%c0_39, %c0_40, %c43] : memref<1x32x50xbf16, #tpu.memory_space<vmem>>, vector<1x32x7xbf16>
    %61 = vector.shape_cast %60 : vector<1x32x7xbf16> to vector<32x7xbf16>
    %62 = vector.shape_cast %56 : vector<32x7xbf16> to vector<1x32x7xbf16>
    tpu.vector_store %arg5[%c0_39, %c0_40, %c43], %62 {strides = array<i32>} : memref<1x32x50xbf16, #tpu.memory_space<vmem>>, vector<1x32x7xbf16>,
    %63 = arith.truncf %55 : vector<32x36xf32> to vector<32x36xbf16>
    %c0_41 = arith.constant 0 : index
    %c0_42 = arith.constant 0 : index
    %c7_43 = arith.constant 7 : index
    %64 = vector.load %arg5[%c0_41, %c0_42, %c7_43] : memref<1x32x50xbf16, #tpu.memory_space<vmem>>, vector<1x32x36xbf16>
    %65 = vector.shape_cast %64 : vector<1x32x36xbf16> to vector<32x36xbf16>
    %66 = vector.shape_cast %63 : vector<32x36xbf16> to vector<1x32x36xbf16>
    tpu.vector_store %arg5[%c0_41, %c0_42, %c7_43], %66 {strides = array<i32>} : memref<1x32x50xbf16, #tpu.memory_space<vmem>>, vector<1x32x36xbf16>,
    return
  }
  func.func @transform_0(%arg0: i32) -> (i32, i32, i32) {
    %c0_i32 = arith.constant 0 : i32
    %c0_i32_0 = arith.constant 0 : i32
    %c0_i32_1 = arith.constant 0 : i32
    return %arg0, %c0_i32, %c0_i32_0 : i32, i32, i32
  }
  func.func @transform_1(%arg0: i32) -> (i32, i32, i32) {
    %c0_i32 = arith.constant 0 : i32
    %c0_i32_0 = arith.constant 0 : i32
    %c0_i32_1 = arith.constant 0 : i32
    %c0_i32_2 = arith.constant 0 : i32
    return %c0_i32, %c0_i32_0, %c0_i32_1 : i32, i32, i32
  }
  func.func @transform_2(%arg0: i32) -> (i32, i32) {
    %c0_i32 = arith.constant 0 : i32
    %c0_i32_0 = arith.constant 0 : i32
    %c0_i32_1 = arith.constant 0 : i32
    return %c0_i32, %c0_i32_0 : i32, i32
  }
  func.func @transform_3(%arg0: i32) -> (i32, i32) {
    %c0_i32 = arith.constant 0 : i32
    %c0_i32_0 = arith.constant 0 : i32
    %c0_i32_1 = arith.constant 0 : i32
    return %c0_i32, %c0_i32_0 : i32, i32
  }
  func.func @transform_4(%arg0: i32) -> (i32, i32, i32) {
    %c0_i32 = arith.constant 0 : i32
    %c0_i32_0 = arith.constant 0 : i32
    %c0_i32_1 = arith.constant 0 : i32
    return %arg0, %c0_i32, %c0_i32_0 : i32, i32, i32
  }
}

module attributes {stable_mosaic.version = 11 : i64} {
  func.func @_conv3x3_relu_kernel(%arg0: i32, %arg1: memref<1x32x26xbf16, #tpu.memory_space<vmem>>, %arg2: memref<9x32x32xbf16, #tpu.memory_space<vmem>>, %arg3: memref<32x1xf32, #tpu.memory_space<vmem>>, %arg4: memref<1x16xf32, #tpu.memory_space<vmem>>, %arg5: memref<1x32x26xbf16, #tpu.memory_space<vmem>>) attributes {dimension_semantics = [#tpu.dimension_semantics<parallel>], iteration_bounds = array<i64: 4>, scalar_prefetch = 0 : i64, scratch_operands = 0 : i64, tpu.core_type = #tpu.core_type<tc>, window_params = [{transform_indices = @transform_0, window_bounds = array<i64: 1, 32, 26>}, {pipeline_mode = #tpu.pipeline_mode<synchronous>, transform_indices = @transform_1, window_bounds = array<i64: 9, 32, 32>}, {pipeline_mode = #tpu.pipeline_mode<synchronous>, transform_indices = @transform_2, window_bounds = array<i64: 32, 1>}, {pipeline_mode = #tpu.pipeline_mode<synchronous>, transform_indices = @transform_3, window_bounds = array<i64: 1, 16>}, {transform_indices = @transform_4, window_bounds = array<i64: 1, 32, 26>}]} {
    %c0 = arith.constant 0 : index
    %c0_0 = arith.constant 0 : index
    %c0_1 = arith.constant 0 : index
    %0 = vector.load %arg1[%c0, %c0_0, %c0_1] : memref<1x32x26xbf16, #tpu.memory_space<vmem>>, vector<1x32x26xbf16>
    %1 = vector.shape_cast %0 : vector<1x32x26xbf16> to vector<32x26xbf16>
    %cst = arith.constant 0.000000e+00 : f32
    %2 = vector.broadcast %cst : f32 to vector<32x16xf32>
    %c0_2 = arith.constant 0 : index
    %c0_3 = arith.constant 0 : index
    %c0_4 = arith.constant 0 : index
    %3 = vector.load %arg2[%c0_2, %c0_3, %c0_4] : memref<9x32x32xbf16, #tpu.memory_space<vmem>>, vector<1x32x32xbf16>
    %4 = vector.shape_cast %3 : vector<1x32x32xbf16> to vector<32x32xbf16>
    %5 = vector.extract_strided_slice %1 {offsets = [0, 0], sizes = [32, 16], strides = [1, 1]} : vector<32x26xbf16> to vector<32x16xbf16>
    %cst_5 = arith.constant dense<0.000000e+00> : vector<32x16xf32>
    %6 = tpu.matmul %4, %5, %cst_5 {dimension_numbers = #tpu.dot_dimension_numbers<[1], [0], [0], [1], [0, 0, 1, 1], [], []>} : vector<32x32xbf16>, vector<32x16xbf16>, vector<32x16xf32> -> vector<32x16xf32>
    %7 = arith.addf %2, %6 : vector<32x16xf32>
    %c1 = arith.constant 1 : index
    %c0_6 = arith.constant 0 : index
    %c0_7 = arith.constant 0 : index
    %8 = vector.load %arg2[%c1, %c0_6, %c0_7] : memref<9x32x32xbf16, #tpu.memory_space<vmem>>, vector<1x32x32xbf16>
    %9 = vector.shape_cast %8 : vector<1x32x32xbf16> to vector<32x32xbf16>
    %10 = vector.extract_strided_slice %1 {offsets = [0, 1], sizes = [32, 16], strides = [1, 1]} : vector<32x26xbf16> to vector<32x16xbf16>
    %cst_8 = arith.constant dense<0.000000e+00> : vector<32x16xf32>
    %11 = tpu.matmul %9, %10, %cst_8 {dimension_numbers = #tpu.dot_dimension_numbers<[1], [0], [0], [1], [0, 0, 1, 1], [], []>} : vector<32x32xbf16>, vector<32x16xbf16>, vector<32x16xf32> -> vector<32x16xf32>
    %12 = arith.addf %7, %11 : vector<32x16xf32>
    %c2 = arith.constant 2 : index
    %c0_9 = arith.constant 0 : index
    %c0_10 = arith.constant 0 : index
    %13 = vector.load %arg2[%c2, %c0_9, %c0_10] : memref<9x32x32xbf16, #tpu.memory_space<vmem>>, vector<1x32x32xbf16>
    %14 = vector.shape_cast %13 : vector<1x32x32xbf16> to vector<32x32xbf16>
    %15 = vector.extract_strided_slice %1 {offsets = [0, 2], sizes = [32, 16], strides = [1, 1]} : vector<32x26xbf16> to vector<32x16xbf16>
    %cst_11 = arith.constant dense<0.000000e+00> : vector<32x16xf32>
    %16 = tpu.matmul %14, %15, %cst_11 {dimension_numbers = #tpu.dot_dimension_numbers<[1], [0], [0], [1], [0, 0, 1, 1], [], []>} : vector<32x32xbf16>, vector<32x16xbf16>, vector<32x16xf32> -> vector<32x16xf32>
    %17 = arith.addf %12, %16 : vector<32x16xf32>
    %c3 = arith.constant 3 : index
    %c0_12 = arith.constant 0 : index
    %c0_13 = arith.constant 0 : index
    %18 = vector.load %arg2[%c3, %c0_12, %c0_13] : memref<9x32x32xbf16, #tpu.memory_space<vmem>>, vector<1x32x32xbf16>
    %19 = vector.shape_cast %18 : vector<1x32x32xbf16> to vector<32x32xbf16>
    %20 = vector.extract_strided_slice %1 {offsets = [0, 4], sizes = [32, 16], strides = [1, 1]} : vector<32x26xbf16> to vector<32x16xbf16>
    %cst_14 = arith.constant dense<0.000000e+00> : vector<32x16xf32>
    %21 = tpu.matmul %19, %20, %cst_14 {dimension_numbers = #tpu.dot_dimension_numbers<[1], [0], [0], [1], [0, 0, 1, 1], [], []>} : vector<32x32xbf16>, vector<32x16xbf16>, vector<32x16xf32> -> vector<32x16xf32>
    %22 = arith.addf %17, %21 : vector<32x16xf32>
    %c4 = arith.constant 4 : index
    %c0_15 = arith.constant 0 : index
    %c0_16 = arith.constant 0 : index
    %23 = vector.load %arg2[%c4, %c0_15, %c0_16] : memref<9x32x32xbf16, #tpu.memory_space<vmem>>, vector<1x32x32xbf16>
    %24 = vector.shape_cast %23 : vector<1x32x32xbf16> to vector<32x32xbf16>
    %25 = vector.extract_strided_slice %1 {offsets = [0, 5], sizes = [32, 16], strides = [1, 1]} : vector<32x26xbf16> to vector<32x16xbf16>
    %cst_17 = arith.constant dense<0.000000e+00> : vector<32x16xf32>
    %26 = tpu.matmul %24, %25, %cst_17 {dimension_numbers = #tpu.dot_dimension_numbers<[1], [0], [0], [1], [0, 0, 1, 1], [], []>} : vector<32x32xbf16>, vector<32x16xbf16>, vector<32x16xf32> -> vector<32x16xf32>
    %27 = arith.addf %22, %26 : vector<32x16xf32>
    %c5 = arith.constant 5 : index
    %c0_18 = arith.constant 0 : index
    %c0_19 = arith.constant 0 : index
    %28 = vector.load %arg2[%c5, %c0_18, %c0_19] : memref<9x32x32xbf16, #tpu.memory_space<vmem>>, vector<1x32x32xbf16>
    %29 = vector.shape_cast %28 : vector<1x32x32xbf16> to vector<32x32xbf16>
    %30 = vector.extract_strided_slice %1 {offsets = [0, 6], sizes = [32, 16], strides = [1, 1]} : vector<32x26xbf16> to vector<32x16xbf16>
    %cst_20 = arith.constant dense<0.000000e+00> : vector<32x16xf32>
    %31 = tpu.matmul %29, %30, %cst_20 {dimension_numbers = #tpu.dot_dimension_numbers<[1], [0], [0], [1], [0, 0, 1, 1], [], []>} : vector<32x32xbf16>, vector<32x16xbf16>, vector<32x16xf32> -> vector<32x16xf32>
    %32 = arith.addf %27, %31 : vector<32x16xf32>
    %c6 = arith.constant 6 : index
    %c0_21 = arith.constant 0 : index
    %c0_22 = arith.constant 0 : index
    %33 = vector.load %arg2[%c6, %c0_21, %c0_22] : memref<9x32x32xbf16, #tpu.memory_space<vmem>>, vector<1x32x32xbf16>
    %34 = vector.shape_cast %33 : vector<1x32x32xbf16> to vector<32x32xbf16>
    %35 = vector.extract_strided_slice %1 {offsets = [0, 8], sizes = [32, 16], strides = [1, 1]} : vector<32x26xbf16> to vector<32x16xbf16>
    %cst_23 = arith.constant dense<0.000000e+00> : vector<32x16xf32>
    %36 = tpu.matmul %34, %35, %cst_23 {dimension_numbers = #tpu.dot_dimension_numbers<[1], [0], [0], [1], [0, 0, 1, 1], [], []>} : vector<32x32xbf16>, vector<32x16xbf16>, vector<32x16xf32> -> vector<32x16xf32>
    %37 = arith.addf %32, %36 : vector<32x16xf32>
    %c7 = arith.constant 7 : index
    %c0_24 = arith.constant 0 : index
    %c0_25 = arith.constant 0 : index
    %38 = vector.load %arg2[%c7, %c0_24, %c0_25] : memref<9x32x32xbf16, #tpu.memory_space<vmem>>, vector<1x32x32xbf16>
    %39 = vector.shape_cast %38 : vector<1x32x32xbf16> to vector<32x32xbf16>
    %40 = vector.extract_strided_slice %1 {offsets = [0, 9], sizes = [32, 16], strides = [1, 1]} : vector<32x26xbf16> to vector<32x16xbf16>
    %cst_26 = arith.constant dense<0.000000e+00> : vector<32x16xf32>
    %41 = tpu.matmul %39, %40, %cst_26 {dimension_numbers = #tpu.dot_dimension_numbers<[1], [0], [0], [1], [0, 0, 1, 1], [], []>} : vector<32x32xbf16>, vector<32x16xbf16>, vector<32x16xf32> -> vector<32x16xf32>
    %42 = arith.addf %37, %41 : vector<32x16xf32>
    %c8 = arith.constant 8 : index
    %c0_27 = arith.constant 0 : index
    %c0_28 = arith.constant 0 : index
    %43 = vector.load %arg2[%c8, %c0_27, %c0_28] : memref<9x32x32xbf16, #tpu.memory_space<vmem>>, vector<1x32x32xbf16>
    %44 = vector.shape_cast %43 : vector<1x32x32xbf16> to vector<32x32xbf16>
    %45 = vector.extract_strided_slice %1 {offsets = [0, 10], sizes = [32, 16], strides = [1, 1]} : vector<32x26xbf16> to vector<32x16xbf16>
    %cst_29 = arith.constant dense<0.000000e+00> : vector<32x16xf32>
    %46 = tpu.matmul %44, %45, %cst_29 {dimension_numbers = #tpu.dot_dimension_numbers<[1], [0], [0], [1], [0, 0, 1, 1], [], []>} : vector<32x32xbf16>, vector<32x16xbf16>, vector<32x16xf32> -> vector<32x16xf32>
    %47 = arith.addf %42, %46 : vector<32x16xf32>
    %c0_30 = arith.constant 0 : index
    %c0_31 = arith.constant 0 : index
    %48 = vector.load %arg3[%c0_30, %c0_31] : memref<32x1xf32, #tpu.memory_space<vmem>>, vector<32x1xf32>
    %49 = vector.broadcast %48 : vector<32x1xf32> to vector<32x16xf32>
    %50 = arith.addf %47, %49 : vector<32x16xf32>
    %cst_32 = arith.constant 0.000000e+00 : f32
    %51 = vector.broadcast %cst_32 : f32 to vector<32x16xf32>
    %52 = arith.maximumf %50, %51 : vector<32x16xf32>
    %c0_33 = arith.constant 0 : index
    %c0_34 = arith.constant 0 : index
    %53 = vector.load %arg4[%c0_33, %c0_34] : memref<1x16xf32, #tpu.memory_space<vmem>>, vector<1x16xf32>
    %54 = vector.broadcast %53 : vector<1x16xf32> to vector<32x16xf32>
    %55 = arith.mulf %52, %54 : vector<32x16xf32>
    %cst_35 = arith.constant 0.000000e+00 : bf16
    %56 = vector.broadcast %cst_35 : bf16 to vector<32x5xbf16>
    %c0_36 = arith.constant 0 : index
    %c0_37 = arith.constant 0 : index
    %c0_38 = arith.constant 0 : index
    %57 = vector.load %arg5[%c0_36, %c0_37, %c0_38] : memref<1x32x26xbf16, #tpu.memory_space<vmem>>, vector<1x32x5xbf16>
    %58 = vector.shape_cast %57 : vector<1x32x5xbf16> to vector<32x5xbf16>
    %59 = vector.shape_cast %56 : vector<32x5xbf16> to vector<1x32x5xbf16>
    tpu.vector_store %arg5[%c0_36, %c0_37, %c0_38], %59 {strides = array<i32>} : memref<1x32x26xbf16, #tpu.memory_space<vmem>>, vector<1x32x5xbf16>,
    %c0_39 = arith.constant 0 : index
    %c0_40 = arith.constant 0 : index
    %c21 = arith.constant 21 : index
    %60 = vector.load %arg5[%c0_39, %c0_40, %c21] : memref<1x32x26xbf16, #tpu.memory_space<vmem>>, vector<1x32x5xbf16>
    %61 = vector.shape_cast %60 : vector<1x32x5xbf16> to vector<32x5xbf16>
    %62 = vector.shape_cast %56 : vector<32x5xbf16> to vector<1x32x5xbf16>
    tpu.vector_store %arg5[%c0_39, %c0_40, %c21], %62 {strides = array<i32>} : memref<1x32x26xbf16, #tpu.memory_space<vmem>>, vector<1x32x5xbf16>,
    %63 = arith.truncf %55 : vector<32x16xf32> to vector<32x16xbf16>
    %c0_41 = arith.constant 0 : index
    %c0_42 = arith.constant 0 : index
    %c5_43 = arith.constant 5 : index
    %64 = vector.load %arg5[%c0_41, %c0_42, %c5_43] : memref<1x32x26xbf16, #tpu.memory_space<vmem>>, vector<1x32x16xbf16>
    %65 = vector.shape_cast %64 : vector<1x32x16xbf16> to vector<32x16xbf16>
    %66 = vector.shape_cast %63 : vector<32x16xbf16> to vector<1x32x16xbf16>
    tpu.vector_store %arg5[%c0_41, %c0_42, %c5_43], %66 {strides = array<i32>} : memref<1x32x26xbf16, #tpu.memory_space<vmem>>, vector<1x32x16xbf16>,
    return
  }
  func.func @transform_0(%arg0: i32) -> (i32, i32, i32) {
    %c0_i32 = arith.constant 0 : i32
    %c0_i32_0 = arith.constant 0 : i32
    %c0_i32_1 = arith.constant 0 : i32
    return %arg0, %c0_i32, %c0_i32_0 : i32, i32, i32
  }
  func.func @transform_1(%arg0: i32) -> (i32, i32, i32) {
    %c0_i32 = arith.constant 0 : i32
    %c0_i32_0 = arith.constant 0 : i32
    %c0_i32_1 = arith.constant 0 : i32
    %c0_i32_2 = arith.constant 0 : i32
    return %c0_i32, %c0_i32_0, %c0_i32_1 : i32, i32, i32
  }
  func.func @transform_2(%arg0: i32) -> (i32, i32) {
    %c0_i32 = arith.constant 0 : i32
    %c0_i32_0 = arith.constant 0 : i32
    %c0_i32_1 = arith.constant 0 : i32
    return %c0_i32, %c0_i32_0 : i32, i32
  }
  func.func @transform_3(%arg0: i32) -> (i32, i32) {
    %c0_i32 = arith.constant 0 : i32
    %c0_i32_0 = arith.constant 0 : i32
    %c0_i32_1 = arith.constant 0 : i32
    return %c0_i32, %c0_i32_0 : i32, i32
  }
  func.func @transform_4(%arg0: i32) -> (i32, i32, i32) {
    %c0_i32 = arith.constant 0 : i32
    %c0_i32_0 = arith.constant 0 : i32
    %c0_i32_1 = arith.constant 0 : i32
    return %arg0, %c0_i32, %c0_i32_0 : i32, i32, i32
  }
}

module attributes {stable_mosaic.version = 11 : i64} {
  func.func @_head_loss_kernel(%arg0: memref<2x32xbf16, #tpu.memory_space<vmem>>, %arg1: memref<2x32xbf16, #tpu.memory_space<vmem>>, %arg2: memref<32x128xbf16, #tpu.memory_space<vmem>>, %arg3: memref<1x128xf32, #tpu.memory_space<vmem>>, %arg4: memref<128x128xbf16, #tpu.memory_space<vmem>>, %arg5: memref<1x128xf32, #tpu.memory_space<vmem>>, %arg6: memref<128x64xbf16, #tpu.memory_space<vmem>>, %arg7: memref<1x64xf32, #tpu.memory_space<vmem>>, %arg8: memref<1x1xf32, #tpu.memory_space<vmem>>) attributes {dimension_semantics = [], scalar_prefetch = 0 : i64, scratch_operands = 0 : i64, tpu.core_type = #tpu.core_type<tc>} {
    %c0 = arith.constant 0 : index
    %c0_0 = arith.constant 0 : index
    %0 = vector.load %arg0[%c0, %c0_0] : memref<2x32xbf16, #tpu.memory_space<vmem>>, vector<2x32xbf16>
    %c0_1 = arith.constant 0 : index
    %c0_2 = arith.constant 0 : index
    %1 = vector.load %arg2[%c0_1, %c0_2] : memref<32x128xbf16, #tpu.memory_space<vmem>>, vector<32x128xbf16>
    %cst = arith.constant dense<0.000000e+00> : vector<2x128xf32>
    %2 = tpu.matmul %0, %1, %cst {dimension_numbers = #tpu.dot_dimension_numbers<[1], [0], [0], [1], [0, 0, 1, 1], [], []>} : vector<2x32xbf16>, vector<32x128xbf16>, vector<2x128xf32> -> vector<2x128xf32>
    %c0_3 = arith.constant 0 : index
    %c0_4 = arith.constant 0 : index
    %3 = vector.load %arg3[%c0_3, %c0_4] : memref<1x128xf32, #tpu.memory_space<vmem>>, vector<1x128xf32>
    %4 = vector.broadcast %3 : vector<1x128xf32> to vector<2x128xf32>
    %5 = arith.addf %2, %4 : vector<2x128xf32>
    %cst_5 = arith.constant 0.000000e+00 : f32
    %6 = vector.broadcast %cst_5 : f32 to vector<2x128xf32>
    %7 = arith.maximumf %5, %6 : vector<2x128xf32>
    %8 = arith.truncf %7 : vector<2x128xf32> to vector<2x128xbf16>
    %c0_6 = arith.constant 0 : index
    %c0_7 = arith.constant 0 : index
    %9 = vector.load %arg4[%c0_6, %c0_7] : memref<128x128xbf16, #tpu.memory_space<vmem>>, vector<128x128xbf16>
    %cst_8 = arith.constant dense<0.000000e+00> : vector<2x128xf32>
    %10 = tpu.matmul %8, %9, %cst_8 {dimension_numbers = #tpu.dot_dimension_numbers<[1], [0], [0], [1], [0, 0, 1, 1], [], []>} : vector<2x128xbf16>, vector<128x128xbf16>, vector<2x128xf32> -> vector<2x128xf32>
    %c0_9 = arith.constant 0 : index
    %c0_10 = arith.constant 0 : index
    %11 = vector.load %arg5[%c0_9, %c0_10] : memref<1x128xf32, #tpu.memory_space<vmem>>, vector<1x128xf32>
    %12 = vector.broadcast %11 : vector<1x128xf32> to vector<2x128xf32>
    %13 = arith.addf %10, %12 : vector<2x128xf32>
    %cst_11 = arith.constant 0.000000e+00 : f32
    %14 = vector.broadcast %cst_11 : f32 to vector<2x128xf32>
    %15 = arith.maximumf %13, %14 : vector<2x128xf32>
    %16 = arith.truncf %15 : vector<2x128xf32> to vector<2x128xbf16>
    %c0_12 = arith.constant 0 : index
    %c0_13 = arith.constant 0 : index
    %17 = vector.load %arg6[%c0_12, %c0_13] : memref<128x64xbf16, #tpu.memory_space<vmem>>, vector<128x64xbf16>
    %cst_14 = arith.constant dense<0.000000e+00> : vector<2x64xf32>
    %18 = tpu.matmul %16, %17, %cst_14 {dimension_numbers = #tpu.dot_dimension_numbers<[1], [0], [0], [1], [0, 0, 1, 1], [], []>} : vector<2x128xbf16>, vector<128x64xbf16>, vector<2x64xf32> -> vector<2x64xf32>
    %c0_15 = arith.constant 0 : index
    %c0_16 = arith.constant 0 : index
    %19 = vector.load %arg7[%c0_15, %c0_16] : memref<1x64xf32, #tpu.memory_space<vmem>>, vector<1x64xf32>
    %20 = vector.broadcast %19 : vector<1x64xf32> to vector<2x64xf32>
    %21 = arith.addf %18, %20 : vector<2x64xf32>
    %c0_17 = arith.constant 0 : index
    %c0_18 = arith.constant 0 : index
    %22 = vector.load %arg1[%c0_17, %c0_18] : memref<2x32xbf16, #tpu.memory_space<vmem>>, vector<2x32xbf16>
    %c0_19 = arith.constant 0 : index
    %c0_20 = arith.constant 0 : index
    %23 = vector.load %arg2[%c0_19, %c0_20] : memref<32x128xbf16, #tpu.memory_space<vmem>>, vector<32x128xbf16>
    %cst_21 = arith.constant dense<0.000000e+00> : vector<2x128xf32>
    %24 = tpu.matmul %22, %23, %cst_21 {dimension_numbers = #tpu.dot_dimension_numbers<[1], [0], [0], [1], [0, 0, 1, 1], [], []>} : vector<2x32xbf16>, vector<32x128xbf16>, vector<2x128xf32> -> vector<2x128xf32>
    %c0_22 = arith.constant 0 : index
    %c0_23 = arith.constant 0 : index
    %25 = vector.load %arg3[%c0_22, %c0_23] : memref<1x128xf32, #tpu.memory_space<vmem>>, vector<1x128xf32>
    %26 = vector.broadcast %25 : vector<1x128xf32> to vector<2x128xf32>
    %27 = arith.addf %24, %26 : vector<2x128xf32>
    %cst_24 = arith.constant 0.000000e+00 : f32
    %28 = vector.broadcast %cst_24 : f32 to vector<2x128xf32>
    %29 = arith.maximumf %27, %28 : vector<2x128xf32>
    %30 = arith.truncf %29 : vector<2x128xf32> to vector<2x128xbf16>
    %c0_25 = arith.constant 0 : index
    %c0_26 = arith.constant 0 : index
    %31 = vector.load %arg4[%c0_25, %c0_26] : memref<128x128xbf16, #tpu.memory_space<vmem>>, vector<128x128xbf16>
    %cst_27 = arith.constant dense<0.000000e+00> : vector<2x128xf32>
    %32 = tpu.matmul %30, %31, %cst_27 {dimension_numbers = #tpu.dot_dimension_numbers<[1], [0], [0], [1], [0, 0, 1, 1], [], []>} : vector<2x128xbf16>, vector<128x128xbf16>, vector<2x128xf32> -> vector<2x128xf32>
    %c0_28 = arith.constant 0 : index
    %c0_29 = arith.constant 0 : index
    %33 = vector.load %arg5[%c0_28, %c0_29] : memref<1x128xf32, #tpu.memory_space<vmem>>, vector<1x128xf32>
    %34 = vector.broadcast %33 : vector<1x128xf32> to vector<2x128xf32>
    %35 = arith.addf %32, %34 : vector<2x128xf32>
    %cst_30 = arith.constant 0.000000e+00 : f32
    %36 = vector.broadcast %cst_30 : f32 to vector<2x128xf32>
    %37 = arith.maximumf %35, %36 : vector<2x128xf32>
    %38 = arith.truncf %37 : vector<2x128xf32> to vector<2x128xbf16>
    %c0_31 = arith.constant 0 : index
    %c0_32 = arith.constant 0 : index
    %39 = vector.load %arg6[%c0_31, %c0_32] : memref<128x64xbf16, #tpu.memory_space<vmem>>, vector<128x64xbf16>
    %cst_33 = arith.constant dense<0.000000e+00> : vector<2x64xf32>
    %40 = tpu.matmul %38, %39, %cst_33 {dimension_numbers = #tpu.dot_dimension_numbers<[1], [0], [0], [1], [0, 0, 1, 1], [], []>} : vector<2x128xbf16>, vector<128x64xbf16>, vector<2x64xf32> -> vector<2x64xf32>
    %c0_34 = arith.constant 0 : index
    %c0_35 = arith.constant 0 : index
    %41 = vector.load %arg7[%c0_34, %c0_35] : memref<1x64xf32, #tpu.memory_space<vmem>>, vector<1x64xf32>
    %42 = vector.broadcast %41 : vector<1x64xf32> to vector<2x64xf32>
    %43 = arith.addf %40, %42 : vector<2x64xf32>
    %44 = arith.mulf %21, %21 : vector<2x64xf32>
    %cst_36 = arith.constant dense<0.000000e+00> : vector<2xf32>
    %45 = vector.multi_reduction <add>, %44, %cst_36 [1] : vector<2x64xf32> to vector<2xf32>
    %46 = vector.shape_cast %45 : vector<2xf32> to vector<2x1xf32>
    %47 = math.sqrt %46 : vector<2x1xf32>
    %48 = arith.mulf %43, %43 : vector<2x64xf32>
    %cst_37 = arith.constant dense<0.000000e+00> : vector<2xf32>
    %49 = vector.multi_reduction <add>, %48, %cst_37 [1] : vector<2x64xf32> to vector<2xf32>
    %50 = vector.shape_cast %49 : vector<2xf32> to vector<2x1xf32>
    %51 = math.sqrt %50 : vector<2x1xf32>
    %cst_38 = arith.constant 9.99999997E-7 : f32
    %52 = vector.broadcast %cst_38 : f32 to vector<2x1xf32>
    %53 = arith.maximumf %47, %52 : vector<2x1xf32>
    %54 = tpu.reciprocal %53 {approx = true} : vector<2x1xf32> -> vector<2x1xf32>
    %55 = vector.broadcast %54 : vector<2x1xf32> to vector<2x64xf32>
    %56 = arith.mulf %21, %55 : vector<2x64xf32>
    %cst_39 = arith.constant 9.99999997E-7 : f32
    %57 = vector.broadcast %cst_39 : f32 to vector<2x1xf32>
    %58 = arith.maximumf %51, %57 : vector<2x1xf32>
    %59 = tpu.reciprocal %58 {approx = true} : vector<2x1xf32> -> vector<2x1xf32>
    %60 = vector.broadcast %59 : vector<2x1xf32> to vector<2x64xf32>
    %61 = arith.mulf %43, %60 : vector<2x64xf32>
    %cst_40 = arith.constant dense<0.000000e+00> : vector<2x2xf32>
    %62 = tpu.matmul %56, %61, %cst_40 {dimension_numbers = #tpu.dot_dimension_numbers<[1], [1], [0], [0], [0, 0, 1, 0], [], []>} : vector<2x64xf32>, vector<2x64xf32>, vector<2x2xf32> -> vector<2x2xf32>
    %63 = arith.mulf %56, %61 : vector<2x64xf32>
    %cst_41 = arith.constant dense<0.000000e+00> : vector<2xf32>
    %64 = vector.multi_reduction <add>, %63, %cst_41 [1] : vector<2x64xf32> to vector<2xf32>
    %65 = vector.shape_cast %64 : vector<2xf32> to vector<2x1xf32>
    %cst_42 = arith.constant 14.2857141 : f32
    %66 = vector.broadcast %cst_42 : f32 to vector<2x2xf32>
    %67 = arith.mulf %62, %66 : vector<2x2xf32>
    %68 = math.exp %67 : vector<2x2xf32>
    %cst_43 = arith.constant 14.2857141 : f32
    %69 = vector.broadcast %cst_43 : f32 to vector<2x1xf32>
    %70 = arith.mulf %65, %69 : vector<2x1xf32>
    %71 = math.exp %70 : vector<2x1xf32>
    %cst_44 = arith.constant dense<0.000000e+00> : vector<2xf32>
    %72 = vector.multi_reduction <add>, %68, %cst_44 [1] : vector<2x2xf32> to vector<2xf32>
    %73 = vector.shape_cast %72 : vector<2xf32> to vector<2x1xf32>
    %cst_45 = arith.constant 3.000000e-06 : f32
    %74 = vector.broadcast %cst_45 : f32 to vector<2x1xf32>
    %75 = arith.addf %73, %74 : vector<2x1xf32>
    %cst_46 = arith.constant dense<0.000000e+00> : vector<2xf32>
    %76 = vector.multi_reduction <add>, %68, %cst_46 [0] : vector<2x2xf32> to vector<2xf32>
    %77 = vector.shape_cast %76 : vector<2xf32> to vector<1x2xf32>
    %cst_47 = arith.constant 3.000000e-06 : f32
    %78 = vector.broadcast %cst_47 : f32 to vector<1x2xf32>
    %79 = arith.addf %77, %78 : vector<1x2xf32>
    %80 = math.log %71 : vector<2x1xf32>
    %81 = vector.shape_cast %80 : vector<2x1xf32> to vector<1x2x1xf32>
    %cst_48 = arith.constant dense<0.000000e+00> : vector<1xf32>
    %82 = vector.multi_reduction <add>, %81, %cst_48 [1, 2] : vector<1x2x1xf32> to vector<1xf32>
    %83 = vector.shape_cast %82 : vector<1xf32> to vector<1x1x1xf32>
    %84 = vector.extract %83[0, 0, 0] : f32 from vector<1x1x1xf32>
    %85 = vector.broadcast %84 : f32 to vector<1x1xf32>
    %86 = math.log %75 : vector<2x1xf32>
    %87 = vector.shape_cast %86 : vector<2x1xf32> to vector<1x2x1xf32>
    %cst_49 = arith.constant dense<0.000000e+00> : vector<1xf32>
    %88 = vector.multi_reduction <add>, %87, %cst_49 [1, 2] : vector<1x2x1xf32> to vector<1xf32>
    %89 = vector.shape_cast %88 : vector<1xf32> to vector<1x1x1xf32>
    %90 = vector.extract %89[0, 0, 0] : f32 from vector<1x1x1xf32>
    %91 = vector.broadcast %90 : f32 to vector<1x1xf32>
    %92 = math.log %79 : vector<1x2xf32>
    %93 = vector.shape_cast %92 : vector<1x2xf32> to vector<1x1x2xf32>
    %cst_50 = arith.constant dense<0.000000e+00> : vector<1xf32>
    %94 = vector.multi_reduction <add>, %93, %cst_50 [1, 2] : vector<1x1x2xf32> to vector<1xf32>
    %95 = vector.shape_cast %94 : vector<1xf32> to vector<1x1x1xf32>
    %96 = vector.extract %95[0, 0, 0] : f32 from vector<1x1x1xf32>
    %97 = vector.broadcast %96 : f32 to vector<1x1xf32>
    %cst_51 = arith.constant 2.000000e+00 : f32
    %98 = vector.broadcast %cst_51 : f32 to vector<1x1xf32>
    %99 = arith.mulf %98, %85 : vector<1x1xf32>
    %100 = arith.subf %99, %91 : vector<1x1xf32>
    %101 = arith.subf %100, %97 : vector<1x1xf32>
    %cst_52 = arith.constant -2.500000e-01 : f32
    %102 = vector.broadcast %cst_52 : f32 to vector<1x1xf32>
    %103 = arith.mulf %102, %101 : vector<1x1xf32>
    %c0_53 = arith.constant 0 : index
    %c0_54 = arith.constant 0 : index
    %104 = vector.load %arg8[%c0_53, %c0_54] : memref<1x1xf32, #tpu.memory_space<vmem>>, vector<1x1xf32>
    tpu.vector_store %arg8[%c0_53, %c0_54], %103 {strides = array<i32>} : memref<1x1xf32, #tpu.memory_space<vmem>>, vector<1x1xf32>,
    return
  }
}

</mosaic_0001>

<bundles_post_ra>
// kernel: vgg_contrastive_loss.18
= control target key start
LH: loop header
LB: loop body
LE: loop exit
PB: predicated region body
PF: predicated region fallthrough
CT: control target
= control target key end

     0   :  { %s3140_s15 = smov 0   ;;  %s3741_s0 = inlined_call_operand.vmem [shape: bf16[4,4,1226], index: 0, kind: input, shape index: {}]   ;;  %s3742_s1 = inlined_call_operand.vmem [shape: bf16[9,4,4], index: 1, kind: input, shape index: {}]   ;;  %s3743_s2 = inlined_call_operand.vmem [shape: f32[4,1], index: 2, kind: input, shape index: {}]   ;;  %s3744_s3 = inlined_call_operand.vmem [shape: f32[1,1156], index: 3, kind: input, shape index: {}]   ;;  %s3745_s4 = inlined_call_operand.vmem [shape: bf16[4,4,1226], index: 4, kind: output, shape index: {}]  }
   0x1 LB: > { %s2960_s16 = sadd.s32 4294967295, %s3102_s15   ;;  %p2964_p0 = scmp.ge.s32.totalorder %s3102_s15, 1  ;;  %s3102_s15 = sphi %s3140_s15, %s14_s15  }
   0x2   : > { %p162_p1 = scmp.lt.s32.totalorder %s3102_s15, 5 }
   0x4   : > { %p163_p2 = pnand %p2964_p0, %p162_p1 }
   0x5   : > { %p188_p3 = scmp.lt.s32.totalorder (!%p163_p2), %s2960_s16, 3  ;;  %s3106_s21 = smov (!%p163_p2), 127  }
   0x6   : > { %166 = sbr.rel (%p163_p2) target bundleno = 647 (0x287), region = 36  ;;  %s3107_s22 = smov (!%p163_p2), 126  }
   0x7   : > { %s3108_s23 = smov (!%p163_p2), 94   ;;  %s3109_s24 = smov (!%p163_p2), 93  }
   0x8   : > { %s3110_s25 = smov (!%p163_p2), 92   ;;  %s3111_s26 = smov (!%p163_p2), 60  }
   0x9   : > { %s3112_s27 = smov (!%p163_p2), 59   ;;  %s3113_s6 = smov (!%p163_p2), 58  }
   0xa   : > { %s3114_s5 = smov (!%p163_p2), 35  }
   0xb   : > { %v212_v0 = vlaneseq  ;;  %v3104_v1 = vmov 1983009808   ;;  %s3747_s16 = smov (!%p188_p3, %s2960_s16), 3  ;;  %v3105_v6 = vmov 0   ;;  %vm270_vm0 = vcmask 1039360  }
   0xc   : > { %v210_v2 = vunpack.c.l.s4 %v3104_v1  ;;  %s3073_s17 = smul.u32 20, %s3747_s16  ;;  %347 = vmatprep.mubr.bf16.mxu0 %v3105_v6  ;;  %388 = vmatprep.mubr.bf16.mxu1 %v3105_v6  ;;  %vm284_vm1 = vcmask 1041408   ;;  %v2967_v28 = vld [vmem:[%s3742_s1 + $0x2] sm:$0x3]  ;;  %vm280_vm2 = vcmask 31744   ;;  %vm780_vm3 = vcmask 1031168  }
   0xd   : > { %v3150_v3 = vshrl.u32 %v212_v0, 7  ;;  %3093 = vset.pattern.permute.xlu0 %v3105_v6  ;;  %v202_v52 = vld [vmem:[%s3742_s1] sm:$0x3]  ;;  %vm1060_vm4 = vcmask 769024   ;;  %vm1340_vm5 = vcmask 760832   ;;  %vm1620_vm6 = vcmask 752640  }
   0xe   : > { %v211_v4 = vunpack.c.0.s8 %v210_v2  ;;  %s192_s20 = scalar_lea.vmem %s3741_s0, %s3073_s17  ;;  %vm1900_vm7 = vcmask 490496   ;;  %vm2180_vm8 = vcmask 482304   ;;  %vm2460_vm9 = vcmask 474112   ;;  %s3593_s28 = scalar_lea.vmem %s3745_s4, %s3073_s17 }
   0xf   : > { %v199_v7 = vld [vmem:[%s192_s20] sm:$0xff]  ;;  %v200_v10 = vld [vmem:[%s192_s20 + $0x8] sm:$0xff]  ;;  %v3198_v19 = vld.sshfl [vmem:[%s192_s20 + $0x10] sm:$0x33 pattern:$0x76325410] }
  0x10   : > { %v3154_v5 = vsub.s32 %v211_v4, %v3150_v3  ;;  %v208_v9 = vcombine.high %v199_v7, %v199_v7  ;;  %v225_v15 = vcombine.high %v200_v10, %v200_v10  ;;  %v3204_v20 = vcombine.high %v3198_v19, %v3198_v19 }
  0x11   : > { %v548_v60 = vsel %vm284_vm1, %v3198_v19, 0  ;;  %vm2808_vm10 = vcmask 279552   ;;  %vm2810_vm11 = vcmask 599352   ;;  %vm2893_vm12 = vcmask 1041688  }
  0x12   : > { %v3165_v8 = vrot.slane %v199_v7, %v3154_v5  ;;  %v3169_v11 = vrot.slane %v208_v9, %v3154_v5  ;;  %v3181_v14 = vrot.slane %v200_v10, %v3154_v5  ;;  %v3190_v17 = vrot.slane %v225_v15, %v3154_v5  ;;  %2809 = vst.msk [vmem:[%s3593_s28] sm:$0x3] %vm2808_vm10, %v3105_v6 }
  0x13   : > { %2811 = vst.msk [vmem:[%s3593_s28 + $0x12] sm:$0x3] %vm2810_vm11, %v3105_v6  ;;  %vm2894_vm13 = vcmask 1043458   ;;  %vm2896_vm15 = vcmask 1045508  }
  0x14   : > { %250 = vrot.lane.b32.xlu0 %v3165_v8, %s3106_s21  ;;  %v3173_v12 = vcombine.high %v3165_v8, %v3165_v8  ;;  %254 = vrot.lane.b32.xlu1 %v3169_v11, %s3106_s21  ;;  %v3178_v13 = vcombine.high %v3169_v11, %v3169_v11  ;;  %v3187_v16 = vcombine.high %v3181_v14, %v3181_v14  ;;  %v524_v46 = vsel %vm284_vm1, %v3165_v8, 0  ;;  %vm2895_vm14 = vmor %vm2894_vm13, %vm2893_vm12 }
  0x15   : > { %v3196_v18 = vcombine.high %v3190_v17, %v3190_v17  ;;  %v530_v49 = vsel %vm284_vm1, %v3169_v11, 0  ;;  %v536_v53 = vsel %vm284_vm1, %v3181_v14, 0  ;;  %v542_v56 = vsel %vm284_vm1, %v3190_v17, 0 }
  0x18   : > { %252 = vrot.lane.b32.xlu0 %v3173_v12, %s3106_s21  ;;  %256 = vrot.lane.b32.xlu1 %v3178_v13, %s3106_s21 }
  0x1c   : > { %258 = vrot.lane.b32.xlu0 %v3181_v14, %s3106_s21  ;;  %260 = vrot.lane.b32.xlu1 %v3187_v16, %s3106_s21 }
  0x20   : > { %262 = vrot.lane.b32.xlu0 %v3190_v17, %s3106_s21  ;;  %264 = vrot.lane.b32.xlu1 %v3196_v18, %s3106_s21 }
  0x24   : > { %266 = vrot.lane.b32.xlu0 %v3198_v19, %s3106_s21  ;;  %268 = vrot.lane.b32.xlu1 %v3204_v20, %s3106_s21 }
  0x28   : > { %760 = vrot.lane.b32.xlu0 %v3165_v8, %s3107_s22  ;;  %762 = vrot.lane.b32.xlu1 %v3173_v12, %s3107_s22 }
  0x2c   : > { %764 = vrot.lane.b32.xlu0 %v3169_v11, %s3107_s22  ;;  %766 = vrot.lane.b32.xlu1 %v3178_v13, %s3107_s22 }
  0x30   : > { %768 = vrot.lane.b32.xlu0 %v3181_v14, %s3107_s22  ;;  %770 = vrot.lane.b32.xlu1 %v3187_v16, %s3107_s22 }
  0x34   : > { %772 = vrot.lane.b32.xlu0 %v3190_v17, %s3107_s22  ;;  %774 = vrot.lane.b32.xlu1 %v3196_v18, %s3107_s22 }
  0x38   : > { %776 = vrot.lane.b32.xlu0 %v3198_v19, %s3107_s22  ;;  %778 = vrot.lane.b32.xlu1 %v3204_v20, %s3107_s22 }
  0x3c   : > { %1040 = vrot.lane.b32.xlu0 %v3165_v8, %s3108_s23  ;;  %1042 = vrot.lane.b32.xlu1 %v3173_v12, %s3108_s23 }
  0x40   : > { %1044 = vrot.lane.b32.xlu0 %v3169_v11, %s3108_s23  ;;  %1046 = vrot.lane.b32.xlu1 %v3178_v13, %s3108_s23 }
  0x44   : > { %1048 = vrot.lane.b32.xlu0 %v3181_v14, %s3108_s23  ;;  %1050 = vrot.lane.b32.xlu1 %v3187_v16, %s3108_s23 }
  0x48   : > { %1052 = vrot.lane.b32.xlu0 %v3190_v17, %s3108_s23  ;;  %1054 = vrot.lane.b32.xlu1 %v3196_v18, %s3108_s23 }
  0x4c   : > { %1056 = vrot.lane.b32.xlu0 %v3198_v19, %s3108_s23  ;;  %1058 = vrot.lane.b32.xlu1 %v3204_v20, %s3108_s23 }
  0x50   : > { %1320 = vrot.lane.b32.xlu0 %v3165_v8, %s3109_s24  ;;  %1322 = vrot.lane.b32.xlu1 %v3173_v12, %s3109_s24 }
  0x54   : > { %1324 = vrot.lane.b32.xlu0 %v3169_v11, %s3109_s24  ;;  %1326 = vrot.lane.b32.xlu1 %v3178_v13, %s3109_s24 }
  0x58   : > { %1328 = vrot.lane.b32.xlu0 %v3181_v14, %s3109_s24  ;;  %1330 = vrot.lane.b32.xlu1 %v3187_v16, %s3109_s24 }
  0x5c   : > { %1332 = vrot.lane.b32.xlu0 %v3190_v17, %s3109_s24  ;;  %1334 = vrot.lane.b32.xlu1 %v3196_v18, %s3109_s24 }
  0x60   : > { %1336 = vrot.lane.b32.xlu0 %v3198_v19, %s3109_s24  ;;  %1338 = vrot.lane.b32.xlu1 %v3204_v20, %s3109_s24 }
  0x64   : > { %1600 = vrot.lane.b32.xlu0 %v3165_v8, %s3110_s25  ;;  %1602 = vrot.lane.b32.xlu1 %v3173_v12, %s3110_s25 }
  0x68   : > { %1604 = vrot.lane.b32.xlu0 %v3169_v11, %s3110_s25  ;;  %1606 = vrot.lane.b32.xlu1 %v3178_v13, %s3110_s25 }
  0x6c   : > { %1608 = vrot.lane.b32.xlu0 %v3181_v14, %s3110_s25  ;;  %1610 = vrot.lane.b32.xlu1 %v3187_v16, %s3110_s25 }
  0x70   : > { %1612 = vrot.lane.b32.xlu0 %v3190_v17, %s3110_s25  ;;  %1614 = vrot.lane.b32.xlu1 %v3196_v18, %s3110_s25 }
  0x74   : > { %1616 = vrot.lane.b32.xlu0 %v3198_v19, %s3110_s25  ;;  %1618 = vrot.lane.b32.xlu1 %v3204_v20, %s3110_s25 }
  0x78   : > { %1880 = vrot.lane.b32.xlu0 %v3165_v8, %s3111_s26  ;;  %1882 = vrot.lane.b32.xlu1 %v3173_v12, %s3111_s26 }
  0x7c   : > { %1884 = vrot.lane.b32.xlu0 %v3169_v11, %s3111_s26  ;;  %1886 = vrot.lane.b32.xlu1 %v3178_v13, %s3111_s26 }
  0x80   : > { %1888 = vrot.lane.b32.xlu0 %v3181_v14, %s3111_s26  ;;  %1890 = vrot.lane.b32.xlu1 %v3187_v16, %s3111_s26 }
  0x84   : > { %1892 = vrot.lane.b32.xlu0 %v3190_v17, %s3111_s26  ;;  %1894 = vrot.lane.b32.xlu1 %v3196_v18, %s3111_s26 }
  0x86   : > { %v251_v21 = vpop.permute.xlu0 %250  ;;  %v255_v22 = vpop.permute.xlu1 %254 }
  0x88   : > { %1896 = vrot.lane.b32.xlu0 %v3198_v19, %s3111_s26  ;;  %1898 = vrot.lane.b32.xlu1 %v3204_v20, %s3111_s26 }
  0x8a   : > { %v253_v23 = vpop.permute.xlu0 %252  ;;  %v257_v26 = vpop.permute.xlu1 %256 }
  0x8b   : > { %v272_v24 = vsel %vm270_vm0, %v253_v23, %v255_v22  ;;  %v271_v25 = vsel %vm270_vm0, %v251_v21, %v253_v23  ;;  %v273_v29 = vsel %vm270_vm0, %v255_v22, %v257_v26 }
  0x8c   : > { %2969 = vmatprep.subr.msk.bf16.mxu0 %vm284_vm1, %v272_v24  ;;  %v286_v27 = vsel %vm284_vm1, %v271_v25, 0  ;;  %2160 = vrot.lane.b32.xlu0 %v3165_v8, %s3112_s27  ;;  %v292_v33 = vsel %vm284_vm1, %v273_v29, 0 }
  0x8d   : > { %330 = vmatpush1.bf16.msra.mxu0 %v286_v27  ;;  %2162 = vrot.lane.b32.xlu1 %v3173_v12, %s3112_s27 }
  0x8e   : > { %v259_v30 = vpop.permute.xlu0 %258  ;;  %v261_v32 = vpop.permute.xlu1 %260 }
  0x8f   : > { %v274_v31 = vsel %vm270_vm0, %v257_v26, %v259_v30  ;;  %v275_v34 = vsel %vm270_vm0, %v259_v30, %v261_v32 }
  0x90   : > { %2970 = vmatmul.mubr.msk.bf16.vlgmr.msra.gmra.mxu0 %vm280_vm2, %v2967_v28  ;;  %2971 = vmatprep.subr.msk.bf16.mxu1 %vm284_vm1, %v274_v31  ;;  %v298_v37 = vsel %vm284_vm1, %v275_v34, 0 }
  0x91   : > { %371 = vmatpush1.bf16.msra.mxu1 %v292_v33  ;;  %429 = vmatprep.mubr.bf16.mxu0 %v3105_v6 }
  0x92   : > { %v263_v35 = vpop.permute.xlu0 %262  ;;  %2164 = vrot.lane.b32.xlu0 %v3169_v11, %s3112_s27  ;;  %2166 = vrot.lane.b32.xlu1 %v3178_v13, %s3112_s27  ;;  %v265_v38 = vpop.permute.xlu1 %264 }
  0x93   : > { %v276_v36 = vsel %vm270_vm0, %v261_v32, %v263_v35  ;;  %v277_v39 = vsel %vm270_vm0, %v263_v35, %v265_v38 }
  0x94   : > { %2972 = vmatmul.mubr.msk.bf16.vlgmr.msra.gmra.mxu1 %vm280_vm2, %v2967_v28  ;;  %2973 = vmatprep.subr.msk.bf16.mxu0 %vm284_vm1, %v276_v36  ;;  %v304_v42 = vsel %vm284_vm1, %v277_v39, 0  ;;  %v3000_v39 = vld [vmem:[%s3742_s1 + $0x6] sm:$0x3] }
  0x95   : > { %412 = vmatpush1.bf16.msra.mxu0 %v298_v37  ;;  %470 = vmatprep.mubr.bf16.mxu1 %v3105_v6 }
  0x96   : > { %v267_v40 = vpop.permute.xlu0 %266  ;;  %2168 = vrot.lane.b32.xlu0 %v3181_v14, %s3112_s27  ;;  %2170 = vrot.lane.b32.xlu1 %v3187_v16, %s3112_s27  ;;  %v269_v43 = vpop.permute.xlu1 %268 }
  0x97   : > { %v278_v41 = vsel %vm270_vm0, %v265_v38, %v267_v40  ;;  %v279_v44 = vsel %vm270_vm0, %v267_v40, %v269_v43  ;;  %2977 = vmatprep.subr.msk.bf16.mxu0 %vm284_vm1, %v269_v43  ;;  %vm2897_vm0 = vmor %vm2896_vm15, %vm2895_vm14 }
  0x98   : > { %2974 = vmatmul.mubr.msk.bf16.vlgmr.msra.gmra.mxu0 %vm280_vm2, %v2967_v28  ;;  %2975 = vmatprep.subr.msk.bf16.mxu1 %vm284_vm1, %v278_v41  ;;  %v310_v45 = vsel %vm284_vm1, %v279_v44, 0 }
  0x99   : > { %453 = vmatpush1.bf16.msra.mxu1 %v304_v42  ;;  %511 = vmatprep.mubr.bf16.mxu0 %v3105_v6 }
  0x9a   : > { %2979 = vmatprep.subr.msk.bf16.mxu1 %vm284_vm1, %v3173_v12  ;;  %v761_v47 = vpop.permute.xlu0 %760  ;;  %494 = vmatpush1.bf16.msra.mxu0 %v310_v45  ;;  %v763_v48 = vpop.permute.xlu1 %762 }
  0x9b   : > { %2172 = vrot.lane.b32.xlu0 %v3190_v17, %s3112_s27  ;;  %2981 = vmatprep.subr.msk.bf16.mxu0 %vm284_vm1, %v3178_v13  ;;  %v781_v62 = vsel %vm780_vm3, %v761_v47, %v763_v48 }
  0x9c   : > { %2976 = vmatmul.mubr.msk.bf16.vlgmr.msra.gmra.mxu1 %vm280_vm2, %v2967_v28  ;;  %2174 = vrot.lane.b32.xlu1 %v3196_v18, %s3112_s27  ;;  %v794_v1 = vsel %vm284_vm1, %v781_v62, 0 }
  0x9d   : > { %568 = vmatpush1.bf16.msra.mxu1 %v524_v46  ;;  %585 = vmatprep.mubr.bf16.mxu1 %v3105_v6 }
  0x9e   : > { %2983 = vmatprep.subr.msk.bf16.mxu1 %vm284_vm1, %v3187_v16  ;;  %v765_v50 = vpop.permute.xlu0 %764  ;;  %v767_v51 = vpop.permute.xlu1 %766 }
  0x9f   : > { %2176 = vrot.lane.b32.xlu0 %v3198_v19, %s3112_s27  ;;  %v782_v58 = vsel %vm780_vm3, %v763_v48, %v765_v50  ;;  %v783_v4 = vsel %vm780_vm3, %v765_v50, %v767_v51 }
  0xa0   : > { %2978 = vmatmul.mubr.msk.bf16.vlgmr.msra.gmra.mxu0 %vm280_vm2, %v2967_v28  ;;  %2178 = vrot.lane.b32.xlu1 %v3204_v20, %s3112_s27  ;;  %v800_v9 = vsel %vm284_vm1, %v783_v4, 0 }
  0xa1   : > { %609 = vmatpush1.bf16.msra.mxu0 %v530_v49  ;;  %626 = vmatprep.mubr.bf16.mxu0 %v3105_v6 }
  0xa2   : > { %2985 = vmatprep.subr.msk.bf16.mxu0 %vm284_vm1, %v3196_v18  ;;  %v769_v54 = vpop.permute.xlu0 %768  ;;  %v771_v55 = vpop.permute.xlu1 %770 }
  0xa3   : > { %2440 = vrot.lane.b32.xlu0 %v3165_v8, %s3113_s6  ;;  %v784_v63 = vsel %vm780_vm3, %v767_v51, %v769_v54 }
  0xa4   : > { %2980 = vmatmul.mubr.msk.bf16.vlgmr.msra.gmra.mxu1 %vm280_vm2, %v202_v52  ;;  %2442 = vrot.lane.b32.xlu1 %v3173_v12, %s3113_s6 }
  0xa5   : > { %650 = vmatpush1.bf16.msra.mxu1 %v536_v53  ;;  %667 = vmatprep.mubr.bf16.mxu1 %v3105_v6 }
  0xa6   : > { %2987 = vmatprep.subr.msk.bf16.mxu1 %vm284_vm1, %v3204_v20  ;;  %v773_v57 = vpop.permute.xlu0 %772  ;;  %v775_v59 = vpop.permute.xlu1 %774 }
  0xa7   : > { %2444 = vrot.lane.b32.xlu0 %v3169_v11, %s3113_s6  ;;  %v786_v7 = vsel %vm780_vm3, %v771_v55, %v773_v57  ;;  %v785_v11 = vsel %vm780_vm3, %v769_v54, %v771_v55 }
  0xa8   : > { %2982 = vmatmul.mubr.msk.bf16.vlgmr.msra.gmra.mxu0 %vm280_vm2, %v202_v52  ;;  %2446 = vrot.lane.b32.xlu1 %v3178_v13, %s3113_s6  ;;  %v806_v15 = vsel %vm284_vm1, %v785_v11, 0 }
  0xa9   : > { %691 = vmatpush1.bf16.msra.mxu0 %v542_v56  ;;  %708 = vmatprep.mubr.bf16.mxu0 %v3105_v6 }
  0xaa   : > { %2990 = vmatprep.subr.msk.bf16.mxu0 %vm284_vm1, %v782_v58  ;;  %v777_v61 = vpop.permute.xlu0 %776  ;;  %v779_v0 = vpop.permute.xlu1 %778 }
  0xab   : > { %2448 = vrot.lane.b32.xlu0 %v3181_v14, %s3113_s6  ;;  %v788_v12 = vsel %vm780_vm3, %v775_v59, %v777_v61  ;;  %v2989_v14 = vld [vmem:[%s3742_s1 + $0x4] sm:$0x3]  ;;  %v789_v22 = vsel %vm780_vm3, %v777_v61, %v779_v0 }
  0xac   : > { %2984 = vmatmul.mubr.msk.bf16.vlgmr.msra.gmra.mxu1 %vm280_vm2, %v202_v52  ;;  %2450 = vrot.lane.b32.xlu1 %v3187_v16, %s3113_s6  ;;  %v818_v24 = vsel %vm284_vm1, %v789_v22, 0 }
  0xad   : > { %732 = vmatpush1.bf16.msra.mxu1 %v548_v60  ;;  %749 = vmatprep.mubr.bf16.mxu1 %v3105_v6 }
  0xae   : > { %2992 = vmatprep.subr.msk.bf16.mxu1 %vm284_vm1, %v784_v63  ;;  %v1041_v2 = vpop.permute.xlu0 %1040  ;;  %v1043_v8 = vpop.permute.xlu1 %1042 }
  0xaf   : > { %2452 = vrot.lane.b32.xlu0 %v3190_v17, %s3113_s6  ;;  %v787_v17 = vsel %vm780_vm3, %v773_v57, %v775_v59  ;;  %v1061_v26 = vsel %vm1060_vm4, %v1041_v2, %v1043_v8  ;;  %vm2883_vm3 = vcmask 285696  }
  0xb0   : > { %2986 = vmatmul.mubr.msk.bf16.vlgmr.msra.gmra.mxu0 %vm280_vm2, %v202_v52  ;;  %2454 = vrot.lane.b32.xlu1 %v3196_v18, %s3113_s6  ;;  %v1074_v29 = vsel %vm284_vm1, %v1061_v26, 0 }
  0xb1   : > { %838 = vmatpush1.bf16.msra.mxu0 %v794_v1  ;;  %855 = vmatprep.mubr.bf16.mxu0 %v3105_v6 }
  0xb2   : > { %2994 = vmatprep.subr.msk.bf16.mxu0 %vm284_vm1, %v786_v7  ;;  %v1045_v10 = vpop.permute.xlu0 %1044  ;;  %v1047_v13 = vpop.permute.xlu1 %1046 }
  0xb3   : > { %2456 = vrot.lane.b32.xlu0 %v3198_v19, %s3113_s6  ;;  %v812_v19 = vsel %vm284_vm1, %v787_v17, 0  ;;  %v1062_v23 = vsel %vm1060_vm4, %v1043_v8, %v1045_v10  ;;  %v1063_v31 = vsel %vm1060_vm4, %v1045_v10, %v1047_v13 }
  0xb4   : > { %2988 = vmatmul.mubr.msk.bf16.vlgmr.msra.gmra.mxu1 %vm280_vm2, %v202_v52  ;;  %2458 = vrot.lane.b32.xlu1 %v3204_v20, %s3113_s6  ;;  %v1080_v34 = vsel %vm284_vm1, %v1063_v31, 0 }
  0xb5   : > { %879 = vmatpush1.bf16.msra.mxu1 %v800_v9  ;;  %896 = vmatprep.mubr.bf16.mxu1 %v3105_v6 }
  0xb6   : > { %2996 = vmatprep.subr.msk.bf16.mxu1 %vm284_vm1, %v788_v12  ;;  %v1049_v16 = vpop.permute.xlu0 %1048  ;;  %v1051_v18 = vpop.permute.xlu1 %1050 }
  0xb7   : > { %v1064_v27 = vsel %vm1060_vm4, %v1047_v13, %v1049_v16  ;;  %v1065_v36 = vsel %vm1060_vm4, %v1049_v16, %v1051_v18 }
  0xb8   : > { %2991 = vmatmul.mubr.msk.bf16.vlgmr.msra.gmra.mxu0 %vm280_vm2, %v2989_v14  ;;  %v1086_v40 = vsel %vm284_vm1, %v1065_v36, 0 }
  0xb9   : > { %920 = vmatpush1.bf16.msra.mxu0 %v806_v15  ;;  %937 = vmatprep.mubr.bf16.mxu0 %v3105_v6 }
  0xba   : > { %2998 = vmatprep.subr.msk.bf16.mxu0 %vm284_vm1, %v779_v0  ;;  %v1053_v21 = vpop.permute.xlu0 %1052  ;;  %v1055_v20 = vpop.permute.xlu1 %1054  ;;  %v3011_v0 = vld [vmem:[%s3742_s1 + $0x8] sm:$0x3] }
  0xbb   : > { %v1066_v32 = vsel %vm1060_vm4, %v1051_v18, %v1053_v21  ;;  %v1067_v42 = vsel %vm1060_vm4, %v1053_v21, %v1055_v20 }
  0xbc   : > { %2993 = vmatmul.mubr.msk.bf16.vlgmr.msra.gmra.mxu1 %vm280_vm2, %v2989_v14  ;;  %v1092_v44 = vsel %vm284_vm1, %v1067_v42, 0 }
  0xbd   : > { %961 = vmatpush1.bf16.msra.mxu1 %v812_v19  ;;  %978 = vmatprep.mubr.bf16.mxu1 %v3105_v6 }
  0xbe   : > { %3001 = vmatprep.subr.msk.bf16.mxu1 %vm284_vm1, %v1062_v23  ;;  %v1057_v25 = vpop.permute.xlu0 %1056  ;;  %v1059_v28 = vpop.permute.xlu1 %1058 }
  0xbf   : > { %v1068_v37 = vsel %vm1060_vm4, %v1055_v20, %v1057_v25  ;;  %v1069_v46 = vsel %vm1060_vm4, %v1057_v25, %v1059_v28 }
  0xc0   : > { %2995 = vmatmul.mubr.msk.bf16.vlgmr.msra.gmra.mxu0 %vm280_vm2, %v2989_v14  ;;  %v1098_v49 = vsel %vm284_vm1, %v1069_v46, 0 }
  0xc1   : > { %1002 = vmatpush1.bf16.msra.mxu0 %v818_v24  ;;  %1019 = vmatprep.mubr.bf16.mxu0 %v3105_v6 }
  0xc2   : > { %3003 = vmatprep.subr.msk.bf16.mxu0 %vm284_vm1, %v1064_v27  ;;  %v1321_v30 = vpop.permute.xlu0 %1320  ;;  %v1323_v33 = vpop.permute.xlu1 %1322 }
  0xc3   : > { %v1341_v51 = vsel %vm1340_vm5, %v1321_v30, %v1323_v33 }
  0xc4   : > { %2997 = vmatmul.mubr.msk.bf16.vlgmr.msra.gmra.mxu1 %vm280_vm2, %v2989_v14  ;;  %v1354_v54 = vsel %vm284_vm1, %v1341_v51, 0 }
  0xc5   : > { %1118 = vmatpush1.bf16.msra.mxu1 %v1074_v29  ;;  %1135 = vmatprep.mubr.bf16.mxu1 %v3105_v6 }
  0xc6   : > { %3005 = vmatprep.subr.msk.bf16.mxu1 %vm284_vm1, %v1066_v32  ;;  %v1325_v35 = vpop.permute.xlu0 %1324  ;;  %v1327_v38 = vpop.permute.xlu1 %1326 }
  0xc7   : > { %v1342_v47 = vsel %vm1340_vm5, %v1323_v33, %v1325_v35  ;;  %v1343_v56 = vsel %vm1340_vm5, %v1325_v35, %v1327_v38  ;;  %v2718_v35 = vld [vmem:[%s3743_s2] sm:$0xf] }
  0xc8   : > { %2999 = vmatmul.mubr.msk.bf16.vlgmr.msra.gmra.mxu0 %vm280_vm2, %v2989_v14  ;;  %v1360_v59 = vsel %vm284_vm1, %v1343_v56, 0  ;;  %2721 = vperm.xlu0 %3093, %v2718_v35  }
  0xc9   : > { %1159 = vmatpush1.bf16.msra.mxu0 %v1080_v34  ;;  %1176 = vmatprep.mubr.bf16.mxu0 %v3105_v6 }
  0xca   : > { %3007 = vmatprep.subr.msk.bf16.mxu0 %vm284_vm1, %v1068_v37  ;;  %v1329_v41 = vpop.permute.xlu0 %1328  ;;  %v1331_v43 = vpop.permute.xlu1 %1330 }
  0xcb   : > { %v1344_v52 = vsel %vm1340_vm5, %v1327_v38, %v1329_v41  ;;  %v1345_v61 = vsel %vm1340_vm5, %v1329_v41, %v1331_v43 }
  0xcc   : > { %3002 = vmatmul.mubr.msk.bf16.vlgmr.msra.gmra.mxu1 %vm280_vm2, %v3000_v39  ;;  %v1366_v1 = vsel %vm284_vm1, %v1345_v61, 0 }
  0xcd   : > { %1200 = vmatpush1.bf16.msra.mxu1 %v1086_v40  ;;  %1217 = vmatprep.mubr.bf16.mxu1 %v3105_v6 }
  0xce   : > { %3009 = vmatprep.subr.msk.bf16.mxu1 %vm284_vm1, %v1059_v28  ;;  %v1333_v45 = vpop.permute.xlu0 %1332  ;;  %v1335_v48 = vpop.permute.xlu1 %1334  ;;  %v3022_v28 = vld [vmem:[%s3742_s1 + $0xa] sm:$0x3] }
  0xcf   : > { %v1346_v57 = vsel %vm1340_vm5, %v1331_v43, %v1333_v45  ;;  %v1347_v4 = vsel %vm1340_vm5, %v1333_v45, %v1335_v48 }
  0xd0   : > { %3004 = vmatmul.mubr.msk.bf16.vlgmr.msra.gmra.mxu0 %vm280_vm2, %v3000_v39  ;;  %v1372_v8 = vsel %vm284_vm1, %v1347_v4, 0 }
  0xd1   : > { %1241 = vmatpush1.bf16.msra.mxu0 %v1092_v44  ;;  %1258 = vmatprep.mubr.bf16.mxu0 %v3105_v6 }
  0xd2   : > { %3012 = vmatprep.subr.msk.bf16.mxu0 %vm284_vm1, %v1342_v47  ;;  %v1337_v50 = vpop.permute.xlu0 %1336  ;;  %v1339_v53 = vpop.permute.xlu1 %1338 }
  0xd3   : > { %v1348_v62 = vsel %vm1340_vm5, %v1335_v48, %v1337_v50  ;;  %v1349_v10 = vsel %vm1340_vm5, %v1337_v50, %v1339_v53  ;;  %vm2902_vm5 = vcmask 314370  }
  0xd4   : > { %3006 = vmatmul.mubr.msk.bf16.vlgmr.msra.gmra.mxu1 %vm280_vm2, %v3000_v39  ;;  %v1378_v13 = vsel %vm284_vm1, %v1349_v10, 0 }
  0xd5   : > { %1282 = vmatpush1.bf16.msra.mxu1 %v1098_v49  ;;  %1299 = vmatprep.mubr.bf16.mxu1 %v3105_v6 }
  0xd6   : > { %3014 = vmatprep.subr.msk.bf16.mxu1 %vm284_vm1, %v1344_v52  ;;  %v1601_v55 = vpop.permute.xlu0 %1600  ;;  %v1603_v58 = vpop.permute.xlu1 %1602 }
  0xd7   : > { %v1621_v15 = vsel %vm1620_vm6, %v1601_v55, %v1603_v58 }
  0xd8   : > { %3008 = vmatmul.mubr.msk.bf16.vlgmr.msra.gmra.mxu0 %vm280_vm2, %v3000_v39  ;;  %v1634_v18 = vsel %vm284_vm1, %v1621_v15, 0 }
  0xd9   : > { %1398 = vmatpush1.bf16.msra.mxu0 %v1354_v54  ;;  %1415 = vmatprep.mubr.bf16.mxu0 %v3105_v6  ;;  %v3033_v54 = vld [vmem:[%s3742_s1 + $0xc] sm:$0x3] }
  0xda   : > { %3016 = vmatprep.subr.msk.bf16.mxu0 %vm284_vm1, %v1346_v57  ;;  %v1605_v60 = vpop.permute.xlu0 %1604  ;;  %v1607_v63 = vpop.permute.xlu1 %1606 }
  0xdb   : > { %v1622_v11 = vsel %vm1620_vm6, %v1603_v58, %v1605_v60  ;;  %v1623_v21 = vsel %vm1620_vm6, %v1605_v60, %v1607_v63 }
  0xdc   : > { %3010 = vmatmul.mubr.msk.bf16.vlgmr.msra.gmra.mxu1 %vm280_vm2, %v3000_v39  ;;  %v1640_v20 = vsel %vm284_vm1, %v1623_v21, 0 }
  0xdd   : > { %1439 = vmatpush1.bf16.msra.mxu1 %v1360_v59  ;;  %1456 = vmatprep.mubr.bf16.mxu1 %v3105_v6 }
  0xde   : > { %3018 = vmatprep.subr.msk.bf16.mxu1 %vm284_vm1, %v1348_v62  ;;  %v1609_v2 = vpop.permute.xlu0 %1608  ;;  %v1611_v7 = vpop.permute.xlu1 %1610 }
  0xdf   : > { %v1624_v16 = vsel %vm1620_vm6, %v1607_v63, %v1609_v2  ;;  %v1625_v25 = vsel %vm1620_vm6, %v1609_v2, %v1611_v7 }
  0xe0   : > { %3013 = vmatmul.mubr.msk.bf16.vlgmr.msra.gmra.mxu0 %vm280_vm2, %v3011_v0  ;;  %v1646_v29 = vsel %vm284_vm1, %v1625_v25, 0 }
  0xe1   : > { %1480 = vmatpush1.bf16.msra.mxu0 %v1366_v1  ;;  %1497 = vmatprep.mubr.bf16.mxu0 %v3105_v6 }
  0xe2   : > { %3020 = vmatprep.subr.msk.bf16.mxu0 %vm284_vm1, %v1339_v53  ;;  %v1613_v9 = vpop.permute.xlu0 %1612  ;;  %v1615_v12 = vpop.permute.xlu1 %1614 }
  0xe3   : > { %v1626_v22 = vsel %vm1620_vm6, %v1611_v7, %v1613_v9  ;;  %v1627_v31 = vsel %vm1620_vm6, %v1613_v9, %v1615_v12 }
  0xe4   : > { %3015 = vmatmul.mubr.msk.bf16.vlgmr.msra.gmra.mxu1 %vm280_vm2, %v3011_v0  ;;  %v1652_v33 = vsel %vm284_vm1, %v1627_v31, 0 }
  0xe5   : > { %1521 = vmatpush1.bf16.msra.mxu1 %v1372_v8  ;;  %1538 = vmatprep.mubr.bf16.mxu1 %v3105_v6 }
  0xe6   : > { %3023 = vmatprep.subr.msk.bf16.mxu1 %vm284_vm1, %v1622_v11  ;;  %v1617_v14 = vpop.permute.xlu0 %1616  ;;  %v1619_v17 = vpop.permute.xlu1 %1618 }
  0xe7   : > { %v1628_v26 = vsel %vm1620_vm6, %v1615_v12, %v1617_v14  ;;  %v1629_v36 = vsel %vm1620_vm6, %v1617_v14, %v1619_v17  ;;  %vm2903_vm6 = vmor %vm2902_vm5, %vm284_vm1 }
  0xe8   : > { %3017 = vmatmul.mubr.msk.bf16.vlgmr.msra.gmra.mxu0 %vm280_vm2, %v3011_v0  ;;  %v1658_v39 = vsel %vm284_vm1, %v1629_v36, 0 }
  0xe9   : > { %1562 = vmatpush1.bf16.msra.mxu0 %v1378_v13  ;;  %1579 = vmatprep.mubr.bf16.mxu0 %v3105_v6 }
  0xea   : > { %3025 = vmatprep.subr.msk.bf16.mxu0 %vm284_vm1, %v1624_v16  ;;  %v1881_v19 = vpop.permute.xlu0 %1880  ;;  %v1883_v23 = vpop.permute.xlu1 %1882  ;;  %v3044_v16 = vld [vmem:[%s3742_s1 + $0xe] sm:$0x3] }
  0xeb   : > { %v1901_v41 = vsel %vm1900_vm7, %v1881_v19, %v1883_v23 }
  0xec   : > { %3019 = vmatmul.mubr.msk.bf16.vlgmr.msra.gmra.mxu1 %vm280_vm2, %v3011_v0  ;;  %v1914_v44 = vsel %vm284_vm1, %v1901_v41, 0 }
  0xed   : > { %1678 = vmatpush1.bf16.msra.mxu1 %v1634_v18  ;;  %1695 = vmatprep.mubr.bf16.mxu1 %v3105_v6 }
  0xee   : > { %3027 = vmatprep.subr.msk.bf16.mxu1 %vm284_vm1, %v1626_v22  ;;  %v1885_v24 = vpop.permute.xlu0 %1884  ;;  %v1887_v27 = vpop.permute.xlu1 %1886 }
  0xef   : > { %v1902_v37 = vsel %vm1900_vm7, %v1883_v23, %v1885_v24  ;;  %v1903_v46 = vsel %vm1900_vm7, %v1885_v24, %v1887_v27 }
  0xf0   : > { %3021 = vmatmul.mubr.msk.bf16.vlgmr.msra.gmra.mxu0 %vm280_vm2, %v3011_v0  ;;  %v1920_v49 = vsel %vm284_vm1, %v1903_v46, 0 }
  0xf1   : > { %1719 = vmatpush1.bf16.msra.mxu0 %v1640_v20  ;;  %1736 = vmatprep.mubr.bf16.mxu0 %v3105_v6 }
  0xf2   : > { %3029 = vmatprep.subr.msk.bf16.mxu0 %vm284_vm1, %v1628_v26  ;;  %v1889_v30 = vpop.permute.xlu0 %1888  ;;  %v1891_v32 = vpop.permute.xlu1 %1890 }
  0xf3   : > { %v1904_v42 = vsel %vm1900_vm7, %v1887_v27, %v1889_v30  ;;  %v1905_v50 = vsel %vm1900_vm7, %v1889_v30, %v1891_v32 }
  0xf4   : > { %3024 = vmatmul.mubr.msk.bf16.vlgmr.msra.gmra.mxu1 %vm280_vm2, %v3022_v28  ;;  %v1926_v55 = vsel %vm284_vm1, %v1905_v50, 0 }
  0xf5   : > { %1760 = vmatpush1.bf16.msra.mxu1 %v1646_v29  ;;  %1777 = vmatprep.mubr.bf16.mxu1 %v3105_v6 }
  0xf6   : > { %3031 = vmatprep.subr.msk.bf16.mxu1 %vm284_vm1, %v1619_v17  ;;  %v1893_v34 = vpop.permute.xlu0 %1892  ;;  %v1895_v38 = vpop.permute.xlu1 %1894 }
  0xf7   : > { %v1906_v47 = vsel %vm1900_vm7, %v1891_v32, %v1893_v34  ;;  %v1907_v56 = vsel %vm1900_vm7, %v1893_v34, %v1895_v38 }
  0xf8   : > { %3026 = vmatmul.mubr.msk.bf16.vlgmr.msra.gmra.mxu0 %vm280_vm2, %v3022_v28  ;;  %v1932_v58 = vsel %vm284_vm1, %v1907_v56, 0 }
  0xf9   : > { %1801 = vmatpush1.bf16.msra.mxu0 %v1652_v33  ;;  %1818 = vmatprep.mubr.bf16.mxu0 %v3105_v6 }
  0xfa   : > { %3034 = vmatprep.subr.msk.bf16.mxu0 %vm284_vm1, %v1902_v37  ;;  %v1897_v40 = vpop.permute.xlu0 %1896  ;;  %v1899_v43 = vpop.permute.xlu1 %1898 }
  0xfb   : > { %v1908_v51 = vsel %vm1900_vm7, %v1895_v38, %v1897_v40  ;;  %v1909_v60 = vsel %vm1900_vm7, %v1897_v40, %v1899_v43  ;;  %v3055_v38 = vld [vmem:[%s3742_s1 + $0x10] sm:$0x3] }
  0xfc   : > { %3028 = vmatmul.mubr.msk.bf16.vlgmr.msra.gmra.mxu1 %vm280_vm2, %v3022_v28  ;;  %v1938_v63 = vsel %vm284_vm1, %v1909_v60, 0 }
  0xfd   : > { %1842 = vmatpush1.bf16.msra.mxu1 %v1658_v39  ;;  %1859 = vmatprep.mubr.bf16.mxu1 %v3105_v6 }
  0xfe   : > { %3036 = vmatprep.subr.msk.bf16.mxu1 %vm284_vm1, %v1904_v42  ;;  %v2161_v45 = vpop.permute.xlu0 %2160 }
  0xff   : > { %v2163_v48 = vpop.permute.xlu1 %2162 }
 0x100   : > { %3030 = vmatmul.mubr.msk.bf16.vlgmr.msra.gmra.mxu0 %vm280_vm2, %v3022_v28  ;;  %v2181_v0 = vsel %vm2180_vm8, %v2161_v45, %v2163_v48 }
 0x101   : > { %1958 = vmatpush1.bf16.msra.mxu0 %v1914_v44  ;;  %1975 = vmatprep.mubr.bf16.mxu0 %v3105_v6  ;;  %v2194_v7 = vsel %vm284_vm1, %v2181_v0, 0 }
 0x102   : > { %3038 = vmatprep.subr.msk.bf16.mxu0 %vm284_vm1, %v1906_v47 }
 0x104   : > { %3032 = vmatmul.mubr.msk.bf16.vlgmr.msra.gmra.mxu1 %vm280_vm2, %v3022_v28  ;;  %v2165_v52 = vpop.permute.xlu0 %2164  ;;  %v2167_v53 = vpop.permute.xlu1 %2166 }
 0x105   : > { %1999 = vmatpush1.bf16.msra.mxu1 %v1920_v49  ;;  %2016 = vmatprep.mubr.bf16.mxu1 %v3105_v6  ;;  %v2182_v61 = vsel %vm2180_vm8, %v2163_v48, %v2165_v52  ;;  %v2183_v8 = vsel %vm2180_vm8, %v2165_v52, %v2167_v53 }
 0x106   : > { %3040 = vmatprep.subr.msk.bf16.mxu1 %vm284_vm1, %v1908_v51  ;;  %v2200_v12 = vsel %vm284_vm1, %v2183_v8, 0 }
 0x108   : > { %3035 = vmatmul.mubr.msk.bf16.vlgmr.msra.gmra.mxu0 %vm280_vm2, %v3033_v54  ;;  %v2169_v57 = vpop.permute.xlu0 %2168  ;;  %v2171_v59 = vpop.permute.xlu1 %2170 }
 0x109   : > { %2040 = vmatpush1.bf16.msra.mxu0 %v1926_v55  ;;  %2057 = vmatprep.mubr.bf16.mxu0 %v3105_v6  ;;  %v2184_v1 = vsel %vm2180_vm8, %v2167_v53, %v2169_v57  ;;  %v2185_v13 = vsel %vm2180_vm8, %v2169_v57, %v2171_v59 }
 0x10a   : > { %3042 = vmatprep.subr.msk.bf16.mxu0 %vm284_vm1, %v1899_v43  ;;  %v2206_v18 = vsel %vm284_vm1, %v2185_v13, 0 }
 0x10c   : > { %3037 = vmatmul.mubr.msk.bf16.vlgmr.msra.gmra.mxu1 %vm280_vm2, %v3033_v54 }
 0x10d   : > { %2081 = vmatpush1.bf16.msra.mxu1 %v1932_v58  ;;  %2098 = vmatprep.mubr.bf16.mxu1 %v3105_v6  ;;  %v2173_v62 = vpop.permute.xlu0 %2172 }
 0x10e   : > { %3045 = vmatprep.subr.msk.bf16.mxu1 %vm284_vm1, %v2182_v61  ;;  %v2175_v2 = vpop.permute.xlu1 %2174  ;;  %v2186_v9 = vsel %vm2180_vm8, %v2171_v59, %v2173_v62 }
 0x10f   : > { %v2187_v19 = vsel %vm2180_vm8, %v2173_v62, %v2175_v2 }
 0x110   : > { %3039 = vmatmul.mubr.msk.bf16.vlgmr.msra.gmra.mxu0 %vm280_vm2, %v3033_v54  ;;  %v2212_v23 = vsel %vm284_vm1, %v2187_v19, 0 }
 0x111   : > { %2122 = vmatpush1.bf16.msra.mxu0 %v1938_v63  ;;  %2139 = vmatprep.mubr.bf16.mxu0 %v3105_v6  ;;  %v2177_v4 = vpop.permute.xlu0 %2176 }
 0x112   : > { %3047 = vmatprep.subr.msk.bf16.mxu0 %vm284_vm1, %v2184_v1  ;;  %v2179_v10 = vpop.permute.xlu1 %2178  ;;  %v2188_v14 = vsel %vm2180_vm8, %v2175_v2, %v2177_v4 }
 0x113   : > { %v2189_v20 = vsel %vm2180_vm8, %v2177_v4, %v2179_v10 }
 0x114   : > { %3041 = vmatmul.mubr.msk.bf16.vlgmr.msra.gmra.mxu1 %vm280_vm2, %v3033_v54  ;;  %v2218_v25 = vsel %vm284_vm1, %v2189_v20, 0 }
 0x115   : > { %2238 = vmatpush1.bf16.msra.mxu1 %v2194_v7  ;;  %2255 = vmatprep.mubr.bf16.mxu1 %v3105_v6  ;;  %v2441_v11 = vpop.permute.xlu0 %2440 }
 0x116   : > { %3049 = vmatprep.subr.msk.bf16.mxu1 %vm284_vm1, %v2186_v9  ;;  %v2443_v15 = vpop.permute.xlu1 %2442 }
 0x117   : > { %v2461_v28 = vsel %vm2460_vm9, %v2441_v11, %v2443_v15 }
 0x118   : > { %3043 = vmatmul.mubr.msk.bf16.vlgmr.msra.gmra.mxu0 %vm280_vm2, %v3033_v54  ;;  %v2474_v30 = vsel %vm284_vm1, %v2461_v28, 0 }
 0x119   : > { %2279 = vmatpush1.bf16.msra.mxu0 %v2200_v12  ;;  %2296 = vmatprep.mubr.bf16.mxu0 %v3105_v6  ;;  %v2445_v17 = vpop.permute.xlu0 %2444 }
 0x11a   : > { %3051 = vmatprep.subr.msk.bf16.mxu0 %vm284_vm1, %v2188_v14  ;;  %v2447_v21 = vpop.permute.xlu1 %2446  ;;  %v2462_v24 = vsel %vm2460_vm9, %v2443_v15, %v2445_v17 }
 0x11b   : > { %v2463_v31 = vsel %vm2460_vm9, %v2445_v17, %v2447_v21 }
 0x11c   : > { %3046 = vmatmul.mubr.msk.bf16.vlgmr.msra.gmra.mxu1 %vm280_vm2, %v3044_v16  ;;  %v2480_v35 = vsel %vm284_vm1, %v2463_v31, 0 }
 0x11d   : > { %2320 = vmatpush1.bf16.msra.mxu1 %v2206_v18  ;;  %2337 = vmatprep.mubr.bf16.mxu1 %v3105_v6  ;;  %v2449_v22 = vpop.permute.xlu0 %2448 }
 0x11e   : > { %3053 = vmatprep.subr.msk.bf16.mxu1 %vm284_vm1, %v2179_v10  ;;  %v2451_v27 = vpop.permute.xlu1 %2450  ;;  %v2464_v29 = vsel %vm2460_vm9, %v2447_v21, %v2449_v22 }
 0x11f   : > { %v2465_v36 = vsel %vm2460_vm9, %v2449_v22, %v2451_v27 }
 0x120   : > { %3048 = vmatmul.mubr.msk.bf16.vlgmr.msra.gmra.mxu0 %vm280_vm2, %v3044_v16  ;;  %v2486_v39 = vsel %vm284_vm1, %v2465_v36, 0 }
 0x121   : > { %2361 = vmatpush1.bf16.msra.mxu0 %v2212_v23  ;;  %2378 = vmatprep.mubr.bf16.mxu0 %v3105_v6  ;;  %v2453_v26 = vpop.permute.xlu0 %2452 }
 0x122   : > { %3056 = vmatprep.subr.msk.bf16.mxu0 %vm284_vm1, %v2462_v24  ;;  %v2466_v32 = vsel %vm2460_vm9, %v2451_v27, %v2453_v26  ;;  %v2455_v34 = vpop.permute.xlu1 %2454 }
 0x123   : > { %v2467_v40 = vsel %vm2460_vm9, %v2453_v26, %v2455_v34 }
 0x124   : > { %3050 = vmatmul.mubr.msk.bf16.vlgmr.msra.gmra.mxu1 %vm280_vm2, %v3044_v16  ;;  %v2492_v42 = vsel %vm284_vm1, %v2467_v40, 0 }
 0x125   : > { %2402 = vmatpush1.bf16.msra.mxu1 %v2218_v25  ;;  %2419 = vmatprep.mubr.bf16.mxu1 %v3105_v6  ;;  %v2457_v33 = vpop.permute.xlu0 %2456 }
 0x126   : > { %3058 = vmatprep.subr.msk.bf16.mxu1 %vm284_vm1, %v2464_v29  ;;  %v2468_v37 = vsel %vm2460_vm9, %v2455_v34, %v2457_v33  ;;  %v2459_v41 = vpop.permute.xlu1 %2458 }
 0x127   : > { %v2469_v43 = vsel %vm2460_vm9, %v2457_v33, %v2459_v41 }
 0x128   : > { %3052 = vmatmul.mubr.msk.bf16.vlgmr.msra.gmra.mxu0 %vm280_vm2, %v3044_v16  ;;  %v2498_v44 = vsel %vm284_vm1, %v2469_v43, 0 }
 0x129   : > { %2518 = vmatpush1.bf16.msra.mxu0 %v2474_v30  ;;  %2535 = vmatprep.mubr.bf16.mxu0 %v3105_v6 }
 0x12a   : > { %3060 = vmatprep.subr.msk.bf16.mxu0 %vm284_vm1, %v2466_v32 }
 0x12c   : > { %3054 = vmatmul.mubr.msk.bf16.vlgmr.msra.gmra.mxu1 %vm280_vm2, %v3044_v16 }
 0x12d   : > { %2559 = vmatpush1.bf16.msra.mxu1 %v2480_v35  ;;  %2576 = vmatprep.mubr.bf16.mxu1 %v3105_v6 }
 0x12e   : > { %3062 = vmatprep.subr.msk.bf16.mxu1 %vm284_vm1, %v2468_v37 }
 0x130   : > { %3057 = vmatmul.mubr.msk.bf16.vlgmr.msra.gmra.mxu0 %vm280_vm2, %v3055_v38 }
 0x131   : > { %2600 = vmatpush1.bf16.msra.mxu0 %v2486_v39  ;;  %2617 = vmatprep.mubr.bf16.mxu0 %v3105_v6 }
 0x132   : > { %3064 = vmatprep.subr.msk.bf16.mxu0 %vm284_vm1, %v2459_v41 }
 0x134   : > { %3059 = vmatmul.mubr.msk.bf16.vlgmr.msra.gmra.mxu1 %vm280_vm2, %v3055_v38 }
 0x135   : > { %2641 = vmatpush1.bf16.msra.mxu1 %v2492_v42  ;;  %2658 = vmatprep.mubr.bf16.mxu1 %v3105_v6 }
 0x138   : > { %3061 = vmatmul.mubr.msk.bf16.vlgmr.msra.gmra.mxu0 %vm280_vm2, %v3055_v38 }
 0x139   : > { %2682 = vmatpush1.bf16.msra.mxu0 %v2498_v44  ;;  %2699 = vmatprep.mubr.bf16.mxu0 %v3105_v6 }
 0x13c   : > { %3063 = vmatmul.mubr.msk.bf16.vlgmr.msra.gmra.mxu1 %vm280_vm2, %v3055_v38 }
 0x140   : > { %3065 = vmatmul.mubr.msk.bf16.vlgmr.msra.gmra.mxu0 %vm280_vm2, %v3055_v38  ;;  %vm2898_vm2 = vcmask 1047558  }
 0x141   : > { %vm2899_vm4 = vmor %vm2898_vm2, %vm2897_vm0 }
 0x150   : > { %v349_v45 = vpop.f32.mrf.mxu0 }
 0x152   : > { %v351_v46 = vpop.f32.mrf.mxu0 }
 0x154   : > { %v353_v47 = vpop.f32.mrf.mxu0  ;;  %v390_v48 = vpop.f32.mrf.mxu1 }
 0x156   : > { %v354_v49 = vpop.f32.mrf.mxu0  ;;  %v392_v50 = vpop.f32.mrf.mxu1 }
 0x158   : > { %v394_v51 = vpop.f32.mrf.mxu1  ;;  %v431_v52 = vpop.f32.mrf.mxu0 }
 0x15a   : > { %v395_v53 = vpop.f32.mrf.mxu1  ;;  %v433_v54 = vpop.f32.mrf.mxu0 }
 0x15c   : > { %v435_v55 = vpop.f32.mrf.mxu0  ;;  %v472_v56 = vpop.f32.mrf.mxu1 }
 0x15e   : > { %v436_v57 = vpop.f32.mrf.mxu0  ;;  %v474_v58 = vpop.f32.mrf.mxu1 }
 0x160   : > { %v476_v59 = vpop.f32.mrf.mxu1  ;;  %v513_v60 = vpop.f32.mrf.mxu0 }
 0x162   : > { %v477_v61 = vpop.f32.mrf.mxu1  ;;  %v515_v62 = vpop.f32.mrf.mxu0 }
 0x164   : > { %v517_v63 = vpop.f32.mrf.mxu0  ;;  %v587_v0 = vpop.f32.mrf.mxu1 }
 0x165   : > { %v588_v1 = vadd.f32 %v587_v0, %v349_v45 }
 0x166   : > { %v518_v2 = vpop.f32.mrf.mxu0  ;;  %v589_v4 = vpop.f32.mrf.mxu1 }
 0x167   : > { %v590_v7 = vadd.f32 %v589_v4, %v351_v46 }
 0x168   : > { %v591_v8 = vpop.f32.mrf.mxu1  ;;  %v628_v9 = vpop.f32.mrf.mxu0 }
 0x169   : > { %v629_v10 = vadd.f32 %v628_v9, %v390_v48 }
 0x16a   : > { %v592_v11 = vpop.f32.mrf.mxu1  ;;  %v630_v12 = vpop.f32.mrf.mxu0 }
 0x16b   : > { %v631_v13 = vadd.f32 %v630_v12, %v392_v50 }
 0x16c   : > { %v632_v14 = vpop.f32.mrf.mxu0  ;;  %v669_v15 = vpop.f32.mrf.mxu1 }
 0x16d   : > { %v670_v16 = vadd.f32 %v669_v15, %v431_v52 }
 0x16e   : > { %v633_v17 = vpop.f32.mrf.mxu0  ;;  %v671_v18 = vpop.f32.mrf.mxu1 }
 0x16f   : > { %v672_v19 = vadd.f32 %v671_v18, %v433_v54 }
 0x170   : > { %v673_v21 = vpop.f32.mrf.mxu1  ;;  %v710_v22 = vpop.f32.mrf.mxu0 }
 0x171   : > { %v711_v23 = vadd.f32 %v710_v22, %v472_v56 }
 0x172   : > { %v674_v20 = vpop.f32.mrf.mxu1  ;;  %v712_v24 = vpop.f32.mrf.mxu0 }
 0x173   : > { %v713_v25 = vadd.f32 %v712_v24, %v474_v58 }
 0x174   : > { %v714_v26 = vpop.f32.mrf.mxu0  ;;  %v751_v27 = vpop.f32.mrf.mxu1 }
 0x175   : > { %v752_v28 = vadd.f32 %v751_v27, %v513_v60 }
 0x176   : > { %v715_v29 = vpop.f32.mrf.mxu0  ;;  %v753_v30 = vpop.f32.mrf.mxu1 }
 0x177   : > { %v754_v31 = vadd.f32 %v753_v30, %v515_v62 }
 0x178   : > { %v755_v32 = vpop.f32.mrf.mxu1  ;;  %v857_v33 = vpop.f32.mrf.mxu0 }
 0x179   : > { %v1028_v34 = vadd.f32 %v857_v33, %v588_v1 }
 0x17a   : > { %v756_v35 = vpop.f32.mrf.mxu1  ;;  %v859_v36 = vpop.f32.mrf.mxu0 }
 0x17b   : > { %v1029_v37 = vadd.f32 %v859_v36, %v590_v7 }
 0x17c   : > { %v861_v38 = vpop.f32.mrf.mxu0  ;;  %v898_v39 = vpop.f32.mrf.mxu1 }
 0x17d   : > { %v1030_v40 = vadd.f32 %v898_v39, %v629_v10 }
 0x17e   : > { %v862_v41 = vpop.f32.mrf.mxu0  ;;  %v900_v42 = vpop.f32.mrf.mxu1 }
 0x17f   : > { %v1031_v43 = vadd.f32 %v900_v42, %v631_v13 }
 0x180   : > { %v902_v44 = vpop.f32.mrf.mxu1  ;;  %v939_v45 = vpop.f32.mrf.mxu0 }
 0x181   : > { %v1032_v46 = vadd.f32 %v939_v45, %v670_v16 }
 0x182   : > { %v903_v47 = vpop.f32.mrf.mxu1  ;;  %v941_v48 = vpop.f32.mrf.mxu0 }
 0x183   : > { %v1033_v49 = vadd.f32 %v941_v48, %v672_v19 }
 0x184   : > { %v943_v50 = vpop.f32.mrf.mxu0  ;;  %v980_v51 = vpop.f32.mrf.mxu1 }
 0x185   : > { %v1034_v52 = vadd.f32 %v980_v51, %v711_v23 }
 0x186   : > { %v944_v53 = vpop.f32.mrf.mxu0  ;;  %v982_v54 = vpop.f32.mrf.mxu1 }
 0x187   : > { %v1035_v55 = vadd.f32 %v982_v54, %v713_v25 }
 0x188   : > { %v984_v56 = vpop.f32.mrf.mxu1  ;;  %v1021_v57 = vpop.f32.mrf.mxu0 }
 0x189   : > { %v1036_v58 = vadd.f32 %v1021_v57, %v752_v28 }
 0x18a   : > { %v985_v59 = vpop.f32.mrf.mxu1  ;;  %v1023_v60 = vpop.f32.mrf.mxu0 }
 0x18b   : > { %v1037_v61 = vadd.f32 %v1023_v60, %v754_v31 }
 0x18c   : > { %v1025_v62 = vpop.f32.mrf.mxu0  ;;  %v1137_v63 = vpop.f32.mrf.mxu1 }
 0x18d   : > { %v1308_v0 = vadd.f32 %v1137_v63, %v1028_v34 }
 0x18e   : > { %v1026_v1 = vpop.f32.mrf.mxu0  ;;  %v1139_v2 = vpop.f32.mrf.mxu1 }
 0x18f   : > { %v1309_v4 = vadd.f32 %v1139_v2, %v1029_v37 }
 0x190   : > { %v1141_v7 = vpop.f32.mrf.mxu1  ;;  %v1178_v8 = vpop.f32.mrf.mxu0 }
 0x191   : > { %v1310_v9 = vadd.f32 %v1178_v8, %v1030_v40 }
 0x192   : > { %v1142_v10 = vpop.f32.mrf.mxu1  ;;  %v1180_v11 = vpop.f32.mrf.mxu0 }
 0x193   : > { %v1311_v12 = vadd.f32 %v1180_v11, %v1031_v43 }
 0x194   : > { %v1182_v13 = vpop.f32.mrf.mxu0  ;;  %v1219_v14 = vpop.f32.mrf.mxu1 }
 0x195   : > { %v1312_v15 = vadd.f32 %v1219_v14, %v1032_v46 }
 0x196   : > { %v1183_v16 = vpop.f32.mrf.mxu0  ;;  %v1221_v17 = vpop.f32.mrf.mxu1 }
 0x197   : > { %v1313_v18 = vadd.f32 %v1221_v17, %v1033_v49 }
 0x198   : > { %v1223_v19 = vpop.f32.mrf.mxu1  ;;  %v1260_v21 = vpop.f32.mrf.mxu0 }
 0x199   : > { %v1314_v22 = vadd.f32 %v1260_v21, %v1034_v52 }
 0x19a   : > { %v1224_v23 = vpop.f32.mrf.mxu1  ;;  %v1262_v20 = vpop.f32.mrf.mxu0 }
 0x19b   : > { %v1315_v24 = vadd.f32 %v1262_v20, %v1035_v55 }
 0x19c   : > { %v1264_v25 = vpop.f32.mrf.mxu0  ;;  %v1301_v26 = vpop.f32.mrf.mxu1 }
 0x19d   : > { %v1316_v27 = vadd.f32 %v1301_v26, %v1036_v58 }
 0x19e   : > { %v1265_v28 = vpop.f32.mrf.mxu0  ;;  %v1303_v29 = vpop.f32.mrf.mxu1 }
 0x19f   : > { %v1317_v30 = vadd.f32 %v1303_v29, %v1037_v61 }
 0x1a0   : > { %v1305_v31 = vpop.f32.mrf.mxu1  ;;  %v1417_v32 = vpop.f32.mrf.mxu0 }
 0x1a1   : > { %v3597_v33 = vadd.f32 %v1417_v32, %v1308_v0 }
 0x1a2   : > { %v1306_v34 = vpop.f32.mrf.mxu1  ;;  %v1419_v35 = vpop.f32.mrf.mxu0 }
 0x1a3   : > { %v3599_v36 = vadd.f32 %v1419_v35, %v1309_v4 }
 0x1a4   : > { %v1421_v37 = vpop.f32.mrf.mxu0  ;;  %v1458_v38 = vpop.f32.mrf.mxu1 }
 0x1a5   : > { %v3601_v39 = vadd.f32 %v1458_v38, %v1310_v9 }
 0x1a6   : > { %v1422_v40 = vpop.f32.mrf.mxu0  ;;  %v1460_v41 = vpop.f32.mrf.mxu1 }
 0x1a7   : > { %v3603_v42 = vadd.f32 %v1460_v41, %v1311_v12 }
 0x1a8   : > { %v1462_v43 = vpop.f32.mrf.mxu1  ;;  %v1499_v44 = vpop.f32.mrf.mxu0 }
 0x1a9   : > { %v3605_v45 = vadd.f32 %v1499_v44, %v1312_v15 }
 0x1aa   : > { %v1463_v46 = vpop.f32.mrf.mxu1  ;;  %v1501_v47 = vpop.f32.mrf.mxu0 }
 0x1ab   : > { %v3607_v48 = vadd.f32 %v1501_v47, %v1313_v18 }
 0x1ac   : > { %v1503_v49 = vpop.f32.mrf.mxu0  ;;  %v1540_v50 = vpop.f32.mrf.mxu1 }
 0x1ad   : > { %v3609_v51 = vadd.f32 %v1540_v50, %v1314_v22 }
 0x1ae   : > { %v1504_v52 = vpop.f32.mrf.mxu0  ;;  %v1542_v53 = vpop.f32.mrf.mxu1 }
 0x1af   : > { %v3611_v54 = vadd.f32 %v1542_v53, %v1315_v24 }
 0x1b0   : > { %v1544_v55 = vpop.f32.mrf.mxu1  ;;  %v1581_v56 = vpop.f32.mrf.mxu0 }
 0x1b1   : > { %v3613_v57 = vadd.f32 %v1581_v56, %v1316_v27 }
 0x1b2   : > { %v1545_v58 = vpop.f32.mrf.mxu1  ;;  %v1583_v59 = vpop.f32.mrf.mxu0 }
 0x1b3   : > { %v3615_v60 = vadd.f32 %v1583_v59, %v1317_v30 }
 0x1b4   : > { %v1585_v61 = vpop.f32.mrf.mxu0  ;;  %v1697_v62 = vpop.f32.mrf.mxu1 }
 0x1b6   : > { %v1586_v63 = vpop.f32.mrf.mxu0  ;;  %v1699_v0 = vpop.f32.mrf.mxu1 }
 0x1b8   : > { %v1701_v1 = vpop.f32.mrf.mxu1  ;;  %v1738_v2 = vpop.f32.mrf.mxu0 }
 0x1ba   : > { %v1702_v4 = vpop.f32.mrf.mxu1  ;;  %v3617_v7 = vpop.f32.mrf.mxu0 }
 0x1bc   : > { %v1742_v8 = vpop.f32.mrf.mxu0  ;;  %v3619_v9 = vpop.f32.mrf.mxu1 }
 0x1be   : > { %v1743_v10 = vpop.f32.mrf.mxu0  ;;  %v3621_v11 = vpop.f32.mrf.mxu1 }
 0x1bf   : > { %v1868_v10 = vadd.f32 %v1697_v62, %v3597_v33  ;;  %v3660_v33 = vld [vmem:[%s3744_s3] sm:$0xff] }
 0x1c0   : > { %v1783_v12 = vpop.f32.mrf.mxu1  ;;  %v3623_v13 = vpop.f32.mrf.mxu0 }
 0x1c2   : > { %v1784_v14 = vpop.f32.mrf.mxu1  ;;  %v3625_v15 = vpop.f32.mrf.mxu0 }
 0x1c4   : > { %v1824_v16 = vpop.f32.mrf.mxu0  ;;  %v3627_v17 = vpop.f32.mrf.mxu1 }
 0x1c5   : > { %v1869_v16 = vadd.f32 %v1699_v0, %v3599_v36  ;;  %v2754_v36 = vsub.s32 1, %v3150_v3  ;;  %v2758_v0 = vsub.s32 2, %v3150_v3 }
 0x1c6   : > { %v1825_v18 = vpop.f32.mrf.mxu0  ;;  %v3629_v19 = vpop.f32.mrf.mxu1 }
 0x1c8   : > { %v1865_v21 = vpop.f32.mrf.mxu1  ;;  %v1977_v22 = vpop.f32.mrf.mxu0 }
 0x1c9   : > { %v2148_v18 = vadd.f32 %v1977_v22, %v1868_v10  ;;  %v2762_v22 = vsub.s32 3, %v3150_v3 }
 0x1ca   : > { %v1866_v23 = vpop.f32.mrf.mxu1  ;;  %v1979_v20 = vpop.f32.mrf.mxu0 }
 0x1cc   : > { %v1981_v24 = vpop.f32.mrf.mxu0  ;;  %v2018_v25 = vpop.f32.mrf.mxu1 }
 0x1cd   : > { %v2750_v24 = vsub.s32 0, %v3150_v3 }
 0x1ce   : > { %v1982_v26 = vpop.f32.mrf.mxu0  ;;  %v2020_v27 = vpop.f32.mrf.mxu1 }
 0x1cf   : > { %v1870_v26 = vadd.f32 %v1738_v2, %v3601_v39  ;;  %v1871_v39 = vadd.f32 %v3617_v7, %v3603_v42  ;;  %v2755_v7 = vrot.slane %v3660_v33, %v2754_v36 }
 0x1d0   : > { %v2022_v28 = vpop.f32.mrf.mxu1  ;;  %v2059_v29 = vpop.f32.mrf.mxu0 }
 0x1d1   : > { %v2149_v28 = vadd.f32 %v1979_v20, %v1869_v16  ;;  %v2150_v2 = vadd.f32 %v2018_v25, %v1870_v26  ;;  %v2770_v26 = vsub.s32 5, %v3150_v3 }
 0x1d2   : > { %v2023_v30 = vpop.f32.mrf.mxu1  ;;  %v3631_v31 = vpop.f32.mrf.mxu0 }
 0x1d4   : > { %v2063_v32 = vpop.f32.mrf.mxu0  ;;  %v3633_v34 = vpop.f32.mrf.mxu1 }
 0x1d5   : > { %v3655_v32 = vpop.permute.xlu0 %2721 }
 0x1d6   : > { %v2064_v35 = vpop.f32.mrf.mxu0  ;;  %v3635_v37 = vpop.f32.mrf.mxu1 }
 0x1d8   : > { %v2104_v38 = vpop.f32.mrf.mxu1  ;;  %v3637_v40 = vpop.f32.mrf.mxu0 }
 0x1da   : > { %v2105_v41 = vpop.f32.mrf.mxu1  ;;  %v3639_v43 = vpop.f32.mrf.mxu0 }
 0x1db   : > { %v1872_v41 = vadd.f32 %v3619_v9, %v3605_v45  ;;  %v2759_v9 = vrot.slane %v3660_v33, %v2758_v0 }
 0x1dc   : > { %v2145_v44 = vpop.f32.mrf.mxu0  ;;  %v2257_v46 = vpop.f32.mrf.mxu1 }
 0x1dd   : > { %v2428_v30 = vadd.f32 %v2257_v46, %v2148_v18  ;;  %v2152_v42 = vadd.f32 %v2059_v29, %v1872_v41  ;;  %v1874_v29 = vadd.f32 %v3623_v13, %v3609_v51 }
 0x1de   : > { %v2146_v47 = vpop.f32.mrf.mxu0  ;;  %v2259_v49 = vpop.f32.mrf.mxu1 }
 0x1df   : > { %v2429_v20 = vadd.f32 %v2259_v49, %v2149_v28  ;;  %v2751_v47 = vrot.slane %v3660_v33, %v2750_v24  ;;  %v2763_v49 = vrot.slane %v3660_v33, %v2762_v22 }
 0x1e0   : > { %v2261_v50 = vpop.f32.mrf.mxu1  ;;  %v2298_v52 = vpop.f32.mrf.mxu0 }
 0x1e1   : > { %v2766_v50 = vsub.s32 4, %v3150_v3 }
 0x1e2   : > { %v2262_v53 = vpop.f32.mrf.mxu1  ;;  %v2300_v55 = vpop.f32.mrf.mxu0 }
 0x1e3   : > { %v2151_v53 = vadd.f32 %v2020_v27, %v1871_v39 }
 0x1e4   : > { %v2302_v56 = vpop.f32.mrf.mxu0  ;;  %v2339_v58 = vpop.f32.mrf.mxu1 }
 0x1e5   : > { %v2430_v56 = vadd.f32 %v2298_v52, %v2150_v2  ;;  %v1873_v52 = vadd.f32 %v3621_v11, %v3607_v48  ;;  %v2432_v28 = vadd.f32 %v2339_v58, %v2152_v42  ;;  %v2154_v48 = vadd.f32 %v3633_v34, %v1874_v29 }
 0x1e6   : > { %v2303_v59 = vpop.f32.mrf.mxu0  ;;  %v3641_v61 = vpop.f32.mrf.mxu1  ;;  %v1876_v58 = vadd.f32 %v3627_v17, %v3613_v57 }
 0x1e7   : > { %v2153_v0 = vadd.f32 %v3631_v31, %v1873_v52  ;;  %v2774_v31 = vsub.s32 6, %v3150_v3  ;;  %v2745_v52 = vld [vmem:[%s3744_s3 + $0x8] sm:$0x3] }
 0x1e8   : > { %v2343_v63 = vpop.f32.mrf.mxu1  ;;  %v3643_v1 = vpop.f32.mrf.mxu0 }
 0x1e9   : > { %v2433_v41 = vadd.f32 %v3641_v61, %v2153_v0  ;;  %v2434_v34 = vadd.f32 %v3643_v1, %v2154_v48  ;;  %v2778_v61 = vsub.s32 7, %v3150_v3  ;;  %v2783_v0 = vrot.slane %v2745_v52, %v2750_v24 }
 0x1ea   : > { %v2344_v4 = vpop.f32.mrf.mxu1  ;;  %v3645_v8 = vpop.f32.mrf.mxu0 }
 0x1eb   : > { %v2431_v4 = vadd.f32 %v2300_v55, %v2151_v53  ;;  %v2156_v53 = vadd.f32 %v3637_v40, %v1876_v58 }
 0x1ec   : > { %v2384_v12 = vpop.f32.mrf.mxu0  ;;  %v3648_v14 = vpop.f32.mrf.mxu1 }
 0x1ed   : > { %v2436_v40 = vadd.f32 %v3648_v14, %v2156_v53 }
 0x1ee   : > { %v2385_v21 = vpop.f32.mrf.mxu0  ;;  %v3651_v23 = vpop.f32.mrf.mxu1 }
 0x1ef   : > { %v2767_v21 = vrot.slane %v3660_v33, %v2766_v50  ;;  %v1877_v50 = vadd.f32 %v3629_v19, %v3615_v60 }
 0x1f0   : > { %v2425_v62 = vpop.f32.mrf.mxu1  ;;  %v2537_v35 = vpop.f32.mrf.mxu0 }
 0x1f1   : > { %v2708_v38 = vadd.f32 %v2537_v35, %v2428_v30  ;;  %v1875_v35 = vadd.f32 %v3625_v15, %v3611_v54  ;;  %v2157_v1 = vadd.f32 %v3639_v43, %v1877_v50  ;;  %v2779_v43 = vrot.slane %v3660_v33, %v2778_v61 }
 0x1f2   : > { %v2426_v44 = vpop.f32.mrf.mxu1  ;;  %v2539_v46 = vpop.f32.mrf.mxu0 }
 0x1f3   : > { %v2709_v59 = vadd.f32 %v2539_v46, %v2429_v20  ;;  %v2724_v63 = vadd.f32 %v3655_v32, %v2708_v38  ;;  %v2155_v38 = vadd.f32 %v3635_v37, %v1875_v35 }
 0x1f4   : > { %v2541_v25 = vpop.f32.mrf.mxu0  ;;  %v2578_v45 = vpop.f32.mrf.mxu1 }
 0x1f5   : > { %v2725_v10 = vadd.f32 %v3655_v32, %v2709_v59  ;;  %v2734_v12 = vmax.f32 %v2724_v63, 0.0  ;;  %v2710_v27 = vadd.f32 %v2578_v45, %v2430_v56  ;;  %v2435_v56 = vadd.f32 %v3645_v8, %v2155_v38 }
 0x1f6   : > { %v2542_v16 = vpop.f32.mrf.mxu0  ;;  %v2580_v18 = vpop.f32.mrf.mxu1  ;;  %v2771_v45 = vrot.slane %v3660_v33, %v2770_v26  ;;  %v2437_v8 = vadd.f32 %v3651_v23, %v2157_v1 }
 0x1f7   : > { %v2735_v30 = vmax.f32 %v2725_v10, 0.0  ;;  %v2726_v55 = vadd.f32 %v3655_v32, %v2710_v27  ;;  %v2711_v62 = vadd.f32 %v2580_v18, %v2431_v4  ;;  %v2798_v11 = vmul.f32 %v2751_v47, %v2734_v12 }
 0x1f8   : > { %v2582_v51 = vpop.f32.mrf.mxu1  ;;  %v2619_v13 = vpop.f32.mrf.mxu0 }
 0x1f9   : > { %v2799_v22 = vmul.f32 %v2755_v7, %v2735_v30  ;;  %v2736_v39 = vmax.f32 %v2726_v55, 0.0  ;;  %v2727_v2 = vadd.f32 %v3655_v32, %v2711_v62  ;;  %v2712_v20 = vadd.f32 %v2619_v13, %v2432_v28 }
 0x1fa   : > { %v2583_v54 = vpop.f32.mrf.mxu1  ;;  %v2621_v15 = vpop.f32.mrf.mxu0  ;;  %v2787_v51 = vrot.slane %v2745_v52, %v2754_v36 }
 0x1fb   : > { %v3066_v44 = vpack.c.bf16 %v2799_v22, %v2798_v11  ;;  %v2737_v46 = vmax.f32 %v2727_v2, 0.0  ;;  %v2728_v47 = vadd.f32 %v3655_v32, %v2712_v20  ;;  %v2713_v57 = vadd.f32 %v2621_v15, %v2433_v41 }
 0x1fc   : > { %v2623_v17 = vpop.f32.mrf.mxu0  ;;  %v2660_v37 = vpop.f32.mrf.mxu1  ;;  %v2800_v59 = vmul.f32 %v2759_v9, %v2736_v39 }
 0x1fd   : > { %v2801_v63 = vmul.f32 %v2763_v49, %v2737_v46  ;;  %v2714_v42 = vadd.f32 %v2660_v37, %v2434_v34  ;;  %v2738_v7 = vmax.f32 %v2728_v47, 0.0  ;;  %v2729_v25 = vadd.f32 %v3655_v32, %v2713_v57 }
 0x1fe   : > { %v2624_v60 = vpop.f32.mrf.mxu0  ;;  %v2662_v19 = vpop.f32.mrf.mxu1  ;;  %v2775_v49 = vrot.slane %v3660_v33, %v2774_v31  ;;  %v2840_v62 = vrot.slane %v3066_v44, %v3154_v5 }
 0x1ff   : > { %v3067_v4 = vpack.c.bf16 %v2801_v63, %v2800_v59  ;;  %v2730_v10 = vadd.f32 %v3655_v32, %v2714_v42  ;;  %v2715_v12 = vadd.f32 %v2662_v19, %v2435_v56  ;;  %v2739_v9 = vmax.f32 %v2729_v25, 0.0 }
 0x200   : > { %v2701_v27 = vpop.f32.mrf.mxu0  ;;  %v2664_v29 = vpop.f32.mrf.mxu1  ;;  %v2802_v28 = vmul.f32 %v2767_v21, %v2738_v7 }
 0x201   : > { %v2740_v16 = vmax.f32 %v2730_v10, 0.0  ;;  %v2731_v14 = vadd.f32 %v3655_v32, %v2715_v12  ;;  %v2716_v18 = vadd.f32 %v2701_v27, %v2436_v40  ;;  %v2847_v26 = vrot.slane %v3067_v4, %v3154_v5 }
 0x202   : > { %v2803_v30 = vmul.f32 %v2771_v45, %v2739_v9  ;;  %v2703_v23 = vpop.f32.mrf.mxu0  ;;  %v2665_v55 = vpop.f32.mrf.mxu1 }
 0x203   : > { %v2741_v33 = vmax.f32 %v2731_v14, 0.0  ;;  %v2732_v35 = vadd.f32 %v3655_v32, %v2716_v18  ;;  %v2717_v48 = vadd.f32 %v2703_v23, %v2437_v8  ;;  %v2848_v22 = vcombine.low %v2840_v62, %v2847_v26 }
 0x204   : > { %v3068_v11 = vpack.c.bf16 %v2803_v30, %v2802_v28  ;;  %v2705_v13 = vpop.f32.mrf.mxu0  ;;  %v2804_v21 = vmul.f32 %v2775_v49, %v2740_v16 }
 0x205   : > { %v2805_v39 = vmul.f32 %v2779_v43, %v2741_v33  ;;  %v2742_v2 = vmax.f32 %v2732_v35, 0.0  ;;  %v2733_v20 = vadd.f32 %v3655_v32, %v2717_v48  ;;  %2874 = vrot.lane.b32.xlu1 %v2848_v22, %s3114_s5 }
 0x206   : > { %v2706_v58 = vpop.f32.mrf.mxu0  ;;  %v2857_v3 = vrot.slane %v3068_v11, %v3154_v5 }
 0x207   : > { %v3069_v38 = vpack.c.bf16 %v2805_v39, %v2804_v21  ;;  %v2743_v24 = vmax.f32 %v2733_v20, 0.0  ;;  %v2806_v41 = vmul.f32 %v2783_v0, %v2742_v2 }
 0x209   : > { %v2807_v54 = vmul.f32 %v2787_v51, %v2743_v24  ;;  %v2864_v36 = vrot.slane %v3069_v38, %v3154_v5 }
 0x20b   : > { %v2865_v15 = vcombine.low %v2857_v3, %v2864_v36  ;;  %v3070_v31 = vpack.c.bf16 %v2807_v54, %v2806_v41 }
 0x20d   : > { %2876 = vrot.lane.b32.xlu1 %v2865_v15, %s3114_s5  ;;  %v2873_v34 = vrot.slane %v3070_v31, %v3154_v5 }
 0x20f   : > { %2878 = vrot.lane.b32.xlu0 %v2873_v34, %s3114_s5 }
 0x277   : > { %v2875_v6 = vpop.permute.xlu1 %2874 }
 0x278   : > { %v2880_v32 = vrot.slane %v2875_v6, 6 }
 0x27a   : > { %v2884_v44 = vsel %vm2883_vm3, %v2880_v32, %v2875_v6 }
 0x27b   : > { %2900 = vst.msk [vmem:[%s3593_s28] sm:$0xff] %vm2899_vm4, %v2884_v44 }
 0x27f   : > { %v2877_v46 = vpop.permute.xlu1 %2876 }
 0x280   : > { %v2881_v47 = vrot.slane %v2877_v46, 6 }
 0x281   : > { %v2879_v5 = vpop.permute.xlu0 %2878 }
 0x282   : > { %v2886_v50 = vsel %vm284_vm1, %v2880_v32, %v2881_v47  ;;  %v2882_v53 = vrot.slane %v2879_v5, 6 }
 0x283   : > { %v2887_v57 = vsel %vm2883_vm3, %v2886_v50, %v2877_v46 }
 0x284   : > { %2901 = vst [vmem:[%s3593_s28 + $0x8] sm:$0xff] %v2887_v57  ;;  %v2888_v17 = vsel %vm284_vm1, %v2881_v47, %v2882_v53 }
 0x285   : > { %v2889_v37 = vsel %vm2883_vm3, %v2888_v17, %v2879_v5 }
 0x286   : > { %2904 = vst.msk [vmem:[%s3593_s28 + $0x10] sm:$0xf] %vm2903_vm6, %v2889_v37 }
 0x287 PF: > { %s14_s15 = sadd.s32 1, %s3102_s15  }
 0x288   : > { %p11_p4 = scmp.ge.s32.totalorder %s14_s15, 6  }
 0x28a   :  { %13 = sbr.rel (!%p11_p4) target bundleno = 1 (0x1), region = 74 }

// kernel: vgg_contrastive_loss.17
= control target key start
LH: loop header
LB: loop body
LE: loop exit
PB: predicated region body
PF: predicated region fallthrough
CT: control target
= control target key end

     0   :  { %s3100_s15 = smov 0   ;;  %s3712_s0 = inlined_call_operand.vmem [shape: bf16[4,3,1226], index: 0, kind: input, shape index: {}]   ;;  %s3713_s1 = inlined_call_operand.vmem [shape: bf16[9,4,3], index: 1, kind: input, shape index: {}]   ;;  %s3714_s2 = inlined_call_operand.vmem [shape: f32[4,1], index: 2, kind: input, shape index: {}]   ;;  %s3715_s3 = inlined_call_operand.vmem [shape: f32[1,1156], index: 3, kind: input, shape index: {}]   ;;  %s3716_s4 = inlined_call_operand.vmem [shape: bf16[4,4,1226], index: 4, kind: output, shape index: {}]  }
   0x1 LB: > { %s2963_s16 = sadd.s32 4294967295, %s3061_s15   ;;  %p2967_p0 = scmp.ge.s32.totalorder %s3061_s15, 1  ;;  %s3061_s15 = sphi %s3100_s15, %s14_s15  }
   0x2   : > { %p162_p1 = scmp.lt.s32.totalorder %s3061_s15, 5 }
   0x4   : > { %p163_p2 = pnand %p2967_p0, %p162_p1 }
   0x5   : > { %p188_p3 = scmp.lt.s32.totalorder (!%p163_p2), %s2963_s16, 3  ;;  %s3064_s21 = smov (!%p163_p2), 127  }
   0x6   : > { %166 = sbr.rel (%p163_p2) target bundleno = 651 (0x28b), region = 36  ;;  %s3066_s22 = smov (!%p163_p2), 126  }
   0x7   : > { %s3067_s23 = smov (!%p163_p2), 94   ;;  %s3068_s24 = smov (!%p163_p2), 93  }
   0x8   : > { %s3069_s25 = smov (!%p163_p2), 92   ;;  %s3070_s26 = smov (!%p163_p2), 60  }
   0x9   : > { %s3072_s27 = smov (!%p163_p2), 59   ;;  %s3073_s30 = smov (!%p163_p2), 58  }
   0xa   : > { %s3074_s5 = smov (!%p163_p2), 35  }
   0xb   : > { %v212_v0 = vlaneseq  ;;  %v3063_v1 = vmov 1983009808   ;;  %s3718_s16 = smov (!%p188_p3, %s2963_s16), 3  ;;  %v3065_v14 = vmov 0   ;;  %vm284_vm0 = vcmask 1040384  }
   0xc   : > { %v210_v2 = vunpack.c.l.s4 %v3063_v1  ;;  %s3031_s17 = smul.u32 20, %s3718_s16  ;;  %350 = vmatprep.mubr.bf16.mxu0 %v3065_v14  ;;  %391 = vmatprep.mubr.bf16.mxu1 %v3065_v14  ;;  %vm270_vm1 = vcmask 1039360   ;;  %vm285_vm2 = vcmask 1041408   ;;  %v3071_v23 = vmov 65535   ;;  %v2970_v35 = vld [vmem:[%s3713_s1 + $0x2] sm:$0x3] }
   0xd   : > { %v3110_v3 = vshrl.u32 %v212_v0, 7  ;;  %3052 = vset.pattern.permute.xlu0 %v3065_v14  ;;  %v286_v24 = vsel %vm284_vm0, 4294967295, %v3071_v23  ;;  %vm280_vm3 = vcmask 23552   ;;  %vm783_vm4 = vcmask 1031168  }
   0xe   : > { %v211_v4 = vunpack.c.0.s8 %v210_v2  ;;  %s192_s20 = scalar_lea.vmem %s3712_s0, %s3031_s17  ;;  %v3220_v28 = vsel %vm285_vm2, %v286_v24, 0  ;;  %v202_v2 = vld [vmem:[%s3713_s1] sm:$0x3]  ;;  %vm1063_vm5 = vcmask 769024   ;;  %vm1343_vm6 = vcmask 760832   ;;  %s3564_s28 = scalar_lea.vmem %s3716_s4, %s3031_s17 }
   0xf   : > { %v199_v6 = vld [vmem:[%s192_s20] sm:$0xff]  ;;  %v200_v7 = vld [vmem:[%s192_s20 + $0x8] sm:$0xff]  ;;  %v3157_v19 = vld.sshfl [vmem:[%s192_s20 + $0x10] sm:$0x33 pattern:$0x76325410] }
  0x10   : > { %v3114_v5 = vsub.s32 %v211_v4, %v3110_v3  ;;  %v208_v9 = vcombine.high %v199_v6, %v199_v6  ;;  %v225_v13 = vcombine.high %v200_v7, %v200_v7  ;;  %v3163_v20 = vcombine.high %v3157_v19, %v3157_v19 }
  0x11   : > { %vm1623_vm7 = vcmask 752640   ;;  %vm1903_vm8 = vcmask 490496   ;;  %vm2183_vm9 = vcmask 482304   ;;  %vm2463_vm10 = vcmask 474112  }
  0x12   : > { %v3122_v8 = vrot.slane %v199_v6, %v3114_v5  ;;  %v3130_v11 = vrot.slane %v208_v9, %v3114_v5  ;;  %v3133_v12 = vrot.slane %v200_v7, %v3114_v5  ;;  %v3149_v17 = vrot.slane %v225_v13, %v3114_v5 }
  0x13   : > { %v554_v6 = vand.u32 %v3220_v28, %v3163_v20  ;;  %vm2811_vm11 = vcmask 279552   ;;  %vm2813_vm12 = vcmask 599352   ;;  %vm2896_vm13 = vcmask 1041688  }
  0x14   : > { %250 = vrot.lane.b32.xlu1 %v3122_v8, %s3064_s21  ;;  %v3127_v10 = vcombine.high %v3122_v8, %v3122_v8  ;;  %v3140_v15 = vcombine.high %v3130_v11, %v3130_v11  ;;  %v3146_v16 = vcombine.high %v3133_v12, %v3133_v12  ;;  %v3155_v18 = vcombine.high %v3149_v17, %v3149_v17 }
  0x15   : > { %v527_v58 = vand.u32 %v3220_v28, %v3122_v8  ;;  %v533_v62 = vand.u32 %v3220_v28, %v3130_v11  ;;  %v539_v4 = vand.u32 %v3220_v28, %v3133_v12  ;;  %2812 = vst.msk [vmem:[%s3564_s28] sm:$0x3] %vm2811_vm11, %v3065_v14  ;;  %vm2897_vm14 = vcmask 1043458  }
  0x16   : > { %252 = vrot.lane.b32.xlu0 %v3127_v10, %s3064_s21  ;;  %v530_v53 = vand.u32 %v3220_v28, %v3127_v10  ;;  %v536_v56 = vand.u32 %v3220_v28, %v3140_v15  ;;  %v542_v59 = vand.u32 %v3220_v28, %v3146_v16  ;;  %v548_v63 = vand.u32 %v3220_v28, %v3155_v18  ;;  %vm2898_vm15 = vmor %vm2897_vm14, %vm2896_vm13 }
  0x17   : > { %2814 = vst.msk [vmem:[%s3564_s28 + $0x12] sm:$0x3] %vm2813_vm12, %v3065_v14  ;;  %vm2899_vm0 = vcmask 1045508  }
  0x18   : > { %256 = vrot.lane.b32.xlu1 %v3140_v15, %s3064_s21 }
  0x1a   : > { %254 = vrot.lane.b32.xlu0 %v3130_v11, %s3064_s21 }
  0x1c   : > { %260 = vrot.lane.b32.xlu1 %v3146_v16, %s3064_s21 }
  0x1e   : > { %258 = vrot.lane.b32.xlu0 %v3133_v12, %s3064_s21 }
  0x20   : > { %264 = vrot.lane.b32.xlu1 %v3155_v18, %s3064_s21 }
  0x22   : > { %262 = vrot.lane.b32.xlu0 %v3149_v17, %s3064_s21 }
  0x24   : > { %268 = vrot.lane.b32.xlu1 %v3163_v20, %s3064_s21 }
  0x26   : > { %266 = vrot.lane.b32.xlu0 %v3157_v19, %s3064_s21 }
  0x28   : > { %767 = vrot.lane.b32.xlu1 %v3130_v11, %s3066_s22 }
  0x2a   : > { %765 = vrot.lane.b32.xlu0 %v3127_v10, %s3066_s22 }
  0x2c   : > { %769 = vrot.lane.b32.xlu1 %v3140_v15, %s3066_s22 }
  0x2e   : > { %763 = vrot.lane.b32.xlu0 %v3122_v8, %s3066_s22 }
  0x30   : > { %773 = vrot.lane.b32.xlu1 %v3146_v16, %s3066_s22 }
  0x32   : > { %771 = vrot.lane.b32.xlu0 %v3133_v12, %s3066_s22 }
  0x34   : > { %777 = vrot.lane.b32.xlu1 %v3155_v18, %s3066_s22 }
  0x36   : > { %775 = vrot.lane.b32.xlu0 %v3149_v17, %s3066_s22 }
  0x38   : > { %781 = vrot.lane.b32.xlu1 %v3163_v20, %s3066_s22 }
  0x3a   : > { %779 = vrot.lane.b32.xlu0 %v3157_v19, %s3066_s22 }
  0x3c   : > { %1047 = vrot.lane.b32.xlu1 %v3130_v11, %s3067_s23 }
  0x3e   : > { %1045 = vrot.lane.b32.xlu0 %v3127_v10, %s3067_s23 }
  0x40   : > { %1049 = vrot.lane.b32.xlu1 %v3140_v15, %s3067_s23 }
  0x42   : > { %1043 = vrot.lane.b32.xlu0 %v3122_v8, %s3067_s23 }
  0x44   : > { %1053 = vrot.lane.b32.xlu1 %v3146_v16, %s3067_s23 }
  0x46   : > { %1051 = vrot.lane.b32.xlu0 %v3133_v12, %s3067_s23 }
  0x48   : > { %1057 = vrot.lane.b32.xlu1 %v3155_v18, %s3067_s23 }
  0x4a   : > { %1055 = vrot.lane.b32.xlu0 %v3149_v17, %s3067_s23 }
  0x4c   : > { %1061 = vrot.lane.b32.xlu1 %v3163_v20, %s3067_s23 }
  0x4e   : > { %1059 = vrot.lane.b32.xlu0 %v3157_v19, %s3067_s23 }
  0x50   : > { %1327 = vrot.lane.b32.xlu1 %v3130_v11, %s3068_s24 }
  0x52   : > { %1325 = vrot.lane.b32.xlu0 %v3127_v10, %s3068_s24 }
  0x54   : > { %1329 = vrot.lane.b32.xlu1 %v3140_v15, %s3068_s24 }
  0x56   : > { %1323 = vrot.lane.b32.xlu0 %v3122_v8, %s3068_s24 }
  0x58   : > { %1333 = vrot.lane.b32.xlu1 %v3146_v16, %s3068_s24 }
  0x5a   : > { %1331 = vrot.lane.b32.xlu0 %v3133_v12, %s3068_s24 }
  0x5c   : > { %1337 = vrot.lane.b32.xlu1 %v3155_v18, %s3068_s24 }
  0x5e   : > { %1335 = vrot.lane.b32.xlu0 %v3149_v17, %s3068_s24 }
  0x60   : > { %1341 = vrot.lane.b32.xlu1 %v3163_v20, %s3068_s24 }
  0x62   : > { %1339 = vrot.lane.b32.xlu0 %v3157_v19, %s3068_s24 }
  0x64   : > { %1607 = vrot.lane.b32.xlu1 %v3130_v11, %s3069_s25 }
  0x66   : > { %1605 = vrot.lane.b32.xlu0 %v3127_v10, %s3069_s25 }
  0x68   : > { %1609 = vrot.lane.b32.xlu1 %v3140_v15, %s3069_s25 }
  0x6a   : > { %1603 = vrot.lane.b32.xlu0 %v3122_v8, %s3069_s25 }
  0x6c   : > { %1613 = vrot.lane.b32.xlu1 %v3146_v16, %s3069_s25 }
  0x6e   : > { %1611 = vrot.lane.b32.xlu0 %v3133_v12, %s3069_s25 }
  0x70   : > { %1617 = vrot.lane.b32.xlu1 %v3155_v18, %s3069_s25 }
  0x72   : > { %1615 = vrot.lane.b32.xlu0 %v3149_v17, %s3069_s25 }
  0x74   : > { %1621 = vrot.lane.b32.xlu1 %v3163_v20, %s3069_s25 }
  0x76   : > { %1619 = vrot.lane.b32.xlu0 %v3157_v19, %s3069_s25 }
  0x78   : > { %1887 = vrot.lane.b32.xlu1 %v3130_v11, %s3070_s26 }
  0x7a   : > { %1885 = vrot.lane.b32.xlu0 %v3127_v10, %s3070_s26 }
  0x7c   : > { %1889 = vrot.lane.b32.xlu1 %v3140_v15, %s3070_s26 }
  0x7e   : > { %1883 = vrot.lane.b32.xlu0 %v3122_v8, %s3070_s26 }
  0x80   : > { %1893 = vrot.lane.b32.xlu1 %v3146_v16, %s3070_s26 }
  0x82   : > { %1891 = vrot.lane.b32.xlu0 %v3133_v12, %s3070_s26 }
  0x84   : > { %1897 = vrot.lane.b32.xlu1 %v3155_v18, %s3070_s26 }
  0x86   : > { %v251_v21 = vpop.permute.xlu1 %250  ;;  %1895 = vrot.lane.b32.xlu0 %v3149_v17, %s3070_s26 }
  0x88   : > { %v253_v22 = vpop.permute.xlu0 %252  ;;  %1901 = vrot.lane.b32.xlu1 %v3163_v20, %s3070_s26 }
  0x89   : > { %v271_v26 = vsel %vm270_vm1, %v251_v21, %v253_v22 }
  0x8a   : > { %v257_v25 = vpop.permute.xlu1 %256  ;;  %1899 = vrot.lane.b32.xlu0 %v3157_v19, %s3070_s26  ;;  %v289_v32 = vand.u32 %v3220_v28, %v271_v26 }
  0x8c   : > { %v255_v27 = vpop.permute.xlu0 %254  ;;  %2167 = vrot.lane.b32.xlu1 %v3130_v11, %s3072_s27 }
  0x8d   : > { %v272_v29 = vsel %vm270_vm1, %v253_v22, %v255_v27  ;;  %v273_v33 = vsel %vm270_vm1, %v255_v27, %v257_v25 }
  0x8e   : > { %v292_v30 = vand.u32 %v3220_v28, %v272_v29  ;;  %v261_v31 = vpop.permute.xlu1 %260  ;;  %2165 = vrot.lane.b32.xlu0 %v3127_v10, %s3072_s27  ;;  %v295_v39 = vand.u32 %v3220_v28, %v273_v33 }
  0x90   : > { %332 = vmatprep.subr.bf16.mxu0 %v292_v30  ;;  %v259_v34 = vpop.permute.xlu0 %258  ;;  %2169 = vrot.lane.b32.xlu1 %v3140_v15, %s3072_s27 }
  0x91   : > { %333 = vmatpush1.bf16.msra.mxu0 %v289_v32  ;;  %v274_v36 = vsel %vm270_vm1, %v257_v25, %v259_v34  ;;  %v275_v40 = vsel %vm270_vm1, %v259_v34, %v261_v31 }
  0x92   : > { %v298_v37 = vand.u32 %v3220_v28, %v274_v36  ;;  %v265_v38 = vpop.permute.xlu1 %264  ;;  %2163 = vrot.lane.b32.xlu0 %v3122_v8, %s3072_s27  ;;  %v301_v45 = vand.u32 %v3220_v28, %v275_v40 }
  0x94   : > { %2972 = vmatmul.mubr.msk.bf16.vlgmr.msra.gmra.mxu0 %vm280_vm3, %v2970_v35  ;;  %v263_v41 = vpop.permute.xlu0 %262  ;;  %373 = vmatprep.subr.bf16.mxu1 %v298_v37 }
  0x95   : > { %v276_v42 = vsel %vm270_vm1, %v261_v31, %v263_v41  ;;  %374 = vmatpush1.bf16.msra.mxu1 %v295_v39  ;;  %432 = vmatprep.mubr.bf16.mxu0 %v3065_v14  ;;  %v277_v47 = vsel %vm270_vm1, %v263_v41, %v265_v38 }
  0x96   : > { %v304_v43 = vand.u32 %v3220_v28, %v276_v42  ;;  %v269_v44 = vpop.permute.xlu1 %268  ;;  %2171 = vrot.lane.b32.xlu0 %v3133_v12, %s3072_s27  ;;  %2173 = vrot.lane.b32.xlu1 %v3146_v16, %s3072_s27  ;;  %v307_v55 = vand.u32 %v3220_v28, %v277_v47 }
  0x97   : > { %v316_v46 = vand.u32 %v3220_v28, %v269_v44 }
  0x98   : > { %v267_v48 = vpop.permute.xlu0 %266  ;;  %2973 = vmatmul.mubr.msk.bf16.vlgmr.msra.gmra.mxu1 %vm280_vm3, %v2970_v35  ;;  %414 = vmatprep.subr.bf16.mxu0 %v304_v43 }
  0x99   : > { %v278_v49 = vsel %vm270_vm1, %v265_v38, %v267_v48  ;;  %415 = vmatpush1.bf16.msra.mxu0 %v301_v45  ;;  %v279_v50 = vsel %vm270_vm1, %v267_v48, %v269_v44  ;;  %473 = vmatprep.mubr.bf16.mxu1 %v3065_v14  ;;  %vm2900_vm1 = vmor %vm2899_vm0, %vm2898_vm15 }
  0x9a   : > { %v310_v51 = vand.u32 %v3220_v28, %v278_v49  ;;  %v313_v52 = vand.u32 %v3220_v28, %v279_v50  ;;  %496 = vmatprep.subr.bf16.mxu0 %v316_v46  ;;  %2175 = vrot.lane.b32.xlu0 %v3149_v17, %s3072_s27  ;;  %v3262_v54 = vpop.permute.xlu1 %767 }
  0x9b   : > { %2177 = vrot.lane.b32.xlu1 %v3155_v18, %s3072_s27 }
  0x9c   : > { %2974 = vmatmul.mubr.msk.bf16.vlgmr.msra.gmra.mxu0 %vm280_vm3, %v2970_v35  ;;  %455 = vmatprep.subr.bf16.mxu1 %v310_v51  ;;  %v766_v57 = vpop.permute.xlu0 %765 }
  0x9d   : > { %456 = vmatpush1.bf16.msra.mxu1 %v307_v55  ;;  %497 = vmatpush1.bf16.msra.mxu0 %v313_v52  ;;  %v785_v9 = vsel %vm783_vm4, %v766_v57, %v3262_v54 }
  0x9e   : > { %514 = vmatprep.mubr.bf16.mxu0 %v3065_v14  ;;  %570 = vmatprep.subr.bf16.mxu1 %v530_v53  ;;  %v770_v60 = vpop.permute.xlu1 %769  ;;  %v800_v13 = vand.u32 %v785_v9, %v3220_v28 }
  0x9f   : > { %611 = vmatprep.subr.bf16.mxu0 %v536_v56  ;;  %2179 = vrot.lane.b32.xlu0 %v3157_v19, %s3072_s27  ;;  %v786_v27 = vsel %vm783_vm4, %v3262_v54, %v770_v60 }
  0xa0   : > { %2975 = vmatmul.mubr.msk.bf16.vlgmr.msra.gmra.mxu1 %vm280_vm3, %v2970_v35  ;;  %v764_v61 = vpop.permute.xlu0 %763  ;;  %2181 = vrot.lane.b32.xlu1 %v3163_v20, %s3072_s27  ;;  %v803_v31 = vand.u32 %v786_v27, %v3220_v28 }
  0xa1   : > { %571 = vmatpush1.bf16.msra.mxu1 %v527_v58  ;;  %588 = vmatprep.mubr.bf16.mxu1 %v3065_v14  ;;  %v784_v23 = vsel %vm783_vm4, %v764_v61, %v766_v57 }
  0xa2   : > { %652 = vmatprep.subr.bf16.mxu1 %v542_v59  ;;  %v774_v0 = vpop.permute.xlu1 %773  ;;  %v797_v26 = vand.u32 %v784_v23, %v3220_v28 }
  0xa3   : > { %2445 = vrot.lane.b32.xlu0 %v3127_v10, %s3073_s30 }
  0xa4   : > { %2976 = vmatmul.mubr.msk.bf16.vlgmr.msra.gmra.mxu0 %vm280_vm3, %v2970_v35  ;;  %v772_v1 = vpop.permute.xlu0 %771  ;;  %2447 = vrot.lane.b32.xlu1 %v3130_v11, %s3073_s30  ;;  %v545_v11 = vand.u32 %v3220_v28, %v3149_v17 }
  0xa5   : > { %612 = vmatpush1.bf16.msra.mxu0 %v533_v62  ;;  %629 = vmatprep.mubr.bf16.mxu0 %v3065_v14  ;;  %v787_v22 = vsel %vm783_vm4, %v770_v60, %v772_v1  ;;  %v788_v32 = vsel %vm783_vm4, %v772_v1, %v774_v0  ;;  %v2988_v1 = vld [vmem:[%s3713_s1 + $0x6] sm:$0x3] }
  0xa6   : > { %693 = vmatprep.subr.bf16.mxu0 %v548_v63  ;;  %v778_v7 = vpop.permute.xlu1 %777  ;;  %v806_v24 = vand.u32 %v787_v22, %v3220_v28  ;;  %v809_v35 = vand.u32 %v788_v32, %v3220_v28 }
  0xa7   : > { %2443 = vrot.lane.b32.xlu0 %v3122_v8, %s3073_s30 }
  0xa8   : > { %2977 = vmatmul.mubr.msk.bf16.vlgmr.msra.gmra.mxu1 %vm280_vm3, %v202_v2  ;;  %v776_v10 = vpop.permute.xlu0 %775  ;;  %2449 = vrot.lane.b32.xlu1 %v3140_v15, %s3073_s30  ;;  %v551_v15 = vand.u32 %v3157_v19, %v3220_v28 }
  0xa9   : > { %653 = vmatpush1.bf16.msra.mxu1 %v539_v4  ;;  %670 = vmatprep.mubr.bf16.mxu1 %v3065_v14  ;;  %v790_v36 = vsel %vm783_vm4, %v776_v10, %v778_v7 }
  0xaa   : > { %734 = vmatprep.subr.bf16.mxu1 %v554_v6  ;;  %v782_v21 = vpop.permute.xlu1 %781  ;;  %v815_v41 = vand.u32 %v790_v36, %v3220_v28 }
  0xab   : > { %2451 = vrot.lane.b32.xlu0 %v3133_v12, %s3073_s30  ;;  %v789_v12 = vsel %vm783_vm4, %v774_v0, %v776_v10  ;;  %v824_v37 = vand.u32 %v782_v21, %v3220_v28 }
  0xac   : > { %2978 = vmatmul.mubr.msk.bf16.vlgmr.msra.gmra.mxu0 %vm280_vm3, %v202_v2  ;;  %v780_v8 = vpop.permute.xlu0 %779  ;;  %2453 = vrot.lane.b32.xlu1 %v3146_v16, %s3073_s30  ;;  %v812_v29 = vand.u32 %v789_v12, %v3220_v28 }
  0xad   : > { %694 = vmatpush1.bf16.msra.mxu0 %v545_v11  ;;  %711 = vmatprep.mubr.bf16.mxu0 %v3065_v14  ;;  %v792_v42 = vsel %vm783_vm4, %v780_v8, %v782_v21 }
  0xae   : > { %840 = vmatprep.subr.bf16.mxu0 %v800_v13  ;;  %v3320_v25 = vpop.permute.xlu1 %1047  ;;  %v821_v47 = vand.u32 %v792_v42, %v3220_v28 }
  0xaf   : > { %2455 = vrot.lane.b32.xlu0 %v3149_v17, %s3073_s30  ;;  %v791_v17 = vsel %vm783_vm4, %v778_v7, %v780_v8  ;;  %vm2886_vm4 = vcmask 285696  }
  0xb0   : > { %2979 = vmatmul.mubr.msk.bf16.vlgmr.msra.gmra.mxu1 %vm280_vm3, %v202_v2  ;;  %v1046_v16 = vpop.permute.xlu0 %1045  ;;  %2457 = vrot.lane.b32.xlu1 %v3155_v18, %s3073_s30  ;;  %v818_v33 = vand.u32 %v791_v17, %v3220_v28 }
  0xb1   : > { %735 = vmatpush1.bf16.msra.mxu1 %v551_v15  ;;  %752 = vmatprep.mubr.bf16.mxu1 %v3065_v14  ;;  %v1065_v39 = vsel %vm1063_vm5, %v1046_v16, %v3320_v25 }
  0xb2   : > { %881 = vmatprep.subr.bf16.mxu1 %v806_v24  ;;  %v1050_v30 = vpop.permute.xlu1 %1049  ;;  %v1080_v43 = vand.u32 %v1065_v39, %v3220_v28 }
  0xb3   : > { %2459 = vrot.lane.b32.xlu0 %v3157_v19, %s3073_s30  ;;  %v1066_v54 = vsel %vm1063_vm5, %v3320_v25, %v1050_v30 }
  0xb4   : > { %2980 = vmatmul.mubr.msk.bf16.vlgmr.msra.gmra.mxu0 %vm280_vm3, %v202_v2  ;;  %v1044_v18 = vpop.permute.xlu0 %1043  ;;  %2461 = vrot.lane.b32.xlu1 %v3163_v20, %s3073_s30  ;;  %v2982_v20 = vld [vmem:[%s3713_s1 + $0x4] sm:$0x3]  ;;  %v1083_v59 = vand.u32 %v1066_v54, %v3220_v28 }
  0xb5   : > { %841 = vmatpush1.bf16.msra.mxu0 %v797_v26  ;;  %858 = vmatprep.mubr.bf16.mxu0 %v3065_v14  ;;  %v1064_v48 = vsel %vm1063_vm5, %v1044_v18, %v1046_v16 }
  0xb6   : > { %922 = vmatprep.subr.bf16.mxu0 %v812_v29  ;;  %v1054_v34 = vpop.permute.xlu1 %1053  ;;  %v1077_v53 = vand.u32 %v1064_v48, %v3220_v28 }
  0xb8   : > { %2981 = vmatmul.mubr.msk.bf16.vlgmr.msra.gmra.mxu1 %vm280_vm3, %v202_v2  ;;  %v1052_v19 = vpop.permute.xlu0 %1051 }
  0xb9   : > { %882 = vmatpush1.bf16.msra.mxu1 %v803_v31  ;;  %899 = vmatprep.mubr.bf16.mxu1 %v3065_v14  ;;  %v1067_v45 = vsel %vm1063_vm5, %v1050_v30, %v1052_v19  ;;  %v1068_v60 = vsel %vm1063_vm5, %v1052_v19, %v1054_v34 }
  0xba   : > { %963 = vmatprep.subr.bf16.mxu1 %v818_v33  ;;  %v1058_v38 = vpop.permute.xlu1 %1057  ;;  %v1086_v49 = vand.u32 %v1067_v45, %v3220_v28  ;;  %v1089_v0 = vand.u32 %v1068_v60, %v3220_v28 }
  0xbc   : > { %2983 = vmatmul.mubr.msk.bf16.vlgmr.msra.gmra.mxu0 %vm280_vm3, %v2982_v20  ;;  %v1056_v40 = vpop.permute.xlu0 %1055 }
  0xbd   : > { %923 = vmatpush1.bf16.msra.mxu0 %v809_v35  ;;  %940 = vmatprep.mubr.bf16.mxu0 %v3065_v14  ;;  %v1069_v51 = vsel %vm1063_vm5, %v1054_v34, %v1056_v40  ;;  %v1070_v2 = vsel %vm1063_vm5, %v1056_v40, %v1058_v38 }
  0xbe   : > { %1004 = vmatprep.subr.bf16.mxu0 %v824_v37  ;;  %v1062_v44 = vpop.permute.xlu1 %1061  ;;  %v1092_v55 = vand.u32 %v1069_v51, %v3220_v28  ;;  %v1095_v10 = vand.u32 %v1070_v2, %v3220_v28 }
  0xbf   : > { %v1104_v4 = vand.u32 %v1062_v44, %v3220_v28 }
  0xc0   : > { %2984 = vmatmul.mubr.msk.bf16.vlgmr.msra.gmra.mxu1 %vm280_vm3, %v2982_v20  ;;  %v1060_v46 = vpop.permute.xlu0 %1059 }
  0xc1   : > { %964 = vmatpush1.bf16.msra.mxu1 %v815_v41  ;;  %981 = vmatprep.mubr.bf16.mxu1 %v3065_v14  ;;  %v1071_v57 = vsel %vm1063_vm5, %v1058_v38, %v1060_v46  ;;  %v1072_v11 = vsel %vm1063_vm5, %v1060_v46, %v1062_v44 }
  0xc2   : > { %1120 = vmatprep.subr.bf16.mxu1 %v1080_v43  ;;  %v1328_v50 = vpop.permute.xlu1 %1327  ;;  %v1098_v61 = vand.u32 %v1071_v57, %v3220_v28  ;;  %v1101_v15 = vand.u32 %v1072_v11, %v3220_v28 }
  0xc4   : > { %2985 = vmatmul.mubr.msk.bf16.vlgmr.msra.gmra.mxu0 %vm280_vm3, %v2982_v20  ;;  %v1326_v52 = vpop.permute.xlu0 %1325 }
  0xc5   : > { %1005 = vmatpush1.bf16.msra.mxu0 %v821_v47  ;;  %1022 = vmatprep.mubr.bf16.mxu0 %v3065_v14  ;;  %v1345_v7 = vsel %vm1343_vm6, %v1326_v52, %v1328_v50 }
  0xc6   : > { %1161 = vmatprep.subr.bf16.mxu0 %v1086_v49  ;;  %v1330_v56 = vpop.permute.xlu1 %1329  ;;  %v1360_v13 = vand.u32 %v1345_v7, %v3220_v28 }
  0xc7   : > { %v1346_v27 = vsel %vm1343_vm6, %v1328_v50, %v1330_v56 }
  0xc8   : > { %2986 = vmatmul.mubr.msk.bf16.vlgmr.msra.gmra.mxu1 %vm280_vm3, %v2982_v20  ;;  %v1324_v58 = vpop.permute.xlu0 %1323  ;;  %v1363_v31 = vand.u32 %v1346_v27, %v3220_v28 }
  0xc9   : > { %1121 = vmatpush1.bf16.msra.mxu1 %v1077_v53  ;;  %1138 = vmatprep.mubr.bf16.mxu1 %v3065_v14  ;;  %v1344_v23 = vsel %vm1343_vm6, %v1324_v58, %v1326_v52 }
  0xca   : > { %1202 = vmatprep.subr.bf16.mxu1 %v1092_v55  ;;  %v1334_v62 = vpop.permute.xlu1 %1333  ;;  %v1357_v26 = vand.u32 %v1344_v23, %v3220_v28 }
  0xcc   : > { %2987 = vmatmul.mubr.msk.bf16.vlgmr.msra.gmra.mxu0 %vm280_vm3, %v2982_v20  ;;  %v1332_v63 = vpop.permute.xlu0 %1331  ;;  %v2994_v20 = vld [vmem:[%s3713_s1 + $0x8] sm:$0x3] }
  0xcd   : > { %1162 = vmatpush1.bf16.msra.mxu0 %v1083_v59  ;;  %1179 = vmatprep.mubr.bf16.mxu0 %v3065_v14  ;;  %v1347_v22 = vsel %vm1343_vm6, %v1330_v56, %v1332_v63  ;;  %v1348_v32 = vsel %vm1343_vm6, %v1332_v63, %v1334_v62 }
  0xce   : > { %1243 = vmatprep.subr.bf16.mxu0 %v1098_v61  ;;  %v1338_v6 = vpop.permute.xlu1 %1337  ;;  %v1366_v24 = vand.u32 %v1347_v22, %v3220_v28  ;;  %v1369_v35 = vand.u32 %v1348_v32, %v3220_v28 }
  0xd0   : > { %2989 = vmatmul.mubr.msk.bf16.vlgmr.msra.gmra.mxu1 %vm280_vm3, %v2988_v1  ;;  %v1336_v9 = vpop.permute.xlu0 %1335 }
  0xd1   : > { %1203 = vmatpush1.bf16.msra.mxu1 %v1089_v0  ;;  %1220 = vmatprep.mubr.bf16.mxu1 %v3065_v14  ;;  %v1349_v12 = vsel %vm1343_vm6, %v1334_v62, %v1336_v9  ;;  %v1350_v36 = vsel %vm1343_vm6, %v1336_v9, %v1338_v6 }
  0xd2   : > { %1284 = vmatprep.subr.bf16.mxu1 %v1104_v4  ;;  %v1342_v21 = vpop.permute.xlu1 %1341  ;;  %v1372_v29 = vand.u32 %v1349_v12, %v3220_v28  ;;  %v1375_v41 = vand.u32 %v1350_v36, %v3220_v28  ;;  %v3006_v36 = vld [vmem:[%s3713_s1 + $0xc] sm:$0x3] }
  0xd3   : > { %v1384_v37 = vand.u32 %v1342_v21, %v3220_v28 }
  0xd4   : > { %2990 = vmatmul.mubr.msk.bf16.vlgmr.msra.gmra.mxu0 %vm280_vm3, %v2988_v1  ;;  %v1340_v8 = vpop.permute.xlu0 %1339 }
  0xd5   : > { %1244 = vmatpush1.bf16.msra.mxu0 %v1095_v10  ;;  %1261 = vmatprep.mubr.bf16.mxu0 %v3065_v14  ;;  %v1351_v17 = vsel %vm1343_vm6, %v1338_v6, %v1340_v8  ;;  %v1352_v42 = vsel %vm1343_vm6, %v1340_v8, %v1342_v21  ;;  %v2721_v8 = vld [vmem:[%s3714_s2] sm:$0xf]  ;;  %vm2905_vm6 = vcmask 314370  }
  0xd6   : > { %1400 = vmatprep.subr.bf16.mxu0 %v1360_v13  ;;  %v1608_v25 = vpop.permute.xlu1 %1607  ;;  %v1378_v33 = vand.u32 %v1351_v17, %v3220_v28  ;;  %v1381_v47 = vand.u32 %v1352_v42, %v3220_v28  ;;  %2724 = vperm.xlu0 %3052, %v2721_v8  }
  0xd8   : > { %2991 = vmatmul.mubr.msk.bf16.vlgmr.msra.gmra.mxu1 %vm280_vm3, %v2988_v1  ;;  %v1606_v16 = vpop.permute.xlu0 %1605 }
  0xd9   : > { %1285 = vmatpush1.bf16.msra.mxu1 %v1101_v15  ;;  %1302 = vmatprep.mubr.bf16.mxu1 %v3065_v14  ;;  %v1625_v39 = vsel %vm1623_vm7, %v1606_v16, %v1608_v25 }
  0xda   : > { %1441 = vmatprep.subr.bf16.mxu1 %v1366_v24  ;;  %v1610_v30 = vpop.permute.xlu1 %1609  ;;  %v1640_v43 = vand.u32 %v1625_v39, %v3220_v28 }
  0xdb   : > { %v1626_v54 = vsel %vm1623_vm7, %v1608_v25, %v1610_v30 }
  0xdc   : > { %2992 = vmatmul.mubr.msk.bf16.vlgmr.msra.gmra.mxu0 %vm280_vm3, %v2988_v1  ;;  %v1604_v18 = vpop.permute.xlu0 %1603  ;;  %v1643_v59 = vand.u32 %v1626_v54, %v3220_v28 }
  0xdd   : > { %1401 = vmatpush1.bf16.msra.mxu0 %v1357_v26  ;;  %1418 = vmatprep.mubr.bf16.mxu0 %v3065_v14  ;;  %v1624_v48 = vsel %vm1623_vm7, %v1604_v18, %v1606_v16 }
  0xde   : > { %1482 = vmatprep.subr.bf16.mxu0 %v1372_v29  ;;  %v1614_v34 = vpop.permute.xlu1 %1613  ;;  %v1637_v53 = vand.u32 %v1624_v48, %v3220_v28 }
  0xe0   : > { %2993 = vmatmul.mubr.msk.bf16.vlgmr.msra.gmra.mxu1 %vm280_vm3, %v2988_v1  ;;  %v1612_v19 = vpop.permute.xlu0 %1611  ;;  %v3000_v1 = vld [vmem:[%s3713_s1 + $0xa] sm:$0x3] }
  0xe1   : > { %1442 = vmatpush1.bf16.msra.mxu1 %v1363_v31  ;;  %1459 = vmatprep.mubr.bf16.mxu1 %v3065_v14  ;;  %v1627_v45 = vsel %vm1623_vm7, %v1610_v30, %v1612_v19  ;;  %v1628_v60 = vsel %vm1623_vm7, %v1612_v19, %v1614_v34 }
  0xe2   : > { %1523 = vmatprep.subr.bf16.mxu1 %v1378_v33  ;;  %v1618_v38 = vpop.permute.xlu1 %1617  ;;  %v1646_v49 = vand.u32 %v1627_v45, %v3220_v28  ;;  %v1649_v0 = vand.u32 %v1628_v60, %v3220_v28 }
  0xe4   : > { %2995 = vmatmul.mubr.msk.bf16.vlgmr.msra.gmra.mxu0 %vm280_vm3, %v2994_v20  ;;  %v1616_v40 = vpop.permute.xlu0 %1615 }
  0xe5   : > { %1483 = vmatpush1.bf16.msra.mxu0 %v1369_v35  ;;  %1500 = vmatprep.mubr.bf16.mxu0 %v3065_v14  ;;  %v1629_v51 = vsel %vm1623_vm7, %v1614_v34, %v1616_v40  ;;  %v1630_v2 = vsel %vm1623_vm7, %v1616_v40, %v1618_v38 }
  0xe6   : > { %1564 = vmatprep.subr.bf16.mxu0 %v1384_v37  ;;  %v1622_v44 = vpop.permute.xlu1 %1621  ;;  %v1652_v55 = vand.u32 %v1629_v51, %v3220_v28  ;;  %v1655_v10 = vand.u32 %v1630_v2, %v3220_v28 }
  0xe7   : > { %v1664_v4 = vand.u32 %v1622_v44, %v3220_v28 }
  0xe8   : > { %2996 = vmatmul.mubr.msk.bf16.vlgmr.msra.gmra.mxu1 %vm280_vm3, %v2994_v20  ;;  %v1620_v46 = vpop.permute.xlu0 %1619 }
  0xe9   : > { %1524 = vmatpush1.bf16.msra.mxu1 %v1375_v41  ;;  %1541 = vmatprep.mubr.bf16.mxu1 %v3065_v14  ;;  %v1631_v57 = vsel %vm1623_vm7, %v1618_v38, %v1620_v46  ;;  %v1632_v11 = vsel %vm1623_vm7, %v1620_v46, %v1622_v44  ;;  %vm2906_vm7 = vmor %vm2905_vm6, %vm285_vm2 }
  0xea   : > { %1680 = vmatprep.subr.bf16.mxu1 %v1640_v43  ;;  %v1888_v50 = vpop.permute.xlu1 %1887  ;;  %v1658_v61 = vand.u32 %v1631_v57, %v3220_v28  ;;  %v1661_v23 = vand.u32 %v1632_v11, %v3220_v28 }
  0xec   : > { %2997 = vmatmul.mubr.msk.bf16.vlgmr.msra.gmra.mxu0 %vm280_vm3, %v2994_v20  ;;  %v1886_v52 = vpop.permute.xlu0 %1885 }
  0xed   : > { %1565 = vmatpush1.bf16.msra.mxu0 %v1381_v47  ;;  %1582 = vmatprep.mubr.bf16.mxu0 %v3065_v14  ;;  %v1905_v7 = vsel %vm1903_vm8, %v1886_v52, %v1888_v50 }
  0xee   : > { %1721 = vmatprep.subr.bf16.mxu0 %v1646_v49  ;;  %v1890_v56 = vpop.permute.xlu1 %1889  ;;  %v1920_v13 = vand.u32 %v1905_v7, %v3220_v28 }
  0xef   : > { %v1906_v29 = vsel %vm1903_vm8, %v1888_v50, %v1890_v56 }
  0xf0   : > { %2998 = vmatmul.mubr.msk.bf16.vlgmr.msra.gmra.mxu1 %vm280_vm3, %v2994_v20  ;;  %v1884_v58 = vpop.permute.xlu0 %1883  ;;  %v1923_v32 = vand.u32 %v1906_v29, %v3220_v28 }
  0xf1   : > { %1681 = vmatpush1.bf16.msra.mxu1 %v1637_v53  ;;  %1698 = vmatprep.mubr.bf16.mxu1 %v3065_v14  ;;  %v1904_v24 = vsel %vm1903_vm8, %v1884_v58, %v1886_v52 }
  0xf2   : > { %1762 = vmatprep.subr.bf16.mxu1 %v1652_v55  ;;  %v1894_v62 = vpop.permute.xlu1 %1893  ;;  %v1917_v27 = vand.u32 %v1904_v24, %v3220_v28 }
  0xf4   : > { %2999 = vmatmul.mubr.msk.bf16.vlgmr.msra.gmra.mxu0 %vm280_vm3, %v2994_v20  ;;  %v1892_v63 = vpop.permute.xlu0 %1891 }
  0xf5   : > { %1722 = vmatpush1.bf16.msra.mxu0 %v1643_v59  ;;  %1739 = vmatprep.mubr.bf16.mxu0 %v3065_v14  ;;  %v1907_v22 = vsel %vm1903_vm8, %v1890_v56, %v1892_v63  ;;  %v1908_v33 = vsel %vm1903_vm8, %v1892_v63, %v1894_v62 }
  0xf6   : > { %1803 = vmatprep.subr.bf16.mxu0 %v1658_v61  ;;  %v1898_v6 = vpop.permute.xlu1 %1897  ;;  %v1926_v25 = vand.u32 %v1907_v22, %v3220_v28  ;;  %v1929_v20 = vand.u32 %v1908_v33, %v3220_v28 }
  0xf8   : > { %3001 = vmatmul.mubr.msk.bf16.vlgmr.msra.gmra.mxu1 %vm280_vm3, %v3000_v1  ;;  %v1896_v9 = vpop.permute.xlu0 %1895 }
  0xf9   : > { %1763 = vmatpush1.bf16.msra.mxu1 %v1649_v0  ;;  %1780 = vmatprep.mubr.bf16.mxu1 %v3065_v14  ;;  %v1909_v16 = vsel %vm1903_vm8, %v1894_v62, %v1896_v9  ;;  %v1910_v37 = vsel %vm1903_vm8, %v1896_v9, %v1898_v6  ;;  %v3012_v0 = vld [vmem:[%s3713_s1 + $0xe] sm:$0x3] }
  0xfa   : > { %1844 = vmatprep.subr.bf16.mxu1 %v1664_v4  ;;  %v1902_v21 = vpop.permute.xlu1 %1901  ;;  %v1932_v30 = vand.u32 %v1909_v16, %v3220_v28  ;;  %v1935_v41 = vand.u32 %v1910_v37, %v3220_v28 }
  0xfb   : > { %v1944_v38 = vand.u32 %v1902_v21, %v3220_v28 }
  0xfc   : > { %3002 = vmatmul.mubr.msk.bf16.vlgmr.msra.gmra.mxu0 %vm280_vm3, %v3000_v1  ;;  %v1900_v15 = vpop.permute.xlu0 %1899 }
  0xfd   : > { %1804 = vmatpush1.bf16.msra.mxu0 %v1655_v10  ;;  %1821 = vmatprep.mubr.bf16.mxu0 %v3065_v14  ;;  %v1911_v18 = vsel %vm1903_vm8, %v1898_v6, %v1900_v15  ;;  %v1912_v43 = vsel %vm1903_vm8, %v1900_v15, %v1902_v21 }
  0xfe   : > { %1960 = vmatprep.subr.bf16.mxu0 %v1920_v13  ;;  %v2168_v12 = vpop.permute.xlu1 %2167  ;;  %v1938_v34 = vand.u32 %v1911_v18, %v3220_v28  ;;  %v1941_v46 = vand.u32 %v1912_v43, %v3220_v28 }
 0x100   : > { %3003 = vmatmul.mubr.msk.bf16.vlgmr.msra.gmra.mxu1 %vm280_vm3, %v3000_v1  ;;  %v2166_v26 = vpop.permute.xlu0 %2165 }
 0x101   : > { %1845 = vmatpush1.bf16.msra.mxu1 %v1661_v23  ;;  %1862 = vmatprep.mubr.bf16.mxu1 %v3065_v14  ;;  %v2185_v39 = vsel %vm2183_vm9, %v2166_v26, %v2168_v12 }
 0x102   : > { %2001 = vmatprep.subr.bf16.mxu1 %v1926_v25  ;;  %v2170_v17 = vpop.permute.xlu1 %2169  ;;  %v2200_v44 = vand.u32 %v2185_v39, %v3220_v28 }
 0x103   : > { %v2186_v54 = vsel %vm2183_vm9, %v2168_v12, %v2170_v17 }
 0x104   : > { %3004 = vmatmul.mubr.msk.bf16.vlgmr.msra.gmra.mxu0 %vm280_vm3, %v3000_v1  ;;  %v2164_v31 = vpop.permute.xlu0 %2163  ;;  %v2203_v58 = vand.u32 %v2186_v54, %v3220_v28 }
 0x105   : > { %1961 = vmatpush1.bf16.msra.mxu0 %v1917_v27  ;;  %1978 = vmatprep.mubr.bf16.mxu0 %v3065_v14  ;;  %v2184_v48 = vsel %vm2183_vm9, %v2164_v31, %v2166_v26 }
 0x106   : > { %2042 = vmatprep.subr.bf16.mxu0 %v1932_v30  ;;  %v2197_v52 = vand.u32 %v2184_v48, %v3220_v28 }
 0x108   : > { %3005 = vmatmul.mubr.msk.bf16.vlgmr.msra.gmra.mxu1 %vm280_vm3, %v3000_v1  ;;  %v2172_v19 = vpop.permute.xlu0 %2171  ;;  %v2174_v35 = vpop.permute.xlu1 %2173 }
 0x109   : > { %2002 = vmatpush1.bf16.msra.mxu1 %v1923_v32  ;;  %2019 = vmatprep.mubr.bf16.mxu1 %v3065_v14  ;;  %v2187_v45 = vsel %vm2183_vm9, %v2170_v17, %v2172_v19  ;;  %v2188_v60 = vsel %vm2183_vm9, %v2172_v19, %v2174_v35  ;;  %v3018_v32 = vld [vmem:[%s3713_s1 + $0x10] sm:$0x3] }
 0x10a   : > { %2083 = vmatprep.subr.bf16.mxu1 %v1938_v34  ;;  %v2206_v49 = vand.u32 %v2187_v45, %v3220_v28  ;;  %v2209_v63 = vand.u32 %v2188_v60, %v3220_v28 }
 0x10c   : > { %3007 = vmatmul.mubr.msk.bf16.vlgmr.msra.gmra.mxu0 %vm280_vm3, %v3006_v36  ;;  %v2176_v40 = vpop.permute.xlu0 %2175 }
 0x10d   : > { %2043 = vmatpush1.bf16.msra.mxu0 %v1929_v20  ;;  %2060 = vmatprep.mubr.bf16.mxu0 %v3065_v14  ;;  %v2178_v42 = vpop.permute.xlu1 %2177  ;;  %v2189_v51 = vsel %vm2183_vm9, %v2174_v35, %v2176_v40 }
 0x10e   : > { %2124 = vmatprep.subr.bf16.mxu0 %v1944_v38  ;;  %v2212_v55 = vand.u32 %v2189_v51, %v3220_v28  ;;  %v2190_v2 = vsel %vm2183_vm9, %v2176_v40, %v2178_v42 }
 0x10f   : > { %v2215_v7 = vand.u32 %v2190_v2, %v3220_v28 }
 0x110   : > { %3008 = vmatmul.mubr.msk.bf16.vlgmr.msra.gmra.mxu1 %vm280_vm3, %v3006_v36 }
 0x111   : > { %2084 = vmatpush1.bf16.msra.mxu1 %v1935_v41  ;;  %2101 = vmatprep.mubr.bf16.mxu1 %v3065_v14  ;;  %v2180_v47 = vpop.permute.xlu0 %2179 }
 0x112   : > { %2240 = vmatprep.subr.bf16.mxu1 %v2200_v44  ;;  %v2182_v50 = vpop.permute.xlu1 %2181  ;;  %v2191_v57 = vsel %vm2183_vm9, %v2178_v42, %v2180_v47 }
 0x113   : > { %v2218_v61 = vand.u32 %v2191_v57, %v3220_v28  ;;  %v2224_v4 = vand.u32 %v2182_v50, %v3220_v28  ;;  %v2192_v9 = vsel %vm2183_vm9, %v2180_v47, %v2182_v50 }
 0x114   : > { %3009 = vmatmul.mubr.msk.bf16.vlgmr.msra.gmra.mxu0 %vm280_vm3, %v3006_v36  ;;  %v2221_v22 = vand.u32 %v2192_v9, %v3220_v28 }
 0x115   : > { %2125 = vmatpush1.bf16.msra.mxu0 %v1941_v46  ;;  %2142 = vmatprep.mubr.bf16.mxu0 %v3065_v14  ;;  %v2446_v53 = vpop.permute.xlu0 %2445 }
 0x116   : > { %2281 = vmatprep.subr.bf16.mxu0 %v2206_v49  ;;  %v2448_v56 = vpop.permute.xlu1 %2447 }
 0x117   : > { %v2465_v6 = vsel %vm2463_vm10, %v2446_v53, %v2448_v56 }
 0x118   : > { %3010 = vmatmul.mubr.msk.bf16.vlgmr.msra.gmra.mxu1 %vm280_vm3, %v3006_v36  ;;  %v2480_v10 = vand.u32 %v2465_v6, %v3220_v28 }
 0x119   : > { %2241 = vmatpush1.bf16.msra.mxu1 %v2197_v52  ;;  %2258 = vmatprep.mubr.bf16.mxu1 %v3065_v14  ;;  %v2444_v59 = vpop.permute.xlu0 %2443 }
 0x11a   : > { %2322 = vmatprep.subr.bf16.mxu1 %v2212_v55  ;;  %v2450_v62 = vpop.permute.xlu1 %2449  ;;  %v2464_v8 = vsel %vm2463_vm10, %v2444_v59, %v2446_v53 }
 0x11b   : > { %v2477_v12 = vand.u32 %v2464_v8, %v3220_v28  ;;  %v2466_v16 = vsel %vm2463_vm10, %v2448_v56, %v2450_v62 }
 0x11c   : > { %3011 = vmatmul.mubr.msk.bf16.vlgmr.msra.gmra.mxu0 %vm280_vm3, %v3006_v36  ;;  %v2483_v29 = vand.u32 %v2466_v16, %v3220_v28 }
 0x11d   : > { %2282 = vmatpush1.bf16.msra.mxu0 %v2203_v58  ;;  %2299 = vmatprep.mubr.bf16.mxu0 %v3065_v14  ;;  %v2452_v1 = vpop.permute.xlu0 %2451 }
 0x11e   : > { %2363 = vmatprep.subr.bf16.mxu0 %v2218_v61  ;;  %v2454_v13 = vpop.permute.xlu1 %2453  ;;  %v2467_v21 = vsel %vm2463_vm10, %v2450_v62, %v2452_v1 }
 0x11f   : > { %v2486_v15 = vand.u32 %v2467_v21, %v3220_v28  ;;  %v2468_v30 = vsel %vm2463_vm10, %v2452_v1, %v2454_v13 }
 0x120   : > { %3013 = vmatmul.mubr.msk.bf16.vlgmr.msra.gmra.mxu1 %vm280_vm3, %v3012_v0  ;;  %v2489_v31 = vand.u32 %v2468_v30, %v3220_v28 }
 0x121   : > { %2323 = vmatpush1.bf16.msra.mxu1 %v2209_v63  ;;  %2340 = vmatprep.mubr.bf16.mxu1 %v3065_v14  ;;  %v2456_v11 = vpop.permute.xlu0 %2455 }
 0x122   : > { %2404 = vmatprep.subr.bf16.mxu1 %v2224_v4  ;;  %v2469_v23 = vsel %vm2463_vm10, %v2454_v13, %v2456_v11  ;;  %v2458_v25 = vpop.permute.xlu1 %2457 }
 0x123   : > { %v2492_v26 = vand.u32 %v2469_v23, %v3220_v28  ;;  %v2470_v33 = vsel %vm2463_vm10, %v2456_v11, %v2458_v25 }
 0x124   : > { %3014 = vmatmul.mubr.msk.bf16.vlgmr.msra.gmra.mxu0 %vm280_vm3, %v3012_v0  ;;  %v2495_v19 = vand.u32 %v2470_v33, %v3220_v28 }
 0x125   : > { %2364 = vmatpush1.bf16.msra.mxu0 %v2215_v7  ;;  %2381 = vmatprep.mubr.bf16.mxu0 %v3065_v14  ;;  %v2460_v24 = vpop.permute.xlu0 %2459 }
 0x126   : > { %2520 = vmatprep.subr.bf16.mxu0 %v2480_v10  ;;  %v2471_v27 = vsel %vm2463_vm10, %v2458_v25, %v2460_v24  ;;  %v2462_v18 = vpop.permute.xlu1 %2461 }
 0x127   : > { %v2498_v17 = vand.u32 %v2471_v27, %v3220_v28  ;;  %v2504_v34 = vand.u32 %v2462_v18, %v3220_v28  ;;  %v2472_v35 = vsel %vm2463_vm10, %v2460_v24, %v2462_v18 }
 0x128   : > { %3015 = vmatmul.mubr.msk.bf16.vlgmr.msra.gmra.mxu1 %vm280_vm3, %v3012_v0  ;;  %v2501_v20 = vand.u32 %v2472_v35, %v3220_v28 }
 0x129   : > { %2405 = vmatpush1.bf16.msra.mxu1 %v2221_v22  ;;  %2422 = vmatprep.mubr.bf16.mxu1 %v3065_v14 }
 0x12a   : > { %2561 = vmatprep.subr.bf16.mxu1 %v2486_v15 }
 0x12c   : > { %3016 = vmatmul.mubr.msk.bf16.vlgmr.msra.gmra.mxu0 %vm280_vm3, %v3012_v0 }
 0x12d   : > { %2521 = vmatpush1.bf16.msra.mxu0 %v2477_v12  ;;  %2538 = vmatprep.mubr.bf16.mxu0 %v3065_v14 }
 0x12e   : > { %2602 = vmatprep.subr.bf16.mxu0 %v2492_v26 }
 0x130   : > { %3017 = vmatmul.mubr.msk.bf16.vlgmr.msra.gmra.mxu1 %vm280_vm3, %v3012_v0 }
 0x131   : > { %2562 = vmatpush1.bf16.msra.mxu1 %v2483_v29  ;;  %2579 = vmatprep.mubr.bf16.mxu1 %v3065_v14 }
 0x132   : > { %2643 = vmatprep.subr.bf16.mxu1 %v2498_v17 }
 0x134   : > { %3019 = vmatmul.mubr.msk.bf16.vlgmr.msra.gmra.mxu0 %vm280_vm3, %v3018_v32 }
 0x135   : > { %2603 = vmatpush1.bf16.msra.mxu0 %v2489_v31  ;;  %2620 = vmatprep.mubr.bf16.mxu0 %v3065_v14 }
 0x136   : > { %2684 = vmatprep.subr.bf16.mxu0 %v2504_v34 }
 0x138   : > { %3020 = vmatmul.mubr.msk.bf16.vlgmr.msra.gmra.mxu1 %vm280_vm3, %v3018_v32 }
 0x139   : > { %2644 = vmatpush1.bf16.msra.mxu1 %v2495_v19  ;;  %2661 = vmatprep.mubr.bf16.mxu1 %v3065_v14 }
 0x13c   : > { %3021 = vmatmul.mubr.msk.bf16.vlgmr.msra.gmra.mxu0 %vm280_vm3, %v3018_v32 }
 0x13d   : > { %2685 = vmatpush1.bf16.msra.mxu0 %v2501_v20  ;;  %2702 = vmatprep.mubr.bf16.mxu0 %v3065_v14 }
 0x140   : > { %3022 = vmatmul.mubr.msk.bf16.vlgmr.msra.gmra.mxu1 %vm280_vm3, %v3018_v32 }
 0x144   : > { %3023 = vmatmul.mubr.msk.bf16.vlgmr.msra.gmra.mxu0 %vm280_vm3, %v3018_v32  ;;  %vm2901_vm3 = vcmask 1047558  }
 0x145   : > { %vm2902_vm5 = vmor %vm2901_vm3, %vm2900_vm1 }
 0x154   : > { %v352_v36 = vpop.f32.mrf.mxu0 }
 0x156   : > { %v354_v37 = vpop.f32.mrf.mxu0 }
 0x158   : > { %v356_v38 = vpop.f32.mrf.mxu0  ;;  %v393_v39 = vpop.f32.mrf.mxu1 }
 0x15a   : > { %v357_v40 = vpop.f32.mrf.mxu0  ;;  %v395_v41 = vpop.f32.mrf.mxu1 }
 0x15c   : > { %v397_v42 = vpop.f32.mrf.mxu1  ;;  %v434_v43 = vpop.f32.mrf.mxu0 }
 0x15e   : > { %v398_v28 = vpop.f32.mrf.mxu1  ;;  %v436_v44 = vpop.f32.mrf.mxu0 }
 0x160   : > { %v438_v45 = vpop.f32.mrf.mxu0  ;;  %v475_v46 = vpop.f32.mrf.mxu1 }
 0x162   : > { %v439_v47 = vpop.f32.mrf.mxu0  ;;  %v477_v48 = vpop.f32.mrf.mxu1 }
 0x164   : > { %v479_v49 = vpop.f32.mrf.mxu1  ;;  %v516_v50 = vpop.f32.mrf.mxu0 }
 0x166   : > { %v480_v51 = vpop.f32.mrf.mxu1  ;;  %v518_v52 = vpop.f32.mrf.mxu0 }
 0x168   : > { %v520_v53 = vpop.f32.mrf.mxu0  ;;  %v590_v54 = vpop.f32.mrf.mxu1 }
 0x169   : > { %v591_v55 = vadd.f32 %v590_v54, %v352_v36 }
 0x16a   : > { %v521_v56 = vpop.f32.mrf.mxu0  ;;  %v592_v57 = vpop.f32.mrf.mxu1 }
 0x16b   : > { %v593_v58 = vadd.f32 %v592_v57, %v354_v37 }
 0x16c   : > { %v594_v59 = vpop.f32.mrf.mxu1  ;;  %v631_v60 = vpop.f32.mrf.mxu0 }
 0x16d   : > { %v632_v61 = vadd.f32 %v631_v60, %v393_v39 }
 0x16e   : > { %v595_v62 = vpop.f32.mrf.mxu1  ;;  %v633_v63 = vpop.f32.mrf.mxu0 }
 0x16f   : > { %v634_v0 = vadd.f32 %v633_v63, %v395_v41 }
 0x170   : > { %v635_v1 = vpop.f32.mrf.mxu0  ;;  %v672_v2 = vpop.f32.mrf.mxu1 }
 0x171   : > { %v673_v4 = vadd.f32 %v672_v2, %v434_v43 }
 0x172   : > { %v636_v6 = vpop.f32.mrf.mxu0  ;;  %v674_v7 = vpop.f32.mrf.mxu1 }
 0x173   : > { %v675_v9 = vadd.f32 %v674_v7, %v436_v44 }
 0x174   : > { %v676_v10 = vpop.f32.mrf.mxu1  ;;  %v713_v11 = vpop.f32.mrf.mxu0 }
 0x175   : > { %v714_v13 = vadd.f32 %v713_v11, %v475_v46 }
 0x176   : > { %v677_v21 = vpop.f32.mrf.mxu1  ;;  %v715_v22 = vpop.f32.mrf.mxu0 }
 0x177   : > { %v716_v8 = vadd.f32 %v715_v22, %v477_v48 }
 0x178   : > { %v717_v15 = vpop.f32.mrf.mxu0  ;;  %v754_v23 = vpop.f32.mrf.mxu1 }
 0x179   : > { %v755_v24 = vadd.f32 %v754_v23, %v516_v50 }
 0x17a   : > { %v718_v25 = vpop.f32.mrf.mxu0  ;;  %v756_v12 = vpop.f32.mrf.mxu1 }
 0x17b   : > { %v757_v16 = vadd.f32 %v756_v12, %v518_v52 }
 0x17c   : > { %v758_v26 = vpop.f32.mrf.mxu1  ;;  %v860_v27 = vpop.f32.mrf.mxu0 }
 0x17d   : > { %v1031_v29 = vadd.f32 %v860_v27, %v591_v55 }
 0x17e   : > { %v759_v30 = vpop.f32.mrf.mxu1  ;;  %v862_v17 = vpop.f32.mrf.mxu0 }
 0x17f   : > { %v1032_v18 = vadd.f32 %v862_v17, %v593_v58 }
 0x180   : > { %v864_v31 = vpop.f32.mrf.mxu0  ;;  %v901_v32 = vpop.f32.mrf.mxu1 }
 0x181   : > { %v1033_v33 = vadd.f32 %v901_v32, %v632_v61 }
 0x182   : > { %v865_v34 = vpop.f32.mrf.mxu0  ;;  %v903_v19 = vpop.f32.mrf.mxu1 }
 0x183   : > { %v1034_v35 = vadd.f32 %v903_v19, %v634_v0 }
 0x184   : > { %v905_v20 = vpop.f32.mrf.mxu1  ;;  %v942_v36 = vpop.f32.mrf.mxu0 }
 0x185   : > { %v1035_v37 = vadd.f32 %v942_v36, %v673_v4 }
 0x186   : > { %v906_v38 = vpop.f32.mrf.mxu1  ;;  %v944_v39 = vpop.f32.mrf.mxu0 }
 0x187   : > { %v1036_v40 = vadd.f32 %v944_v39, %v675_v9 }
 0x188   : > { %v946_v41 = vpop.f32.mrf.mxu0  ;;  %v983_v42 = vpop.f32.mrf.mxu1 }
 0x189   : > { %v1037_v43 = vadd.f32 %v983_v42, %v714_v13 }
 0x18a   : > { %v947_v28 = vpop.f32.mrf.mxu0  ;;  %v985_v44 = vpop.f32.mrf.mxu1 }
 0x18b   : > { %v1038_v45 = vadd.f32 %v985_v44, %v716_v8 }
 0x18c   : > { %v987_v46 = vpop.f32.mrf.mxu1  ;;  %v1024_v47 = vpop.f32.mrf.mxu0 }
 0x18d   : > { %v1039_v48 = vadd.f32 %v1024_v47, %v755_v24 }
 0x18e   : > { %v988_v49 = vpop.f32.mrf.mxu1  ;;  %v1026_v50 = vpop.f32.mrf.mxu0 }
 0x18f   : > { %v1040_v51 = vadd.f32 %v1026_v50, %v757_v16 }
 0x190   : > { %v1028_v52 = vpop.f32.mrf.mxu0  ;;  %v1140_v53 = vpop.f32.mrf.mxu1 }
 0x191   : > { %v1311_v54 = vadd.f32 %v1140_v53, %v1031_v29 }
 0x192   : > { %v1029_v55 = vpop.f32.mrf.mxu0  ;;  %v1142_v56 = vpop.f32.mrf.mxu1 }
 0x193   : > { %v1312_v57 = vadd.f32 %v1142_v56, %v1032_v18 }
 0x194   : > { %v1144_v58 = vpop.f32.mrf.mxu1  ;;  %v1181_v59 = vpop.f32.mrf.mxu0 }
 0x195   : > { %v1313_v60 = vadd.f32 %v1181_v59, %v1033_v33 }
 0x196   : > { %v1145_v61 = vpop.f32.mrf.mxu1  ;;  %v1183_v62 = vpop.f32.mrf.mxu0 }
 0x197   : > { %v1314_v63 = vadd.f32 %v1183_v62, %v1034_v35 }
 0x198   : > { %v1185_v0 = vpop.f32.mrf.mxu0  ;;  %v1222_v1 = vpop.f32.mrf.mxu1 }
 0x199   : > { %v1315_v2 = vadd.f32 %v1222_v1, %v1035_v37 }
 0x19a   : > { %v1186_v4 = vpop.f32.mrf.mxu0  ;;  %v1224_v6 = vpop.f32.mrf.mxu1 }
 0x19b   : > { %v1316_v7 = vadd.f32 %v1224_v6, %v1036_v40 }
 0x19c   : > { %v1226_v9 = vpop.f32.mrf.mxu1  ;;  %v1263_v10 = vpop.f32.mrf.mxu0 }
 0x19d   : > { %v1317_v11 = vadd.f32 %v1263_v10, %v1037_v43 }
 0x19e   : > { %v1227_v13 = vpop.f32.mrf.mxu1  ;;  %v1265_v21 = vpop.f32.mrf.mxu0 }
 0x19f   : > { %v1318_v22 = vadd.f32 %v1265_v21, %v1038_v45 }
 0x1a0   : > { %v1267_v8 = vpop.f32.mrf.mxu0  ;;  %v1304_v15 = vpop.f32.mrf.mxu1 }
 0x1a1   : > { %v1319_v23 = vadd.f32 %v1304_v15, %v1039_v48 }
 0x1a2   : > { %v1268_v24 = vpop.f32.mrf.mxu0  ;;  %v1306_v25 = vpop.f32.mrf.mxu1 }
 0x1a3   : > { %v1320_v12 = vadd.f32 %v1306_v25, %v1040_v51 }
 0x1a4   : > { %v1308_v16 = vpop.f32.mrf.mxu1  ;;  %v1420_v26 = vpop.f32.mrf.mxu0 }
 0x1a5   : > { %v3568_v27 = vadd.f32 %v1420_v26, %v1311_v54 }
 0x1a6   : > { %v1309_v29 = vpop.f32.mrf.mxu1  ;;  %v1422_v30 = vpop.f32.mrf.mxu0 }
 0x1a7   : > { %v3570_v17 = vadd.f32 %v1422_v30, %v1312_v57 }
 0x1a8   : > { %v1424_v18 = vpop.f32.mrf.mxu0  ;;  %v1461_v31 = vpop.f32.mrf.mxu1 }
 0x1a9   : > { %v3572_v32 = vadd.f32 %v1461_v31, %v1313_v60 }
 0x1aa   : > { %v1425_v33 = vpop.f32.mrf.mxu0  ;;  %v1463_v34 = vpop.f32.mrf.mxu1 }
 0x1ab   : > { %v3574_v19 = vadd.f32 %v1463_v34, %v1314_v63 }
 0x1ac   : > { %v1465_v35 = vpop.f32.mrf.mxu1  ;;  %v1502_v20 = vpop.f32.mrf.mxu0 }
 0x1ad   : > { %v3576_v36 = vadd.f32 %v1502_v20, %v1315_v2 }
 0x1ae   : > { %v1466_v37 = vpop.f32.mrf.mxu1  ;;  %v1504_v38 = vpop.f32.mrf.mxu0 }
 0x1af   : > { %v3578_v39 = vadd.f32 %v1504_v38, %v1316_v7 }
 0x1b0   : > { %v1506_v40 = vpop.f32.mrf.mxu0  ;;  %v1543_v41 = vpop.f32.mrf.mxu1 }
 0x1b1   : > { %v3580_v42 = vadd.f32 %v1543_v41, %v1317_v11 }
 0x1b2   : > { %v1507_v43 = vpop.f32.mrf.mxu0  ;;  %v1545_v28 = vpop.f32.mrf.mxu1 }
 0x1b3   : > { %v3582_v44 = vadd.f32 %v1545_v28, %v1318_v22 }
 0x1b4   : > { %v1547_v45 = vpop.f32.mrf.mxu1  ;;  %v1584_v46 = vpop.f32.mrf.mxu0 }
 0x1b5   : > { %v3584_v47 = vadd.f32 %v1584_v46, %v1319_v23 }
 0x1b6   : > { %v1548_v48 = vpop.f32.mrf.mxu1  ;;  %v1586_v49 = vpop.f32.mrf.mxu0 }
 0x1b7   : > { %v3586_v50 = vadd.f32 %v1586_v49, %v1320_v12 }
 0x1b8   : > { %v1588_v51 = vpop.f32.mrf.mxu0  ;;  %v1700_v52 = vpop.f32.mrf.mxu1 }
 0x1ba   : > { %v1589_v53 = vpop.f32.mrf.mxu0  ;;  %v1702_v54 = vpop.f32.mrf.mxu1 }
 0x1bc   : > { %v1704_v55 = vpop.f32.mrf.mxu1  ;;  %v1741_v56 = vpop.f32.mrf.mxu0 }
 0x1be   : > { %v1705_v57 = vpop.f32.mrf.mxu1  ;;  %v3588_v58 = vpop.f32.mrf.mxu0 }
 0x1c0   : > { %v1745_v59 = vpop.f32.mrf.mxu0  ;;  %v3590_v60 = vpop.f32.mrf.mxu1 }
 0x1c2   : > { %v1746_v61 = vpop.f32.mrf.mxu0  ;;  %v3592_v62 = vpop.f32.mrf.mxu1 }
 0x1c3   : > { %v1871_v61 = vadd.f32 %v1700_v52, %v3568_v27  ;;  %v3631_v27 = vld [vmem:[%s3715_s3] sm:$0xff] }
 0x1c4   : > { %v1786_v63 = vpop.f32.mrf.mxu1  ;;  %v3594_v0 = vpop.f32.mrf.mxu0 }
 0x1c6   : > { %v1787_v1 = vpop.f32.mrf.mxu1  ;;  %v3596_v2 = vpop.f32.mrf.mxu0 }
 0x1c8   : > { %v1827_v4 = vpop.f32.mrf.mxu0  ;;  %v3598_v6 = vpop.f32.mrf.mxu1 }
 0x1c9   : > { %v1872_v4 = vadd.f32 %v1702_v54, %v3570_v17  ;;  %v2757_v17 = vsub.s32 1, %v3110_v3  ;;  %v2761_v54 = vsub.s32 2, %v3110_v3 }
 0x1ca   : > { %v1828_v7 = vpop.f32.mrf.mxu0  ;;  %v3600_v9 = vpop.f32.mrf.mxu1 }
 0x1cc   : > { %v1868_v10 = vpop.f32.mrf.mxu1  ;;  %v1980_v11 = vpop.f32.mrf.mxu0 }
 0x1cd   : > { %v2151_v7 = vadd.f32 %v1980_v11, %v1871_v61  ;;  %v2765_v11 = vsub.s32 3, %v3110_v3 }
 0x1ce   : > { %v1869_v13 = vpop.f32.mrf.mxu1  ;;  %v1982_v21 = vpop.f32.mrf.mxu0 }
 0x1d0   : > { %v1984_v22 = vpop.f32.mrf.mxu0  ;;  %v2021_v8 = vpop.f32.mrf.mxu1 }
 0x1d1   : > { %v2753_v22 = vsub.s32 0, %v3110_v3 }
 0x1d2   : > { %v1985_v15 = vpop.f32.mrf.mxu0  ;;  %v2023_v23 = vpop.f32.mrf.mxu1 }
 0x1d3   : > { %v1873_v15 = vadd.f32 %v1741_v56, %v3572_v32  ;;  %v1874_v32 = vadd.f32 %v3588_v58, %v3574_v19  ;;  %v2758_v58 = vrot.slane %v3631_v27, %v2757_v17 }
 0x1d4   : > { %v2025_v24 = vpop.f32.mrf.mxu1  ;;  %v2062_v25 = vpop.f32.mrf.mxu0 }
 0x1d5   : > { %v2152_v24 = vadd.f32 %v1982_v21, %v1872_v4  ;;  %v2153_v56 = vadd.f32 %v2021_v8, %v1873_v15  ;;  %v2773_v15 = vsub.s32 5, %v3110_v3 }
 0x1d6   : > { %v2026_v12 = vpop.f32.mrf.mxu1  ;;  %v3602_v16 = vpop.f32.mrf.mxu0 }
 0x1d8   : > { %v2066_v26 = vpop.f32.mrf.mxu0  ;;  %v3604_v29 = vpop.f32.mrf.mxu1 }
 0x1d9   : > { %v3626_v26 = vpop.permute.xlu0 %2724 }
 0x1da   : > { %v2067_v30 = vpop.f32.mrf.mxu0  ;;  %v3606_v18 = vpop.f32.mrf.mxu1 }
 0x1dc   : > { %v2107_v31 = vpop.f32.mrf.mxu1  ;;  %v3608_v33 = vpop.f32.mrf.mxu0 }
 0x1de   : > { %v2108_v34 = vpop.f32.mrf.mxu1  ;;  %v3610_v35 = vpop.f32.mrf.mxu0 }
 0x1df   : > { %v1875_v34 = vadd.f32 %v3590_v60, %v3576_v36  ;;  %v2762_v60 = vrot.slane %v3631_v27, %v2761_v54 }
 0x1e0   : > { %v2148_v20 = vpop.f32.mrf.mxu0  ;;  %v2260_v37 = vpop.f32.mrf.mxu1 }
 0x1e1   : > { %v2431_v12 = vadd.f32 %v2260_v37, %v2151_v7  ;;  %v2155_v19 = vadd.f32 %v2062_v25, %v1875_v34  ;;  %v1877_v25 = vadd.f32 %v3594_v0, %v3580_v42 }
 0x1e2   : > { %v2149_v38 = vpop.f32.mrf.mxu0  ;;  %v2262_v40 = vpop.f32.mrf.mxu1 }
 0x1e3   : > { %v2432_v21 = vadd.f32 %v2262_v40, %v2152_v24  ;;  %v2754_v38 = vrot.slane %v3631_v27, %v2753_v22  ;;  %v2766_v40 = vrot.slane %v3631_v27, %v2765_v11 }
 0x1e4   : > { %v2264_v41 = vpop.f32.mrf.mxu1  ;;  %v2301_v43 = vpop.f32.mrf.mxu0 }
 0x1e5   : > { %v2769_v41 = vsub.s32 4, %v3110_v3 }
 0x1e6   : > { %v2265_v28 = vpop.f32.mrf.mxu1  ;;  %v2303_v45 = vpop.f32.mrf.mxu0 }
 0x1e7   : > { %v2154_v28 = vadd.f32 %v2023_v23, %v1874_v32 }
 0x1e8   : > { %v2305_v46 = vpop.f32.mrf.mxu0  ;;  %v2342_v48 = vpop.f32.mrf.mxu1 }
 0x1e9   : > { %v2433_v46 = vadd.f32 %v2301_v43, %v2153_v56  ;;  %v1876_v43 = vadd.f32 %v3592_v62, %v3578_v39  ;;  %v2435_v24 = vadd.f32 %v2342_v48, %v2155_v19  ;;  %v2157_v39 = vadd.f32 %v3604_v29, %v1877_v25 }
 0x1ea   : > { %v2306_v49 = vpop.f32.mrf.mxu0  ;;  %v3612_v51 = vpop.f32.mrf.mxu1  ;;  %v1879_v48 = vadd.f32 %v3598_v6, %v3584_v47 }
 0x1eb   : > { %v2156_v54 = vadd.f32 %v3602_v16, %v1876_v43  ;;  %v2777_v16 = vsub.s32 6, %v3110_v3  ;;  %v2748_v43 = vld [vmem:[%s3715_s3 + $0x8] sm:$0x3] }
 0x1ec   : > { %v2346_v53 = vpop.f32.mrf.mxu1  ;;  %v3614_v55 = vpop.f32.mrf.mxu0 }
 0x1ed   : > { %v2436_v34 = vadd.f32 %v3612_v51, %v2156_v54  ;;  %v2437_v29 = vadd.f32 %v3614_v55, %v2157_v39  ;;  %v2781_v51 = vsub.s32 7, %v3110_v3  ;;  %v2786_v54 = vrot.slane %v2748_v43, %v2753_v22 }
 0x1ee   : > { %v2347_v57 = vpop.f32.mrf.mxu1  ;;  %v3616_v59 = vpop.f32.mrf.mxu0 }
 0x1ef   : > { %v2434_v57 = vadd.f32 %v2303_v45, %v2154_v28  ;;  %v2159_v28 = vadd.f32 %v3608_v33, %v1879_v48 }
 0x1f0   : > { %v2387_v63 = vpop.f32.mrf.mxu0  ;;  %v3619_v1 = vpop.f32.mrf.mxu1 }
 0x1f1   : > { %v2439_v33 = vadd.f32 %v3619_v1, %v2159_v28 }
 0x1f2   : > { %v2388_v10 = vpop.f32.mrf.mxu0  ;;  %v3622_v13 = vpop.f32.mrf.mxu1 }
 0x1f3   : > { %v2770_v10 = vrot.slane %v3631_v27, %v2769_v41  ;;  %v1880_v41 = vadd.f32 %v3600_v9, %v3586_v50 }
 0x1f4   : > { %v2428_v52 = vpop.f32.mrf.mxu1  ;;  %v2540_v30 = vpop.f32.mrf.mxu0 }
 0x1f5   : > { %v2711_v31 = vadd.f32 %v2540_v30, %v2431_v12  ;;  %v1878_v30 = vadd.f32 %v3596_v2, %v3582_v44  ;;  %v2160_v55 = vadd.f32 %v3610_v35, %v1880_v41  ;;  %v2782_v35 = vrot.slane %v3631_v27, %v2781_v51 }
 0x1f6   : > { %v2429_v20 = vpop.f32.mrf.mxu1  ;;  %v2542_v37 = vpop.f32.mrf.mxu0 }
 0x1f7   : > { %v2712_v49 = vadd.f32 %v2542_v37, %v2432_v21  ;;  %v2727_v53 = vadd.f32 %v3626_v26, %v2711_v31  ;;  %v2158_v31 = vadd.f32 %v3606_v18, %v1878_v30 }
 0x1f8   : > { %v2544_v8 = vpop.f32.mrf.mxu0  ;;  %v2581_v36 = vpop.f32.mrf.mxu1 }
 0x1f9   : > { %v2728_v61 = vadd.f32 %v3626_v26, %v2712_v49  ;;  %v2737_v63 = vmax.f32 %v2727_v53, 0.0  ;;  %v2713_v23 = vadd.f32 %v2581_v36, %v2433_v46  ;;  %v2438_v46 = vadd.f32 %v3616_v59, %v2158_v31 }
 0x1fa   : > { %v2545_v4 = vpop.f32.mrf.mxu0  ;;  %v2583_v7 = vpop.f32.mrf.mxu1  ;;  %v2774_v36 = vrot.slane %v3631_v27, %v2773_v15  ;;  %v2440_v59 = vadd.f32 %v3622_v13, %v2160_v55 }
 0x1fb   : > { %v2738_v12 = vmax.f32 %v2728_v61, 0.0  ;;  %v2729_v45 = vadd.f32 %v3626_v26, %v2713_v23  ;;  %v2714_v52 = vadd.f32 %v2583_v7, %v2434_v57  ;;  %v2801_v62 = vmul.f32 %v2754_v38, %v2737_v63 }
 0x1fc   : > { %v2585_v42 = vpop.f32.mrf.mxu1  ;;  %v2622_v0 = vpop.f32.mrf.mxu0 }
 0x1fd   : > { %v2802_v11 = vmul.f32 %v2758_v58, %v2738_v12  ;;  %v2739_v32 = vmax.f32 %v2729_v45, 0.0  ;;  %v2730_v56 = vadd.f32 %v3626_v26, %v2714_v52  ;;  %v2715_v21 = vadd.f32 %v2622_v0, %v2435_v24 }
 0x1fe   : > { %v2586_v44 = vpop.f32.mrf.mxu1  ;;  %v2624_v2 = vpop.f32.mrf.mxu0  ;;  %v2790_v42 = vrot.slane %v2748_v43, %v2757_v17 }
 0x1ff   : > { %v3024_v20 = vpack.c.bf16 %v2802_v11, %v2801_v62  ;;  %v2740_v37 = vmax.f32 %v2730_v56, 0.0  ;;  %v2731_v38 = vadd.f32 %v3626_v26, %v2715_v21  ;;  %v2716_v47 = vadd.f32 %v2624_v2, %v2436_v34 }
 0x200   : > { %v2626_v6 = vpop.f32.mrf.mxu0  ;;  %v2663_v18 = vpop.f32.mrf.mxu1  ;;  %v2803_v49 = vmul.f32 %v2762_v60, %v2739_v32 }
 0x201   : > { %v2804_v53 = vmul.f32 %v2766_v40, %v2740_v37  ;;  %v2717_v19 = vadd.f32 %v2663_v18, %v2437_v29  ;;  %v2741_v58 = vmax.f32 %v2731_v38, 0.0  ;;  %v2732_v8 = vadd.f32 %v3626_v26, %v2716_v47 }
 0x202   : > { %v2627_v50 = vpop.f32.mrf.mxu0  ;;  %v2665_v9 = vpop.f32.mrf.mxu1  ;;  %v2778_v40 = vrot.slane %v3631_v27, %v2777_v16  ;;  %v2843_v52 = vrot.slane %v3024_v20, %v3114_v5 }
 0x203   : > { %v3025_v57 = vpack.c.bf16 %v2804_v53, %v2803_v49  ;;  %v2733_v61 = vadd.f32 %v3626_v26, %v2717_v19  ;;  %v2718_v63 = vadd.f32 %v2665_v9, %v2438_v46  ;;  %v2742_v60 = vmax.f32 %v2732_v8, 0.0 }
 0x204   : > { %v2704_v23 = vpop.f32.mrf.mxu0  ;;  %v2667_v25 = vpop.f32.mrf.mxu1  ;;  %v2805_v24 = vmul.f32 %v2770_v10, %v2741_v58 }
 0x205   : > { %v2743_v4 = vmax.f32 %v2733_v61, 0.0  ;;  %v2734_v1 = vadd.f32 %v3626_v26, %v2718_v63  ;;  %v2719_v7 = vadd.f32 %v2704_v23, %v2439_v33  ;;  %v2850_v15 = vrot.slane %v3025_v57, %v3114_v5 }
 0x206   : > { %v2806_v12 = vmul.f32 %v2774_v36, %v2742_v60  ;;  %v2706_v13 = vpop.f32.mrf.mxu0  ;;  %v2668_v45 = vpop.f32.mrf.mxu1 }
 0x207   : > { %v2744_v27 = vmax.f32 %v2734_v1, 0.0  ;;  %v2735_v30 = vadd.f32 %v3626_v26, %v2719_v7  ;;  %v2720_v39 = vadd.f32 %v2706_v13, %v2440_v59  ;;  %v2851_v11 = vcombine.low %v2843_v52, %v2850_v15 }
 0x208   : > { %v3026_v62 = vpack.c.bf16 %v2806_v12, %v2805_v24  ;;  %v2708_v0 = vpop.f32.mrf.mxu0  ;;  %v2807_v10 = vmul.f32 %v2778_v40, %v2743_v4 }
 0x209   : > { %v2808_v32 = vmul.f32 %v2782_v35, %v2744_v27  ;;  %v2745_v56 = vmax.f32 %v2735_v30, 0.0  ;;  %v2736_v21 = vadd.f32 %v3626_v26, %v2720_v39  ;;  %2877 = vrot.lane.b32.xlu1 %v2851_v11, %s3074_s5 }
 0x20a   : > { %v2709_v48 = vpop.f32.mrf.mxu0  ;;  %v2860_v3 = vrot.slane %v3026_v62, %v3114_v5 }
 0x20b   : > { %v3027_v31 = vpack.c.bf16 %v2808_v32, %v2807_v10  ;;  %v2746_v22 = vmax.f32 %v2736_v21, 0.0  ;;  %v2809_v34 = vmul.f32 %v2786_v54, %v2745_v56 }
 0x20d   : > { %v2810_v44 = vmul.f32 %v2790_v42, %v2746_v22  ;;  %v2867_v17 = vrot.slane %v3027_v31, %v3114_v5 }
 0x20f   : > { %v2868_v2 = vcombine.low %v2860_v3, %v2867_v17  ;;  %v3028_v16 = vpack.c.bf16 %v2810_v44, %v2809_v34 }
 0x211   : > { %2879 = vrot.lane.b32.xlu1 %v2868_v2, %s3074_s5  ;;  %v2876_v29 = vrot.slane %v3028_v16, %v3114_v5 }
 0x213   : > { %2881 = vrot.lane.b32.xlu0 %v2876_v29, %s3074_s5 }
 0x27b   : > { %v2878_v14 = vpop.permute.xlu1 %2877 }
 0x27c   : > { %v2883_v26 = vrot.slane %v2878_v14, 6 }
 0x27e   : > { %v2887_v20 = vsel %vm2886_vm4, %v2883_v26, %v2878_v14 }
 0x27f   : > { %2903 = vst.msk [vmem:[%s3564_s28] sm:$0xff] %vm2902_vm5, %v2887_v20 }
 0x283   : > { %v2880_v37 = vpop.permute.xlu1 %2879 }
 0x284   : > { %v2884_v38 = vrot.slane %v2880_v37, 6 }
 0x285   : > { %v2882_v5 = vpop.permute.xlu0 %2881 }
 0x286   : > { %v2889_v41 = vsel %vm285_vm2, %v2883_v26, %v2884_v38  ;;  %v2885_v28 = vrot.slane %v2882_v5, 6 }
 0x287   : > { %v2890_v47 = vsel %vm2886_vm4, %v2889_v41, %v2880_v37 }
 0x288   : > { %2904 = vst [vmem:[%s3564_s28 + $0x8] sm:$0xff] %v2890_v47  ;;  %v2891_v6 = vsel %vm285_vm2, %v2884_v38, %v2885_v28 }
 0x289   : > { %v2892_v18 = vsel %vm2886_vm4, %v2891_v6, %v2882_v5 }
 0x28a   : > { %2907 = vst.msk [vmem:[%s3564_s28 + $0x10] sm:$0xf] %vm2906_vm7, %v2892_v18 }
 0x28b PF: > { %s14_s15 = sadd.s32 1, %s3061_s15  }
 0x28c   : > { %p11_p4 = scmp.ge.s32.totalorder %s14_s15, 6  }
 0x28e   :  { %13 = sbr.rel (!%p11_p4) target bundleno = 1 (0x1), region = 74 }

// kernel: vgg_contrastive_loss.20
= control target key start
LH: loop header
LB: loop body
LE: loop exit
PB: predicated region body
PF: predicated region fallthrough
CT: control target
= control target key end

     0   :  { %s1469_s15 = smov 0   ;;  %s1618_s0 = inlined_call_operand.vmem [shape: bf16[4,8,362], index: 0, kind: input, shape index: {}]   ;;  %s1619_s1 = inlined_call_operand.vmem [shape: bf16[9,8,8], index: 1, kind: input, shape index: {}]   ;;  %s1620_s2 = inlined_call_operand.vmem [shape: f32[8,1], index: 2, kind: input, shape index: {}]   ;;  %s1621_s3 = inlined_call_operand.vmem [shape: f32[1,324], index: 3, kind: input, shape index: {}]   ;;  %s1622_s4 = inlined_call_operand.vmem [shape: bf16[4,8,362], index: 4, kind: output, shape index: {}]  }
   0x1 LB: > { %s1276_s16 = sadd.s32 4294967295, %s1430_s15   ;;  %p1280_p0 = scmp.ge.s32.totalorder %s1430_s15, 1  ;;  %s1430_s15 = sphi %s1469_s15, %s14_s15  }
   0x2   : > { %p162_p1 = scmp.lt.s32.totalorder %s1430_s15, 5 }
   0x4   : > { %p163_p2 = pnand %p1280_p0, %p162_p1 }
   0x5   : > { %p188_p3 = scmp.lt.s32.totalorder (!%p163_p2), %s1276_s16, 3  ;;  %s1435_s21 = smov (!%p163_p2), 127  }
   0x6   : > { %166 = sbr.rel (%p163_p2) target bundleno = 532 (0x214), region = 36  ;;  %s1436_s22 = smov (!%p163_p2), 126  }
   0x7   : > { %s1437_s23 = smov (!%p163_p2), 110   ;;  %s1438_s24 = smov (!%p163_p2), 109  }
   0x8   : > { %s1439_s25 = smov (!%p163_p2), 108   ;;  %s1440_s26 = smov (!%p163_p2), 92  }
   0x9   : > { %s1441_s27 = smov (!%p163_p2), 91   ;;  %s1442_s28 = smov (!%p163_p2), 90  }
   0xa   : > { %s1443_s29 = smov (!%p163_p2), 19  }
   0xb   : > { %v1432_v0 = vmov 0.0   ;;  %vm1433_vm0 = vmmov 0   ;;  %s1624_s16 = smov (!%p188_p3, %s1276_s16), 3  ;;  %v1434_v1 = vmov 0   ;;  %v1158_v6 = vld [vmem:[%s1620_s2] sm:$0xff]  ;;  %vm225_vm1 = vcmask 1043456  }
   0xc   : > { %1345 = vmatprep.subr.bf16.mxu1 %v1432_v0  ;;  %1347 = vmatprep.mubr.msk.bf16.mxu1 %vm1433_vm0, %v1432_v0  ;;  %s1399_s17 = smul.u32 12, %s1624_s16  ;;  %v1283_v10 = vld [vmem:[%s1619_s1 + $0x4] sm:$0xf]  ;;  %vm221_vm2 = vcmask 64512   ;;  %vm218_vm3 = vcmask 1039360   ;;  %vm417_vm4 = vcmask 1031168  }
   0xd   : > { %267 = vmatprep.mubr.bf16.mxu0 %v1434_v1  ;;  %1420 = vset.pattern.permute.xlu0 %v1434_v1  ;;  %v201_v20 = vld [vmem:[%s1619_s1] sm:$0xf]  ;;  %vm524_vm5 = vcmask 900096   ;;  %v1293_v29 = vld [vmem:[%s1619_s1 + $0x8] sm:$0xf]  ;;  %vm631_vm6 = vcmask 891904  }
   0xe   : > { %s192_s20 = scalar_lea.vmem %s1618_s0, %s1399_s17  ;;  %v1297_v37 = vld [vmem:[%s1619_s1 + $0xc] sm:$0xf]  ;;  %vm738_vm7 = vcmask 883712   ;;  %v1301_v45 = vld [vmem:[%s1619_s1 + $0x10] sm:$0xf]  ;;  %vm845_vm8 = vcmask 752640  }
   0xf   : > { %v1421_v2 = vld [vmem:[%s192_s20 + $0x8] ss:$0 sps:$4 sm:$0xff]   ;;  %v199_v3 = vld [vmem:[%s192_s20] sm:$0xff]  ;;  %v1305_v53 = vld [vmem:[%s1619_s1 + $0x14] sm:$0xf]  ;;  %vm952_vm9 = vcmask 744448  }
  0x10   : > { %v1284_v4 = vcombine.low %v199_v3, %v199_v3  ;;  %216 = vrot.lane.b32.xlu1 %v1421_v2, %s1435_s21  ;;  %v1285_v5 = vcombine.high %v199_v3, %v199_v3  ;;  %v326_v11 = vsel %vm225_vm1, %v1421_v2, 0  ;;  %v1309_v61 = vld [vmem:[%s1619_s1 + $0x18] sm:$0xf]  ;;  %vm1059_vm10 = vcmask 736256  }
  0x11   : > { %vm1190_vm11 = vcmask 150528   ;;  %vm1192_vm12 = vcmask 863928   ;;  %vm1215_vm13 = vcmask 1043608   ;;  %vm1216_vm14 = vcmask 1047556  }
  0x12   : > { %212 = vrot.lane.b32.xlu0 %v1284_v4, %s1435_s21  ;;  %v320_v18 = vsel %vm225_vm1, %v1284_v4, 0  ;;  %vm1210_vm15 = vcmask 154624  }
  0x14   : > { %411 = vrot.lane.b32.xlu1 %v1284_v4, %s1436_s22 }
  0x16   : > { %214 = vrot.lane.b32.xlu0 %v1285_v5, %s1435_s21 }
  0x18   : > { %415 = vrot.lane.b32.xlu1 %v1421_v2, %s1436_s22 }
  0x1a   : > { %413 = vrot.lane.b32.xlu0 %v1285_v5, %s1436_s22 }
  0x1c   : > { %520 = vrot.lane.b32.xlu1 %v1285_v5, %s1437_s23 }
  0x1e   : > { %518 = vrot.lane.b32.xlu0 %v1284_v4, %s1437_s23 }
  0x20   : > { %625 = vrot.lane.b32.xlu1 %v1284_v4, %s1438_s24 }
  0x22   : > { %522 = vrot.lane.b32.xlu0 %v1421_v2, %s1437_s23 }
  0x24   : > { %629 = vrot.lane.b32.xlu1 %v1421_v2, %s1438_s24 }
  0x26   : > { %627 = vrot.lane.b32.xlu0 %v1285_v5, %s1438_s24 }
  0x28   : > { %734 = vrot.lane.b32.xlu1 %v1285_v5, %s1439_s25 }
  0x2a   : > { %732 = vrot.lane.b32.xlu0 %v1284_v4, %s1439_s25 }
  0x2c   : > { %839 = vrot.lane.b32.xlu1 %v1284_v4, %s1440_s26 }
  0x2e   : > { %736 = vrot.lane.b32.xlu0 %v1421_v2, %s1439_s25 }
  0x30   : > { %843 = vrot.lane.b32.xlu1 %v1421_v2, %s1440_s26 }
  0x32   : > { %841 = vrot.lane.b32.xlu0 %v1285_v5, %s1440_s26 }
  0x34   : > { %948 = vrot.lane.b32.xlu1 %v1285_v5, %s1441_s27 }
  0x36   : > { %946 = vrot.lane.b32.xlu0 %v1284_v4, %s1441_s27 }
  0x38   : > { %1053 = vrot.lane.b32.xlu1 %v1284_v4, %s1442_s28 }
  0x3a   : > { %950 = vrot.lane.b32.xlu0 %v1421_v2, %s1441_s27 }
  0x3c   : > { %1057 = vrot.lane.b32.xlu1 %v1421_v2, %s1442_s28 }
  0x3e   : > { %1055 = vrot.lane.b32.xlu0 %v1285_v5, %s1442_s28  ;;  %s1604_s28 = scalar_lea.vmem %s1622_s4, %s1399_s17 }
  0x3f   : > { %1191 = vst.msk [vmem:[%s1604_s28] sm:$0xf] %vm1190_vm11, %v1434_v1 }
  0x40   : > { %1193 = vst.msk [vmem:[%s1604_s28 + $0x8] sm:$0xf] %vm1192_vm12, %v1434_v1 }
  0x42   : > { %1161 = vperm.xlu0 %1420, %v1158_v6   ;;  %v1313_v6 = vld [vmem:[%s1619_s1 + $0x1c] sm:$0xf] }
  0x82   : > { %v217_v7 = vpop.permute.xlu1 %216 }
  0x83   : > { %v233_v9 = vsel %vm225_vm1, %v217_v7, 0 }
  0x84   : > { %v213_v8 = vpop.permute.xlu0 %212  ;;  %1346 = vmatpush3.bf16.msra.mxu1 %v233_v9 }
  0x85   : > { %1351 = vmatprep.subr.bf16.mxu1 %v1432_v0 }
  0x86   : > { %v412_v12 = vpop.permute.xlu1 %411 }
  0x87   : > { %1348 = vmatmul.mubr.msk.bf16.vlgmr.msra.gmra.mxu1 %vm221_vm2, %v1283_v10 }
  0x88   : > { %v215_v13 = vpop.permute.xlu0 %214  ;;  %1352 = vmatpush3.bf16.msra.mxu1 %v326_v11  ;;  %1353 = vmatprep.mubr.msk.bf16.mxu1 %vm1433_vm0, %v1432_v0  ;;  %v1317_v11 = vld [vmem:[%s1619_s1 + $0x20] sm:$0xf] }
  0x89   : > { %v220_v14 = vsel %vm218_vm3, %v215_v13, %v217_v7  ;;  %v219_v15 = vsel %vm218_vm3, %v213_v8, %v215_v13  ;;  %1357 = vmatprep.subr.bf16.mxu1 %v1432_v0 }
  0x8a   : > { %1287 = vmatprep.subr.msk.bf16.mxu0 %vm225_vm1, %v220_v14  ;;  %v227_v16 = vsel %vm225_vm1, %v219_v15, 0  ;;  %v416_v17 = vpop.permute.xlu1 %415 }
  0x8b   : > { %250 = vmatpush1.bf16.msra.mxu0 %v227_v16  ;;  %v430_v22 = vsel %vm225_vm1, %v416_v17, 0 }
  0x8c   : > { %1290 = vmatprep.subr.msk.bf16.mxu0 %vm225_vm1, %v1285_v5  ;;  %v414_v19 = vpop.permute.xlu0 %413 }
  0x8d   : > { %v419_v21 = vsel %vm417_vm4, %v414_v19, %v416_v17  ;;  %v418_v25 = vsel %vm417_vm4, %v412_v12, %v414_v19 }
  0x8e   : > { %1288 = vmatmul.mubr.msk.bf16.vlgmr.msra.gmra.mxu0 %vm221_vm2, %v1283_v10  ;;  %v521_v23 = vpop.permute.xlu1 %520  ;;  %v424_v26 = vsel %vm225_vm1, %v418_v25, 0 }
  0x8f   : > { %343 = vmatpush1.bf16.msra.mxu0 %v320_v18  ;;  %360 = vmatprep.mubr.bf16.mxu0 %v1434_v1 }
  0x90   : > { %1354 = vmatmul.mubr.msk.bf16.vlgmr.msra.gmra.mxu1 %vm221_vm2, %v201_v20  ;;  %1294 = vmatprep.subr.msk.bf16.mxu0 %vm225_vm1, %v419_v21  ;;  %v519_v24 = vpop.permute.xlu0 %518 }
  0x91   : > { %1358 = vmatpush3.bf16.msra.mxu1 %v430_v22  ;;  %1359 = vmatprep.mubr.msk.bf16.mxu1 %vm1433_vm0, %v1432_v0  ;;  %v525_v33 = vsel %vm524_vm5, %v519_v24, %v521_v23 }
  0x92   : > { %1363 = vmatprep.subr.bf16.mxu1 %v1432_v0  ;;  %v626_v28 = vpop.permute.xlu1 %625  ;;  %v531_v35 = vsel %vm225_vm1, %v525_v33, 0 }
  0x94   : > { %v523_v27 = vpop.permute.xlu0 %522 }
  0x95   : > { %v526_v30 = vsel %vm524_vm5, %v521_v23, %v523_v27  ;;  %v537_v31 = vsel %vm225_vm1, %v523_v27, 0 }
  0x96   : > { %1291 = vmatmul.mubr.msk.bf16.vlgmr.msra.gmra.mxu0 %vm221_vm2, %v201_v20  ;;  %v630_v34 = vpop.permute.xlu1 %629 }
  0x97   : > { %447 = vmatpush1.bf16.msra.mxu0 %v424_v26  ;;  %464 = vmatprep.mubr.bf16.mxu0 %v1434_v1  ;;  %v644_v39 = vsel %vm225_vm1, %v630_v34, 0 }
  0x98   : > { %1360 = vmatmul.mubr.msk.bf16.vlgmr.msra.gmra.mxu1 %vm221_vm2, %v1293_v29  ;;  %1298 = vmatprep.subr.msk.bf16.mxu0 %vm225_vm1, %v526_v30  ;;  %v628_v32 = vpop.permute.xlu0 %627 }
  0x99   : > { %1364 = vmatpush3.bf16.msra.mxu1 %v537_v31  ;;  %1365 = vmatprep.mubr.msk.bf16.mxu1 %vm1433_vm0, %v1432_v0  ;;  %v633_v38 = vsel %vm631_vm6, %v628_v32, %v630_v34  ;;  %v632_v41 = vsel %vm631_vm6, %v626_v28, %v628_v32 }
  0x9a   : > { %1369 = vmatprep.subr.bf16.mxu1 %v1432_v0  ;;  %v735_v40 = vpop.permute.xlu1 %734  ;;  %v638_v43 = vsel %vm225_vm1, %v632_v41, 0 }
  0x9c   : > { %v733_v36 = vpop.permute.xlu0 %732 }
  0x9d   : > { %v739_v49 = vsel %vm738_vm7, %v733_v36, %v735_v40 }
  0x9e   : > { %1295 = vmatmul.mubr.msk.bf16.vlgmr.msra.gmra.mxu0 %vm221_vm2, %v1293_v29  ;;  %v840_v44 = vpop.permute.xlu1 %839  ;;  %v745_v51 = vsel %vm225_vm1, %v739_v49, 0 }
  0x9f   : > { %554 = vmatpush1.bf16.msra.mxu0 %v531_v35  ;;  %571 = vmatprep.mubr.bf16.mxu0 %v1434_v1 }
  0xa0   : > { %1366 = vmatmul.mubr.msk.bf16.vlgmr.msra.gmra.mxu1 %vm221_vm2, %v1297_v37  ;;  %1302 = vmatprep.subr.msk.bf16.mxu0 %vm225_vm1, %v633_v38  ;;  %v737_v42 = vpop.permute.xlu0 %736 }
  0xa1   : > { %1370 = vmatpush3.bf16.msra.mxu1 %v644_v39  ;;  %1371 = vmatprep.mubr.msk.bf16.mxu1 %vm1433_vm0, %v1432_v0  ;;  %v740_v46 = vsel %vm738_vm7, %v735_v40, %v737_v42  ;;  %v751_v47 = vsel %vm225_vm1, %v737_v42, 0 }
  0xa2   : > { %1375 = vmatprep.subr.bf16.mxu1 %v1432_v0  ;;  %v844_v50 = vpop.permute.xlu1 %843 }
  0xa3   : > { %v858_v55 = vsel %vm225_vm1, %v844_v50, 0 }
  0xa4   : > { %v842_v48 = vpop.permute.xlu0 %841 }
  0xa5   : > { %v847_v54 = vsel %vm845_vm8, %v842_v48, %v844_v50  ;;  %v846_v57 = vsel %vm845_vm8, %v840_v44, %v842_v48 }
  0xa6   : > { %1299 = vmatmul.mubr.msk.bf16.vlgmr.msra.gmra.mxu0 %vm221_vm2, %v1297_v37  ;;  %v949_v56 = vpop.permute.xlu1 %948  ;;  %v852_v59 = vsel %vm225_vm1, %v846_v57, 0 }
  0xa7   : > { %661 = vmatpush1.bf16.msra.mxu0 %v638_v43  ;;  %678 = vmatprep.mubr.bf16.mxu0 %v1434_v1 }
  0xa8   : > { %1372 = vmatmul.mubr.msk.bf16.vlgmr.msra.gmra.mxu1 %vm221_vm2, %v1301_v45  ;;  %1306 = vmatprep.subr.msk.bf16.mxu0 %vm225_vm1, %v740_v46  ;;  %v947_v52 = vpop.permute.xlu0 %946 }
  0xa9   : > { %1376 = vmatpush3.bf16.msra.mxu1 %v751_v47  ;;  %1377 = vmatprep.mubr.msk.bf16.mxu1 %vm1433_vm0, %v1432_v0  ;;  %v953_v2 = vsel %vm952_vm9, %v947_v52, %v949_v56 }
  0xaa   : > { %1381 = vmatprep.subr.bf16.mxu1 %v1432_v0  ;;  %v1054_v60 = vpop.permute.xlu1 %1053  ;;  %v959_v5 = vsel %vm225_vm1, %v953_v2, 0 }
  0xac   : > { %v951_v58 = vpop.permute.xlu0 %950 }
  0xad   : > { %v954_v62 = vsel %vm952_vm9, %v949_v56, %v951_v58  ;;  %v965_v63 = vsel %vm225_vm1, %v951_v58, 0 }
  0xae   : > { %1303 = vmatmul.mubr.msk.bf16.vlgmr.msra.gmra.mxu0 %vm221_vm2, %v1301_v45  ;;  %v1058_v4 = vpop.permute.xlu1 %1057 }
  0xaf   : > { %768 = vmatpush1.bf16.msra.mxu0 %v745_v51  ;;  %785 = vmatprep.mubr.bf16.mxu0 %v1434_v1  ;;  %v1072_v8 = vsel %vm225_vm1, %v1058_v4, 0 }
  0xb0   : > { %1378 = vmatmul.mubr.msk.bf16.vlgmr.msra.gmra.mxu1 %vm221_vm2, %v1305_v53  ;;  %1310 = vmatprep.subr.msk.bf16.mxu0 %vm225_vm1, %v847_v54  ;;  %v1056_v3 = vpop.permute.xlu0 %1055 }
  0xb1   : > { %1382 = vmatpush3.bf16.msra.mxu1 %v858_v55  ;;  %1383 = vmatprep.mubr.msk.bf16.mxu1 %vm1433_vm0, %v1432_v0  ;;  %v1061_v7 = vsel %vm1059_vm10, %v1056_v3, %v1058_v4  ;;  %v1060_v9 = vsel %vm1059_vm10, %v1054_v60, %v1056_v3 }
  0xb2   : > { %1387 = vmatprep.subr.bf16.mxu1 %v1432_v0  ;;  %v1066_v10 = vsel %vm225_vm1, %v1060_v9, 0 }
  0xb6   : > { %1307 = vmatmul.mubr.msk.bf16.vlgmr.msra.gmra.mxu0 %vm221_vm2, %v1305_v53 }
  0xb7   : > { %875 = vmatpush1.bf16.msra.mxu0 %v852_v59  ;;  %892 = vmatprep.mubr.bf16.mxu0 %v1434_v1 }
  0xb8   : > { %1384 = vmatmul.mubr.msk.bf16.vlgmr.msra.gmra.mxu1 %vm221_vm2, %v1309_v61  ;;  %1314 = vmatprep.subr.msk.bf16.mxu0 %vm225_vm1, %v954_v62 }
  0xb9   : > { %1388 = vmatpush3.bf16.msra.mxu1 %v965_v63  ;;  %1389 = vmatprep.mubr.msk.bf16.mxu1 %vm1433_vm0, %v1432_v0 }
  0xba   : > { %1393 = vmatprep.subr.bf16.mxu1 %v1432_v0 }
  0xbe   : > { %1311 = vmatmul.mubr.msk.bf16.vlgmr.msra.gmra.mxu0 %vm221_vm2, %v1309_v61 }
  0xbf   : > { %982 = vmatpush1.bf16.msra.mxu0 %v959_v5  ;;  %999 = vmatprep.mubr.bf16.mxu0 %v1434_v1 }
  0xc0   : > { %1390 = vmatmul.mubr.msk.bf16.vlgmr.msra.gmra.mxu1 %vm221_vm2, %v1313_v6  ;;  %1318 = vmatprep.subr.msk.bf16.mxu0 %vm225_vm1, %v1061_v7  ;;  %vm1219_vm1 = vcmask 707584  }
  0xc1   : > { %1394 = vmatpush3.bf16.msra.mxu1 %v1072_v8  ;;  %1395 = vmatprep.mubr.msk.bf16.mxu1 %vm1433_vm0, %v1432_v0  ;;  %vm1217_vm0 = vmor %vm1216_vm14, %vm1215_vm13 }
  0xc6   : > { %1315 = vmatmul.mubr.msk.bf16.vlgmr.msra.gmra.mxu0 %vm221_vm2, %v1313_v6 }
  0xc7   : > { %1089 = vmatpush1.bf16.msra.mxu0 %v1066_v10  ;;  %1106 = vmatprep.mubr.bf16.mxu0 %v1434_v1 }
  0xc8   : > { %1396 = vmatmul.mubr.msk.bf16.vlgmr.msra.gmra.mxu1 %vm221_vm2, %v1317_v11 }
  0xce   : > { %1319 = vmatmul.mubr.msk.bf16.vlgmr.msra.gmra.mxu0 %vm221_vm2, %v1317_v11 }
 0x147   : > { %v310_v0 = vpop.f32.mrf.mxu1 }
 0x149   : > { %v1349_v12 = vpop.f32.mrf.mxu1 }
 0x14b   : > { %v313_v13 = vpop.f32.mrf.mxu1 }
 0x14d   : > { %v1350_v15 = vpop.f32.mrf.mxu1 }
 0x14e   : > { %v269_v14 = vpop.f32.mrf.mxu0 }
 0x150   : > { %v271_v16 = vpop.f32.mrf.mxu0  ;;  %v403_v17 = vpop.f32.mrf.mxu1 }
 0x151   : > { %v404_v2 = vadd.f32 %v403_v17, %v310_v0 }
 0x152   : > { %v273_v18 = vpop.f32.mrf.mxu0  ;;  %v1355_v19 = vpop.f32.mrf.mxu1 }
 0x154   : > { %v274_v20 = vpop.f32.mrf.mxu0  ;;  %v406_v21 = vpop.f32.mrf.mxu1 }
 0x156   : > { %v362_v22 = vpop.f32.mrf.mxu0  ;;  %v1356_v23 = vpop.f32.mrf.mxu1 }
 0x157   : > { %v363_v5 = vadd.f32 %v362_v22, %v269_v14 }
 0x158   : > { %v364_v24 = vpop.f32.mrf.mxu0  ;;  %v507_v25 = vpop.f32.mrf.mxu1 }
 0x159   : > { %v515_v6 = vadd.f32 %v507_v25, %v404_v2  ;;  %v365_v9 = vadd.f32 %v364_v24, %v271_v16 }
 0x15a   : > { %v366_v26 = vpop.f32.mrf.mxu0  ;;  %v1361_v27 = vpop.f32.mrf.mxu1 }
 0x15c   : > { %v367_v28 = vpop.f32.mrf.mxu0  ;;  %v510_v29 = vpop.f32.mrf.mxu1 }
 0x15d   : > { %v1172_v28 = vlaneseq }
 0x15e   : > { %v466_v30 = vpop.f32.mrf.mxu0  ;;  %v1362_v31 = vpop.f32.mrf.mxu1 }
 0x15f   : > { %v513_v10 = vadd.f32 %v466_v30, %v363_v5 }
 0x160   : > { %v468_v32 = vpop.f32.mrf.mxu0  ;;  %v614_v33 = vpop.f32.mrf.mxu1 }
 0x161   : > { %v622_v11 = vadd.f32 %v614_v33, %v515_v6  ;;  %v514_v15 = vadd.f32 %v468_v32, %v365_v9  ;;  %v1173_v33 = vshrl.u32 %v1172_v28, 7 }
 0x162   : > { %v470_v34 = vpop.f32.mrf.mxu0  ;;  %v1367_v35 = vpop.f32.mrf.mxu1 }
 0x164   : > { %v471_v36 = vpop.f32.mrf.mxu0  ;;  %v617_v37 = vpop.f32.mrf.mxu1 }
 0x166   : > { %v573_v38 = vpop.f32.mrf.mxu0  ;;  %v1368_v39 = vpop.f32.mrf.mxu1 }
 0x167   : > { %v620_v18 = vadd.f32 %v573_v38, %v513_v10  ;;  %v1162_v38 = vpop.permute.xlu0 %1161 }
 0x168   : > { %v575_v40 = vpop.f32.mrf.mxu0  ;;  %v721_v41 = vpop.f32.mrf.mxu1 }
 0x169   : > { %v729_v19 = vadd.f32 %v721_v41, %v622_v11  ;;  %v621_v23 = vadd.f32 %v575_v40, %v514_v15 }
 0x16a   : > { %v577_v42 = vpop.f32.mrf.mxu0  ;;  %v1373_v43 = vpop.f32.mrf.mxu1 }
 0x16b   : > { %v1174_v43 = vsub.s32 0, %v1173_v33 }
 0x16c   : > { %v578_v44 = vpop.f32.mrf.mxu0  ;;  %v724_v45 = vpop.f32.mrf.mxu1 }
 0x16d   : > { %v1178_v44 = vsub.s32 1, %v1173_v33  ;;  %v1182_v45 = vsub.s32 2, %v1173_v33 }
 0x16e   : > { %v680_v46 = vpop.f32.mrf.mxu0  ;;  %v1374_v47 = vpop.f32.mrf.mxu1 }
 0x16f   : > { %v727_v26 = vadd.f32 %v680_v46, %v620_v18 }
 0x170   : > { %v682_v48 = vpop.f32.mrf.mxu0  ;;  %v828_v49 = vpop.f32.mrf.mxu1 }
 0x171   : > { %v836_v27 = vadd.f32 %v828_v49, %v729_v19  ;;  %v728_v14 = vadd.f32 %v682_v48, %v621_v23 }
 0x172   : > { %v684_v50 = vpop.f32.mrf.mxu0  ;;  %v1379_v51 = vpop.f32.mrf.mxu1 }
 0x173   : > { %v1170_v50 = vld [vmem:[%s1621_s3] sm:$0x7] }
 0x174   : > { %v685_v52 = vpop.f32.mrf.mxu0  ;;  %v831_v53 = vpop.f32.mrf.mxu1 }
 0x175   : > { %v1175_v53 = vrot.slane %v1170_v50, %v1174_v43 }
 0x176   : > { %v787_v54 = vpop.f32.mrf.mxu0  ;;  %v1380_v55 = vpop.f32.mrf.mxu1 }
 0x177   : > { %v834_v22 = vadd.f32 %v787_v54, %v727_v26  ;;  %v1179_v55 = vrot.slane %v1170_v50, %v1178_v44 }
 0x178   : > { %v789_v56 = vpop.f32.mrf.mxu0  ;;  %v935_v57 = vpop.f32.mrf.mxu1 }
 0x179   : > { %v943_v25 = vadd.f32 %v935_v57, %v836_v27  ;;  %v835_v24 = vadd.f32 %v789_v56, %v728_v14  ;;  %v1183_v57 = vrot.slane %v1170_v50, %v1182_v45 }
 0x17a   : > { %v791_v58 = vpop.f32.mrf.mxu0  ;;  %v1385_v59 = vpop.f32.mrf.mxu1 }
 0x17c   : > { %v792_v60 = vpop.f32.mrf.mxu0  ;;  %v938_v61 = vpop.f32.mrf.mxu1 }
 0x17e   : > { %v894_v62 = vpop.f32.mrf.mxu0  ;;  %v1386_v63 = vpop.f32.mrf.mxu1 }
 0x17f   : > { %v941_v30 = vadd.f32 %v894_v62, %v834_v22 }
 0x180   : > { %v896_v3 = vpop.f32.mrf.mxu0  ;;  %v1042_v4 = vpop.f32.mrf.mxu1 }
 0x181   : > { %v1050_v31 = vadd.f32 %v1042_v4, %v943_v25  ;;  %v942_v35 = vadd.f32 %v896_v3, %v835_v24 }
 0x182   : > { %v898_v7 = vpop.f32.mrf.mxu0  ;;  %v1391_v8 = vpop.f32.mrf.mxu1 }
 0x184   : > { %v899_v12 = vpop.f32.mrf.mxu0  ;;  %v1045_v13 = vpop.f32.mrf.mxu1 }
 0x186   : > { %v1001_v20 = vpop.f32.mrf.mxu0  ;;  %v1392_v21 = vpop.f32.mrf.mxu1 }
 0x187   : > { %v1048_v36 = vadd.f32 %v1001_v20, %v941_v30 }
 0x188   : > { %v1003_v0 = vpop.f32.mrf.mxu0  ;;  %v1149_v17 = vpop.f32.mrf.mxu1 }
 0x189   : > { %v1157_v37 = vadd.f32 %v1149_v17, %v1050_v31  ;;  %v1049_v41 = vadd.f32 %v1003_v0, %v942_v35 }
 0x18a   : > { %v1005_v29 = vpop.f32.mrf.mxu0  ;;  %v1397_v16 = vpop.f32.mrf.mxu1 }
 0x18b   : > { %v1166_v47 = vadd.f32 %v1162_v38, %v1157_v37 }
 0x18c   : > { %v1006_v32 = vpop.f32.mrf.mxu0  ;;  %v1152_v34 = vpop.f32.mrf.mxu1 }
 0x18d   : > { %v1169_v58 = vmax.f32 %v1166_v47, 0.0 }
 0x18e   : > { %v1108_v39 = vpop.f32.mrf.mxu0  ;;  %v1398_v40 = vpop.f32.mrf.mxu1 }
 0x18f   : > { %v1155_v42 = vadd.f32 %v1108_v39, %v1048_v36  ;;  %v1189_v62 = vmul.f32 %v1183_v57, %v1169_v58 }
 0x190   : > { %v1110_v46 = vpop.f32.mrf.mxu0 }
 0x191   : > { %v1164_v48 = vadd.f32 %v1162_v38, %v1155_v42  ;;  %v1156_v49 = vadd.f32 %v1110_v46, %v1049_v41  ;;  %v1326_v2 = vpack.c.bf16 %v1189_v62, %v1189_v62 }
 0x192   : > { %v1112_v51 = vpop.f32.mrf.mxu0 }
 0x193   : > { %v1167_v52 = vmax.f32 %v1164_v48, 0.0  ;;  %v1165_v54 = vadd.f32 %v1162_v38, %v1156_v49 }
 0x194   : > { %v1113_v56 = vpop.f32.mrf.mxu0 }
 0x195   : > { %v1168_v59 = vmax.f32 %v1165_v54, 0.0  ;;  %v1187_v60 = vmul.f32 %v1175_v53, %v1167_v52 }
 0x197   : > { %v1188_v61 = vmul.f32 %v1179_v55, %v1168_v59 }
 0x199   : > { %v1325_v63 = vpack.c.bf16 %v1188_v61, %v1187_v60 }
 0x19b   : > { %1205 = vrot.lane.b32.xlu1 %v1325_v63, %s1443_s29 }
 0x19f   : > { %1207 = vrot.lane.b32.xlu1 %v1326_v2, %s1443_s29 }
 0x20d   : > { %v1206_v1 = vpop.permute.xlu1 %1205 }
 0x20e   : > { %v1209_v3 = vrot.slane %v1206_v1, 4 }
 0x210   : > { %v1211_v4 = vsel %vm1210_vm15, %v1209_v3, %v1206_v1 }
 0x211   : > { %1218 = vst.msk [vmem:[%s1604_s28] sm:$0xff] %vm1217_vm0, %v1211_v4  ;;  %v1208_v5 = vpop.permute.xlu1 %1207 }
 0x212   : > { %v1212_v6 = vsel %vm1210_vm15, %v1209_v3, %v1208_v5 }
 0x213   : > { %1220 = vst.msk [vmem:[%s1604_s28 + $0x8] sm:$0xf] %vm1219_vm1, %v1212_v6 }
 0x214 PF: > { %s14_s15 = sadd.s32 1, %s1430_s15  }
 0x215   : > { %p11_p4 = scmp.ge.s32.totalorder %s14_s15, 6  }
 0x217   :  { %13 = sbr.rel (!%p11_p4) target bundleno = 1 (0x1), region = 74 }

// kernel: vgg_contrastive_loss.19
= control target key start
LH: loop header
LB: loop body
LE: loop exit
PB: predicated region body
PF: predicated region fallthrough
CT: control target
= control target key end

     0   :  { %s1475_s15 = smov 0   ;;  %s1627_s0 = inlined_call_operand.vmem [shape: bf16[4,4,362], index: 0, kind: input, shape index: {}]   ;;  %s1628_s1 = inlined_call_operand.vmem [shape: bf16[9,8,4], index: 1, kind: input, shape index: {}]   ;;  %s1629_s2 = inlined_call_operand.vmem [shape: f32[8,1], index: 2, kind: input, shape index: {}]   ;;  %s1630_s3 = inlined_call_operand.vmem [shape: f32[1,324], index: 3, kind: input, shape index: {}]   ;;  %s1631_s4 = inlined_call_operand.vmem [shape: bf16[4,8,362], index: 4, kind: output, shape index: {}]  }
   0x1 LB: > { %s1284_s16 = sadd.s32 4294967295, %s1435_s15   ;;  %p1288_p0 = scmp.ge.s32.totalorder %s1435_s15, 1  ;;  %s1435_s15 = sphi %s1475_s15, %s14_s15  }
   0x2   : > { %p162_p1 = scmp.lt.s32.totalorder %s1435_s15, 5 }
   0x4   : > { %p163_p2 = pnand %p1288_p0, %p162_p1 }
   0x5   : > { %p188_p3 = scmp.lt.s32.totalorder (!%p163_p2), %s1284_s16, 3  ;;  %s1441_s21 = smov (!%p163_p2), 127  }
   0x6   : > { %166 = sbr.rel (%p163_p2) target bundleno = 534 (0x216), region = 36  ;;  %s1442_s22 = smov (!%p163_p2), 126  }
   0x7   : > { %s1443_s23 = smov (!%p163_p2), 110   ;;  %s1444_s24 = smov (!%p163_p2), 109  }
   0x8   : > { %s1445_s25 = smov (!%p163_p2), 108   ;;  %s1446_s26 = smov (!%p163_p2), 92  }
   0x9   : > { %s1447_s27 = smov (!%p163_p2), 91   ;;  %s1448_s28 = smov (!%p163_p2), 90  }
   0xa   : > { %s1449_s30 = smov (!%p163_p2), 19  }
   0xb   : > { %v208_v0 = vlaneseq  ;;  %v1437_v1 = vmov 1983009808   ;;  %v1438_v3 = vmov 0.0   ;;  %s1633_s16 = smov (!%p188_p3, %s1284_s16), 3  ;;  %vm1439_vm0 = vmmov 0   ;;  %v1166_v13 = vld [vmem:[%s1629_s2] sm:$0xff] }
   0xc   : > { %v206_v2 = vunpack.c.l.s4 %v1437_v1  ;;  %1350 = vmatprep.subr.bf16.mxu1 %v1438_v3  ;;  %1352 = vmatprep.mubr.msk.bf16.mxu1 %vm1439_vm0, %v1438_v3  ;;  %s1404_s17 = smul.u32 6, %s1633_s16  ;;  %v1440_v6 = vmov 0   ;;  %vm233_vm1 = vcmask 1041408   ;;  %vm226_vm2 = vcmask 1039360   ;;  %v1291_v18 = vld [vmem:[%s1628_s1 + $0x4] sm:$0xf] }
   0xd   : > { %v1486_v4 = vshrl.u32 %v208_v0, 7  ;;  %275 = vmatprep.mubr.bf16.mxu0 %v1440_v6  ;;  %1427 = vset.pattern.permute.xlu0 %v1440_v6  ;;  %vm229_vm3 = vcmask 31744   ;;  %vm425_vm4 = vcmask 1031168   ;;  %v200_v28 = vld [vmem:[%s1628_s1] sm:$0xf]  ;;  %vm532_vm5 = vcmask 900096  }
   0xe   : > { %v207_v5 = vunpack.c.0.s8 %v206_v2  ;;  %s192_s20 = scalar_lea.vmem %s1627_s0, %s1404_s17  ;;  %v1298_v37 = vld [vmem:[%s1628_s1 + $0x8] sm:$0xf]  ;;  %vm639_vm6 = vcmask 891904   ;;  %v1302_v46 = vld [vmem:[%s1628_s1 + $0xc] sm:$0xf]  ;;  %vm746_vm7 = vcmask 883712  }
   0xf   : > { %v199_v8 = vld [vmem:[%s192_s20] sm:$0x3f]  ;;  %v1306_v54 = vld [vmem:[%s1628_s1 + $0x10] sm:$0xf]  ;;  %vm853_vm8 = vcmask 752640   ;;  %vm960_vm9 = vcmask 744448  }
  0x10   : > { %v210_v7 = vsub.s32 %v207_v5, %v1486_v4  ;;  %v204_v10 = vcombine.high %v199_v8, %v199_v8  ;;  %v1310_v62 = vld [vmem:[%s1628_s1 + $0x14] sm:$0xf]  ;;  %vm1067_vm10 = vcmask 736256   ;;  %vm1198_vm11 = vcmask 150528  }
  0x11   : > { %vm1200_vm12 = vcmask 863928   ;;  %vm1223_vm13 = vcmask 1043608   ;;  %vm1224_vm14 = vcmask 1047556   ;;  %vm1218_vm15 = vcmask 154624  }
  0x12   : > { %v211_v9 = vrot.slane %v199_v8, %v210_v7  ;;  %v218_v11 = vrot.slane %v204_v10, %v210_v7  ;;  %v1314_v8 = vld [vmem:[%s1628_s1 + $0x18] sm:$0xf] }
  0x14   : > { %220 = vrot.lane.b32.xlu0 %v211_v9, %s1441_s21  ;;  %v219_v12 = vcombine.high %v211_v9, %v211_v9  ;;  %224 = vrot.lane.b32.xlu1 %v218_v11, %s1441_s21  ;;  %v334_v21 = vsel %vm233_vm1, %v218_v11, 0  ;;  %v328_v24 = vsel %vm233_vm1, %v211_v9, 0 }
  0x18   : > { %222 = vrot.lane.b32.xlu0 %v219_v12, %s1441_s21  ;;  %419 = vrot.lane.b32.xlu1 %v211_v9, %s1442_s22 }
  0x1c   : > { %421 = vrot.lane.b32.xlu0 %v219_v12, %s1442_s22  ;;  %423 = vrot.lane.b32.xlu1 %v218_v11, %s1442_s22 }
  0x20   : > { %526 = vrot.lane.b32.xlu0 %v211_v9, %s1443_s23  ;;  %528 = vrot.lane.b32.xlu1 %v219_v12, %s1443_s23 }
  0x24   : > { %530 = vrot.lane.b32.xlu0 %v218_v11, %s1443_s23  ;;  %633 = vrot.lane.b32.xlu1 %v211_v9, %s1444_s24 }
  0x28   : > { %635 = vrot.lane.b32.xlu0 %v219_v12, %s1444_s24  ;;  %637 = vrot.lane.b32.xlu1 %v218_v11, %s1444_s24 }
  0x2c   : > { %740 = vrot.lane.b32.xlu0 %v211_v9, %s1445_s25  ;;  %742 = vrot.lane.b32.xlu1 %v219_v12, %s1445_s25 }
  0x30   : > { %744 = vrot.lane.b32.xlu0 %v218_v11, %s1445_s25  ;;  %847 = vrot.lane.b32.xlu1 %v211_v9, %s1446_s26  ;;  %s1405_s25 = smul.u32 12, %s1633_s16 }
  0x34   : > { %849 = vrot.lane.b32.xlu0 %v219_v12, %s1446_s26  ;;  %851 = vrot.lane.b32.xlu1 %v218_v11, %s1446_s26 }
  0x38   : > { %954 = vrot.lane.b32.xlu0 %v211_v9, %s1447_s27  ;;  %956 = vrot.lane.b32.xlu1 %v219_v12, %s1447_s27 }
  0x3c   : > { %958 = vrot.lane.b32.xlu0 %v218_v11, %s1447_s27  ;;  %1061 = vrot.lane.b32.xlu1 %v211_v9, %s1448_s28 }
  0x40   : > { %1063 = vrot.lane.b32.xlu0 %v219_v12, %s1448_s28  ;;  %1065 = vrot.lane.b32.xlu1 %v218_v11, %s1448_s28  ;;  %s1610_s28 = scalar_lea.vmem %s1631_s4, %s1405_s25 }
  0x41   : > { %1199 = vst.msk [vmem:[%s1610_s28] sm:$0xf] %vm1198_vm11, %v1440_v6 }
  0x42   : > { %1201 = vst.msk [vmem:[%s1610_s28 + $0x8] sm:$0xf] %vm1200_vm12, %v1440_v6 }
  0x44   : > { %1169 = vperm.xlu0 %1427, %v1166_v13  }
  0x86   : > { %v221_v14 = vpop.permute.xlu0 %220  ;;  %v225_v15 = vpop.permute.xlu1 %224 }
  0x87   : > { %v241_v16 = vsel %vm233_vm1, %v225_v15, 0 }
  0x88   : > { %1351 = vmatpush3.bf16.msra.mxu1 %v241_v16 }
  0x89   : > { %1356 = vmatprep.subr.bf16.mxu1 %v1438_v3 }
  0x8a   : > { %v223_v17 = vpop.permute.xlu0 %222  ;;  %v420_v23 = vpop.permute.xlu1 %419 }
  0x8b   : > { %v228_v19 = vsel %vm226_vm2, %v223_v17, %v225_v15  ;;  %v227_v20 = vsel %vm226_vm2, %v221_v14, %v223_v17  ;;  %1353 = vmatmul.mubr.msk.bf16.vlgmr.msra.gmra.mxu1 %vm229_vm3, %v1291_v18  ;;  %v1318_v15 = vld [vmem:[%s1628_s1 + $0x1c] sm:$0xf] }
  0x8c   : > { %1292 = vmatprep.subr.msk.bf16.mxu0 %vm233_vm1, %v228_v19  ;;  %v235_v22 = vsel %vm233_vm1, %v227_v20, 0  ;;  %1357 = vmatpush3.bf16.msra.mxu1 %v334_v21  ;;  %v1322_v19 = vld [vmem:[%s1628_s1 + $0x20] sm:$0xf] }
  0x8d   : > { %258 = vmatpush1.bf16.msra.mxu0 %v235_v22  ;;  %1358 = vmatprep.mubr.msk.bf16.mxu1 %vm1439_vm0, %v1438_v3 }
  0x8e   : > { %1295 = vmatprep.subr.msk.bf16.mxu0 %vm233_vm1, %v219_v12  ;;  %v422_v25 = vpop.permute.xlu0 %421  ;;  %1362 = vmatprep.subr.bf16.mxu1 %v1438_v3  ;;  %v424_v26 = vpop.permute.xlu1 %423 }
  0x8f   : > { %v427_v27 = vsel %vm425_vm4, %v422_v25, %v424_v26  ;;  %v426_v30 = vsel %vm425_vm4, %v420_v23, %v422_v25  ;;  %v438_v31 = vsel %vm233_vm1, %v424_v26, 0 }
  0x90   : > { %1293 = vmatmul.mubr.msk.bf16.vlgmr.msra.gmra.mxu0 %vm229_vm3, %v1291_v18  ;;  %v432_v33 = vsel %vm233_vm1, %v426_v30, 0 }
  0x91   : > { %351 = vmatpush1.bf16.msra.mxu0 %v328_v24  ;;  %368 = vmatprep.mubr.bf16.mxu0 %v1440_v6 }
  0x92   : > { %1299 = vmatprep.subr.msk.bf16.mxu0 %vm233_vm1, %v427_v27  ;;  %v527_v29 = vpop.permute.xlu0 %526  ;;  %v529_v32 = vpop.permute.xlu1 %528 }
  0x93   : > { %1359 = vmatmul.mubr.msk.bf16.vlgmr.msra.gmra.mxu1 %vm229_vm3, %v200_v28  ;;  %v533_v39 = vsel %vm532_vm5, %v527_v29, %v529_v32 }
  0x94   : > { %1363 = vmatpush3.bf16.msra.mxu1 %v438_v31  ;;  %1364 = vmatprep.mubr.msk.bf16.mxu1 %vm1439_vm0, %v1438_v3  ;;  %v539_v42 = vsel %vm233_vm1, %v533_v39, 0 }
  0x95   : > { %1368 = vmatprep.subr.bf16.mxu1 %v1438_v3 }
  0x96   : > { %v531_v34 = vpop.permute.xlu0 %530  ;;  %v634_v36 = vpop.permute.xlu1 %633 }
  0x97   : > { %v534_v35 = vsel %vm532_vm5, %v529_v32, %v531_v34  ;;  %v545_v40 = vsel %vm233_vm1, %v531_v34, 0 }
  0x98   : > { %1296 = vmatmul.mubr.msk.bf16.vlgmr.msra.gmra.mxu0 %vm229_vm3, %v200_v28 }
  0x99   : > { %455 = vmatpush1.bf16.msra.mxu0 %v432_v33  ;;  %472 = vmatprep.mubr.bf16.mxu0 %v1440_v6 }
  0x9a   : > { %1303 = vmatprep.subr.msk.bf16.mxu0 %vm233_vm1, %v534_v35  ;;  %v636_v38 = vpop.permute.xlu0 %635  ;;  %v638_v41 = vpop.permute.xlu1 %637 }
  0x9b   : > { %1365 = vmatmul.mubr.msk.bf16.vlgmr.msra.gmra.mxu1 %vm229_vm3, %v1298_v37  ;;  %v641_v44 = vsel %vm639_vm6, %v636_v38, %v638_v41  ;;  %v640_v47 = vsel %vm639_vm6, %v634_v36, %v636_v38  ;;  %v652_v48 = vsel %vm233_vm1, %v638_v41, 0 }
  0x9c   : > { %1369 = vmatpush3.bf16.msra.mxu1 %v545_v40  ;;  %1370 = vmatprep.mubr.msk.bf16.mxu1 %vm1439_vm0, %v1438_v3  ;;  %v646_v50 = vsel %vm233_vm1, %v640_v47, 0 }
  0x9d   : > { %1374 = vmatprep.subr.bf16.mxu1 %v1438_v3 }
  0x9e   : > { %v741_v43 = vpop.permute.xlu0 %740  ;;  %v743_v45 = vpop.permute.xlu1 %742 }
  0x9f   : > { %v747_v55 = vsel %vm746_vm7, %v741_v43, %v743_v45 }
  0xa0   : > { %1300 = vmatmul.mubr.msk.bf16.vlgmr.msra.gmra.mxu0 %vm229_vm3, %v1298_v37  ;;  %v753_v58 = vsel %vm233_vm1, %v747_v55, 0 }
  0xa1   : > { %562 = vmatpush1.bf16.msra.mxu0 %v539_v42  ;;  %579 = vmatprep.mubr.bf16.mxu0 %v1440_v6 }
  0xa2   : > { %1307 = vmatprep.subr.msk.bf16.mxu0 %vm233_vm1, %v641_v44  ;;  %v745_v49 = vpop.permute.xlu0 %744  ;;  %v848_v51 = vpop.permute.xlu1 %847 }
  0xa3   : > { %1371 = vmatmul.mubr.msk.bf16.vlgmr.msra.gmra.mxu1 %vm229_vm3, %v1302_v46  ;;  %v748_v52 = vsel %vm746_vm7, %v743_v45, %v745_v49  ;;  %v759_v56 = vsel %vm233_vm1, %v745_v49, 0 }
  0xa4   : > { %1375 = vmatpush3.bf16.msra.mxu1 %v652_v48  ;;  %1376 = vmatprep.mubr.msk.bf16.mxu1 %vm1439_vm0, %v1438_v3 }
  0xa5   : > { %1380 = vmatprep.subr.bf16.mxu1 %v1438_v3 }
  0xa6   : > { %v850_v53 = vpop.permute.xlu0 %849  ;;  %v852_v57 = vpop.permute.xlu1 %851 }
  0xa7   : > { %v855_v60 = vsel %vm853_vm8, %v850_v53, %v852_v57  ;;  %v854_v63 = vsel %vm853_vm8, %v848_v51, %v850_v53  ;;  %v866_v0 = vsel %vm233_vm1, %v852_v57, 0 }
  0xa8   : > { %1304 = vmatmul.mubr.msk.bf16.vlgmr.msra.gmra.mxu0 %vm229_vm3, %v1302_v46  ;;  %v860_v2 = vsel %vm233_vm1, %v854_v63, 0 }
  0xa9   : > { %669 = vmatpush1.bf16.msra.mxu0 %v646_v50  ;;  %686 = vmatprep.mubr.bf16.mxu0 %v1440_v6 }
  0xaa   : > { %1311 = vmatprep.subr.msk.bf16.mxu0 %vm233_vm1, %v748_v52  ;;  %v955_v59 = vpop.permute.xlu0 %954  ;;  %v957_v61 = vpop.permute.xlu1 %956 }
  0xab   : > { %1377 = vmatmul.mubr.msk.bf16.vlgmr.msra.gmra.mxu1 %vm229_vm3, %v1306_v54  ;;  %v961_v9 = vsel %vm960_vm9, %v955_v59, %v957_v61 }
  0xac   : > { %1381 = vmatpush3.bf16.msra.mxu1 %v759_v56  ;;  %1382 = vmatprep.mubr.msk.bf16.mxu1 %vm1439_vm0, %v1438_v3  ;;  %v967_v13 = vsel %vm233_vm1, %v961_v9, 0 }
  0xad   : > { %1386 = vmatprep.subr.bf16.mxu1 %v1438_v3 }
  0xae   : > { %v959_v1 = vpop.permute.xlu0 %958  ;;  %v1062_v5 = vpop.permute.xlu1 %1061 }
  0xaf   : > { %v962_v7 = vsel %vm960_vm9, %v957_v61, %v959_v1  ;;  %v973_v10 = vsel %vm233_vm1, %v959_v1, 0 }
  0xb0   : > { %1308 = vmatmul.mubr.msk.bf16.vlgmr.msra.gmra.mxu0 %vm229_vm3, %v1306_v54 }
  0xb1   : > { %776 = vmatpush1.bf16.msra.mxu0 %v753_v58  ;;  %793 = vmatprep.mubr.bf16.mxu0 %v1440_v6 }
  0xb2   : > { %1315 = vmatprep.subr.msk.bf16.mxu0 %vm233_vm1, %v855_v60  ;;  %v1064_v11 = vpop.permute.xlu0 %1063  ;;  %v1066_v12 = vpop.permute.xlu1 %1065 }
  0xb3   : > { %1383 = vmatmul.mubr.msk.bf16.vlgmr.msra.gmra.mxu1 %vm229_vm3, %v1310_v62  ;;  %v1069_v14 = vsel %vm1067_vm10, %v1064_v11, %v1066_v12  ;;  %v1068_v16 = vsel %vm1067_vm10, %v1062_v5, %v1064_v11  ;;  %v1080_v17 = vsel %vm233_vm1, %v1066_v12, 0 }
  0xb4   : > { %1387 = vmatpush3.bf16.msra.mxu1 %v866_v0  ;;  %1388 = vmatprep.mubr.msk.bf16.mxu1 %vm1439_vm0, %v1438_v3  ;;  %v1074_v18 = vsel %vm233_vm1, %v1068_v16, 0 }
  0xb5   : > { %1392 = vmatprep.subr.bf16.mxu1 %v1438_v3 }
  0xb8   : > { %1312 = vmatmul.mubr.msk.bf16.vlgmr.msra.gmra.mxu0 %vm229_vm3, %v1310_v62 }
  0xb9   : > { %883 = vmatpush1.bf16.msra.mxu0 %v860_v2  ;;  %900 = vmatprep.mubr.bf16.mxu0 %v1440_v6 }
  0xba   : > { %1319 = vmatprep.subr.msk.bf16.mxu0 %vm233_vm1, %v962_v7 }
  0xbb   : > { %1389 = vmatmul.mubr.msk.bf16.vlgmr.msra.gmra.mxu1 %vm229_vm3, %v1314_v8 }
  0xbc   : > { %1393 = vmatpush3.bf16.msra.mxu1 %v973_v10  ;;  %1394 = vmatprep.mubr.msk.bf16.mxu1 %vm1439_vm0, %v1438_v3 }
  0xbd   : > { %1398 = vmatprep.subr.bf16.mxu1 %v1438_v3 }
  0xc0   : > { %1316 = vmatmul.mubr.msk.bf16.vlgmr.msra.gmra.mxu0 %vm229_vm3, %v1314_v8 }
  0xc1   : > { %990 = vmatpush1.bf16.msra.mxu0 %v967_v13  ;;  %1007 = vmatprep.mubr.bf16.mxu0 %v1440_v6 }
  0xc2   : > { %1323 = vmatprep.subr.msk.bf16.mxu0 %vm233_vm1, %v1069_v14  ;;  %vm1227_vm1 = vcmask 707584  }
  0xc3   : > { %1395 = vmatmul.mubr.msk.bf16.vlgmr.msra.gmra.mxu1 %vm229_vm3, %v1318_v15 }
  0xc4   : > { %1399 = vmatpush3.bf16.msra.mxu1 %v1080_v17  ;;  %1400 = vmatprep.mubr.msk.bf16.mxu1 %vm1439_vm0, %v1438_v3  ;;  %vm1225_vm0 = vmor %vm1224_vm14, %vm1223_vm13 }
  0xc8   : > { %1320 = vmatmul.mubr.msk.bf16.vlgmr.msra.gmra.mxu0 %vm229_vm3, %v1318_v15 }
  0xc9   : > { %1097 = vmatpush1.bf16.msra.mxu0 %v1074_v18  ;;  %1114 = vmatprep.mubr.bf16.mxu0 %v1440_v6 }
  0xcb   : > { %1401 = vmatmul.mubr.msk.bf16.vlgmr.msra.gmra.mxu1 %vm229_vm3, %v1322_v19 }
  0xd0   : > { %1324 = vmatmul.mubr.msk.bf16.vlgmr.msra.gmra.mxu0 %vm229_vm3, %v1322_v19 }
 0x14b   : > { %v318_v3 = vpop.f32.mrf.mxu1 }
 0x14d   : > { %v1354_v20 = vpop.f32.mrf.mxu1 }
 0x14f   : > { %v321_v22 = vpop.f32.mrf.mxu1 }
 0x150   : > { %v277_v21 = vpop.f32.mrf.mxu0 }
 0x151   : > { %v1355_v24 = vpop.f32.mrf.mxu1 }
 0x152   : > { %v279_v23 = vpop.f32.mrf.mxu0 }
 0x153   : > { %v411_v26 = vpop.f32.mrf.mxu1 }
 0x154   : > { %v281_v25 = vpop.f32.mrf.mxu0  ;;  %v412_v9 = vadd.f32 %v411_v26, %v318_v3 }
 0x155   : > { %v1360_v28 = vpop.f32.mrf.mxu1 }
 0x156   : > { %v282_v27 = vpop.f32.mrf.mxu0 }
 0x157   : > { %v414_v30 = vpop.f32.mrf.mxu1 }
 0x158   : > { %v370_v29 = vpop.f32.mrf.mxu0 }
 0x159   : > { %v1361_v32 = vpop.f32.mrf.mxu1  ;;  %v371_v12 = vadd.f32 %v370_v29, %v277_v21 }
 0x15a   : > { %v372_v31 = vpop.f32.mrf.mxu0 }
 0x15b   : > { %v515_v34 = vpop.f32.mrf.mxu1  ;;  %v373_v16 = vadd.f32 %v372_v31, %v279_v23 }
 0x15c   : > { %v374_v33 = vpop.f32.mrf.mxu0  ;;  %v523_v13 = vadd.f32 %v515_v34, %v412_v9 }
 0x15d   : > { %v1366_v36 = vpop.f32.mrf.mxu1 }
 0x15e   : > { %v375_v35 = vpop.f32.mrf.mxu0 }
 0x15f   : > { %v518_v38 = vpop.f32.mrf.mxu1 }
 0x160   : > { %v474_v37 = vpop.f32.mrf.mxu0 }
 0x161   : > { %v1367_v40 = vpop.f32.mrf.mxu1  ;;  %v521_v17 = vadd.f32 %v474_v37, %v371_v12 }
 0x162   : > { %v476_v39 = vpop.f32.mrf.mxu0 }
 0x163   : > { %v622_v42 = vpop.f32.mrf.mxu1  ;;  %v522_v22 = vadd.f32 %v476_v39, %v373_v16 }
 0x164   : > { %v478_v41 = vpop.f32.mrf.mxu0  ;;  %v630_v18 = vadd.f32 %v622_v42, %v523_v13 }
 0x165   : > { %v1372_v44 = vpop.f32.mrf.mxu1 }
 0x166   : > { %v479_v43 = vpop.f32.mrf.mxu0  ;;  %v1170_v44 = vpop.permute.xlu0 %1169 }
 0x167   : > { %v625_v46 = vpop.f32.mrf.mxu1 }
 0x168   : > { %v581_v45 = vpop.f32.mrf.mxu0 }
 0x169   : > { %v1373_v48 = vpop.f32.mrf.mxu1  ;;  %v628_v24 = vadd.f32 %v581_v45, %v521_v17 }
 0x16a   : > { %v583_v47 = vpop.f32.mrf.mxu0  ;;  %v1182_v48 = vsub.s32 0, %v1486_v4 }
 0x16b   : > { %v729_v50 = vpop.f32.mrf.mxu1  ;;  %v629_v30 = vadd.f32 %v583_v47, %v522_v22 }
 0x16c   : > { %v585_v49 = vpop.f32.mrf.mxu0  ;;  %v737_v25 = vadd.f32 %v729_v50, %v630_v18 }
 0x16d   : > { %v1378_v52 = vpop.f32.mrf.mxu1  ;;  %v1186_v49 = vsub.s32 1, %v1486_v4 }
 0x16e   : > { %v586_v51 = vpop.f32.mrf.mxu0 }
 0x16f   : > { %v732_v54 = vpop.f32.mrf.mxu1  ;;  %v1190_v51 = vsub.s32 2, %v1486_v4 }
 0x170   : > { %v688_v53 = vpop.f32.mrf.mxu0 }
 0x171   : > { %v1379_v56 = vpop.f32.mrf.mxu1  ;;  %v735_v32 = vadd.f32 %v688_v53, %v628_v24 }
 0x172   : > { %v690_v55 = vpop.f32.mrf.mxu0 }
 0x173   : > { %v836_v58 = vpop.f32.mrf.mxu1  ;;  %v736_v35 = vadd.f32 %v690_v55, %v629_v30 }
 0x174   : > { %v692_v57 = vpop.f32.mrf.mxu0  ;;  %v844_v33 = vadd.f32 %v836_v58, %v737_v25 }
 0x175   : > { %v1384_v60 = vpop.f32.mrf.mxu1  ;;  %v1178_v57 = vld [vmem:[%s1630_s3] sm:$0x7] }
 0x176   : > { %v693_v59 = vpop.f32.mrf.mxu0  ;;  %v1183_v60 = vrot.slane %v1178_v57, %v1182_v48 }
 0x177   : > { %v839_v62 = vpop.f32.mrf.mxu1 }
 0x178   : > { %v795_v61 = vpop.f32.mrf.mxu0  ;;  %v1187_v62 = vrot.slane %v1178_v57, %v1186_v49 }
 0x179   : > { %v1385_v0 = vpop.f32.mrf.mxu1  ;;  %v842_v21 = vadd.f32 %v795_v61, %v735_v32 }
 0x17a   : > { %v797_v63 = vpop.f32.mrf.mxu0  ;;  %v1191_v0 = vrot.slane %v1178_v57, %v1190_v51 }
 0x17b   : > { %v943_v2 = vpop.f32.mrf.mxu1  ;;  %v843_v23 = vadd.f32 %v797_v63, %v736_v35 }
 0x17c   : > { %v799_v1 = vpop.f32.mrf.mxu0  ;;  %v951_v29 = vadd.f32 %v943_v2, %v844_v33 }
 0x17d   : > { %v1390_v7 = vpop.f32.mrf.mxu1 }
 0x17e   : > { %v800_v5 = vpop.f32.mrf.mxu0 }
 0x17f   : > { %v946_v10 = vpop.f32.mrf.mxu1 }
 0x180   : > { %v902_v8 = vpop.f32.mrf.mxu0 }
 0x181   : > { %v1391_v14 = vpop.f32.mrf.mxu1  ;;  %v949_v31 = vadd.f32 %v902_v8, %v842_v21 }
 0x182   : > { %v904_v11 = vpop.f32.mrf.mxu0 }
 0x183   : > { %v1050_v19 = vpop.f32.mrf.mxu1  ;;  %v950_v39 = vadd.f32 %v904_v11, %v843_v23 }
 0x184   : > { %v906_v15 = vpop.f32.mrf.mxu0  ;;  %v1058_v37 = vadd.f32 %v1050_v19, %v951_v29 }
 0x185   : > { %v1396_v27 = vpop.f32.mrf.mxu1 }
 0x186   : > { %v907_v20 = vpop.f32.mrf.mxu0 }
 0x187   : > { %v1053_v3 = vpop.f32.mrf.mxu1 }
 0x188   : > { %v1009_v28 = vpop.f32.mrf.mxu0 }
 0x189   : > { %v1397_v34 = vpop.f32.mrf.mxu1  ;;  %v1056_v41 = vadd.f32 %v1009_v28, %v949_v31 }
 0x18a   : > { %v1011_v26 = vpop.f32.mrf.mxu0 }
 0x18b   : > { %v1157_v38 = vpop.f32.mrf.mxu1  ;;  %v1057_v46 = vadd.f32 %v1011_v26, %v950_v39 }
 0x18c   : > { %v1013_v36 = vpop.f32.mrf.mxu0  ;;  %v1165_v42 = vadd.f32 %v1157_v38, %v1058_v37 }
 0x18d   : > { %v1402_v43 = vpop.f32.mrf.mxu1 }
 0x18e   : > { %v1014_v40 = vpop.f32.mrf.mxu0  ;;  %v1174_v53 = vadd.f32 %v1170_v44, %v1165_v42 }
 0x18f   : > { %v1160_v50 = vpop.f32.mrf.mxu1 }
 0x190   : > { %v1116_v45 = vpop.f32.mrf.mxu0  ;;  %v1177_v4 = vmax.f32 %v1174_v53, 0.0 }
 0x191   : > { %v1163_v47 = vadd.f32 %v1116_v45, %v1056_v41  ;;  %v1403_v56 = vpop.f32.mrf.mxu1 }
 0x192   : > { %v1118_v52 = vpop.f32.mrf.mxu0  ;;  %v1197_v7 = vmul.f32 %v1191_v0, %v1177_v4 }
 0x193   : > { %v1172_v54 = vadd.f32 %v1170_v44, %v1163_v47  ;;  %v1164_v55 = vadd.f32 %v1118_v52, %v1057_v46 }
 0x194   : > { %v1120_v58 = vpop.f32.mrf.mxu0  ;;  %v1331_v9 = vpack.c.bf16 %v1197_v7, %v1197_v7 }
 0x195   : > { %v1175_v59 = vmax.f32 %v1172_v54, 0.0  ;;  %v1173_v61 = vadd.f32 %v1170_v44, %v1164_v55 }
 0x196   : > { %v1121_v63 = vpop.f32.mrf.mxu0 }
 0x197   : > { %v1176_v1 = vmax.f32 %v1173_v61, 0.0  ;;  %v1195_v2 = vmul.f32 %v1183_v60, %v1175_v59 }
 0x199   : > { %v1196_v5 = vmul.f32 %v1187_v62, %v1176_v1 }
 0x19b   : > { %v1330_v8 = vpack.c.bf16 %v1196_v5, %v1195_v2 }
 0x19d   : > { %1213 = vrot.lane.b32.xlu1 %v1330_v8, %s1449_s30 }
 0x1a1   : > { %1215 = vrot.lane.b32.xlu1 %v1331_v9, %s1449_s30 }
 0x20f   : > { %v1214_v6 = vpop.permute.xlu1 %1213 }
 0x210   : > { %v1217_v10 = vrot.slane %v1214_v6, 4 }
 0x212   : > { %v1219_v11 = vsel %vm1218_vm15, %v1217_v10, %v1214_v6 }
 0x213   : > { %1226 = vst.msk [vmem:[%s1610_s28] sm:$0xff] %vm1225_vm0, %v1219_v11  ;;  %v1216_v12 = vpop.permute.xlu1 %1215 }
 0x214   : > { %v1220_v13 = vsel %vm1218_vm15, %v1217_v10, %v1216_v12 }
 0x215   : > { %1228 = vst.msk [vmem:[%s1610_s28 + $0x8] sm:$0xf] %vm1227_vm1, %v1220_v13 }
 0x216 PF: > { %s14_s15 = sadd.s32 1, %s1435_s15  }
 0x217   : > { %p11_p4 = scmp.ge.s32.totalorder %s14_s15, 6  }
 0x219   :  { %13 = sbr.rel (!%p11_p4) target bundleno = 1 (0x1), region = 74 }

// kernel: vgg_contrastive_loss.22
= control target key start
LH: loop header
LB: loop body
LE: loop exit
PB: predicated region body
PF: predicated region fallthrough
CT: control target
= control target key end

     0   :  { %s1016_s15 = smov 0   ;;  %s1120_s0 = inlined_call_operand.vmem [shape: bf16[4,16,122], index: 0, kind: input, shape index: {}]   ;;  %s1121_s1 = inlined_call_operand.vmem [shape: bf16[9,16,16], index: 1, kind: input, shape index: {}]   ;;  %s1122_s2 = inlined_call_operand.vmem [shape: f32[16,1], index: 2, kind: input, shape index: {}]   ;;  %s1123_s3 = inlined_call_operand.vmem [shape: f32[1,100], index: 3, kind: input, shape index: {}]   ;;  %s1124_s4 = inlined_call_operand.vmem [shape: bf16[4,16,122], index: 4, kind: output, shape index: {}]  }
   0x1 LB: > { %s814_s16 = sadd.s32 4294967295, %s977_s15   ;;  %p818_p0 = scmp.ge.s32.totalorder %s977_s15, 1  ;;  %s977_s15 = sphi %s1016_s15, %s14_s15  }
   0x2   : > { %p162_p1 = scmp.lt.s32.totalorder %s977_s15, 5 }
   0x4   : > { %p163_p2 = pnand %p818_p0, %p162_p1 }
   0x5   : > { %p188_p3 = scmp.lt.s32.totalorder (!%p163_p2), %s814_s16, 3  ;;  %s981_s23 = smov (!%p163_p2), 127  }
   0x6   : > { %166 = sbr.rel (%p163_p2) target bundleno = 488 (0x1e8), region = 36  ;;  %s982_s24 = smov (!%p163_p2), 118  }
   0x7   : > { %s983_s25 = smov (!%p163_p2), 126   ;;  %s984_s26 = smov (!%p163_p2), 117  }
   0x8   : > { %s985_s27 = smov (!%p163_p2), 116   ;;  %s986_s28 = smov (!%p163_p2), 108  }
   0x9   : > { %s987_s29 = smov (!%p163_p2), 107   ;;  %s988_s30 = smov (!%p163_p2), 106  }
   0xa   : > { %s990_s5 = smov (!%p163_p2), 11  }
   0xb   : > { %v979_v0 = vmov 0.0   ;;  %s1126_s16 = smov (!%p188_p3, %s814_s16), 3  ;;  %vm980_vm0 = vmmov 0   ;;  %v963_v2 = vld [vmem:[%s1121_s1] sm:$0xff]   ;;  %vm219_vm1 = vcmask 130048   ;;  %v714_v4 = vld [vmem:[%s1122_s2 + $0x8] sm:$0xff] }
   0xc   : > { %885 = vmatprep.subr.bf16.mxu0 %v979_v0  ;;  %891 = vmatprep.subr.bf16.mxu1 %v979_v0  ;;  %s863_s17 = sshll.u32 %s1126_s16, 3  ;;  %v713_v3 = vld [vmem:[%s1122_s2] sm:$0xff]  ;;  %v989_v5 = vmov 0   ;;  %v962_v7 = vld [vmem:[%s1121_s1 + $0x8] sm:$0xff]   ;;  %v965_v9 = vld [vmem:[%s1121_s1 + $0x18] sm:$0xff]   ;;  %vm738_vm2 = vcmask 84992  }
   0xd   : > { %887 = vmatprep.mubr.msk.bf16.mxu0 %vm980_vm0, %v979_v0  ;;  %893 = vmatprep.mubr.msk.bf16.mxu1 %vm980_vm0, %v979_v0  ;;  %s192_s20 = scalar_lea.vmem %s1120_s0, %s863_s17  ;;  %v964_v11 = vld [vmem:[%s1121_s1 + $0x10] sm:$0xff]   ;;  %v967_v13 = vld [vmem:[%s1121_s1 + $0x28] sm:$0xff]   ;;  %v966_v16 = vld [vmem:[%s1121_s1 + $0x20] sm:$0xff]   ;;  %vm741_vm3 = vcmask 995192   ;;  %vm756_vm4 = vcmask 904280  }
   0xe   : > { %v961_v1 = vld [vmem:[%s192_s20] sm:$0xff]   ;;  %959 = vset.pattern.permute.xlu0 %v989_v5  ;;  %960 = vset.pattern.permute.xlu1 %v989_v5  ;;  %v969_v17 = vld [vmem:[%s1121_s1 + $0x38] sm:$0xff]   ;;  %v968_v19 = vld [vmem:[%s1121_s1 + $0x30] sm:$0xff]  }
   0xf   : > { %216 = vrot.lane.b32.xlu0 %v961_v1, %s981_s23  ;;  %379 = vrot.lane.b32.xlu1 %v961_v1, %s982_s24  ;;  %v970_v21 = vld [vmem:[%s1121_s1 + $0x40] sm:$0xff]  }
  0x10   : > { %892 = vmatpush3.bf16.msra.mxu1 %v961_v1 }
  0x11   : > { %903 = vmatprep.subr.bf16.mxu1 %v979_v0 }
  0x13   : > { %322 = vrot.lane.b32.xlu0 %v961_v1, %s983_s25  ;;  %436 = vrot.lane.b32.xlu1 %v961_v1, %s984_s26 }
  0x14   : > { %894 = vmatmul.mubr.msk.bf16.vlgmr.msra.gmra.mxu1 %vm219_vm1, %v963_v2 }
  0x15   : > { %905 = vmatprep.mubr.msk.bf16.mxu1 %vm980_vm0, %v979_v0 }
  0x17   : > { %493 = vrot.lane.b32.xlu0 %v961_v1, %s985_s27  ;;  %550 = vrot.lane.b32.xlu1 %v961_v1, %s986_s28 }
  0x1b   : > { %607 = vrot.lane.b32.xlu0 %v961_v1, %s987_s29  ;;  %664 = vrot.lane.b32.xlu1 %v961_v1, %s988_s30  ;;  %s1106_s30 = scalar_lea.vmem %s1124_s4, %s863_s17 }
  0x1c   : > { %739 = vst.msk [vmem:[%s1106_s30] sm:$0xf] %vm738_vm2, %v989_v5  ;;  %740 = vst.msk [vmem:[%s1106_s30 + $0x4] sm:$0xf] %vm738_vm2, %v989_v5 }
  0x1d   : > { %742 = vst.msk [vmem:[%s1106_s30] sm:$0xf] %vm741_vm3, %v989_v5  ;;  %743 = vst.msk [vmem:[%s1106_s30 + $0x4] sm:$0xf] %vm741_vm3, %v989_v5 }
  0x1f   : > { %717 = vperm.xlu0 %959, %v713_v3   ;;  %722 = vperm.xlu1 %960, %v714_v4  }
  0x81   : > { %v217_v6 = vpop.permute.xlu0 %216  ;;  %v380_v8 = vpop.permute.xlu1 %379 }
  0x82   : > { %886 = vmatpush3.bf16.msra.mxu0 %v217_v6  ;;  %904 = vmatpush3.bf16.msra.mxu1 %v380_v8 }
  0x83   : > { %897 = vmatprep.subr.bf16.mxu0 %v979_v0  ;;  %915 = vmatprep.subr.bf16.mxu1 %v979_v0 }
  0x85   : > { %888 = vmatmul.mubr.msk.bf16.vlgmr.msra.gmra.mxu0 %vm219_vm1, %v962_v7  ;;  %v323_v10 = vpop.permute.xlu0 %322  ;;  %906 = vmatmul.mubr.msk.bf16.vlgmr.msra.gmra.mxu1 %vm219_vm1, %v965_v9  ;;  %v437_v14 = vpop.permute.xlu1 %436  ;;  %v858_v9 = vld [vmem:[%s1123_s3] ss:$0 sm:$0xff] }
  0x86   : > { %898 = vmatpush3.bf16.msra.mxu0 %v323_v10  ;;  %899 = vmatprep.mubr.msk.bf16.mxu0 %vm980_vm0, %v979_v0 }
  0x87   : > { %909 = vmatprep.subr.bf16.mxu0 %v979_v0  ;;  %917 = vmatprep.mubr.msk.bf16.mxu1 %vm980_vm0, %v979_v0 }
  0x89   : > { %v494_v12 = vpop.permute.xlu0 %493  ;;  %v551_v18 = vpop.permute.xlu1 %550 }
  0x8a   : > { %916 = vmatpush3.bf16.msra.mxu1 %v494_v12 }
  0x8b   : > { %927 = vmatprep.subr.bf16.mxu1 %v979_v0 }
  0x8d   : > { %900 = vmatmul.mubr.msk.bf16.vlgmr.msra.gmra.mxu0 %vm219_vm1, %v964_v11  ;;  %918 = vmatmul.mubr.msk.bf16.vlgmr.msra.gmra.mxu1 %vm219_vm1, %v967_v13  ;;  %v608_v15 = vpop.permute.xlu0 %607  ;;  %v665_v20 = vpop.permute.xlu1 %664 }
  0x8e   : > { %910 = vmatpush3.bf16.msra.mxu0 %v437_v14  ;;  %911 = vmatprep.mubr.msk.bf16.mxu0 %vm980_vm0, %v979_v0 }
  0x8f   : > { %921 = vmatprep.subr.bf16.mxu0 %v979_v0  ;;  %928 = vmatpush3.bf16.msra.mxu1 %v608_v15 }
  0x90   : > { %929 = vmatprep.mubr.msk.bf16.mxu1 %vm980_vm0, %v979_v0 }
  0x95   : > { %912 = vmatmul.mubr.msk.bf16.vlgmr.msra.gmra.mxu0 %vm219_vm1, %v966_v16  ;;  %930 = vmatmul.mubr.msk.bf16.vlgmr.msra.gmra.mxu1 %vm219_vm1, %v969_v17 }
  0x96   : > { %922 = vmatpush3.bf16.msra.mxu0 %v551_v18  ;;  %923 = vmatprep.mubr.msk.bf16.mxu0 %vm980_vm0, %v979_v0 }
  0x97   : > { %933 = vmatprep.subr.bf16.mxu0 %v979_v0 }
  0x9a   : > { %v718_v4 = vpop.permute.xlu0 %717  ;;  %v723_v11 = vpop.permute.xlu1 %722 }
  0x9d   : > { %924 = vmatmul.mubr.msk.bf16.vlgmr.msra.gmra.mxu0 %vm219_vm1, %v968_v19 }
  0x9e   : > { %934 = vmatpush3.bf16.msra.mxu0 %v665_v20  ;;  %935 = vmatprep.mubr.msk.bf16.mxu0 %vm980_vm0, %v979_v0 }
  0xa5   : > { %936 = vmatmul.mubr.msk.bf16.vlgmr.msra.gmra.mxu0 %vm219_vm1, %v970_v21 }
  0xd4   : > { %v307_v22 = vpop.f32.mrf.mxu1 }
  0xd6   : > { %v895_v23 = vpop.f32.mrf.mxu1 }
  0xd8   : > { %v310_v24 = vpop.f32.mrf.mxu1 }
  0xda   : > { %v896_v25 = vpop.f32.mrf.mxu1 }
 0x145   : > { %v257_v26 = vpop.f32.mrf.mxu0  ;;  %v419_v27 = vpop.f32.mrf.mxu1 }
 0x146   : > { %v308_v40 = vadd.f32 %v307_v22, %v257_v26 }
 0x147   : > { %v889_v28 = vpop.f32.mrf.mxu0  ;;  %v907_v29 = vpop.f32.mrf.mxu1 }
 0x149   : > { %v260_v30 = vpop.f32.mrf.mxu0  ;;  %v422_v31 = vpop.f32.mrf.mxu1 }
 0x14a   : > { %v311_v46 = vadd.f32 %v310_v24, %v260_v30 }
 0x14b   : > { %v890_v32 = vpop.f32.mrf.mxu0  ;;  %v908_v33 = vpop.f32.mrf.mxu1 }
 0x14d   : > { %v362_v34 = vpop.f32.mrf.mxu0  ;;  %v533_v35 = vpop.f32.mrf.mxu1 }
 0x14e   : > { %v369_v43 = vadd.f32 %v362_v34, %v308_v40 }
 0x14f   : > { %v901_v36 = vpop.f32.mrf.mxu0  ;;  %v919_v37 = vpop.f32.mrf.mxu1 }
 0x150   : > { %v426_v49 = vadd.f32 %v419_v27, %v369_v43 }
 0x151   : > { %v365_v38 = vpop.f32.mrf.mxu0  ;;  %v536_v39 = vpop.f32.mrf.mxu1 }
 0x152   : > { %v370_v50 = vadd.f32 %v365_v38, %v311_v46 }
 0x153   : > { %v902_v41 = vpop.f32.mrf.mxu0  ;;  %v920_v42 = vpop.f32.mrf.mxu1 }
 0x154   : > { %v427_v56 = vadd.f32 %v422_v31, %v370_v50 }
 0x155   : > { %v476_v44 = vpop.f32.mrf.mxu0  ;;  %v647_v45 = vpop.f32.mrf.mxu1 }
 0x156   : > { %v483_v53 = vadd.f32 %v476_v44, %v426_v49 }
 0x157   : > { %v913_v47 = vpop.f32.mrf.mxu0  ;;  %v931_v48 = vpop.f32.mrf.mxu1 }
 0x158   : > { %v540_v58 = vadd.f32 %v533_v35, %v483_v53 }
 0x159   : > { %v479_v51 = vpop.f32.mrf.mxu0  ;;  %v650_v52 = vpop.f32.mrf.mxu1 }
 0x15a   : > { %v484_v59 = vadd.f32 %v479_v51, %v427_v56 }
 0x15b   : > { %v914_v54 = vpop.f32.mrf.mxu0  ;;  %v932_v55 = vpop.f32.mrf.mxu1 }
 0x15c   : > { %v541_v63 = vadd.f32 %v536_v39, %v484_v59 }
 0x15d   : > { %v590_v57 = vpop.f32.mrf.mxu0 }
 0x15e   : > { %v597_v61 = vadd.f32 %v590_v57, %v540_v58 }
 0x15f   : > { %v925_v60 = vpop.f32.mrf.mxu0 }
 0x160   : > { %v654_v1 = vadd.f32 %v647_v45, %v597_v61 }
 0x161   : > { %v593_v62 = vpop.f32.mrf.mxu0 }
 0x162   : > { %v598_v2 = vadd.f32 %v593_v62, %v541_v63 }
 0x163   : > { %v926_v0 = vpop.f32.mrf.mxu0 }
 0x164   : > { %v655_v7 = vadd.f32 %v650_v52, %v598_v2 }
 0x165   : > { %v704_v3 = vpop.f32.mrf.mxu0 }
 0x166   : > { %v711_v5 = vadd.f32 %v704_v3, %v654_v1 }
 0x167   : > { %v937_v6 = vpop.f32.mrf.mxu0 }
 0x168   : > { %v725_v8 = vadd.f32 %v718_v4, %v711_v5 }
 0x169   : > { %v707_v10 = vpop.f32.mrf.mxu0 }
 0x16a   : > { %v727_v12 = vmax.f32 %v725_v8, 0.0  ;;  %v712_v13 = vadd.f32 %v707_v10, %v655_v7 }
 0x16b   : > { %v938_v14 = vpop.f32.mrf.mxu0 }
 0x16c   : > { %v736_v15 = vmul.f32 %v858_v9, %v727_v12  ;;  %v726_v16 = vadd.f32 %v723_v11, %v712_v13 }
 0x16e   : > { %v865_v17 = vpack.c.bf16 %v736_v15, %v736_v15  ;;  %v728_v18 = vmax.f32 %v726_v16, 0.0 }
 0x170   : > { %v737_v19 = vmul.f32 %v858_v9, %v728_v18  ;;  %750 = vrot.lane.b32.xlu1 %v865_v17, %s990_s5 }
 0x172   : > { %v866_v20 = vpack.c.bf16 %v737_v19, %v737_v19 }
 0x174   : > { %752 = vrot.lane.b32.xlu0 %v866_v20, %s990_s5 }
 0x1e2   : > { %v751_v21 = vpop.permute.xlu1 %750 }
 0x1e3   : > { %757 = vst.msk [vmem:[%s1106_s30] sm:$0xf] %vm756_vm4, %v751_v21 }
 0x1e6   : > { %v753_v22 = vpop.permute.xlu0 %752 }
 0x1e7   : > { %758 = vst.msk [vmem:[%s1106_s30 + $0x4] sm:$0xf] %vm756_vm4, %v753_v22 }
 0x1e8 PF: > { %s14_s15 = sadd.s32 1, %s977_s15  }
 0x1e9   : > { %p11_p4 = scmp.ge.s32.totalorder %s14_s15, 6  }
 0x1eb   :  { %13 = sbr.rel (!%p11_p4) target bundleno = 1 (0x1), region = 74 }

// kernel: vgg_contrastive_loss.21
= control target key start
LH: loop header
LB: loop body
LE: loop exit
PB: predicated region body
PF: predicated region fallthrough
CT: control target
= control target key end

     0   :  { %s1027_s15 = smov 0   ;;  %s1143_s0 = inlined_call_operand.vmem [shape: bf16[4,8,122], index: 0, kind: input, shape index: {}]   ;;  %s1144_s1 = inlined_call_operand.vmem [shape: bf16[9,16,8], index: 1, kind: input, shape index: {}]   ;;  %s1145_s2 = inlined_call_operand.vmem [shape: f32[16,1], index: 2, kind: input, shape index: {}]   ;;  %s1146_s3 = inlined_call_operand.vmem [shape: f32[1,100], index: 3, kind: input, shape index: {}]   ;;  %s1147_s4 = inlined_call_operand.vmem [shape: bf16[4,16,122], index: 4, kind: output, shape index: {}]  }
   0x1 LB: > { %s827_s16 = sadd.s32 4294967295, %s988_s15   ;;  %p831_p0 = scmp.ge.s32.totalorder %s988_s15, 1  ;;  %s988_s15 = sphi %s1027_s15, %s14_s15  }
   0x2   : > { %p161_p1 = scmp.lt.s32.totalorder %s988_s15, 5 }
   0x4   : > { %p162_p2 = pnand %p831_p0, %p161_p1 }
   0x5   : > { %p186_p3 = scmp.lt.s32.totalorder (!%p162_p2), %s827_s16, 3  ;;  %s992_s23 = smov (!%p162_p2), 127  }
   0x6   : > { %165 = sbr.rel (%p162_p2) target bundleno = 491 (0x1eb), region = 36  ;;  %s993_s24 = smov (!%p162_p2), 118  }
   0x7   : > { %s994_s25 = smov (!%p162_p2), 126   ;;  %s995_s26 = smov (!%p162_p2), 117  }
   0x8   : > { %s996_s27 = smov (!%p162_p2), 116   ;;  %s997_s28 = smov (!%p162_p2), 108  }
   0x9   : > { %s998_s29 = smov (!%p162_p2), 107   ;;  %s999_s30 = smov (!%p162_p2), 106  }
   0xa   : > { %s1001_s6 = smov (!%p162_p2), 11  }
   0xb   : > { %v990_v0 = vmov 0.0   ;;  %s1149_s16 = smov (!%p186_p3, %s827_s16), 3  ;;  %vm991_vm0 = vmmov 0   ;;  %vm216_vm1 = vcmask 1043456   ;;  %vm212_vm2 = vcmask 64512   ;;  %v974_v4 = vld [vmem:[%s1144_s1] sm:$0xff]  }
   0xc   : > { %896 = vmatprep.subr.bf16.mxu0 %v990_v0  ;;  %902 = vmatprep.subr.bf16.mxu1 %v990_v0  ;;  %s832_s17 = sshll.u32 %s1149_s16, 2  ;;  %v726_v5 = vld [vmem:[%s1145_s2] sm:$0xff]  ;;  %v727_v6 = vld [vmem:[%s1145_s2 + $0x8] sm:$0xff]  ;;  %v1000_v7 = vmov 0   ;;  %v976_v13 = vld [vmem:[%s1144_s1 + $0x18] sm:$0xff]   ;;  %vm751_vm3 = vcmask 84992  }
   0xd   : > { %898 = vmatprep.mubr.msk.bf16.mxu0 %vm991_vm0, %v990_v0  ;;  %904 = vmatprep.mubr.msk.bf16.mxu1 %vm991_vm0, %v990_v0  ;;  %s189_s20 = scalar_lea.vmem %s1143_s0, %s832_s17  ;;  %v973_v11 = vld [vmem:[%s1144_s1 + $0x8] sm:$0xff]   ;;  %v975_v18 = vld [vmem:[%s1144_s1 + $0x10] sm:$0xff]   ;;  %v977_v25 = vld [vmem:[%s1144_s1 + $0x20] sm:$0xff]   ;;  %vm754_vm4 = vcmask 995192   ;;  %vm769_vm5 = vcmask 904280  }
   0xe   : > { %v196_v1 = vld [vmem:[%s189_s20] sm:$0xf]  ;;  %970 = vset.pattern.permute.xlu0 %v1000_v7  ;;  %971 = vset.pattern.permute.xlu1 %v1000_v7  ;;  %v978_v20 = vld [vmem:[%s1144_s1 + $0x28] sm:$0xff]   ;;  %v980_v26 = vld [vmem:[%s1144_s1 + $0x38] sm:$0xff]  }
   0xf   : > { %v838_v2 = vcombine.low %v196_v1, %v196_v1  ;;  %v270_v3 = vsel %vm216_vm1, %v196_v1, 0  ;;  %v979_v29 = vld [vmem:[%s1144_s1 + $0x30] sm:$0xff]   ;;  %v981_v31 = vld [vmem:[%s1144_s1 + $0x40] sm:$0xff]  }
  0x10   : > { %903 = vmatpush3.bf16.msra.mxu1 %v270_v3 }
  0x11   : > { %210 = vrot.lane.b32.xlu0 %v838_v2, %s992_s23  ;;  %380 = vrot.lane.b32.xlu1 %v838_v2, %s993_s24 }
  0x12   : > { %914 = vmatprep.subr.bf16.mxu1 %v990_v0 }
  0x13   : > { %905 = vmatmul.mubr.msk.bf16.vlgmr.msra.gmra.mxu1 %vm212_vm2, %v974_v4 }
  0x14   : > { %916 = vmatprep.mubr.msk.bf16.mxu1 %vm991_vm0, %v990_v0 }
  0x15   : > { %321 = vrot.lane.b32.xlu0 %v838_v2, %s994_s25  ;;  %439 = vrot.lane.b32.xlu1 %v838_v2, %s995_s26 }
  0x19   : > { %498 = vrot.lane.b32.xlu0 %v838_v2, %s996_s27  ;;  %557 = vrot.lane.b32.xlu1 %v838_v2, %s997_s28  ;;  %s875_s27 = sshll.u32 %s1149_s16, 3 }
  0x1d   : > { %616 = vrot.lane.b32.xlu0 %v838_v2, %s998_s29  ;;  %675 = vrot.lane.b32.xlu1 %v838_v2, %s999_s30  ;;  %s1125_s30 = scalar_lea.vmem %s1147_s4, %s875_s27 }
  0x1e   : > { %752 = vst.msk [vmem:[%s1125_s30] sm:$0xf] %vm751_vm3, %v1000_v7  ;;  %753 = vst.msk [vmem:[%s1125_s30 + $0x4] sm:$0xf] %vm751_vm3, %v1000_v7 }
  0x1f   : > { %755 = vst.msk [vmem:[%s1125_s30] sm:$0xf] %vm754_vm4, %v1000_v7  ;;  %756 = vst.msk [vmem:[%s1125_s30 + $0x4] sm:$0xf] %vm754_vm4, %v1000_v7 }
  0x21   : > { %730 = vperm.xlu0 %970, %v726_v5   ;;  %735 = vperm.xlu1 %971, %v727_v6  }
  0x83   : > { %v211_v8 = vpop.permute.xlu0 %210  ;;  %v381_v9 = vpop.permute.xlu1 %380 }
  0x84   : > { %v218_v10 = vsel %vm216_vm1, %v211_v8, 0  ;;  %v386_v12 = vsel %vm216_vm1, %v381_v9, 0 }
  0x85   : > { %897 = vmatpush3.bf16.msra.mxu0 %v218_v10  ;;  %915 = vmatpush3.bf16.msra.mxu1 %v386_v12 }
  0x86   : > { %908 = vmatprep.subr.bf16.mxu0 %v990_v0  ;;  %926 = vmatprep.subr.bf16.mxu1 %v990_v0 }
  0x87   : > { %v322_v14 = vpop.permute.xlu0 %321  ;;  %v440_v16 = vpop.permute.xlu1 %439 }
  0x88   : > { %v327_v15 = vsel %vm216_vm1, %v322_v14, 0  ;;  %899 = vmatmul.mubr.msk.bf16.vlgmr.msra.gmra.mxu0 %vm212_vm2, %v973_v11  ;;  %917 = vmatmul.mubr.msk.bf16.vlgmr.msra.gmra.mxu1 %vm212_vm2, %v976_v13  ;;  %v445_v21 = vsel %vm216_vm1, %v440_v16, 0 }
  0x89   : > { %909 = vmatpush3.bf16.msra.mxu0 %v327_v15  ;;  %910 = vmatprep.mubr.msk.bf16.mxu0 %vm991_vm0, %v990_v0 }
  0x8a   : > { %920 = vmatprep.subr.bf16.mxu0 %v990_v0  ;;  %928 = vmatprep.mubr.msk.bf16.mxu1 %vm991_vm0, %v990_v0 }
  0x8b   : > { %v499_v17 = vpop.permute.xlu0 %498  ;;  %v558_v24 = vpop.permute.xlu1 %557 }
  0x8c   : > { %v504_v19 = vsel %vm216_vm1, %v499_v17, 0  ;;  %v563_v27 = vsel %vm216_vm1, %v558_v24, 0 }
  0x8d   : > { %927 = vmatpush3.bf16.msra.mxu1 %v504_v19  ;;  %v870_v19 = vld [vmem:[%s1146_s3] ss:$0 sm:$0xff] }
  0x8e   : > { %938 = vmatprep.subr.bf16.mxu1 %v990_v0 }
  0x8f   : > { %v617_v22 = vpop.permute.xlu0 %616  ;;  %v676_v28 = vpop.permute.xlu1 %675 }
  0x90   : > { %911 = vmatmul.mubr.msk.bf16.vlgmr.msra.gmra.mxu0 %vm212_vm2, %v975_v18  ;;  %929 = vmatmul.mubr.msk.bf16.vlgmr.msra.gmra.mxu1 %vm212_vm2, %v978_v20  ;;  %v622_v23 = vsel %vm216_vm1, %v617_v22, 0  ;;  %v681_v30 = vsel %vm216_vm1, %v676_v28, 0 }
  0x91   : > { %921 = vmatpush3.bf16.msra.mxu0 %v445_v21  ;;  %922 = vmatprep.mubr.msk.bf16.mxu0 %vm991_vm0, %v990_v0 }
  0x92   : > { %932 = vmatprep.subr.bf16.mxu0 %v990_v0  ;;  %939 = vmatpush3.bf16.msra.mxu1 %v622_v23 }
  0x93   : > { %940 = vmatprep.mubr.msk.bf16.mxu1 %vm991_vm0, %v990_v0 }
  0x98   : > { %923 = vmatmul.mubr.msk.bf16.vlgmr.msra.gmra.mxu0 %vm212_vm2, %v977_v25  ;;  %941 = vmatmul.mubr.msk.bf16.vlgmr.msra.gmra.mxu1 %vm212_vm2, %v980_v26 }
  0x99   : > { %933 = vmatpush3.bf16.msra.mxu0 %v563_v27  ;;  %934 = vmatprep.mubr.msk.bf16.mxu0 %vm991_vm0, %v990_v0 }
  0x9a   : > { %944 = vmatprep.subr.bf16.mxu0 %v990_v0 }
  0x9c   : > { %v731_v14 = vpop.permute.xlu0 %730  ;;  %v736_v21 = vpop.permute.xlu1 %735 }
  0xa0   : > { %935 = vmatmul.mubr.msk.bf16.vlgmr.msra.gmra.mxu0 %vm212_vm2, %v979_v29 }
  0xa1   : > { %945 = vmatpush3.bf16.msra.mxu0 %v681_v30  ;;  %946 = vmatprep.mubr.msk.bf16.mxu0 %vm991_vm0, %v990_v0 }
  0xa8   : > { %947 = vmatmul.mubr.msk.bf16.vlgmr.msra.gmra.mxu0 %vm212_vm2, %v981_v31 }
  0xd3   : > { %v306_v32 = vpop.f32.mrf.mxu1 }
  0xd5   : > { %v906_v33 = vpop.f32.mrf.mxu1 }
  0xd7   : > { %v309_v34 = vpop.f32.mrf.mxu1 }
  0xd9   : > { %v907_v35 = vpop.f32.mrf.mxu1 }
 0x148   : > { %v254_v36 = vpop.f32.mrf.mxu0  ;;  %v422_v37 = vpop.f32.mrf.mxu1 }
 0x149   : > { %v307_v50 = vadd.f32 %v306_v32, %v254_v36 }
 0x14a   : > { %v900_v38 = vpop.f32.mrf.mxu0  ;;  %v918_v39 = vpop.f32.mrf.mxu1 }
 0x14c   : > { %v257_v40 = vpop.f32.mrf.mxu0  ;;  %v425_v41 = vpop.f32.mrf.mxu1 }
 0x14d   : > { %v310_v56 = vadd.f32 %v309_v34, %v257_v40 }
 0x14e   : > { %v901_v42 = vpop.f32.mrf.mxu0  ;;  %v919_v43 = vpop.f32.mrf.mxu1 }
 0x150   : > { %v363_v44 = vpop.f32.mrf.mxu0  ;;  %v540_v45 = vpop.f32.mrf.mxu1 }
 0x151   : > { %v370_v53 = vadd.f32 %v363_v44, %v307_v50 }
 0x152   : > { %v912_v46 = vpop.f32.mrf.mxu0  ;;  %v930_v47 = vpop.f32.mrf.mxu1 }
 0x153   : > { %v429_v59 = vadd.f32 %v422_v37, %v370_v53 }
 0x154   : > { %v366_v48 = vpop.f32.mrf.mxu0  ;;  %v543_v49 = vpop.f32.mrf.mxu1 }
 0x155   : > { %v371_v60 = vadd.f32 %v366_v48, %v310_v56 }
 0x156   : > { %v913_v51 = vpop.f32.mrf.mxu0  ;;  %v931_v52 = vpop.f32.mrf.mxu1 }
 0x157   : > { %v430_v2 = vadd.f32 %v425_v41, %v371_v60 }
 0x158   : > { %v481_v54 = vpop.f32.mrf.mxu0  ;;  %v658_v55 = vpop.f32.mrf.mxu1 }
 0x159   : > { %v488_v63 = vadd.f32 %v481_v54, %v429_v59 }
 0x15a   : > { %v924_v57 = vpop.f32.mrf.mxu0  ;;  %v942_v58 = vpop.f32.mrf.mxu1 }
 0x15b   : > { %v547_v4 = vadd.f32 %v540_v45, %v488_v63 }
 0x15c   : > { %v484_v61 = vpop.f32.mrf.mxu0  ;;  %v661_v62 = vpop.f32.mrf.mxu1 }
 0x15d   : > { %v489_v5 = vadd.f32 %v484_v61, %v430_v2 }
 0x15e   : > { %v925_v0 = vpop.f32.mrf.mxu0  ;;  %v943_v1 = vpop.f32.mrf.mxu1 }
 0x15f   : > { %v548_v9 = vadd.f32 %v543_v49, %v489_v5 }
 0x160   : > { %v599_v3 = vpop.f32.mrf.mxu0 }
 0x161   : > { %v606_v7 = vadd.f32 %v599_v3, %v547_v4 }
 0x162   : > { %v936_v6 = vpop.f32.mrf.mxu0 }
 0x163   : > { %v665_v11 = vadd.f32 %v658_v55, %v606_v7 }
 0x164   : > { %v602_v8 = vpop.f32.mrf.mxu0 }
 0x165   : > { %v607_v12 = vadd.f32 %v602_v8, %v548_v9 }
 0x166   : > { %v937_v10 = vpop.f32.mrf.mxu0 }
 0x167   : > { %v666_v17 = vadd.f32 %v661_v62, %v607_v12 }
 0x168   : > { %v717_v13 = vpop.f32.mrf.mxu0 }
 0x169   : > { %v724_v15 = vadd.f32 %v717_v13, %v665_v11 }
 0x16a   : > { %v948_v16 = vpop.f32.mrf.mxu0 }
 0x16b   : > { %v738_v18 = vadd.f32 %v731_v14, %v724_v15 }
 0x16c   : > { %v720_v20 = vpop.f32.mrf.mxu0 }
 0x16d   : > { %v740_v22 = vmax.f32 %v738_v18, 0.0  ;;  %v725_v23 = vadd.f32 %v720_v20, %v666_v17 }
 0x16e   : > { %v949_v24 = vpop.f32.mrf.mxu0 }
 0x16f   : > { %v749_v25 = vmul.f32 %v870_v19, %v740_v22  ;;  %v739_v26 = vadd.f32 %v736_v21, %v725_v23 }
 0x171   : > { %v876_v27 = vpack.c.bf16 %v749_v25, %v749_v25  ;;  %v741_v28 = vmax.f32 %v739_v26, 0.0 }
 0x173   : > { %v750_v29 = vmul.f32 %v870_v19, %v741_v28  ;;  %763 = vrot.lane.b32.xlu1 %v876_v27, %s1001_s6 }
 0x175   : > { %v877_v30 = vpack.c.bf16 %v750_v29, %v750_v29 }
 0x177   : > { %765 = vrot.lane.b32.xlu0 %v877_v30, %s1001_s6 }
 0x1e5   : > { %v764_v31 = vpop.permute.xlu1 %763 }
 0x1e6   : > { %770 = vst.msk [vmem:[%s1125_s30] sm:$0xf] %vm769_vm5, %v764_v31 }
 0x1e9   : > { %v766_v32 = vpop.permute.xlu0 %765 }
 0x1ea   : > { %771 = vst.msk [vmem:[%s1125_s30 + $0x4] sm:$0xf] %vm769_vm5, %v766_v32 }
 0x1eb PF: > { %s14_s15 = sadd.s32 1, %s988_s15  }
 0x1ec   : > { %p11_p4 = scmp.ge.s32.totalorder %s14_s15, 6  }
 0x1ee   :  { %13 = sbr.rel (!%p11_p4) target bundleno = 1 (0x1), region = 74 }

// kernel: vgg_contrastive_loss.25
= control target key start
LH: loop header
LB: loop body
LE: loop exit
PB: predicated region body
PF: predicated region fallthrough
CT: control target
= control target key end

     0   :  { %s1280_s15 = smov 0   ;;  %s1412_s0 = inlined_call_operand.vmem [shape: bf16[4,16,50], index: 0, kind: input, shape index: {}]   ;;  %s1413_s1 = inlined_call_operand.vmem [shape: bf16[9,32,16], index: 1, kind: input, shape index: {}]   ;;  %s1414_s2 = inlined_call_operand.vmem [shape: f32[32,1], index: 2, kind: input, shape index: {}]   ;;  %s1415_s3 = inlined_call_operand.vmem [shape: f32[1,36], index: 3, kind: input, shape index: {}]   ;;  %s1416_s4 = inlined_call_operand.vmem [shape: bf16[4,32,50], index: 4, kind: output, shape index: {}]  }
   0x1 LB: > { %s1026_s16 = sadd.s32 4294967295, %s1243_s15   ;;  %p1030_p0 = scmp.ge.s32.totalorder %s1243_s15, 1  ;;  %s1243_s15 = sphi %s1280_s15, %s14_s15  }
   0x2   : > { %p162_p1 = scmp.lt.s32.totalorder %s1243_s15, 5 }
   0x4   : > { %p163_p2 = pnand %p1030_p0, %p162_p1 }
   0x5   : > { %p188_p3 = scmp.lt.s32.totalorder (!%p163_p2), %s1026_s16, 3  ;;  %s1245_s25 = smov (!%p163_p2), 127  }
   0x6   : > { %166 = sbr.rel (%p163_p2) target bundleno = 495 (0x1ef), region = 36  ;;  %s1246_s26 = smov (!%p163_p2), 122  }
   0x7   : > { %s1247_s5 = smov (!%p163_p2), 126   ;;  %s1248_s6 = smov (!%p163_p2), 121  }
   0x8   : > { %s1249_s7 = smov (!%p163_p2), 120   ;;  %s1250_s8 = smov (!%p163_p2), 116  }
   0x9   : > { %s1251_s9 = smov (!%p163_p2), 115   ;;  %s1252_s10 = smov (!%p163_p2), 114  }
   0xa   : > { %s1254_s30 = smov (!%p163_p2), 7  }
   0xb   : > { %v1219_v0 = vld [vmem:[%s1413_s1 + $0x10] sm:$0xff]   ;;  %vm228_vm0 = vcmask 130048   ;;  %s1418_s16 = smov (!%p188_p3, %s1026_s16), 3  ;;  %v1220_v1 = vld [vmem:[%s1413_s1] sm:$0xff]   ;;  %v1222_v3 = vld [vmem:[%s1413_s1 + $0x8] sm:$0xff]   ;;  %v1253_v7 = vmov 0  }
   0xc   : > { %1146 = vmatprep.mubr.msk.bf16.mxu0 %vm228_vm0, %v1219_v0  ;;  %s1111_s21 = sshll.u32 %s1418_s16, 3  ;;  %1152 = vmatprep.mubr.msk.bf16.mxu1 %vm228_vm0, %v1220_v1  ;;  %v1225_v4 = vld [vmem:[%s1413_s1 + $0x30] sm:$0xff]   ;;  %v890_v5 = vld [vmem:[%s1414_s2 + $0x8] sm:$0xff]  ;;  %v889_v6 = vld [vmem:[%s1414_s2] sm:$0xff]  ;;  %vm932_vm1 = vcmask 52224   ;;  %vm937_vm2 = vcmask 404824  }
   0xd   : > { %s192_s24 = scalar_lea.vmem %s1412_s0, %s1111_s21  ;;  %1217 = vset.pattern.permute.xlu1 %v1253_v7  ;;  %1216 = vset.pattern.permute.xlu0 %v1253_v7  ;;  %v891_v8 = vld [vmem:[%s1414_s2 + $0x10] sm:$0xff]  ;;  %v892_v9 = vld [vmem:[%s1414_s2 + $0x18] sm:$0xff]  ;;  %v1223_v13 = vld [vmem:[%s1413_s1 + $0x20] sm:$0xff]   ;;  %vm966_vm3 = vcmask 347192  }
   0xe   : > { %v1218_v2 = vld [vmem:[%s192_s24] sm:$0xff]   ;;  %v1221_v12 = vld [vmem:[%s1413_s1 + $0x18] sm:$0xff]   ;;  %v1229_v17 = vld [vmem:[%s1413_s1 + $0x50] sm:$0xff]  }
   0xf   : > { %225 = vrot.lane.b32.xlu0 %v1218_v2, %s1245_s25  ;;  %442 = vrot.lane.b32.xlu1 %v1218_v2, %s1246_s26  ;;  %v1226_v14 = vld [vmem:[%s1413_s1 + $0x38] sm:$0xff]   ;;  %v1224_v19 = vld [vmem:[%s1413_s1 + $0x28] sm:$0xff]   ;;  %s1112_s25 = sshll.u32 %s1418_s16, 4 }
  0x10   : > { %1150 = vmatprep.subr.bf16.mxu1 %v1218_v2  ;;  %v1227_v20 = vld [vmem:[%s1413_s1 + $0x40] sm:$0xff]   ;;  %v1230_v21 = vld [vmem:[%s1413_s1 + $0x58] sm:$0xff]   ;;  %v1233_v24 = vld [vmem:[%s1413_s1 + $0x70] sm:$0xff]   ;;  %s1384_s28 = scalar_lea.vmem %s1416_s4, %s1112_s25 }
  0x11   : > { %1151 = vmatpush3.bf16.msra.mxu1 %v1218_v2  ;;  %v1228_v25 = vld [vmem:[%s1413_s1 + $0x48] sm:$0xff]   ;;  %v1231_v26 = vld [vmem:[%s1413_s1 + $0x60] sm:$0xff]   ;;  %v1234_v27 = vld [vmem:[%s1413_s1 + $0x78] sm:$0xff]   ;;  %933 = vst.msk [vmem:[%s1384_s28] sm:$0xf] %vm932_vm1, %v1253_v7 }
  0x12   : > { %v1232_v29 = vld [vmem:[%s1413_s1 + $0x68] sm:$0xff]   ;;  %v1235_v30 = vld [vmem:[%s1413_s1 + $0x80] sm:$0xff]   ;;  %934 = vst.msk [vmem:[%s1384_s28 + $0x4] sm:$0xf] %vm932_vm1, %v1253_v7  ;;  %935 = vst.msk [vmem:[%s1384_s28 + $0x8] sm:$0xf] %vm932_vm1, %v1253_v7 }
  0x13   : > { %365 = vrot.lane.b32.xlu0 %v1218_v2, %s1247_s5  ;;  %519 = vrot.lane.b32.xlu1 %v1218_v2, %s1248_s6  ;;  %v1236_v31 = vld [vmem:[%s1413_s1 + $0x88] sm:$0xff]   ;;  %936 = vst.msk [vmem:[%s1384_s28 + $0xc] sm:$0xf] %vm932_vm1, %v1253_v7 }
  0x14   : > { %1153 = vmatmul.mubr.msk.bf16.vlgmr.msra.gmra.mxu1 %vm228_vm0, %v1222_v3  ;;  %938 = vst.msk [vmem:[%s1384_s28] sm:$0xf] %vm937_vm2, %v1253_v7  ;;  %939 = vst.msk [vmem:[%s1384_s28 + $0x4] sm:$0xf] %vm937_vm2, %v1253_v7 }
  0x15   : > { %1164 = vmatprep.mubr.msk.bf16.mxu1 %vm228_vm0, %v1225_v4  ;;  %940 = vst.msk [vmem:[%s1384_s28 + $0x8] sm:$0xf] %vm937_vm2, %v1253_v7  ;;  %941 = vst.msk [vmem:[%s1384_s28 + $0xc] sm:$0xf] %vm937_vm2, %v1253_v7 }
  0x17   : > { %596 = vrot.lane.b32.xlu0 %v1218_v2, %s1249_s7  ;;  %673 = vrot.lane.b32.xlu1 %v1218_v2, %s1250_s8 }
  0x1b   : > { %750 = vrot.lane.b32.xlu0 %v1218_v2, %s1251_s9  ;;  %827 = vrot.lane.b32.xlu1 %v1218_v2, %s1252_s10 }
  0x1f   : > { %900 = vperm.xlu1 %1217, %v890_v5   ;;  %895 = vperm.xlu0 %1216, %v889_v6  }
  0x23   : > { %905 = vperm.xlu1 %1217, %v891_v8   ;;  %910 = vperm.xlu0 %1216, %v892_v9  }
  0x81   : > { %v226_v10 = vpop.permute.xlu0 %225  ;;  %v443_v11 = vpop.permute.xlu1 %442 }
  0x82   : > { %1144 = vmatprep.subr.bf16.mxu0 %v226_v10  ;;  %1162 = vmatprep.subr.bf16.mxu1 %v443_v11 }
  0x83   : > { %1145 = vmatpush3.bf16.msra.mxu0 %v226_v10  ;;  %1163 = vmatpush3.bf16.msra.mxu1 %v443_v11 }
  0x85   : > { %v366_v15 = vpop.permute.xlu0 %365  ;;  %v520_v16 = vpop.permute.xlu1 %519 }
  0x86   : > { %1147 = vmatmul.mubr.msk.bf16.vlgmr.msra.gmra.mxu0 %vm228_vm0, %v1221_v12  ;;  %1156 = vmatprep.subr.bf16.mxu0 %v366_v15 }
  0x87   : > { %1157 = vmatpush3.bf16.msra.mxu0 %v366_v15  ;;  %1158 = vmatprep.mubr.msk.bf16.mxu0 %vm228_vm0, %v1223_v13 }
  0x88   : > { %1168 = vmatprep.subr.bf16.mxu0 %v520_v16  ;;  %1165 = vmatmul.mubr.msk.bf16.vlgmr.msra.gmra.mxu1 %vm228_vm0, %v1226_v14 }
  0x89   : > { %v597_v18 = vpop.permute.xlu0 %596  ;;  %1176 = vmatprep.mubr.msk.bf16.mxu1 %vm228_vm0, %v1229_v17  ;;  %v674_v22 = vpop.permute.xlu1 %673 }
  0x8a   : > { %1174 = vmatprep.subr.bf16.mxu1 %v597_v18 }
  0x8b   : > { %1175 = vmatpush3.bf16.msra.mxu1 %v597_v18 }
  0x8d   : > { %v751_v23 = vpop.permute.xlu0 %750  ;;  %v828_v28 = vpop.permute.xlu1 %827 }
  0x8e   : > { %1159 = vmatmul.mubr.msk.bf16.vlgmr.msra.gmra.mxu0 %vm228_vm0, %v1224_v19  ;;  %1186 = vmatprep.subr.bf16.mxu1 %v751_v23 }
  0x8f   : > { %1169 = vmatpush3.bf16.msra.mxu0 %v520_v16  ;;  %1170 = vmatprep.mubr.msk.bf16.mxu0 %vm228_vm0, %v1227_v20 }
  0x90   : > { %1180 = vmatprep.subr.bf16.mxu0 %v674_v22  ;;  %1177 = vmatmul.mubr.msk.bf16.vlgmr.msra.gmra.mxu1 %vm228_vm0, %v1230_v21 }
  0x91   : > { %1187 = vmatpush3.bf16.msra.mxu1 %v751_v23  ;;  %1188 = vmatprep.mubr.msk.bf16.mxu1 %vm228_vm0, %v1233_v24 }
  0x96   : > { %1171 = vmatmul.mubr.msk.bf16.vlgmr.msra.gmra.mxu0 %vm228_vm0, %v1228_v25 }
  0x97   : > { %1181 = vmatpush3.bf16.msra.mxu0 %v674_v22  ;;  %1182 = vmatprep.mubr.msk.bf16.mxu0 %vm228_vm0, %v1231_v26 }
  0x98   : > { %1192 = vmatprep.subr.bf16.mxu0 %v828_v28  ;;  %1189 = vmatmul.mubr.msk.bf16.vlgmr.msra.gmra.mxu1 %vm228_vm0, %v1234_v27 }
  0x9a   : > { %v901_v10 = vpop.permute.xlu1 %900  ;;  %v896_v19 = vpop.permute.xlu0 %895 }
  0x9e   : > { %1183 = vmatmul.mubr.msk.bf16.vlgmr.msra.gmra.mxu0 %vm228_vm0, %v1232_v29  ;;  %v906_v24 = vpop.permute.xlu1 %905 }
  0x9f   : > { %1193 = vmatpush3.bf16.msra.mxu0 %v828_v28  ;;  %1194 = vmatprep.mubr.msk.bf16.mxu0 %vm228_vm0, %v1235_v30 }
  0xa6   : > { %1195 = vmatmul.mubr.msk.bf16.vlgmr.msra.gmra.mxu0 %vm228_vm0, %v1236_v31 }
  0xd4   : > { %v1154_v32 = vpop.f32.mrf.mxu1 }
  0xd6   : > { %v335_v33 = vpop.f32.mrf.mxu1 }
  0xd8   : > { %v1155_v34 = vpop.f32.mrf.mxu1 }
  0xda   : > { %v338_v35 = vpop.f32.mrf.mxu1 }
 0x146   : > { %v1148_v36 = vpop.f32.mrf.mxu0 }
 0x147   : > { %v344_v49 = vadd.f32 %v1154_v32, %v1148_v36 }
 0x148   : > { %v269_v37 = vpop.f32.mrf.mxu0  ;;  %v1166_v38 = vpop.f32.mrf.mxu1 }
 0x149   : > { %v336_v51 = vadd.f32 %v335_v33, %v269_v37 }
 0x14a   : > { %v1149_v39 = vpop.f32.mrf.mxu0  ;;  %v485_v40 = vpop.f32.mrf.mxu1 }
 0x14b   : > { %v347_v55 = vadd.f32 %v1155_v34, %v1149_v39  ;;  %v911_v34 = vpop.permute.xlu0 %910 }
 0x14c   : > { %v272_v41 = vpop.f32.mrf.mxu0  ;;  %v1167_v42 = vpop.f32.mrf.mxu1 }
 0x14d   : > { %v339_v58 = vadd.f32 %v338_v35, %v272_v41 }
 0x14e   : > { %v1160_v43 = vpop.f32.mrf.mxu0  ;;  %v488_v44 = vpop.f32.mrf.mxu1 }
 0x14f   : > { %v425_v52 = vadd.f32 %v1160_v43, %v344_v49 }
 0x150   : > { %v408_v45 = vpop.f32.mrf.mxu0  ;;  %v1178_v46 = vpop.f32.mrf.mxu1 }
 0x151   : > { %v423_v56 = vadd.f32 %v408_v45, %v336_v51  ;;  %v502_v59 = vadd.f32 %v1166_v38, %v425_v52  ;;  %v1104_v45 = vld [vmem:[%s1415_s3] ss:$0 sm:$0xff] }
 0x152   : > { %v1161_v47 = vpop.f32.mrf.mxu0  ;;  %v639_v48 = vpop.f32.mrf.mxu1 }
 0x153   : > { %v426_v60 = vadd.f32 %v1161_v47, %v347_v55  ;;  %v500_v63 = vadd.f32 %v485_v40, %v423_v56 }
 0x154   : > { %v411_v50 = vpop.f32.mrf.mxu0  ;;  %v1179_v54 = vpop.f32.mrf.mxu1 }
 0x155   : > { %v424_v0 = vadd.f32 %v411_v50, %v339_v58  ;;  %v503_v3 = vadd.f32 %v1167_v42, %v426_v60 }
 0x156   : > { %v1172_v53 = vpop.f32.mrf.mxu0  ;;  %v642_v62 = vpop.f32.mrf.mxu1 }
 0x157   : > { %v579_v1 = vadd.f32 %v1172_v53, %v502_v59  ;;  %v501_v7 = vadd.f32 %v488_v44, %v424_v0 }
 0x158   : > { %v562_v57 = vpop.f32.mrf.mxu0  ;;  %v1190_v6 = vpop.f32.mrf.mxu1 }
 0x159   : > { %v577_v4 = vadd.f32 %v562_v57, %v500_v63  ;;  %v656_v8 = vadd.f32 %v1178_v46, %v579_v1 }
 0x15a   : > { %v1173_v61 = vpop.f32.mrf.mxu0  ;;  %v793_v15 = vpop.f32.mrf.mxu1 }
 0x15b   : > { %v580_v9 = vadd.f32 %v1173_v61, %v503_v3  ;;  %v654_v12 = vadd.f32 %v639_v48, %v577_v4 }
 0x15c   : > { %v565_v2 = vpop.f32.mrf.mxu0  ;;  %v1191_v25 = vpop.f32.mrf.mxu1 }
 0x15d   : > { %v578_v13 = vadd.f32 %v565_v2, %v501_v7  ;;  %v657_v17 = vadd.f32 %v1179_v54, %v580_v9 }
 0x15e   : > { %v1184_v5 = vpop.f32.mrf.mxu0  ;;  %v796_v35 = vpop.f32.mrf.mxu1 }
 0x15f   : > { %v733_v14 = vadd.f32 %v1184_v5, %v656_v8  ;;  %v655_v21 = vadd.f32 %v642_v62, %v578_v13 }
 0x160   : > { %v716_v11 = vpop.f32.mrf.mxu0 }
 0x161   : > { %v731_v18 = vadd.f32 %v716_v11, %v654_v12  ;;  %v810_v22 = vadd.f32 %v1190_v6, %v733_v14 }
 0x162   : > { %v1185_v16 = vpop.f32.mrf.mxu0 }
 0x163   : > { %v734_v23 = vadd.f32 %v1185_v16, %v657_v17  ;;  %v808_v27 = vadd.f32 %v793_v15, %v731_v18 }
 0x164   : > { %v719_v20 = vpop.f32.mrf.mxu0 }
 0x165   : > { %v732_v28 = vadd.f32 %v719_v20, %v655_v21  ;;  %v811_v31 = vadd.f32 %v1191_v25, %v734_v23 }
 0x166   : > { %v1196_v26 = vpop.f32.mrf.mxu0 }
 0x167   : > { %v887_v29 = vadd.f32 %v1196_v26, %v810_v22  ;;  %v809_v37 = vadd.f32 %v796_v35, %v732_v28 }
 0x168   : > { %v870_v30 = vpop.f32.mrf.mxu0 }
 0x169   : > { %v915_v32 = vadd.f32 %v906_v24, %v887_v29  ;;  %v885_v33 = vadd.f32 %v870_v30, %v808_v27 }
 0x16a   : > { %v1197_v36 = vpop.f32.mrf.mxu0 }
 0x16b   : > { %v913_v38 = vadd.f32 %v896_v19, %v885_v33  ;;  %v888_v39 = vadd.f32 %v1197_v36, %v811_v31  ;;  %v919_v41 = vmax.f32 %v915_v32, 0.0 }
 0x16c   : > { %v873_v40 = vpop.f32.mrf.mxu0 }
 0x16d   : > { %v917_v42 = vmax.f32 %v913_v38, 0.0  ;;  %v886_v43 = vadd.f32 %v873_v40, %v809_v37  ;;  %v916_v44 = vadd.f32 %v911_v34, %v888_v39  ;;  %v930_v48 = vmul.f32 %v1104_v45, %v919_v41 }
 0x16f   : > { %v928_v46 = vmul.f32 %v1104_v45, %v917_v42  ;;  %v914_v47 = vadd.f32 %v901_v10, %v886_v43  ;;  %v920_v51 = vmax.f32 %v916_v44, 0.0  ;;  %v1115_v53 = vpack.c.bf16 %v930_v48, %v930_v48 }
 0x171   : > { %v1113_v49 = vpack.c.bf16 %v928_v46, %v928_v46  ;;  %v918_v50 = vmax.f32 %v914_v47, 0.0  ;;  %v931_v54 = vmul.f32 %v1104_v45, %v920_v51 }
 0x173   : > { %954 = vrot.lane.b32.xlu1 %v1113_v49, %s1254_s30  ;;  %v929_v52 = vmul.f32 %v1104_v45, %v918_v50  ;;  %v1116_v56 = vpack.c.bf16 %v931_v54, %v931_v54 }
 0x175   : > { %v1114_v55 = vpack.c.bf16 %v929_v52, %v929_v52 }
 0x177   : > { %956 = vrot.lane.b32.xlu0 %v1114_v55, %s1254_s30  ;;  %958 = vrot.lane.b32.xlu1 %v1115_v53, %s1254_s30 }
 0x17b   : > { %960 = vrot.lane.b32.xlu0 %v1116_v56, %s1254_s30 }
 0x1e5   : > { %v955_v57 = vpop.permute.xlu1 %954 }
 0x1e6   : > { %967 = vst.msk [vmem:[%s1384_s28] sm:$0xf] %vm966_vm3, %v955_v57 }
 0x1e9   : > { %v957_v58 = vpop.permute.xlu0 %956  ;;  %v959_v59 = vpop.permute.xlu1 %958 }
 0x1ea   : > { %968 = vst.msk [vmem:[%s1384_s28 + $0x4] sm:$0xf] %vm966_vm3, %v957_v58  ;;  %969 = vst.msk [vmem:[%s1384_s28 + $0x8] sm:$0xf] %vm966_vm3, %v959_v59 }
 0x1ed   : > { %v961_v60 = vpop.permute.xlu0 %960 }
 0x1ee   : > { %970 = vst.msk [vmem:[%s1384_s28 + $0xc] sm:$0xf] %vm966_vm3, %v961_v60 }
 0x1ef PF: > { %s14_s15 = sadd.s32 1, %s1243_s15  }
 0x1f0   : > { %p11_p4 = scmp.ge.s32.totalorder %s14_s15, 6  }
 0x1f2   :  { %13 = sbr.rel (!%p11_p4) target bundleno = 1 (0x1), region = 74 }

// kernel: vgg_contrastive_loss.26
= control target key start
LH: loop header
LB: loop body
LE: loop exit
PB: predicated region body
PF: predicated region fallthrough
CT: control target
= control target key end

     0   :  { %s1341_s15 = smov 0   ;;  %s1476_s0 = inlined_call_operand.vmem [shape: bf16[4,32,50], index: 0, kind: input, shape index: {}]   ;;  %s1477_s1 = inlined_call_operand.vmem [shape: bf16[9,32,32], index: 1, kind: input, shape index: {}]   ;;  %s1478_s2 = inlined_call_operand.vmem [shape: f32[32,1], index: 2, kind: input, shape index: {}]   ;;  %s1479_s3 = inlined_call_operand.vmem [shape: f32[1,36], index: 3, kind: input, shape index: {}]   ;;  %s1480_s4 = inlined_call_operand.vmem [shape: bf16[4,32,50], index: 4, kind: output, shape index: {}]  }
   0x1 LB: > { %s1058_s16 = sadd.s32 4294967295, %s1304_s15   ;;  %p1062_p0 = scmp.ge.s32.totalorder %s1304_s15, 1  ;;  %s1304_s15 = sphi %s1341_s15, %s14_s15  }
   0x2   : > { %p162_p1 = scmp.lt.s32.totalorder %s1304_s15, 5 }
   0x4   : > { %p163_p2 = pnand %p1062_p0, %p162_p1 }
   0x5   : > { %p188_p3 = scmp.lt.s32.totalorder (!%p163_p2), %s1058_s16, 3  ;;  %s1306_s25 = smov (!%p163_p2), 127  }
   0x6   : > { %166 = sbr.rel (%p163_p2) target bundleno = 499 (0x1f3), region = 36  ;;  %s1307_s26 = smov (!%p163_p2), 126  }
   0x7   : > { %s1308_s5 = smov (!%p163_p2), 122   ;;  %s1309_s6 = smov (!%p163_p2), 121  }
   0x8   : > { %s1310_s7 = smov (!%p163_p2), 120   ;;  %s1311_s8 = smov (!%p163_p2), 116  }
   0x9   : > { %s1312_s9 = smov (!%p163_p2), 115   ;;  %s1313_s10 = smov (!%p163_p2), 114  }
   0xa   : > { %s1315_s30 = smov (!%p163_p2), 7  }
   0xb   : > { %v1280_v0 = vld [vmem:[%s1477_s1 + $0x10] sm:$0xff]   ;;  %vm238_vm0 = vcmask 261120   ;;  %s1482_s16 = smov (!%p188_p3, %s1058_s16), 3  ;;  %v1281_v1 = vld [vmem:[%s1477_s1] sm:$0xff]   ;;  %v1283_v4 = vld [vmem:[%s1477_s1 + $0x8] sm:$0xff]   ;;  %v1314_v6 = vmov 0  }
   0xc   : > { %1190 = vmatprep.mubr.msk.bf16.mxu0 %vm238_vm0, %v1280_v0  ;;  %s1144_s21 = sshll.u32 %s1482_s16, 4  ;;  %1198 = vmatprep.mubr.msk.bf16.mxu1 %vm238_vm0, %v1281_v1  ;;  %v1286_v5 = vld [vmem:[%s1477_s1 + $0x30] sm:$0xff]   ;;  %v922_v7 = vld [vmem:[%s1478_s2 + $0x8] sm:$0xff]  ;;  %v921_v8 = vld [vmem:[%s1478_s2] sm:$0xff]  ;;  %vm964_vm1 = vcmask 52224   ;;  %vm969_vm2 = vcmask 404824  }
   0xd   : > { %s192_s24 = scalar_lea.vmem %s1476_s0, %s1144_s21  ;;  %1277 = vset.pattern.permute.xlu1 %v1314_v6  ;;  %1276 = vset.pattern.permute.xlu0 %v1314_v6  ;;  %v923_v9 = vld [vmem:[%s1478_s2 + $0x10] sm:$0xff]  ;;  %v924_v10 = vld [vmem:[%s1478_s2 + $0x18] sm:$0xff]  ;;  %v1284_v16 = vld [vmem:[%s1477_s1 + $0x20] sm:$0xff]   ;;  %s1448_s29 = scalar_lea.vmem %s1480_s4, %s1144_s21  ;;  %vm998_vm3 = vcmask 347192  }
   0xe   : > { %v1278_v2 = vld [vmem:[%s192_s24 + $0x8] sm:$0xff]   ;;  %v1279_v3 = vld [vmem:[%s192_s24] sm:$0xff]   ;;  %v1282_v15 = vld [vmem:[%s1477_s1 + $0x18] sm:$0xff]   ;;  %965 = vst.msk [vmem:[%s1448_s29] sm:$0xf] %vm964_vm1, %v1314_v6 }
   0xf   : > { %234 = vrot.lane.b32.xlu0 %v1278_v2, %s1306_s25  ;;  %378 = vrot.lane.b32.xlu1 %v1278_v2, %s1307_s26  ;;  %v1285_v21 = vld [vmem:[%s1477_s1 + $0x28] sm:$0xff]   ;;  %v1287_v22 = vld [vmem:[%s1477_s1 + $0x38] sm:$0xff]  }
  0x10   : > { %1194 = vmatprep.subr.bf16.mxu1 %v1278_v2  ;;  %v1288_v25 = vld [vmem:[%s1477_s1 + $0x40] sm:$0xff]   ;;  %v1290_v26 = vld [vmem:[%s1477_s1 + $0x50] sm:$0xff]   ;;  %v1289_v29 = vld [vmem:[%s1477_s1 + $0x48] sm:$0xff]   ;;  %966 = vst.msk [vmem:[%s1448_s29 + $0x4] sm:$0xf] %vm964_vm1, %v1314_v6 }
  0x11   : > { %1195 = vmatpush3.bf16.msra.mxu1 %v1278_v2  ;;  %v1291_v30 = vld [vmem:[%s1477_s1 + $0x58] sm:$0xff]   ;;  %v1292_v32 = vld [vmem:[%s1477_s1 + $0x60] sm:$0xff]   ;;  %v1294_v33 = vld [vmem:[%s1477_s1 + $0x70] sm:$0xff]   ;;  %967 = vst.msk [vmem:[%s1448_s29 + $0x8] sm:$0xf] %vm964_vm1, %v1314_v6 }
  0x12   : > { %1196 = vmatprep.subr.bf16.mxu1 %v1279_v3  ;;  %v1293_v36 = vld [vmem:[%s1477_s1 + $0x68] sm:$0xff]   ;;  %v1295_v37 = vld [vmem:[%s1477_s1 + $0x78] sm:$0xff]   ;;  %v1296_v38 = vld [vmem:[%s1477_s1 + $0x80] sm:$0xff]   ;;  %968 = vst.msk [vmem:[%s1448_s29 + $0xc] sm:$0xf] %vm964_vm1, %v1314_v6 }
  0x13   : > { %232 = vrot.lane.b32.xlu0 %v1279_v3, %s1306_s25  ;;  %376 = vrot.lane.b32.xlu1 %v1279_v3, %s1307_s26  ;;  %v1297_v40 = vld [vmem:[%s1477_s1 + $0x88] sm:$0xff]   ;;  %970 = vst.msk [vmem:[%s1448_s29] sm:$0xf] %vm969_vm2, %v1314_v6 }
  0x14   : > { %971 = vst.msk [vmem:[%s1448_s29 + $0x4] sm:$0xf] %vm969_vm2, %v1314_v6  ;;  %972 = vst.msk [vmem:[%s1448_s29 + $0x8] sm:$0xf] %vm969_vm2, %v1314_v6 }
  0x15   : > { %1197 = vmatpush3.bf16.msra.mxu1 %v1279_v3  ;;  %973 = vst.msk [vmem:[%s1448_s29 + $0xc] sm:$0xf] %vm969_vm2, %v1314_v6 }
  0x17   : > { %458 = vrot.lane.b32.xlu0 %v1278_v2, %s1308_s5  ;;  %538 = vrot.lane.b32.xlu1 %v1278_v2, %s1309_s6 }
  0x18   : > { %1199 = vmatmul.mubr.msk.bf16.vlgmr.msra.gmra.mxu1 %vm238_vm0, %v1283_v4 }
  0x19   : > { %1214 = vmatprep.mubr.msk.bf16.mxu1 %vm238_vm0, %v1286_v5 }
  0x1b   : > { %456 = vrot.lane.b32.xlu0 %v1279_v3, %s1308_s5  ;;  %536 = vrot.lane.b32.xlu1 %v1279_v3, %s1309_s6 }
  0x1f   : > { %618 = vrot.lane.b32.xlu0 %v1278_v2, %s1310_s7  ;;  %698 = vrot.lane.b32.xlu1 %v1278_v2, %s1311_s8 }
  0x23   : > { %616 = vrot.lane.b32.xlu0 %v1279_v3, %s1310_s7  ;;  %696 = vrot.lane.b32.xlu1 %v1279_v3, %s1311_s8 }
  0x27   : > { %778 = vrot.lane.b32.xlu0 %v1278_v2, %s1312_s9  ;;  %858 = vrot.lane.b32.xlu1 %v1278_v2, %s1313_s10 }
  0x2b   : > { %776 = vrot.lane.b32.xlu0 %v1279_v3, %s1312_s9  ;;  %856 = vrot.lane.b32.xlu1 %v1279_v3, %s1313_s10 }
  0x2f   : > { %932 = vperm.xlu1 %1277, %v922_v7   ;;  %927 = vperm.xlu0 %1276, %v921_v8  }
  0x33   : > { %937 = vperm.xlu1 %1277, %v923_v9   ;;  %942 = vperm.xlu0 %1276, %v924_v10  }
  0x81   : > { %v235_v11 = vpop.permute.xlu0 %234  ;;  %v379_v12 = vpop.permute.xlu1 %378 }
  0x82   : > { %1186 = vmatprep.subr.bf16.mxu0 %v235_v11 }
  0x83   : > { %1187 = vmatpush3.bf16.msra.mxu0 %v235_v11 }
  0x85   : > { %v233_v13 = vpop.permute.xlu0 %232  ;;  %v377_v14 = vpop.permute.xlu1 %376 }
  0x86   : > { %1188 = vmatprep.subr.bf16.mxu0 %v233_v13 }
  0x87   : > { %1189 = vmatpush3.bf16.msra.mxu0 %v233_v13 }
  0x88   : > { %1202 = vmatprep.subr.bf16.mxu0 %v379_v12 }
  0x89   : > { %v459_v17 = vpop.permute.xlu0 %458  ;;  %v539_v18 = vpop.permute.xlu1 %538 }
  0x8a   : > { %1191 = vmatmul.mubr.msk.bf16.vlgmr.msra.gmra.mxu0 %vm238_vm0, %v1282_v15  ;;  %1210 = vmatprep.subr.bf16.mxu1 %v459_v17 }
  0x8b   : > { %1203 = vmatpush3.bf16.msra.mxu0 %v379_v12  ;;  %1211 = vmatpush3.bf16.msra.mxu1 %v459_v17 }
  0x8c   : > { %1204 = vmatprep.subr.bf16.mxu0 %v377_v14  ;;  %1206 = vmatprep.mubr.msk.bf16.mxu0 %vm238_vm0, %v1284_v16 }
  0x8d   : > { %v457_v19 = vpop.permute.xlu0 %456  ;;  %v537_v20 = vpop.permute.xlu1 %536 }
  0x8e   : > { %1212 = vmatprep.subr.bf16.mxu1 %v457_v19 }
  0x8f   : > { %1205 = vmatpush3.bf16.msra.mxu0 %v377_v14  ;;  %1213 = vmatpush3.bf16.msra.mxu1 %v457_v19 }
  0x90   : > { %1218 = vmatprep.subr.bf16.mxu0 %v539_v18 }
  0x91   : > { %v619_v23 = vpop.permute.xlu0 %618  ;;  %v699_v24 = vpop.permute.xlu1 %698 }
  0x92   : > { %1207 = vmatmul.mubr.msk.bf16.vlgmr.msra.gmra.mxu0 %vm238_vm0, %v1285_v21  ;;  %1215 = vmatmul.mubr.msk.bf16.vlgmr.msra.gmra.mxu1 %vm238_vm0, %v1287_v22 }
  0x93   : > { %1219 = vmatpush3.bf16.msra.mxu0 %v539_v18  ;;  %1226 = vmatprep.subr.bf16.mxu1 %v619_v23 }
  0x94   : > { %1227 = vmatpush3.bf16.msra.mxu1 %v619_v23  ;;  %1220 = vmatprep.subr.bf16.mxu0 %v537_v20 }
  0x95   : > { %v617_v27 = vpop.permute.xlu0 %616  ;;  %1222 = vmatprep.mubr.msk.bf16.mxu0 %vm238_vm0, %v1288_v25  ;;  %1230 = vmatprep.mubr.msk.bf16.mxu1 %vm238_vm0, %v1290_v26  ;;  %v697_v28 = vpop.permute.xlu1 %696 }
  0x96   : > { %1228 = vmatprep.subr.bf16.mxu1 %v617_v27 }
  0x97   : > { %1221 = vmatpush3.bf16.msra.mxu0 %v537_v20 }
  0x98   : > { %1229 = vmatpush3.bf16.msra.mxu1 %v617_v27  ;;  %1234 = vmatprep.subr.bf16.mxu0 %v699_v24 }
  0x99   : > { %v779_v31 = vpop.permute.xlu0 %778  ;;  %v859_v34 = vpop.permute.xlu1 %858 }
  0x9a   : > { %1223 = vmatmul.mubr.msk.bf16.vlgmr.msra.gmra.mxu0 %vm238_vm0, %v1289_v29  ;;  %1242 = vmatprep.subr.bf16.mxu1 %v779_v31 }
  0x9b   : > { %1231 = vmatmul.mubr.msk.bf16.vlgmr.msra.gmra.mxu1 %vm238_vm0, %v1291_v30  ;;  %1235 = vmatpush3.bf16.msra.mxu0 %v699_v24 }
  0x9c   : > { %1243 = vmatpush3.bf16.msra.mxu1 %v779_v31  ;;  %1236 = vmatprep.subr.bf16.mxu0 %v697_v28 }
  0x9d   : > { %v777_v35 = vpop.permute.xlu0 %776  ;;  %1238 = vmatprep.mubr.msk.bf16.mxu0 %vm238_vm0, %v1292_v32  ;;  %1246 = vmatprep.mubr.msk.bf16.mxu1 %vm238_vm0, %v1294_v33  ;;  %v857_v39 = vpop.permute.xlu1 %856 }
  0x9e   : > { %1244 = vmatprep.subr.bf16.mxu1 %v777_v35 }
  0x9f   : > { %1237 = vmatpush3.bf16.msra.mxu0 %v697_v28 }
  0xa0   : > { %1245 = vmatpush3.bf16.msra.mxu1 %v777_v35  ;;  %1250 = vmatprep.subr.bf16.mxu0 %v859_v34 }
  0xa2   : > { %1239 = vmatmul.mubr.msk.bf16.vlgmr.msra.gmra.mxu0 %vm238_vm0, %v1293_v36 }
  0xa3   : > { %1247 = vmatmul.mubr.msk.bf16.vlgmr.msra.gmra.mxu1 %vm238_vm0, %v1295_v37  ;;  %1251 = vmatpush3.bf16.msra.mxu0 %v859_v34 }
  0xa4   : > { %1252 = vmatprep.subr.bf16.mxu0 %v857_v39  ;;  %1254 = vmatprep.mubr.msk.bf16.mxu0 %vm238_vm0, %v1296_v38 }
  0xa7   : > { %1253 = vmatpush3.bf16.msra.mxu0 %v857_v39 }
  0xaa   : > { %1255 = vmatmul.mubr.msk.bf16.vlgmr.msra.gmra.mxu0 %vm238_vm0, %v1297_v40  ;;  %v933_v19 = vpop.permute.xlu1 %932  ;;  %v928_v28 = vpop.permute.xlu0 %927 }
  0xae   : > { %v938_v33 = vpop.permute.xlu1 %937 }
  0xd8   : > { %v1200_v41 = vpop.f32.mrf.mxu1 }
  0xda   : > { %v346_v42 = vpop.f32.mrf.mxu1 }
  0xdc   : > { %v1201_v44 = vpop.f32.mrf.mxu1 }
  0xde   : > { %v349_v47 = vpop.f32.mrf.mxu1 }
 0x14a   : > { %v1192_v43 = vpop.f32.mrf.mxu0 }
 0x14b   : > { %v355_v55 = vadd.f32 %v1200_v41, %v1192_v43  ;;  %v943_v43 = vpop.permute.xlu0 %942 }
 0x14c   : > { %v279_v45 = vpop.f32.mrf.mxu0 }
 0x14d   : > { %v347_v58 = vadd.f32 %v346_v42, %v279_v45 }
 0x14e   : > { %v1193_v46 = vpop.f32.mrf.mxu0 }
 0x14f   : > { %v358_v61 = vadd.f32 %v1201_v44, %v1193_v46 }
 0x150   : > { %v282_v48 = vpop.f32.mrf.mxu0 }
 0x151   : > { %v350_v1 = vadd.f32 %v349_v47, %v282_v48 }
 0x152   : > { %v1208_v49 = vpop.f32.mrf.mxu0  ;;  %v1216_v50 = vpop.f32.mrf.mxu1 }
 0x153   : > { %v439_v59 = vadd.f32 %v1208_v49, %v355_v55 }
 0x154   : > { %v422_v51 = vpop.f32.mrf.mxu0  ;;  %v502_v52 = vpop.f32.mrf.mxu1 }
 0x155   : > { %v437_v62 = vadd.f32 %v422_v51, %v347_v58  ;;  %v519_v2 = vadd.f32 %v1216_v50, %v439_v59 }
 0x156   : > { %v1209_v53 = vpop.f32.mrf.mxu0  ;;  %v1217_v54 = vpop.f32.mrf.mxu1 }
 0x157   : > { %v440_v3 = vadd.f32 %v1209_v53, %v358_v61  ;;  %v517_v6 = vadd.f32 %v502_v52, %v437_v62 }
 0x158   : > { %v425_v56 = vpop.f32.mrf.mxu0  ;;  %v505_v57 = vpop.f32.mrf.mxu1 }
 0x159   : > { %v438_v7 = vadd.f32 %v425_v56, %v350_v1  ;;  %v520_v11 = vadd.f32 %v1217_v54, %v440_v3  ;;  %v1137_v54 = vld [vmem:[%s1479_s3] ss:$0 sm:$0xff] }
 0x15a   : > { %v1224_v60 = vpop.f32.mrf.mxu0 }
 0x15b   : > { %v1232_v63 = vpop.f32.mrf.mxu1  ;;  %v599_v8 = vadd.f32 %v1224_v60, %v519_v2  ;;  %v518_v15 = vadd.f32 %v505_v57, %v438_v7 }
 0x15c   : > { %v582_v0 = vpop.f32.mrf.mxu0 }
 0x15d   : > { %v662_v4 = vpop.f32.mrf.mxu1  ;;  %v597_v12 = vadd.f32 %v582_v0, %v517_v6  ;;  %v679_v16 = vadd.f32 %v1232_v63, %v599_v8 }
 0x15e   : > { %v1225_v5 = vpop.f32.mrf.mxu0 }
 0x15f   : > { %v1233_v9 = vpop.f32.mrf.mxu1  ;;  %v600_v17 = vadd.f32 %v1225_v5, %v520_v11  ;;  %v677_v21 = vadd.f32 %v662_v4, %v597_v12 }
 0x160   : > { %v585_v10 = vpop.f32.mrf.mxu0 }
 0x161   : > { %v665_v13 = vpop.f32.mrf.mxu1  ;;  %v598_v22 = vadd.f32 %v585_v10, %v518_v15  ;;  %v680_v26 = vadd.f32 %v1233_v9, %v600_v17 }
 0x162   : > { %v1240_v14 = vpop.f32.mrf.mxu0 }
 0x163   : > { %v1248_v18 = vpop.f32.mrf.mxu1  ;;  %v759_v23 = vadd.f32 %v1240_v14, %v679_v16  ;;  %v678_v30 = vadd.f32 %v665_v13, %v598_v22 }
 0x164   : > { %v742_v20 = vpop.f32.mrf.mxu0 }
 0x165   : > { %v822_v24 = vpop.f32.mrf.mxu1  ;;  %v757_v27 = vadd.f32 %v742_v20, %v677_v21  ;;  %v839_v31 = vadd.f32 %v1248_v18, %v759_v23 }
 0x166   : > { %v1241_v25 = vpop.f32.mrf.mxu0 }
 0x167   : > { %v760_v32 = vadd.f32 %v1241_v25, %v680_v26  ;;  %v1249_v34 = vpop.f32.mrf.mxu1  ;;  %v837_v36 = vadd.f32 %v822_v24, %v757_v27 }
 0x168   : > { %v745_v29 = vpop.f32.mrf.mxu0 }
 0x169   : > { %v758_v37 = vadd.f32 %v745_v29, %v678_v30  ;;  %v840_v40 = vadd.f32 %v1249_v34, %v760_v32  ;;  %v825_v44 = vpop.f32.mrf.mxu1 }
 0x16a   : > { %v1256_v35 = vpop.f32.mrf.mxu0 }
 0x16b   : > { %v919_v38 = vadd.f32 %v1256_v35, %v839_v31  ;;  %v838_v46 = vadd.f32 %v825_v44, %v758_v37 }
 0x16c   : > { %v902_v39 = vpop.f32.mrf.mxu0 }
 0x16d   : > { %v947_v41 = vadd.f32 %v938_v33, %v919_v38  ;;  %v917_v42 = vadd.f32 %v902_v39, %v837_v36 }
 0x16e   : > { %v1257_v45 = vpop.f32.mrf.mxu0 }
 0x16f   : > { %v945_v47 = vadd.f32 %v928_v28, %v917_v42  ;;  %v920_v48 = vadd.f32 %v1257_v45, %v840_v40  ;;  %v951_v50 = vmax.f32 %v947_v41, 0.0 }
 0x170   : > { %v905_v49 = vpop.f32.mrf.mxu0 }
 0x171   : > { %v949_v51 = vmax.f32 %v945_v47, 0.0  ;;  %v918_v52 = vadd.f32 %v905_v49, %v838_v46  ;;  %v948_v53 = vadd.f32 %v943_v43, %v920_v48  ;;  %v962_v57 = vmul.f32 %v1137_v54, %v951_v50 }
 0x173   : > { %v960_v55 = vmul.f32 %v1137_v54, %v949_v51  ;;  %v946_v56 = vadd.f32 %v933_v19, %v918_v52  ;;  %v952_v60 = vmax.f32 %v948_v53, 0.0  ;;  %v1148_v62 = vpack.c.bf16 %v962_v57, %v962_v57 }
 0x175   : > { %v1146_v58 = vpack.c.bf16 %v960_v55, %v960_v55  ;;  %v950_v59 = vmax.f32 %v946_v56, 0.0  ;;  %v963_v63 = vmul.f32 %v1137_v54, %v952_v60 }
 0x177   : > { %986 = vrot.lane.b32.xlu1 %v1146_v58, %s1315_s30  ;;  %v961_v61 = vmul.f32 %v1137_v54, %v950_v59  ;;  %v1149_v1 = vpack.c.bf16 %v963_v63, %v963_v63 }
 0x179   : > { %v1147_v0 = vpack.c.bf16 %v961_v61, %v961_v61 }
 0x17b   : > { %988 = vrot.lane.b32.xlu0 %v1147_v0, %s1315_s30  ;;  %990 = vrot.lane.b32.xlu1 %v1148_v62, %s1315_s30 }
 0x17f   : > { %992 = vrot.lane.b32.xlu0 %v1149_v1, %s1315_s30 }
 0x1e9   : > { %v987_v2 = vpop.permute.xlu1 %986 }
 0x1ea   : > { %999 = vst.msk [vmem:[%s1448_s29] sm:$0xf] %vm998_vm3, %v987_v2 }
 0x1ed   : > { %v989_v3 = vpop.permute.xlu0 %988  ;;  %v991_v4 = vpop.permute.xlu1 %990 }
 0x1ee   : > { %1000 = vst.msk [vmem:[%s1448_s29 + $0x4] sm:$0xf] %vm998_vm3, %v989_v3  ;;  %1001 = vst.msk [vmem:[%s1448_s29 + $0x8] sm:$0xf] %vm998_vm3, %v991_v4 }
 0x1f1   : > { %v993_v5 = vpop.permute.xlu0 %992 }
 0x1f2   : > { %1002 = vst.msk [vmem:[%s1448_s29 + $0xc] sm:$0xf] %vm998_vm3, %v993_v5 }
 0x1f3 PF: > { %s14_s15 = sadd.s32 1, %s1304_s15  }
 0x1f4   : > { %p11_p4 = scmp.ge.s32.totalorder %s14_s15, 6  }
 0x1f6   :  { %13 = sbr.rel (!%p11_p4) target bundleno = 1 (0x1), region = 74 }

// kernel: vgg_contrastive_loss.33
= control target key start
LH: loop header
LB: loop body
LE: loop exit
PB: predicated region body
PF: predicated region fallthrough
CT: control target
= control target key end

     0   :  { %v879_v1 = vmov 0.0   ;;  %vm880_vm0 = vmmov 0   ;;  %vm55_vm1 = vcmask 261120   ;;  %s1097_s0 = inlined_call_operand.vmem [shape: bf16[2,32], index: 0, kind: input, shape index: {}]   ;;  %s1098_s1 = inlined_call_operand.vmem [shape: bf16[2,32], index: 1, kind: input, shape index: {}]   ;;  %s1099_s2 = inlined_call_operand.vmem [shape: bf16[32,128], index: 2, kind: input, shape index: {}]   ;;  %s1100_s3 = inlined_call_operand.vmem [shape: f32[1,128], index: 3, kind: input, shape index: {}, may-alias: {3,5}]   ;;  %s1101_s4 = inlined_call_operand.vmem [shape: bf16[128,128], index: 4, kind: input, shape index: {}]   ;;  %s1102_s5 = inlined_call_operand.vmem [shape: f32[1,128], index: 5, kind: input, shape index: {}, may-alias: {3,5}]   ;;  %s1103_s6 = inlined_call_operand.vmem [shape: bf16[128,64], index: 6, kind: input, shape index: {}]   ;;  %s1104_s7 = inlined_call_operand.vmem [shape: f32[1,64], index: 7, kind: input, shape index: {}]   ;;  %s1105_s8 = inlined_call_operand.hbm [shape: f32[1,1], index: 8, kind: output, shape index: {}]  }
   0x1   :  { %v930_v0 = vld [vmem:[%s1099_s2 + $0x8] sm:$0xff]   ;;  %711 = vmatprep.subr.bf16.mxu0 %v879_v1  ;;  %719 = vmatprep.subr.bf16.mxu1 %v879_v1  ;;  %v938_v2 = vld [vmem:[%s1099_s2] sm:$0xff]   ;;  %v945_v3 = vld [vmem:[%s1101_s4 + $0x38] sm:$0xff]  }
   0x2   :  { %712 = vmatpush3.bf16.msra.mxu0 %v930_v0  ;;  %715 = vmatprep.mubr.msk.bf16.mxu0 %vm880_vm0, %v879_v1  ;;  %v954_v4 = vld [vmem:[%s1101_s4 + $0x30] sm:$0xff]   ;;  %v31_v5 = vld [vmem:[%s1097_s0] sm:$0x1]  ;;  %v966_v6 = vld [vmem:[%s1101_s4 + $0x28] sm:$0xff]  }
   0x3   :  { %713 = vmatprep.subr.bf16.mxu0 %v879_v1  ;;  %735 = vmatprep.mubr.msk.bf16.mxu1 %vm880_vm0, %v879_v1  ;;  %v973_v7 = vld [vmem:[%s1101_s4 + $0x20] sm:$0xff]  }
   0x4   :  { %720 = vmatpush3.bf16.msra.mxu1 %v945_v3 }
   0x5   :  { %721 = vmatprep.subr.bf16.mxu1 %v879_v1 }
   0x6   :  { %714 = vmatpush3.bf16.msra.mxu0 %v938_v2 }
   0x7   :  { %739 = vmatprep.subr.bf16.mxu0 %v879_v1 }
   0x8   :  { %722 = vmatpush3.bf16.msra.mxu1 %v954_v4 }
   0x9   :  { %716 = vmatmul.mubr.msk.bf16.vlgmr.msra.gmra.mxu0 %vm55_vm1, %v31_v5  ;;  %723 = vmatprep.subr.bf16.mxu1 %v879_v1 }
   0xa   :  { %755 = vmatprep.mubr.msk.bf16.mxu0 %vm880_vm0, %v879_v1 }
   0xc   :  { %724 = vmatpush3.bf16.msra.mxu1 %v966_v6 }
   0xd   :  { %725 = vmatprep.subr.bf16.mxu1 %v879_v1 }
   0xe   :  { %13 = vsyncpa [#allocation3], 0  ;;  %v983_v8 = vld [vmem:[%s1101_s4 + $0x18] sm:$0xff]   ;;  %v990_v9 = vld [vmem:[%s1101_s4 + $0x10] sm:$0xff]   ;;  %vm454_vm2 = vcmask 517120   ;;  %vm482_vm7 = vcmask 523264  }
   0xf   :  { %v998_v10 = vld [vmem:[%s1101_s4 + $0x8] sm:$0xff]   ;;  %v1005_v11 = vld [vmem:[%s1101_s4] sm:$0xff]   ;;  %v831_v12 = vld [vmem:[%s1103_s6 + $0x38] sm:$0xff]   ;;  %vm583_vm8 = vcmask 1024   ;;  %vm569_vm9 = vcmask 9216   ;;  %vm610_vm10 = vcmask 8192  }
  0x10   :  { %726 = vmatpush3.bf16.msra.mxu1 %v973_v7  ;;  %740 = vmatpush3.bf16.msra.mxu0 %v831_v12  ;;  %v832_v13 = vld [vmem:[%s1103_s6 + $0x30] sm:$0xff]   ;;  %v833_v14 = vld [vmem:[%s1103_s6 + $0x28] sm:$0xff]   ;;  %v834_v15 = vld [vmem:[%s1103_s6 + $0x20] sm:$0xff]   ;;  %s881_s22 = smov [#allocation2]   ;;  %vm626_vm11 = vcmask 0  }
  0x11   :  { %727 = vmatprep.subr.bf16.mxu1 %v879_v1  ;;  %741 = vmatprep.subr.bf16.mxu0 %v879_v1  ;;  %v835_v16 = vld [vmem:[%s1103_s6 + $0x18] sm:$0xff]   ;;  %v836_v17 = vld [vmem:[%s1103_s6 + $0x10] sm:$0xff]   ;;  %v837_v18 = vld [vmem:[%s1103_s6 + $0x8] sm:$0xff]   ;;  %s634_s23 = sshll.u32 %s881_s22, 4  ;;  %s635_s23 = int_to_ptr.vmem [resolvable:$true] %s634_s23 }
  0x12   :  { %v642_v19 = vld [vmem:[%s1100_s3] ss:$0 sm:$0xff]  ;;  %s857_s24 = scalar_lea.vmem %s635_s23, 16  ;;  %s861_s25 = scalar_lea.vmem %s635_s23, 32 }
  0x13   :  { %v325_v27 = vld [vmem:[%s1098_s1] sm:$0x1]  ;;  %p858_p0 = scmp.ne.s32.totalorder %s635_s23, %s857_s24  ;;  %p862_p1 = scmp.lt.s32.totalorder %s635_s23, %s635_s23 }
  0x14   :  { %728 = vmatpush3.bf16.msra.mxu1 %v983_v8  ;;  %742 = vmatpush3.bf16.msra.mxu0 %v832_v13  ;;  %v838_v28 = vld [vmem:[%s1103_s6] sm:$0xff]   ;;  %p863_p2 = scmp.lt.s32.totalorder %s861_s25, %s857_s24 }
  0x15   :  { %729 = vmatprep.subr.bf16.mxu1 %v879_v1  ;;  %743 = vmatprep.subr.bf16.mxu0 %v879_v1  ;;  %v646_v29 = vld [vmem:[%s1102_s5] ss:$0 sm:$0xff] }
  0x16   :  { %v655_v55 = vld [vmem:[%s1104_s7] ss:$0 sm:$0xff]  ;;  %p864_p3 = por %p863_p2, %p862_p1 }
  0x18   :  { %730 = vmatpush3.bf16.msra.mxu1 %v990_v9  ;;  %744 = vmatpush3.bf16.msra.mxu0 %v833_v14  ;;  %p865_p4 = pnand %p864_p3, %p858_p0 }
  0x19   :  { %731 = vmatprep.subr.bf16.mxu1 %v879_v1  ;;  %745 = vmatprep.subr.bf16.mxu0 %v879_v1 }
  0x1c   :  { %732 = vmatpush3.bf16.msra.mxu1 %v998_v10  ;;  %746 = vmatpush3.bf16.msra.mxu0 %v834_v15 }
  0x1d   :  { %733 = vmatprep.subr.bf16.mxu1 %v879_v1  ;;  %747 = vmatprep.subr.bf16.mxu0 %v879_v1 }
  0x20   :  { %734 = vmatpush3.bf16.msra.mxu1 %v1005_v11  ;;  %748 = vmatpush3.bf16.msra.mxu0 %v835_v16 }
  0x21   :  { %759 = vmatprep.subr.bf16.mxu1 %v879_v1  ;;  %749 = vmatprep.subr.bf16.mxu0 %v879_v1 }
  0x24   :  { %750 = vmatpush3.bf16.msra.mxu0 %v836_v17 }
  0x25   :  { %751 = vmatprep.subr.bf16.mxu0 %v879_v1 }
  0x28   :  { %752 = vmatpush3.bf16.msra.mxu0 %v837_v18 }
  0x29   :  { %753 = vmatprep.subr.bf16.mxu0 %v879_v1 }
  0x2c   :  { %754 = vmatpush3.bf16.msra.mxu0 %v838_v28 }
  0x2d   :  { %767 = vmatprep.subr.bf16.mxu0 %v879_v1 }
  0xc9   :  { %v93_v20 = vpop.f32.mrf.mxu0 }
  0xca   :  { %v94_v21 = vadd.f32 %v642_v19, %v93_v20 }
  0xcb   :  { %v717_v22 = vpop.f32.mrf.mxu0 }
  0xcc   :  { %v99_v23 = vmax.f32 %v94_v21, 0.0 }
  0xcd   :  { %v96_v24 = vpop.f32.mrf.mxu0 }
  0xce   :  { %v100_v25 = vpack.c.bf16 %v99_v23, %v99_v23 }
  0xcf   :  { %v718_v26 = vpop.f32.mrf.mxu0 }
  0xd0   :  { %736 = vmatmul.mubr.bf16.vlgmr.msra.gmra.mxu1 %v100_v25 }
  0xd1   :  { %760 = vmatpush3.bf16.msra.mxu1 %v930_v0  ;;  %763 = vmatprep.mubr.msk.bf16.mxu1 %vm880_vm0, %v879_v1 }
  0xd2   :  { %761 = vmatprep.subr.bf16.mxu1 %v879_v1 }
  0xd5   :  { %762 = vmatpush3.bf16.msra.mxu1 %v938_v2 }
  0xd6   :  { %787 = vmatprep.subr.bf16.mxu1 %v879_v1 }
  0xd8   :  { %764 = vmatmul.mubr.msk.bf16.vlgmr.msra.gmra.mxu1 %vm55_vm1, %v325_v27 }
  0xd9   :  { %788 = vmatpush3.bf16.msra.mxu1 %v831_v12  ;;  %803 = vmatprep.mubr.msk.bf16.mxu1 %vm880_vm0, %v879_v1 }
  0xda   :  { %789 = vmatprep.subr.bf16.mxu1 %v879_v1 }
  0xdd   :  { %790 = vmatpush3.bf16.msra.mxu1 %v832_v13 }
  0xde   :  { %791 = vmatprep.subr.bf16.mxu1 %v879_v1 }
  0xe1   :  { %792 = vmatpush3.bf16.msra.mxu1 %v833_v14 }
  0xe2   :  { %793 = vmatprep.subr.bf16.mxu1 %v879_v1 }
  0xe5   :  { %794 = vmatpush3.bf16.msra.mxu1 %v834_v15 }
  0xe6   :  { %795 = vmatprep.subr.bf16.mxu1 %v879_v1 }
  0xe9   :  { %796 = vmatpush3.bf16.msra.mxu1 %v835_v16 }
  0xea   :  { %797 = vmatprep.subr.bf16.mxu1 %v879_v1 }
  0xed   :  { %798 = vmatpush3.bf16.msra.mxu1 %v836_v17 }
  0xee   :  { %799 = vmatprep.subr.bf16.mxu1 %v879_v1 }
  0xf1   :  { %800 = vmatpush3.bf16.msra.mxu1 %v837_v18 }
  0xf2   :  { %801 = vmatprep.subr.bf16.mxu1 %v879_v1 }
  0xf5   :  { %802 = vmatpush3.bf16.msra.mxu1 %v838_v28 }
 0x190   :  { %v206_v30 = vpop.f32.mrf.mxu1 }
 0x191   :  { %v207_v31 = vadd.f32 %v646_v29, %v206_v30 }
 0x192   :  { %v737_v32 = vpop.f32.mrf.mxu1 }
 0x193   :  { %v212_v33 = vmax.f32 %v207_v31, 0.0 }
 0x194   :  { %v209_v34 = vpop.f32.mrf.mxu1 }
 0x195   :  { %v213_v35 = vpack.c.bf16 %v212_v33, %v212_v33 }
 0x196   :  { %v738_v36 = vpop.f32.mrf.mxu1 }
 0x197   :  { %756 = vmatmul.mubr.bf16.vlgmr.msra.gmra.mxu0 %v213_v35 }
 0x198   :  { %768 = vmatpush3.bf16.msra.mxu0 %v945_v3  ;;  %v363_v37 = vpop.f32.mrf.mxu1  ;;  %783 = vmatprep.mubr.msk.bf16.mxu0 %vm880_vm0, %v879_v1 }
 0x199   :  { %769 = vmatprep.subr.bf16.mxu0 %v879_v1  ;;  %v364_v41 = vadd.f32 %v642_v19, %v363_v37 }
 0x19a   :  { %v765_v38 = vpop.f32.mrf.mxu1 }
 0x19b   :  { %v369_v42 = vmax.f32 %v364_v41, 0.0 }
 0x19c   :  { %770 = vmatpush3.bf16.msra.mxu0 %v954_v4  ;;  %v366_v39 = vpop.f32.mrf.mxu1 }
 0x19d   :  { %771 = vmatprep.subr.bf16.mxu0 %v879_v1  ;;  %v370_v43 = vpack.c.bf16 %v369_v42, %v369_v42 }
 0x19e   :  { %v766_v40 = vpop.f32.mrf.mxu1 }
 0x1a0   :  { %772 = vmatpush3.bf16.msra.mxu0 %v966_v6 }
 0x1a1   :  { %773 = vmatprep.subr.bf16.mxu0 %v879_v1 }
 0x1a4   :  { %774 = vmatpush3.bf16.msra.mxu0 %v973_v7 }
 0x1a5   :  { %775 = vmatprep.subr.bf16.mxu0 %v879_v1 }
 0x1a8   :  { %776 = vmatpush3.bf16.msra.mxu0 %v983_v8 }
 0x1a9   :  { %777 = vmatprep.subr.bf16.mxu0 %v879_v1 }
 0x1ac   :  { %778 = vmatpush3.bf16.msra.mxu0 %v990_v9 }
 0x1ad   :  { %779 = vmatprep.subr.bf16.mxu0 %v879_v1 }
 0x1b0   :  { %780 = vmatpush3.bf16.msra.mxu0 %v998_v10 }
 0x1b1   :  { %781 = vmatprep.subr.bf16.mxu0 %v879_v1 }
 0x1b4   :  { %782 = vmatpush3.bf16.msra.mxu0 %v1005_v11 }
 0x1b5   :  { %807 = vmatprep.subr.mxu0 %v879_v1 }
 0x1b7   :  { %784 = vmatmul.mubr.bf16.vlgmr.msra.gmra.mxu0 %v370_v43 }
 0x1b8   :  { %809 = vmatprep.mubr.msk.f32.mxu0 %vm880_vm0, %v879_v1 }
 0x257   :  { %v319_v44 = vpop.f32.mrf.mxu0 }
 0x258   :  { %v320_v57 = vadd.f32 %v655_v55, %v319_v44 }
 0x259   :  { %v757_v45 = vpop.f32.mrf.mxu0 }
 0x25a   :  { %v453_v63 = vmul.f32 %v320_v57, %v320_v57 }
 0x25b   :  { %v322_v46 = vpop.f32.mrf.mxu0 }
 0x25c   :  { %v455_v1 = vsel %vm454_vm2, %v453_v63, 0.0 }
 0x25d   :  { %v758_v47 = vpop.f32.mrf.mxu0 }
 0x277   :  { %v405_v48 = vpop.f32.mrf.mxu0 }
 0x278   :  { %v406_v49 = vadd.f32 %v646_v29, %v405_v48 }
 0x279   :  { %v785_v50 = vpop.f32.mrf.mxu0 }
 0x27a   :  { %v411_v51 = vmax.f32 %v406_v49, 0.0 }
 0x27b   :  { %v408_v52 = vpop.f32.mrf.mxu0 }
 0x27c   :  { %v412_v53 = vpack.c.bf16 %v411_v51, %v411_v51 }
 0x27d   :  { %v786_v54 = vpop.f32.mrf.mxu0 }
 0x27e   :  { %804 = vmatmul.mubr.bf16.vlgmr.msra.gmra.mxu1 %v412_v53 }
 0x33e   :  { %v447_v56 = vpop.f32.mrf.mxu1 }
 0x33f   :  { %v448_v58 = vadd.f32 %v655_v55, %v447_v56 }
 0x340   :  { %v805_v59 = vpop.f32.mrf.mxu1 }
 0x341   :  { %v465_v60 = vmul.f32 %v448_v58, %v448_v58 }
 0x342   :  { %v450_v61 = vpop.f32.mrf.mxu1 }
 0x343   :  { %v466_v62 = vsel %vm454_vm2, %v465_v60, 0.0 }
 0x344   :  { %467 = vadd.xlane.f32.xlu0 %v466_v62  ;;  %v806_v0 = vpop.f32.mrf.mxu1 }
 0x348   :  { %456 = vadd.xlane.f32.xlu0 %v455_v1 }
 0x3cd   :  { %v468_v2 = vpop.xlane.xlu0 %467 }
 0x3ce   :  { %839 = vrsqrt.f32 %v468_v2  ;;  %vm471_vm3 = vcmp.eq.f32.partialorder %v468_v2, inf  ;;  %v474_v6 = vand.u32 2147483648, %v468_v2  ;;  %vm473_vm4 = vcmp.eq.f32.partialorder %v468_v2, 0.0 }
 0x3d1   :  { %v457_v3 = vpop.xlane.xlu0 %456 }
 0x3d2   :  { %841 = vrsqrt.f32 %v457_v3  ;;  %vm460_vm5 = vcmp.eq.f32.partialorder %v457_v3, inf  ;;  %v463_v12 = vand.u32 2147483648, %v457_v3  ;;  %vm462_vm6 = vcmp.eq.f32.partialorder %v457_v3, 0.0 }
 0x3db   :  { %v840_v4 = vpop.eup %839 }
 0x3dc   :  { %v470_v5 = vmul.f32 %v840_v4, %v468_v2 }
 0x3de   :  { %v472_v7 = vsel %vm471_vm3, %v468_v2, %v470_v5 }
 0x3df   :  { %v842_v8 = vpop.eup %841  ;;  %v475_v9 = vsel %vm473_vm4, %v474_v6, %v472_v7 }
 0x3e0   :  { %v479_v10 = vmax.f32 %v475_v9, 1e-06  ;;  %v459_v11 = vmul.f32 %v842_v8, %v457_v3 }
 0x3e2   :  { %843 = vrcp.f32 %v479_v10  ;;  %v461_v13 = vsel %vm460_vm5, %v457_v3, %v459_v11 }
 0x3e3   :  { %v464_v14 = vsel %vm462_vm6, %v463_v12, %v461_v13 }
 0x3e4   :  { %v476_v15 = vmax.f32 %v464_v14, 1e-06 }
 0x3e6   :  { %845 = vrcp.f32 %v476_v15 }
 0x3ef   :  { %v844_v16 = vpop.eup %843 }
 0x3f0   :  { %v481_v17 = vmul.f32 %v844_v16, %v448_v58 }
 0x3f2   :  { %808 = vmatpush3.xpose.msk.msra.mxu0 %vm482_vm7, %v481_v17 }
 0x3f3   :  { %v846_v18 = vpop.eup %845 }
 0x3f4   :  { %v478_v19 = vmul.f32 %v846_v18, %v320_v57 }
 0x3f6   :  { %810 = vmatmul.mubr.msk.f32.vlgmr.msra.gmra.mxu0 %vm482_vm7, %v478_v19  ;;  %v559_v20 = vmul.f32 %v481_v17, %v478_v19 }
 0x3f8   :  { %v560_v21 = vsel %vm454_vm2, %v559_v20, 0.0 }
 0x3f9   :  { %561 = vadd.xlane.f32.xlu1 %v560_v21 }
 0x482   :  { %v562_v22 = vpop.xlane.xlu1 %561 }
 0x483   :  { %v566_v23 = vmul.f32 14.285714, %v562_v22 }
 0x485   :  { %v567_v24 = vmul.f32 1.442695, %v566_v23 }
 0x487   :  { %847 = vpow2.f32 %v567_v24 }
 0x494   :  { %v848_v25 = vpop.eup %847 }
 0x495   :  { %849 = vlog2.f32 %v848_v25 }
 0x4a2   :  { %v850_v26 = vpop.eup %849 }
 0x4a3   :  { %v582_v27 = vmul.f32 0.6931472, %v850_v26 }
 0x4a5   :  { %v584_v28 = vsel %vm583_vm8, %v582_v27, 0.0 }
 0x4a6   :  { %585 = vadd.xlane.f32.xlu0 %v584_v28 }
 0x4b6   :  { %v555_v29 = vpop.f32.mrf.mxu0 }
 0x4b7   :  { %v563_v30 = vmul.f32 14.285714, %v555_v29 }
 0x4b8   :  { %v811_v31 = vpop.f32.mrf.mxu0 }
 0x4b9   :  { %v564_v32 = vmul.f32 1.442695, %v563_v30 }
 0x4bb   :  { %851 = vpow2.f32 %v564_v32 }
 0x4c8   :  { %v852_v33 = vpop.eup %851 }
 0x4c9   :  { %v570_v34 = vsel %vm569_vm9, %v852_v33, 0.0 }
 0x4ca   :  { %571 = vadd.xlane.f32.xlu1 %v570_v34  ;;  %v574_v35 = vrot.slane %v570_v34, 4 }
 0x4cc   :  { %v575_v36 = vadd.f32 %v574_v35, %v570_v34 }
 0x4ce   :  { %v576_v37 = vrot.slane %v575_v36, 2 }
 0x4d0   :  { %v577_v38 = vadd.f32 %v576_v37, %v575_v36 }
 0x4d2   :  { %v578_v39 = vrot.slane %v577_v38, 1 }
 0x4d4   :  { %v579_v40 = vadd.f32 %v578_v39, %v577_v38 }
 0x4d6   :  { %v580_v41 = vadd.f32 3e-06, %v579_v40 }
 0x4d8   :  { %853 = vlog2.f32 %v580_v41 }
 0x4e5   :  { %v854_v42 = vpop.eup %853 }
 0x4e6   :  { %v609_v43 = vmul.f32 0.6931472, %v854_v42 }
 0x4e8   :  { %v611_v44 = vsel %vm610_vm10, %v609_v43, 0.0 }
 0x4e9   :  { %612 = vadd.xlane.f32.xlu0 %v611_v44 }
 0x52f   :  { %v586_v45 = vpop.xlane.xlu0 %585 }
 0x530   :  { %v587_v46 = vrot.slane %v586_v45, 4 }
 0x532   :  { %v588_v47 = vadd.f32 %v587_v46, %v586_v45 }
 0x534   :  { %v589_v48 = vrot.slane %v588_v47, 2 }
 0x536   :  { %v590_v49 = vadd.f32 %v589_v48, %v588_v47 }
 0x538   :  { %v591_v50 = vrot.slane %v590_v49, 1 }
 0x53a   :  { %v592_v51 = vadd.f32 %v591_v50, %v590_v49 }
 0x53c   :  { %812 = vpush %v592_v51 }
 0x553   :  { %v572_v52 = vpop.xlane.xlu1 %571 }
 0x554   :  { %v573_v53 = vadd.f32 3e-06, %v572_v52 }
 0x556   :  { %855 = vlog2.f32 %v573_v53 }
 0x563   :  { %v856_v54 = vpop.eup %855 }
 0x564   :  { %v596_v55 = vmul.f32 0.6931472, %v856_v54 }
 0x566   :  { %v597_v56 = vsel %vm583_vm8, %v596_v55, 0.0 }
 0x567   :  { %598 = vadd.xlane.f32.xlu1 %v597_v56 }
 0x56d   :  { %s813_s7 = spop %812 }
 0x56e   :  { %v594_v7 = vstv %s813_s7 }
 0x56f   :  { %v622_v8 = vmul.f32 2.0, %v594_v7 }
 0x572   :  { %v613_v57 = vpop.xlane.xlu0 %612 }
 0x573   :  { %v614_v58 = vrot.slane %v613_v57, 4 }
 0x575   :  { %v615_v59 = vadd.f32 %v614_v58, %v613_v57 }
 0x577   :  { %v616_v60 = vrot.slane %v615_v59, 2 }
 0x579   :  { %v617_v0 = vadd.f32 %v616_v60, %v615_v59 }
 0x57b   :  { %v618_v3 = vrot.slane %v617_v0, 1 }
 0x57d   :  { %v619_v6 = vadd.f32 %v618_v3, %v617_v0 }
 0x5f0   :  { %v599_v61 = vpop.xlane.xlu1 %598 }
 0x5f1   :  { %v600_v62 = vrot.slane %v599_v61, 4 }
 0x5f3   :  { %v601_v63 = vadd.f32 %v600_v62, %v599_v61 }
 0x5f5   :  { %v602_v1 = vrot.slane %v601_v63, 2 }
 0x5f7   :  { %v603_v2 = vadd.f32 %v602_v1, %v601_v63 }
 0x5f9   :  { %v604_v4 = vrot.slane %v603_v2, 1 }
 0x5fb   :  { %v605_v5 = vadd.f32 %v604_v4, %v603_v2 }
 0x5fd   :  { %814 = vpush %v605_v5 }
 0x5fe   :  { %816 = vpush %v619_v6 }
 0x62e   :  { %s815_s20 = spop %814 }
 0x62f   :  { %v607_v9 = vstv %s815_s20  ;;  %s817_s21 = spop %816 }
 0x630   :  { %v623_v10 = vsub.f32 %v622_v8, %v607_v9  ;;  %v621_v11 = vstv %s817_s21 }
 0x632   :  { %v624_v12 = vsub.f32 %v623_v10, %v621_v11 }
 0x634   :  { %v625_v13 = vmul.f32 -0.25, %v624_v12 }
 0x636   :  { %627 = vst.msk [vmem:[#allocation2] sm:$0x1] %vm626_vm11, %v625_v13 }
 0x637   :  { %868 = shalt.err (!%p865_p4)
}
 0x638   :  { %637 = dma.vmem_to_hbm [thread:$0]  %s635_s23, 16, %s1105_s8, [#allocation3]  }
 0x639   :  { %877 = dma.done.wait [#allocation3], 16  }
 0x63a   :  { %878 = vsyncadd [#allocation3], 4294967280 }
 0x63b   :  { %641 = vsyncpa [#allocation3], 1 }

// kernel: vgg_contrastive_loss.29
= control target key start
LH: loop header
LB: loop body
LE: loop exit
PB: predicated region body
PF: predicated region fallthrough
CT: control target
= control target key end

     0   :  { %s1341_s15 = smov 0   ;;  %s1476_s0 = inlined_call_operand.vmem [shape: bf16[4,32,26], index: 0, kind: input, shape index: {}]   ;;  %s1477_s1 = inlined_call_operand.vmem [shape: bf16[9,32,32], index: 1, kind: input, shape index: {}]   ;;  %s1478_s2 = inlined_call_operand.vmem [shape: f32[32,1], index: 2, kind: input, shape index: {}]   ;;  %s1479_s3 = inlined_call_operand.vmem [shape: f32[1,16], index: 3, kind: input, shape index: {}]   ;;  %s1480_s4 = inlined_call_operand.vmem [shape: bf16[4,32,26], index: 4, kind: output, shape index: {}]  }
   0x1 LB: > { %s1058_s16 = sadd.s32 4294967295, %s1304_s15   ;;  %p1062_p0 = scmp.ge.s32.totalorder %s1304_s15, 1  ;;  %s1304_s15 = sphi %s1341_s15, %s14_s15  }
   0x2   : > { %p162_p1 = scmp.lt.s32.totalorder %s1304_s15, 5 }
   0x4   : > { %p163_p2 = pnand %p1062_p0, %p162_p1 }
   0x5   : > { %p188_p3 = scmp.lt.s32.totalorder (!%p163_p2), %s1058_s16, 3  ;;  %s1306_s25 = smov (!%p163_p2), 127  }
   0x6   : > { %166 = sbr.rel (%p163_p2) target bundleno = 499 (0x1f3), region = 36  ;;  %s1307_s26 = smov (!%p163_p2), 126  }
   0x7   : > { %s1308_s5 = smov (!%p163_p2), 124   ;;  %s1309_s6 = smov (!%p163_p2), 123  }
   0x8   : > { %s1310_s7 = smov (!%p163_p2), 122   ;;  %s1311_s8 = smov (!%p163_p2), 120  }
   0x9   : > { %s1312_s9 = smov (!%p163_p2), 119   ;;  %s1313_s10 = smov (!%p163_p2), 118  }
   0xa   : > { %s1315_s30 = smov (!%p163_p2), 5  }
   0xb   : > { %v1280_v0 = vld [vmem:[%s1477_s1 + $0x10] sm:$0xff]   ;;  %vm238_vm0 = vcmask 261120   ;;  %s1482_s16 = smov (!%p188_p3, %s1058_s16), 3  ;;  %v1281_v1 = vld [vmem:[%s1477_s1] sm:$0xff]   ;;  %v1283_v4 = vld [vmem:[%s1477_s1 + $0x8] sm:$0xff]   ;;  %v1314_v6 = vmov 0  }
   0xc   : > { %1190 = vmatprep.mubr.msk.bf16.mxu0 %vm238_vm0, %v1280_v0  ;;  %s1144_s21 = sshll.u32 %s1482_s16, 4  ;;  %1198 = vmatprep.mubr.msk.bf16.mxu1 %vm238_vm0, %v1281_v1  ;;  %v1286_v5 = vld [vmem:[%s1477_s1 + $0x30] sm:$0xff]   ;;  %v922_v7 = vld [vmem:[%s1478_s2 + $0x8] sm:$0xff]  ;;  %v921_v8 = vld [vmem:[%s1478_s2] sm:$0xff]  ;;  %vm964_vm1 = vcmask 35840   ;;  %vm969_vm2 = vcmask 208040  }
   0xd   : > { %s192_s24 = scalar_lea.vmem %s1476_s0, %s1144_s21  ;;  %1277 = vset.pattern.permute.xlu1 %v1314_v6  ;;  %1276 = vset.pattern.permute.xlu0 %v1314_v6  ;;  %v923_v9 = vld [vmem:[%s1478_s2 + $0x10] sm:$0xff]  ;;  %v924_v10 = vld [vmem:[%s1478_s2 + $0x18] sm:$0xff]  ;;  %v1284_v16 = vld [vmem:[%s1477_s1 + $0x20] sm:$0xff]   ;;  %s1448_s29 = scalar_lea.vmem %s1480_s4, %s1144_s21  ;;  %vm998_vm3 = vcmask 166952  }
   0xe   : > { %v1278_v2 = vld [vmem:[%s192_s24 + $0x8] sm:$0xff]   ;;  %v1279_v3 = vld [vmem:[%s192_s24] sm:$0xff]   ;;  %v1282_v15 = vld [vmem:[%s1477_s1 + $0x18] sm:$0xff]   ;;  %965 = vst.msk [vmem:[%s1448_s29] sm:$0xf] %vm964_vm1, %v1314_v6 }
   0xf   : > { %234 = vrot.lane.b32.xlu0 %v1278_v2, %s1306_s25  ;;  %378 = vrot.lane.b32.xlu1 %v1278_v2, %s1307_s26  ;;  %v1285_v21 = vld [vmem:[%s1477_s1 + $0x28] sm:$0xff]   ;;  %v1287_v22 = vld [vmem:[%s1477_s1 + $0x38] sm:$0xff]  }
  0x10   : > { %1194 = vmatprep.subr.bf16.mxu1 %v1278_v2  ;;  %v1288_v25 = vld [vmem:[%s1477_s1 + $0x40] sm:$0xff]   ;;  %v1290_v26 = vld [vmem:[%s1477_s1 + $0x50] sm:$0xff]   ;;  %v1289_v29 = vld [vmem:[%s1477_s1 + $0x48] sm:$0xff]   ;;  %966 = vst.msk [vmem:[%s1448_s29 + $0x4] sm:$0xf] %vm964_vm1, %v1314_v6 }
  0x11   : > { %1195 = vmatpush3.bf16.msra.mxu1 %v1278_v2  ;;  %v1291_v30 = vld [vmem:[%s1477_s1 + $0x58] sm:$0xff]   ;;  %v1292_v32 = vld [vmem:[%s1477_s1 + $0x60] sm:$0xff]   ;;  %v1294_v33 = vld [vmem:[%s1477_s1 + $0x70] sm:$0xff]   ;;  %967 = vst.msk [vmem:[%s1448_s29 + $0x8] sm:$0xf] %vm964_vm1, %v1314_v6 }
  0x12   : > { %1196 = vmatprep.subr.bf16.mxu1 %v1279_v3  ;;  %v1293_v36 = vld [vmem:[%s1477_s1 + $0x68] sm:$0xff]   ;;  %v1295_v37 = vld [vmem:[%s1477_s1 + $0x78] sm:$0xff]   ;;  %v1296_v38 = vld [vmem:[%s1477_s1 + $0x80] sm:$0xff]   ;;  %968 = vst.msk [vmem:[%s1448_s29 + $0xc] sm:$0xf] %vm964_vm1, %v1314_v6 }
  0x13   : > { %232 = vrot.lane.b32.xlu0 %v1279_v3, %s1306_s25  ;;  %376 = vrot.lane.b32.xlu1 %v1279_v3, %s1307_s26  ;;  %v1297_v40 = vld [vmem:[%s1477_s1 + $0x88] sm:$0xff]   ;;  %970 = vst.msk [vmem:[%s1448_s29] sm:$0xf] %vm969_vm2, %v1314_v6 }
  0x14   : > { %971 = vst.msk [vmem:[%s1448_s29 + $0x4] sm:$0xf] %vm969_vm2, %v1314_v6  ;;  %972 = vst.msk [vmem:[%s1448_s29 + $0x8] sm:$0xf] %vm969_vm2, %v1314_v6 }
  0x15   : > { %1197 = vmatpush3.bf16.msra.mxu1 %v1279_v3  ;;  %973 = vst.msk [vmem:[%s1448_s29 + $0xc] sm:$0xf] %vm969_vm2, %v1314_v6 }
  0x17   : > { %458 = vrot.lane.b32.xlu0 %v1278_v2, %s1308_s5  ;;  %538 = vrot.lane.b32.xlu1 %v1278_v2, %s1309_s6 }
  0x18   : > { %1199 = vmatmul.mubr.msk.bf16.vlgmr.msra.gmra.mxu1 %vm238_vm0, %v1283_v4 }
  0x19   : > { %1214 = vmatprep.mubr.msk.bf16.mxu1 %vm238_vm0, %v1286_v5 }
  0x1b   : > { %456 = vrot.lane.b32.xlu0 %v1279_v3, %s1308_s5  ;;  %536 = vrot.lane.b32.xlu1 %v1279_v3, %s1309_s6 }
  0x1f   : > { %618 = vrot.lane.b32.xlu0 %v1278_v2, %s1310_s7  ;;  %698 = vrot.lane.b32.xlu1 %v1278_v2, %s1311_s8 }
  0x23   : > { %616 = vrot.lane.b32.xlu0 %v1279_v3, %s1310_s7  ;;  %696 = vrot.lane.b32.xlu1 %v1279_v3, %s1311_s8 }
  0x27   : > { %778 = vrot.lane.b32.xlu0 %v1278_v2, %s1312_s9  ;;  %858 = vrot.lane.b32.xlu1 %v1278_v2, %s1313_s10 }
  0x2b   : > { %776 = vrot.lane.b32.xlu0 %v1279_v3, %s1312_s9  ;;  %856 = vrot.lane.b32.xlu1 %v1279_v3, %s1313_s10 }
  0x2f   : > { %932 = vperm.xlu1 %1277, %v922_v7   ;;  %927 = vperm.xlu0 %1276, %v921_v8  }
  0x33   : > { %937 = vperm.xlu1 %1277, %v923_v9   ;;  %942 = vperm.xlu0 %1276, %v924_v10  }
  0x81   : > { %v235_v11 = vpop.permute.xlu0 %234  ;;  %v379_v12 = vpop.permute.xlu1 %378 }
  0x82   : > { %1186 = vmatprep.subr.bf16.mxu0 %v235_v11 }
  0x83   : > { %1187 = vmatpush3.bf16.msra.mxu0 %v235_v11 }
  0x85   : > { %v233_v13 = vpop.permute.xlu0 %232  ;;  %v377_v14 = vpop.permute.xlu1 %376 }
  0x86   : > { %1188 = vmatprep.subr.bf16.mxu0 %v233_v13 }
  0x87   : > { %1189 = vmatpush3.bf16.msra.mxu0 %v233_v13 }
  0x88   : > { %1202 = vmatprep.subr.bf16.mxu0 %v379_v12 }
  0x89   : > { %v459_v17 = vpop.permute.xlu0 %458  ;;  %v539_v18 = vpop.permute.xlu1 %538 }
  0x8a   : > { %1191 = vmatmul.mubr.msk.bf16.vlgmr.msra.gmra.mxu0 %vm238_vm0, %v1282_v15  ;;  %1210 = vmatprep.subr.bf16.mxu1 %v459_v17 }
  0x8b   : > { %1203 = vmatpush3.bf16.msra.mxu0 %v379_v12  ;;  %1211 = vmatpush3.bf16.msra.mxu1 %v459_v17 }
  0x8c   : > { %1204 = vmatprep.subr.bf16.mxu0 %v377_v14  ;;  %1206 = vmatprep.mubr.msk.bf16.mxu0 %vm238_vm0, %v1284_v16 }
  0x8d   : > { %v457_v19 = vpop.permute.xlu0 %456  ;;  %v537_v20 = vpop.permute.xlu1 %536 }
  0x8e   : > { %1212 = vmatprep.subr.bf16.mxu1 %v457_v19 }
  0x8f   : > { %1205 = vmatpush3.bf16.msra.mxu0 %v377_v14  ;;  %1213 = vmatpush3.bf16.msra.mxu1 %v457_v19 }
  0x90   : > { %1218 = vmatprep.subr.bf16.mxu0 %v539_v18 }
  0x91   : > { %v619_v23 = vpop.permute.xlu0 %618  ;;  %v699_v24 = vpop.permute.xlu1 %698 }
  0x92   : > { %1207 = vmatmul.mubr.msk.bf16.vlgmr.msra.gmra.mxu0 %vm238_vm0, %v1285_v21  ;;  %1215 = vmatmul.mubr.msk.bf16.vlgmr.msra.gmra.mxu1 %vm238_vm0, %v1287_v22 }
  0x93   : > { %1219 = vmatpush3.bf16.msra.mxu0 %v539_v18  ;;  %1226 = vmatprep.subr.bf16.mxu1 %v619_v23 }
  0x94   : > { %1227 = vmatpush3.bf16.msra.mxu1 %v619_v23  ;;  %1220 = vmatprep.subr.bf16.mxu0 %v537_v20 }
  0x95   : > { %v617_v27 = vpop.permute.xlu0 %616  ;;  %1222 = vmatprep.mubr.msk.bf16.mxu0 %vm238_vm0, %v1288_v25  ;;  %1230 = vmatprep.mubr.msk.bf16.mxu1 %vm238_vm0, %v1290_v26  ;;  %v697_v28 = vpop.permute.xlu1 %696 }
  0x96   : > { %1228 = vmatprep.subr.bf16.mxu1 %v617_v27 }
  0x97   : > { %1221 = vmatpush3.bf16.msra.mxu0 %v537_v20 }
  0x98   : > { %1229 = vmatpush3.bf16.msra.mxu1 %v617_v27  ;;  %1234 = vmatprep.subr.bf16.mxu0 %v699_v24 }
  0x99   : > { %v779_v31 = vpop.permute.xlu0 %778  ;;  %v859_v34 = vpop.permute.xlu1 %858 }
  0x9a   : > { %1223 = vmatmul.mubr.msk.bf16.vlgmr.msra.gmra.mxu0 %vm238_vm0, %v1289_v29  ;;  %1242 = vmatprep.subr.bf16.mxu1 %v779_v31 }
  0x9b   : > { %1231 = vmatmul.mubr.msk.bf16.vlgmr.msra.gmra.mxu1 %vm238_vm0, %v1291_v30  ;;  %1235 = vmatpush3.bf16.msra.mxu0 %v699_v24 }
  0x9c   : > { %1243 = vmatpush3.bf16.msra.mxu1 %v779_v31  ;;  %1236 = vmatprep.subr.bf16.mxu0 %v697_v28 }
  0x9d   : > { %v777_v35 = vpop.permute.xlu0 %776  ;;  %1238 = vmatprep.mubr.msk.bf16.mxu0 %vm238_vm0, %v1292_v32  ;;  %1246 = vmatprep.mubr.msk.bf16.mxu1 %vm238_vm0, %v1294_v33  ;;  %v857_v39 = vpop.permute.xlu1 %856 }
  0x9e   : > { %1244 = vmatprep.subr.bf16.mxu1 %v777_v35 }
  0x9f   : > { %1237 = vmatpush3.bf16.msra.mxu0 %v697_v28 }
  0xa0   : > { %1245 = vmatpush3.bf16.msra.mxu1 %v777_v35  ;;  %1250 = vmatprep.subr.bf16.mxu0 %v859_v34 }
  0xa2   : > { %1239 = vmatmul.mubr.msk.bf16.vlgmr.msra.gmra.mxu0 %vm238_vm0, %v1293_v36 }
  0xa3   : > { %1247 = vmatmul.mubr.msk.bf16.vlgmr.msra.gmra.mxu1 %vm238_vm0, %v1295_v37  ;;  %1251 = vmatpush3.bf16.msra.mxu0 %v859_v34 }
  0xa4   : > { %1252 = vmatprep.subr.bf16.mxu0 %v857_v39  ;;  %1254 = vmatprep.mubr.msk.bf16.mxu0 %vm238_vm0, %v1296_v38 }
  0xa7   : > { %1253 = vmatpush3.bf16.msra.mxu0 %v857_v39 }
  0xaa   : > { %1255 = vmatmul.mubr.msk.bf16.vlgmr.msra.gmra.mxu0 %vm238_vm0, %v1297_v40  ;;  %v933_v19 = vpop.permute.xlu1 %932  ;;  %v928_v28 = vpop.permute.xlu0 %927 }
  0xae   : > { %v938_v33 = vpop.permute.xlu1 %937 }
  0xd8   : > { %v1200_v41 = vpop.f32.mrf.mxu1 }
  0xda   : > { %v346_v42 = vpop.f32.mrf.mxu1 }
  0xdc   : > { %v1201_v44 = vpop.f32.mrf.mxu1 }
  0xde   : > { %v349_v47 = vpop.f32.mrf.mxu1 }
 0x14a   : > { %v1192_v43 = vpop.f32.mrf.mxu0 }
 0x14b   : > { %v355_v55 = vadd.f32 %v1200_v41, %v1192_v43  ;;  %v943_v43 = vpop.permute.xlu0 %942 }
 0x14c   : > { %v279_v45 = vpop.f32.mrf.mxu0 }
 0x14d   : > { %v347_v58 = vadd.f32 %v346_v42, %v279_v45 }
 0x14e   : > { %v1193_v46 = vpop.f32.mrf.mxu0 }
 0x14f   : > { %v358_v61 = vadd.f32 %v1201_v44, %v1193_v46 }
 0x150   : > { %v282_v48 = vpop.f32.mrf.mxu0 }
 0x151   : > { %v350_v1 = vadd.f32 %v349_v47, %v282_v48 }
 0x152   : > { %v1208_v49 = vpop.f32.mrf.mxu0  ;;  %v1216_v50 = vpop.f32.mrf.mxu1 }
 0x153   : > { %v439_v59 = vadd.f32 %v1208_v49, %v355_v55 }
 0x154   : > { %v422_v51 = vpop.f32.mrf.mxu0  ;;  %v502_v52 = vpop.f32.mrf.mxu1 }
 0x155   : > { %v437_v62 = vadd.f32 %v422_v51, %v347_v58  ;;  %v519_v2 = vadd.f32 %v1216_v50, %v439_v59 }
 0x156   : > { %v1209_v53 = vpop.f32.mrf.mxu0  ;;  %v1217_v54 = vpop.f32.mrf.mxu1 }
 0x157   : > { %v440_v3 = vadd.f32 %v1209_v53, %v358_v61  ;;  %v517_v6 = vadd.f32 %v502_v52, %v437_v62 }
 0x158   : > { %v425_v56 = vpop.f32.mrf.mxu0  ;;  %v505_v57 = vpop.f32.mrf.mxu1 }
 0x159   : > { %v438_v7 = vadd.f32 %v425_v56, %v350_v1  ;;  %v520_v11 = vadd.f32 %v1217_v54, %v440_v3  ;;  %v1137_v54 = vld [vmem:[%s1479_s3] ss:$0 sm:$0xff] }
 0x15a   : > { %v1224_v60 = vpop.f32.mrf.mxu0 }
 0x15b   : > { %v1232_v63 = vpop.f32.mrf.mxu1  ;;  %v599_v8 = vadd.f32 %v1224_v60, %v519_v2  ;;  %v518_v15 = vadd.f32 %v505_v57, %v438_v7 }
 0x15c   : > { %v582_v0 = vpop.f32.mrf.mxu0 }
 0x15d   : > { %v662_v4 = vpop.f32.mrf.mxu1  ;;  %v597_v12 = vadd.f32 %v582_v0, %v517_v6  ;;  %v679_v16 = vadd.f32 %v1232_v63, %v599_v8 }
 0x15e   : > { %v1225_v5 = vpop.f32.mrf.mxu0 }
 0x15f   : > { %v1233_v9 = vpop.f32.mrf.mxu1  ;;  %v600_v17 = vadd.f32 %v1225_v5, %v520_v11  ;;  %v677_v21 = vadd.f32 %v662_v4, %v597_v12 }
 0x160   : > { %v585_v10 = vpop.f32.mrf.mxu0 }
 0x161   : > { %v665_v13 = vpop.f32.mrf.mxu1  ;;  %v598_v22 = vadd.f32 %v585_v10, %v518_v15  ;;  %v680_v26 = vadd.f32 %v1233_v9, %v600_v17 }
 0x162   : > { %v1240_v14 = vpop.f32.mrf.mxu0 }
 0x163   : > { %v1248_v18 = vpop.f32.mrf.mxu1  ;;  %v759_v23 = vadd.f32 %v1240_v14, %v679_v16  ;;  %v678_v30 = vadd.f32 %v665_v13, %v598_v22 }
 0x164   : > { %v742_v20 = vpop.f32.mrf.mxu0 }
 0x165   : > { %v822_v24 = vpop.f32.mrf.mxu1  ;;  %v757_v27 = vadd.f32 %v742_v20, %v677_v21  ;;  %v839_v31 = vadd.f32 %v1248_v18, %v759_v23 }
 0x166   : > { %v1241_v25 = vpop.f32.mrf.mxu0 }
 0x167   : > { %v760_v32 = vadd.f32 %v1241_v25, %v680_v26  ;;  %v1249_v34 = vpop.f32.mrf.mxu1  ;;  %v837_v36 = vadd.f32 %v822_v24, %v757_v27 }
 0x168   : > { %v745_v29 = vpop.f32.mrf.mxu0 }
 0x169   : > { %v758_v37 = vadd.f32 %v745_v29, %v678_v30  ;;  %v840_v40 = vadd.f32 %v1249_v34, %v760_v32  ;;  %v825_v44 = vpop.f32.mrf.mxu1 }
 0x16a   : > { %v1256_v35 = vpop.f32.mrf.mxu0 }
 0x16b   : > { %v919_v38 = vadd.f32 %v1256_v35, %v839_v31  ;;  %v838_v46 = vadd.f32 %v825_v44, %v758_v37 }
 0x16c   : > { %v902_v39 = vpop.f32.mrf.mxu0 }
 0x16d   : > { %v947_v41 = vadd.f32 %v938_v33, %v919_v38  ;;  %v917_v42 = vadd.f32 %v902_v39, %v837_v36 }
 0x16e   : > { %v1257_v45 = vpop.f32.mrf.mxu0 }
 0x16f   : > { %v945_v47 = vadd.f32 %v928_v28, %v917_v42  ;;  %v920_v48 = vadd.f32 %v1257_v45, %v840_v40  ;;  %v951_v50 = vmax.f32 %v947_v41, 0.0 }
 0x170   : > { %v905_v49 = vpop.f32.mrf.mxu0 }
 0x171   : > { %v949_v51 = vmax.f32 %v945_v47, 0.0  ;;  %v918_v52 = vadd.f32 %v905_v49, %v838_v46  ;;  %v948_v53 = vadd.f32 %v943_v43, %v920_v48  ;;  %v962_v57 = vmul.f32 %v1137_v54, %v951_v50 }
 0x173   : > { %v960_v55 = vmul.f32 %v1137_v54, %v949_v51  ;;  %v946_v56 = vadd.f32 %v933_v19, %v918_v52  ;;  %v952_v60 = vmax.f32 %v948_v53, 0.0  ;;  %v1148_v62 = vpack.c.bf16 %v962_v57, %v962_v57 }
 0x175   : > { %v1146_v58 = vpack.c.bf16 %v960_v55, %v960_v55  ;;  %v950_v59 = vmax.f32 %v946_v56, 0.0  ;;  %v963_v63 = vmul.f32 %v1137_v54, %v952_v60 }
 0x177   : > { %986 = vrot.lane.b32.xlu1 %v1146_v58, %s1315_s30  ;;  %v961_v61 = vmul.f32 %v1137_v54, %v950_v59  ;;  %v1149_v1 = vpack.c.bf16 %v963_v63, %v963_v63 }
 0x179   : > { %v1147_v0 = vpack.c.bf16 %v961_v61, %v961_v61 }
 0x17b   : > { %988 = vrot.lane.b32.xlu0 %v1147_v0, %s1315_s30  ;;  %990 = vrot.lane.b32.xlu1 %v1148_v62, %s1315_s30 }
 0x17f   : > { %992 = vrot.lane.b32.xlu0 %v1149_v1, %s1315_s30 }
 0x1e9   : > { %v987_v2 = vpop.permute.xlu1 %986 }
 0x1ea   : > { %999 = vst.msk [vmem:[%s1448_s29] sm:$0xf] %vm998_vm3, %v987_v2 }
 0x1ed   : > { %v989_v3 = vpop.permute.xlu0 %988  ;;  %v991_v4 = vpop.permute.xlu1 %990 }
 0x1ee   : > { %1000 = vst.msk [vmem:[%s1448_s29 + $0x4] sm:$0xf] %vm998_vm3, %v989_v3  ;;  %1001 = vst.msk [vmem:[%s1448_s29 + $0x8] sm:$0xf] %vm998_vm3, %v991_v4 }
 0x1f1   : > { %v993_v5 = vpop.permute.xlu0 %992 }
 0x1f2   : > { %1002 = vst.msk [vmem:[%s1448_s29 + $0xc] sm:$0xf] %vm998_vm3, %v993_v5 }
 0x1f3 PF: > { %s14_s15 = sadd.s32 1, %s1304_s15  }
 0x1f4   : > { %p11_p4 = scmp.ge.s32.totalorder %s14_s15, 6  }
 0x1f6   :  { %13 = sbr.rel (!%p11_p4) target bundleno = 1 (0x1), region = 74 }

</bundles_post_ra>
